<compile_context>
chip_gen: v5e
topology: v5e:2x2
jax: 0.10.0
libtpu: 0.0.40
codegen_flags: <defaults>
</compile_context>

<pallas_src>
import math

import jax
import jax.numpy as jnp
import numpy as np
from jax.experimental import pallas as pl
from jax.experimental.pallas import tpu as pltpu


def _round_up(n, m):
    return ((n + m - 1) // m) * m


# ---------------------------------------------------------------------------
# Pallas kernel factory: fused 2-layer LSTM recurrence + output projection.
# Everything (small operands) lives in VMEM; the sequence loop runs in-kernel,
# fully unrolled. All refs are 2D with lane-aligned last dims.
# ---------------------------------------------------------------------------
def _make_lstm2_kernel(S, B, Hp):
    G = 4 * Hp

    def kernel(x_ref, wih0_ref, whh0_ref, b0_ref, w1_ref, b1_ref,
               wout_ref, bout_ref, y_ref, xp0_scr, h1_scr):
        whh0 = whh0_ref[...]                      # (Hp, 4Hp)
        w1 = w1_ref[...]                          # (2Hp, 4Hp) = [Wih1; Whh1]
        # Hoist the bias broadcast out of the loop (JAX does not CSE broadcast_in_dim).
        b1 = jnp.broadcast_to(b1_ref[...], (B, G))

        # Hoisted layer-0 input projection for ALL timesteps: one (S*B, I) @ (I, 4Hp) matmul.
        xp0_scr[...] = (
            jnp.dot(x_ref[...], wih0_ref[...], preferred_element_type=jnp.float32)
            + b0_ref[...])

        def split_act(gates):
            # PyTorch gate order (i, f, g, o); slices land on 128-lane tile boundaries.
            i = jax.nn.sigmoid(gates[:, 0 * Hp:1 * Hp])
            f = jax.nn.sigmoid(gates[:, 1 * Hp:2 * Hp])
            g = jnp.tanh(gates[:, 2 * Hp:3 * Hp])
            o = jax.nn.sigmoid(gates[:, 3 * Hp:4 * Hp])
            return i, f, g, o

        zeros = jnp.zeros((B, Hp), jnp.float32)
        h0, c0, h1, c1 = zeros, zeros, zeros, zeros

        for t in range(S):  # fully unrolled; S is a compile-time constant
            # ----- layer 0: only the recurrent matmul is on the serial path -----
            g0 = xp0_scr[t * B:(t + 1) * B, :] + jnp.dot(
                h0, whh0, preferred_element_type=jnp.float32)
            i0, f0, gg0, o0 = split_act(g0)
            c0 = f0 * c0 + i0 * gg0
            h0 = o0 * jnp.tanh(c0)

            # ----- layer 1: fused input+recurrent matmul on concat([h0, h1]) -----
            z = jnp.concatenate([h0, h1], axis=1)                  # (B, 2Hp)
            g1 = jnp.dot(z, w1, preferred_element_type=jnp.float32) + b1
            i1, f1, gg1, o1 = split_act(g1)
            c1 = f1 * c1 + i1 * gg1
            h1 = o1 * jnp.tanh(c1)

            h1_scr[t * B:(t + 1) * B, :] = h1

        # Hoisted output head: one (S*B, Hp) @ (Hp, Op) matmul + one lane-dense store.
        y = (jnp.dot(h1_scr[...], wout_ref[...], preferred_element_type=jnp.float32)
             + bout_ref[...])
        y_ref[...] = y.astype(y_ref.dtype)

    return kernel


# ---------------------------------------------------------------------------
# Plain-JAX glue: rot6d -> rotmat (only applied when the head width is 12,
# matching the PyTorch forward; not taken for the default outp_size=[18]).
# ---------------------------------------------------------------------------
def rot6_to_rotmat_jax(x):
    batch, seql = x.shape[:2]
    x = x.reshape(-1, 3, 4)

    def _normalize(v):
        n = jnp.linalg.norm(v, axis=1, keepdims=True)
        return v / jnp.maximum(n, 1e-12)

    def conversion(x_):
        a1 = x_[:, :, 0]
        a2 = x_[:, :, 1]
        b1 = _normalize(a1)
        b2 = _normalize(a2 - jnp.einsum('bi,bi->b', b1, a2)[:, None] * b1)
        b3 = jnp.cross(b1, b2)
        r = jnp.stack((b1, b2, b3), axis=-1)
        return r.reshape(batch, seql, 3, 3)

    x1 = conversion(x[:, :, :2])
    x2 = conversion(x[:, :, 2:])
    return jnp.concatenate((x1, x2), axis=-1)


# ---------------------------------------------------------------------------
# Parameter construction (deterministic, PyTorch-default uniform init shapes).
# ---------------------------------------------------------------------------
def init_params(key, inp_size=42, hidden=80, out_size=18):
    bound = 1.0 / math.sqrt(hidden)
    ks = jax.random.split(key, 10)

    def u(k, shape):
        return jax.random.uniform(k, shape, jnp.float32, -bound, bound)

    return {
        # layer 0
        'w_ih_l0': u(ks[0], (4 * hidden, inp_size)),
        'w_hh_l0': u(ks[1], (4 * hidden, hidden)),
        'b_ih_l0': u(ks[2], (4 * hidden,)),
        'b_hh_l0': u(ks[3], (4 * hidden,)),
        # layer 1
        'w_ih_l1': u(ks[4], (4 * hidden, hidden)),
        'w_hh_l1': u(ks[5], (4 * hidden, hidden)),
        'b_ih_l1': u(ks[6], (4 * hidden,)),
        'b_hh_l1': u(ks[7], (4 * hidden,)),
        # linear head
        'w_out': u(ks[8], (out_size, hidden)),
        'b_out': u(ks[9], (out_size,)),
    }


# ---------------------------------------------------------------------------
# Weight packing: gate-stacked, zero-padded to lane-aligned widths.
# ---------------------------------------------------------------------------
def _pack_w_gates(w, H, Hp, din_pad=None):
    """PyTorch (4H, Din) -> (Din[_padded], 4*Hp), gate-major columns, zero padded."""
    din = w.shape[1]
    w4 = jnp.transpose(w.reshape(4, H, din), (2, 0, 1))     # (Din, 4, H)
    w4 = jnp.pad(w4, ((0, 0), (0, 0), (0, Hp - H)))         # (Din, 4, Hp)
    w2 = w4.reshape(din, 4 * Hp)
    if din_pad is not None and din_pad > din:
        w2 = jnp.pad(w2, ((0, din_pad - din), (0, 0)))
    return w2


def _pack_bias(b_ih, b_hh, H, Hp):
    b = (b_ih + b_hh).reshape(4, H)
    b = jnp.pad(b, ((0, 0), (0, Hp - H)))
    return b.reshape(1, 4 * Hp)


# ---------------------------------------------------------------------------
# Forward wrapper (equivalent to CustomLSTM.forward, batch_first input).
# ---------------------------------------------------------------------------
def custom_lstm_forward(x, params, hidden=80):
    B, S, I = x.shape
    H = hidden
    O = params['w_out'].shape[0]
    Hp = _round_up(H, 128)
    Op = _round_up(O, 128)
    f32 = jnp.float32

    wih0 = _pack_w_gates(params['w_ih_l0'].astype(f32), H, Hp)                # (I, 4Hp)
    whh0 = _pack_w_gates(params['w_hh_l0'].astype(f32), H, Hp, din_pad=Hp)    # (Hp, 4Hp)
    b0 = _pack_bias(params['b_ih_l0'], params['b_hh_l0'], H, Hp).astype(f32)  # (1, 4Hp)
    wih1 = _pack_w_gates(params['w_ih_l1'].astype(f32), H, Hp, din_pad=Hp)    # (Hp, 4Hp)
    whh1 = _pack_w_gates(params['w_hh_l1'].astype(f32), H, Hp, din_pad=Hp)    # (Hp, 4Hp)
    w1 = jnp.concatenate([wih1, whh1], axis=0)                                # (2Hp, 4Hp)
    b1 = _pack_bias(params['b_ih_l1'], params['b_hh_l1'], H, Hp).astype(f32)  # (1, 4Hp)
    wout = jnp.pad(params['w_out'].astype(f32).T, ((0, Hp - H), (0, Op - O))) # (Hp, Op)
    bout = jnp.pad(params['b_out'].astype(f32).reshape(1, O),
                   ((0, 0), (0, Op - O)))                                     # (1, Op)

    # Time-major flatten so the hoisted projection / head see S*B sublane rows:
    # row index = t * B + b.
    x2d = jnp.transpose(x.astype(f32), (1, 0, 2)).reshape(S * B, I)

    vmem = pl.BlockSpec(memory_space=pltpu.MemorySpace.VMEM)
    y2d = pl.pallas_call(
        _make_lstm2_kernel(S, B, Hp),
        out_shape=jax.ShapeDtypeStruct((S * B, Op), jnp.float32),
        in_specs=[vmem] * 8,
        out_specs=vmem,
        scratch_shapes=[
            pltpu.VMEM((S * B, 4 * Hp), jnp.float32),   # hoisted layer-0 projection
            pltpu.VMEM((S * B, Hp), jnp.float32),       # per-step h1 for the hoisted head
        ],
    )(x2d, wih0, whh0, b0, w1, b1, wout, bout)

    y = jnp.transpose(y2d.reshape(S, B, Op), (1, 0, 2))[:, :, :O]   # (B, S, O)
    if y.shape[-1] == 12:
        y = rot6_to_rotmat_jax(y)
    return y


# ---------------------------------------------------------------------------
# Pure-JAX reference (PyTorch LSTM semantics) for a correctness check.
# ---------------------------------------------------------------------------
def ref_forward(x, params, hidden=80):
    B, S, _ = x.shape
    H = hidden

    def run_layer(inp, w_ih, w_hh, b_ih, b_hh):
        h = jnp.zeros((B, H), jnp.float32)
        c = jnp.zeros((B, H), jnp.float32)
        outs = []
        for t in range(S):
            gates = inp[:, t, :] @ w_ih.T + b_ih + h @ w_hh.T + b_hh
            i = jax.nn.sigmoid(gates[:, 0 * H:1 * H])
            f = jax.nn.sigmoid(gates[:, 1 * H:2 * H])
            g = jnp.tanh(gates[:, 2 * H:3 * H])
            o = jax.nn.sigmoid(gates[:, 3 * H:4 * H])
            c = f * c + i * g
            h = o * jnp.tanh(c)
            outs.append(h)
        return jnp.stack(outs, axis=1)

    out = run_layer(x, params['w_ih_l0'], params['w_hh_l0'],
                    params['b_ih_l0'], params['b_hh_l0'])
    out = run_layer(out, params['w_ih_l1'], params['w_hh_l1'],
                    params['b_ih_l1'], params['b_hh_l1'])
    y = out @ params['w_out'].T + params['b_out']
    if y.shape[-1] == 12:
        y = rot6_to_rotmat_jax(y)
    return y


if __name__ == "__main__":
    key = jax.random.PRNGKey(0)
    k_param, k_x = jax.random.split(key)

    B, S, I, H, O = 2, 8, 42, 80, 18      # CustomLSTM defaults: 42 -> [80, 80] -> 18
    params = init_params(k_param, inp_size=I, hidden=H, out_size=O)
    x = jax.random.normal(k_x, (B, S, I), dtype=jnp.float32)

    y = custom_lstm_forward(x, params, hidden=H)
    y = jax.block_until_ready(y)

    y_ref = jax.block_until_ready(ref_forward(x, params, hidden=H))
    assert y.shape == (B, S, O), y.shape
    np.testing.assert_allclose(np.asarray(y), np.asarray(y_ref), rtol=1e-4, atol=1e-4)

    print("KERNEL_OK")
</pallas_src>

<mosaic_0001>
module attributes {stable_mosaic.version = 11 : i64} {
  func.func @kernel(%arg0: memref<16x42xf32, #tpu.memory_space<vmem>>, %arg1: memref<42x512xf32, #tpu.memory_space<vmem>>, %arg2: memref<128x512xf32, #tpu.memory_space<vmem>>, %arg3: memref<1x512xf32, #tpu.memory_space<vmem>>, %arg4: memref<256x512xf32, #tpu.memory_space<vmem>>, %arg5: memref<1x512xf32, #tpu.memory_space<vmem>>, %arg6: memref<128x128xf32, #tpu.memory_space<vmem>>, %arg7: memref<1x128xf32, #tpu.memory_space<vmem>>, %arg8: memref<16x128xf32, #tpu.memory_space<vmem>>, %arg9: memref<16x512xf32, #tpu.memory_space<vmem>>, %arg10: memref<16x128xf32, #tpu.memory_space<vmem>>) attributes {dimension_semantics = [], scalar_prefetch = 0 : i64, scratch_operands = 2 : i64, tpu.core_type = #tpu.core_type<tc>} {
    %c0 = arith.constant 0 : index
    %c0_0 = arith.constant 0 : index
    %0 = vector.load %arg2[%c0, %c0_0] : memref<128x512xf32, #tpu.memory_space<vmem>>, vector<128x512xf32>
    %c0_1 = arith.constant 0 : index
    %c0_2 = arith.constant 0 : index
    %1 = vector.load %arg4[%c0_1, %c0_2] : memref<256x512xf32, #tpu.memory_space<vmem>>, vector<256x512xf32>
    %c0_3 = arith.constant 0 : index
    %c0_4 = arith.constant 0 : index
    %2 = vector.load %arg5[%c0_3, %c0_4] : memref<1x512xf32, #tpu.memory_space<vmem>>, vector<1x512xf32>
    %3 = vector.shape_cast %2 : vector<1x512xf32> to vector<1x512xf32>
    %4 = vector.broadcast %3 : vector<1x512xf32> to vector<2x512xf32>
    %c0_5 = arith.constant 0 : index
    %c0_6 = arith.constant 0 : index
    %5 = vector.load %arg0[%c0_5, %c0_6] : memref<16x42xf32, #tpu.memory_space<vmem>>, vector<16x42xf32>
    %c0_7 = arith.constant 0 : index
    %c0_8 = arith.constant 0 : index
    %6 = vector.load %arg1[%c0_7, %c0_8] : memref<42x512xf32, #tpu.memory_space<vmem>>, vector<42x512xf32>
    %cst = arith.constant dense<0.000000e+00> : vector<16x512xf32>
    %7 = tpu.matmul %5, %6, %cst {dimension_numbers = #tpu.dot_dimension_numbers<[1], [0], [0], [1], [0, 0, 1, 1], [], []>} : vector<16x42xf32>, vector<42x512xf32>, vector<16x512xf32> -> vector<16x512xf32>
    %c0_9 = arith.constant 0 : index
    %c0_10 = arith.constant 0 : index
    %8 = vector.load %arg3[%c0_9, %c0_10] : memref<1x512xf32, #tpu.memory_space<vmem>>, vector<1x512xf32>
    %9 = vector.broadcast %8 : vector<1x512xf32> to vector<16x512xf32>
    %10 = arith.addf %7, %9 : vector<16x512xf32>
    %c0_11 = arith.constant 0 : index
    %c0_12 = arith.constant 0 : index
    %11 = vector.load %arg9[%c0_11, %c0_12] : memref<16x512xf32, #tpu.memory_space<vmem>>, vector<16x512xf32>
    tpu.vector_store %arg9[%c0_11, %c0_12], %10 {strides = array<i32>} : memref<16x512xf32, #tpu.memory_space<vmem>>, vector<16x512xf32>,
    %cst_13 = arith.constant 0.000000e+00 : f32
    %12 = vector.broadcast %cst_13 : f32 to vector<2x128xf32>
    %c0_14 = arith.constant 0 : index
    %c0_15 = arith.constant 0 : index
    %13 = vector.load %arg9[%c0_14, %c0_15] : memref<16x512xf32, #tpu.memory_space<vmem>>, vector<2x512xf32>
    %cst_16 = arith.constant dense<0.000000e+00> : vector<2x512xf32>
    %14 = tpu.matmul %12, %0, %cst_16 {dimension_numbers = #tpu.dot_dimension_numbers<[1], [0], [0], [1], [0, 0, 1, 1], [], []>} : vector<2x128xf32>, vector<128x512xf32>, vector<2x512xf32> -> vector<2x512xf32>
    %15 = arith.addf %13, %14 : vector<2x512xf32>
    %16 = vector.extract_strided_slice %15 {offsets = [0, 0], sizes = [2, 128], strides = [1, 1]} : vector<2x512xf32> to vector<2x128xf32>
    %17 = arith.negf %16 : vector<2x128xf32>
    %18 = math.exp %17 : vector<2x128xf32>
    %cst_17 = arith.constant 1.000000e+00 : f32
    %19 = vector.broadcast %cst_17 : f32 to vector<2x128xf32>
    %20 = arith.addf %19, %18 : vector<2x128xf32>
    %21 = arith.divf %19, %20 : vector<2x128xf32>
    %22 = vector.extract_strided_slice %15 {offsets = [0, 128], sizes = [2, 128], strides = [1, 1]} : vector<2x512xf32> to vector<2x128xf32>
    %23 = arith.negf %22 : vector<2x128xf32>
    %24 = math.exp %23 : vector<2x128xf32>
    %cst_18 = arith.constant 1.000000e+00 : f32
    %25 = vector.broadcast %cst_18 : f32 to vector<2x128xf32>
    %26 = arith.addf %25, %24 : vector<2x128xf32>
    %27 = arith.divf %25, %26 : vector<2x128xf32>
    %28 = vector.extract_strided_slice %15 {offsets = [0, 256], sizes = [2, 128], strides = [1, 1]} : vector<2x512xf32> to vector<2x128xf32>
    %29 = math.tanh %28 : vector<2x128xf32>
    %30 = vector.extract_strided_slice %15 {offsets = [0, 384], sizes = [2, 128], strides = [1, 1]} : vector<2x512xf32> to vector<2x128xf32>
    %31 = arith.negf %30 : vector<2x128xf32>
    %32 = math.exp %31 : vector<2x128xf32>
    %cst_19 = arith.constant 1.000000e+00 : f32
    %33 = vector.broadcast %cst_19 : f32 to vector<2x128xf32>
    %34 = arith.addf %33, %32 : vector<2x128xf32>
    %35 = arith.divf %33, %34 : vector<2x128xf32>
    %36 = arith.mulf %27, %12 : vector<2x128xf32>
    %37 = arith.mulf %21, %29 : vector<2x128xf32>
    %38 = arith.addf %36, %37 : vector<2x128xf32>
    %39 = math.tanh %38 : vector<2x128xf32>
    %40 = arith.mulf %35, %39 : vector<2x128xf32>
    %41 = tpu.concatenate %40, %12 in 1 : vector<2x128xf32>, vector<2x128xf32> -> vector<2x256xf32>
    %cst_20 = arith.constant dense<0.000000e+00> : vector<2x512xf32>
    %42 = tpu.matmul %41, %1, %cst_20 {dimension_numbers = #tpu.dot_dimension_numbers<[1], [0], [0], [1], [0, 0, 1, 1], [], []>} : vector<2x256xf32>, vector<256x512xf32>, vector<2x512xf32> -> vector<2x512xf32>
    %43 = arith.addf %42, %4 : vector<2x512xf32>
    %44 = vector.extract_strided_slice %43 {offsets = [0, 0], sizes = [2, 128], strides = [1, 1]} : vector<2x512xf32> to vector<2x128xf32>
    %45 = arith.negf %44 : vector<2x128xf32>
    %46 = math.exp %45 : vector<2x128xf32>
    %cst_21 = arith.constant 1.000000e+00 : f32
    %47 = vector.broadcast %cst_21 : f32 to vector<2x128xf32>
    %48 = arith.addf %47, %46 : vector<2x128xf32>
    %49 = arith.divf %47, %48 : vector<2x128xf32>
    %50 = vector.extract_strided_slice %43 {offsets = [0, 128], sizes = [2, 128], strides = [1, 1]} : vector<2x512xf32> to vector<2x128xf32>
    %51 = arith.negf %50 : vector<2x128xf32>
    %52 = math.exp %51 : vector<2x128xf32>
    %cst_22 = arith.constant 1.000000e+00 : f32
    %53 = vector.broadcast %cst_22 : f32 to vector<2x128xf32>
    %54 = arith.addf %53, %52 : vector<2x128xf32>
    %55 = arith.divf %53, %54 : vector<2x128xf32>
    %56 = vector.extract_strided_slice %43 {offsets = [0, 256], sizes = [2, 128], strides = [1, 1]} : vector<2x512xf32> to vector<2x128xf32>
    %57 = math.tanh %56 : vector<2x128xf32>
    %58 = vector.extract_strided_slice %43 {offsets = [0, 384], sizes = [2, 128], strides = [1, 1]} : vector<2x512xf32> to vector<2x128xf32>
    %59 = arith.negf %58 : vector<2x128xf32>
    %60 = math.exp %59 : vector<2x128xf32>
    %cst_23 = arith.constant 1.000000e+00 : f32
    %61 = vector.broadcast %cst_23 : f32 to vector<2x128xf32>
    %62 = arith.addf %61, %60 : vector<2x128xf32>
    %63 = arith.divf %61, %62 : vector<2x128xf32>
    %64 = arith.mulf %55, %12 : vector<2x128xf32>
    %65 = arith.mulf %49, %57 : vector<2x128xf32>
    %66 = arith.addf %64, %65 : vector<2x128xf32>
    %67 = math.tanh %66 : vector<2x128xf32>
    %68 = arith.mulf %63, %67 : vector<2x128xf32>
    %c0_24 = arith.constant 0 : index
    %c0_25 = arith.constant 0 : index
    %69 = vector.load %arg10[%c0_24, %c0_25] : memref<16x128xf32, #tpu.memory_space<vmem>>, vector<2x128xf32>
    tpu.vector_store %arg10[%c0_24, %c0_25], %68 {strides = array<i32>} : memref<16x128xf32, #tpu.memory_space<vmem>>, vector<2x128xf32>,
    %c2 = arith.constant 2 : index
    %c0_26 = arith.constant 0 : index
    %70 = vector.load %arg9[%c2, %c0_26] : memref<16x512xf32, #tpu.memory_space<vmem>>, vector<2x512xf32>
    %cst_27 = arith.constant dense<0.000000e+00> : vector<2x512xf32>
    %71 = tpu.matmul %40, %0, %cst_27 {dimension_numbers = #tpu.dot_dimension_numbers<[1], [0], [0], [1], [0, 0, 1, 1], [], []>} : vector<2x128xf32>, vector<128x512xf32>, vector<2x512xf32> -> vector<2x512xf32>
    %72 = arith.addf %70, %71 : vector<2x512xf32>
    %73 = vector.extract_strided_slice %72 {offsets = [0, 0], sizes = [2, 128], strides = [1, 1]} : vector<2x512xf32> to vector<2x128xf32>
    %74 = arith.negf %73 : vector<2x128xf32>
    %75 = math.exp %74 : vector<2x128xf32>
    %cst_28 = arith.constant 1.000000e+00 : f32
    %76 = vector.broadcast %cst_28 : f32 to vector<2x128xf32>
    %77 = arith.addf %76, %75 : vector<2x128xf32>
    %78 = arith.divf %76, %77 : vector<2x128xf32>
    %79 = vector.extract_strided_slice %72 {offsets = [0, 128], sizes = [2, 128], strides = [1, 1]} : vector<2x512xf32> to vector<2x128xf32>
    %80 = arith.negf %79 : vector<2x128xf32>
    %81 = math.exp %80 : vector<2x128xf32>
    %cst_29 = arith.constant 1.000000e+00 : f32
    %82 = vector.broadcast %cst_29 : f32 to vector<2x128xf32>
    %83 = arith.addf %82, %81 : vector<2x128xf32>
    %84 = arith.divf %82, %83 : vector<2x128xf32>
    %85 = vector.extract_strided_slice %72 {offsets = [0, 256], sizes = [2, 128], strides = [1, 1]} : vector<2x512xf32> to vector<2x128xf32>
    %86 = math.tanh %85 : vector<2x128xf32>
    %87 = vector.extract_strided_slice %72 {offsets = [0, 384], sizes = [2, 128], strides = [1, 1]} : vector<2x512xf32> to vector<2x128xf32>
    %88 = arith.negf %87 : vector<2x128xf32>
    %89 = math.exp %88 : vector<2x128xf32>
    %cst_30 = arith.constant 1.000000e+00 : f32
    %90 = vector.broadcast %cst_30 : f32 to vector<2x128xf32>
    %91 = arith.addf %90, %89 : vector<2x128xf32>
    %92 = arith.divf %90, %91 : vector<2x128xf32>
    %93 = arith.mulf %84, %38 : vector<2x128xf32>
    %94 = arith.mulf %78, %86 : vector<2x128xf32>
    %95 = arith.addf %93, %94 : vector<2x128xf32>
    %96 = math.tanh %95 : vector<2x128xf32>
    %97 = arith.mulf %92, %96 : vector<2x128xf32>
    %98 = tpu.concatenate %97, %68 in 1 : vector<2x128xf32>, vector<2x128xf32> -> vector<2x256xf32>
    %cst_31 = arith.constant dense<0.000000e+00> : vector<2x512xf32>
    %99 = tpu.matmul %98, %1, %cst_31 {dimension_numbers = #tpu.dot_dimension_numbers<[1], [0], [0], [1], [0, 0, 1, 1], [], []>} : vector<2x256xf32>, vector<256x512xf32>, vector<2x512xf32> -> vector<2x512xf32>
    %100 = arith.addf %99, %4 : vector<2x512xf32>
    %101 = vector.extract_strided_slice %100 {offsets = [0, 0], sizes = [2, 128], strides = [1, 1]} : vector<2x512xf32> to vector<2x128xf32>
    %102 = arith.negf %101 : vector<2x128xf32>
    %103 = math.exp %102 : vector<2x128xf32>
    %cst_32 = arith.constant 1.000000e+00 : f32
    %104 = vector.broadcast %cst_32 : f32 to vector<2x128xf32>
    %105 = arith.addf %104, %103 : vector<2x128xf32>
    %106 = arith.divf %104, %105 : vector<2x128xf32>
    %107 = vector.extract_strided_slice %100 {offsets = [0, 128], sizes = [2, 128], strides = [1, 1]} : vector<2x512xf32> to vector<2x128xf32>
    %108 = arith.negf %107 : vector<2x128xf32>
    %109 = math.exp %108 : vector<2x128xf32>
    %cst_33 = arith.constant 1.000000e+00 : f32
    %110 = vector.broadcast %cst_33 : f32 to vector<2x128xf32>
    %111 = arith.addf %110, %109 : vector<2x128xf32>
    %112 = arith.divf %110, %111 : vector<2x128xf32>
    %113 = vector.extract_strided_slice %100 {offsets = [0, 256], sizes = [2, 128], strides = [1, 1]} : vector<2x512xf32> to vector<2x128xf32>
    %114 = math.tanh %113 : vector<2x128xf32>
    %115 = vector.extract_strided_slice %100 {offsets = [0, 384], sizes = [2, 128], strides = [1, 1]} : vector<2x512xf32> to vector<2x128xf32>
    %116 = arith.negf %115 : vector<2x128xf32>
    %117 = math.exp %116 : vector<2x128xf32>
    %cst_34 = arith.constant 1.000000e+00 : f32
    %118 = vector.broadcast %cst_34 : f32 to vector<2x128xf32>
    %119 = arith.addf %118, %117 : vector<2x128xf32>
    %120 = arith.divf %118, %119 : vector<2x128xf32>
    %121 = arith.mulf %112, %66 : vector<2x128xf32>
    %122 = arith.mulf %106, %114 : vector<2x128xf32>
    %123 = arith.addf %121, %122 : vector<2x128xf32>
    %124 = math.tanh %123 : vector<2x128xf32>
    %125 = arith.mulf %120, %124 : vector<2x128xf32>
    %c2_35 = arith.constant 2 : index
    %c0_36 = arith.constant 0 : index
    %126 = vector.load %arg10[%c2_35, %c0_36] : memref<16x128xf32, #tpu.memory_space<vmem>>, vector<2x128xf32>
    tpu.vector_store %arg10[%c2_35, %c0_36], %125 {strides = array<i32>} : memref<16x128xf32, #tpu.memory_space<vmem>>, vector<2x128xf32>,
    %c4 = arith.constant 4 : index
    %c0_37 = arith.constant 0 : index
    %127 = vector.load %arg9[%c4, %c0_37] : memref<16x512xf32, #tpu.memory_space<vmem>>, vector<2x512xf32>
    %cst_38 = arith.constant dense<0.000000e+00> : vector<2x512xf32>
    %128 = tpu.matmul %97, %0, %cst_38 {dimension_numbers = #tpu.dot_dimension_numbers<[1], [0], [0], [1], [0, 0, 1, 1], [], []>} : vector<2x128xf32>, vector<128x512xf32>, vector<2x512xf32> -> vector<2x512xf32>
    %129 = arith.addf %127, %128 : vector<2x512xf32>
    %130 = vector.extract_strided_slice %129 {offsets = [0, 0], sizes = [2, 128], strides = [1, 1]} : vector<2x512xf32> to vector<2x128xf32>
    %131 = arith.negf %130 : vector<2x128xf32>
    %132 = math.exp %131 : vector<2x128xf32>
    %cst_39 = arith.constant 1.000000e+00 : f32
    %133 = vector.broadcast %cst_39 : f32 to vector<2x128xf32>
    %134 = arith.addf %133, %132 : vector<2x128xf32>
    %135 = arith.divf %133, %134 : vector<2x128xf32>
    %136 = vector.extract_strided_slice %129 {offsets = [0, 128], sizes = [2, 128], strides = [1, 1]} : vector<2x512xf32> to vector<2x128xf32>
    %137 = arith.negf %136 : vector<2x128xf32>
    %138 = math.exp %137 : vector<2x128xf32>
    %cst_40 = arith.constant 1.000000e+00 : f32
    %139 = vector.broadcast %cst_40 : f32 to vector<2x128xf32>
    %140 = arith.addf %139, %138 : vector<2x128xf32>
    %141 = arith.divf %139, %140 : vector<2x128xf32>
    %142 = vector.extract_strided_slice %129 {offsets = [0, 256], sizes = [2, 128], strides = [1, 1]} : vector<2x512xf32> to vector<2x128xf32>
    %143 = math.tanh %142 : vector<2x128xf32>
    %144 = vector.extract_strided_slice %129 {offsets = [0, 384], sizes = [2, 128], strides = [1, 1]} : vector<2x512xf32> to vector<2x128xf32>
    %145 = arith.negf %144 : vector<2x128xf32>
    %146 = math.exp %145 : vector<2x128xf32>
    %cst_41 = arith.constant 1.000000e+00 : f32
    %147 = vector.broadcast %cst_41 : f32 to vector<2x128xf32>
    %148 = arith.addf %147, %146 : vector<2x128xf32>
    %149 = arith.divf %147, %148 : vector<2x128xf32>
    %150 = arith.mulf %141, %95 : vector<2x128xf32>
    %151 = arith.mulf %135, %143 : vector<2x128xf32>
    %152 = arith.addf %150, %151 : vector<2x128xf32>
    %153 = math.tanh %152 : vector<2x128xf32>
    %154 = arith.mulf %149, %153 : vector<2x128xf32>
    %155 = tpu.concatenate %154, %125 in 1 : vector<2x128xf32>, vector<2x128xf32> -> vector<2x256xf32>
    %cst_42 = arith.constant dense<0.000000e+00> : vector<2x512xf32>
    %156 = tpu.matmul %155, %1, %cst_42 {dimension_numbers = #tpu.dot_dimension_numbers<[1], [0], [0], [1], [0, 0, 1, 1], [], []>} : vector<2x256xf32>, vector<256x512xf32>, vector<2x512xf32> -> vector<2x512xf32>
    %157 = arith.addf %156, %4 : vector<2x512xf32>
    %158 = vector.extract_strided_slice %157 {offsets = [0, 0], sizes = [2, 128], strides = [1, 1]} : vector<2x512xf32> to vector<2x128xf32>
    %159 = arith.negf %158 : vector<2x128xf32>
    %160 = math.exp %159 : vector<2x128xf32>
    %cst_43 = arith.constant 1.000000e+00 : f32
    %161 = vector.broadcast %cst_43 : f32 to vector<2x128xf32>
    %162 = arith.addf %161, %160 : vector<2x128xf32>
    %163 = arith.divf %161, %162 : vector<2x128xf32>
    %164 = vector.extract_strided_slice %157 {offsets = [0, 128], sizes = [2, 128], strides = [1, 1]} : vector<2x512xf32> to vector<2x128xf32>
    %165 = arith.negf %164 : vector<2x128xf32>
    %166 = math.exp %165 : vector<2x128xf32>
    %cst_44 = arith.constant 1.000000e+00 : f32
    %167 = vector.broadcast %cst_44 : f32 to vector<2x128xf32>
    %168 = arith.addf %167, %166 : vector<2x128xf32>
    %169 = arith.divf %167, %168 : vector<2x128xf32>
    %170 = vector.extract_strided_slice %157 {offsets = [0, 256], sizes = [2, 128], strides = [1, 1]} : vector<2x512xf32> to vector<2x128xf32>
    %171 = math.tanh %170 : vector<2x128xf32>
    %172 = vector.extract_strided_slice %157 {offsets = [0, 384], sizes = [2, 128], strides = [1, 1]} : vector<2x512xf32> to vector<2x128xf32>
    %173 = arith.negf %172 : vector<2x128xf32>
    %174 = math.exp %173 : vector<2x128xf32>
    %cst_45 = arith.constant 1.000000e+00 : f32
    %175 = vector.broadcast %cst_45 : f32 to vector<2x128xf32>
    %176 = arith.addf %175, %174 : vector<2x128xf32>
    %177 = arith.divf %175, %176 : vector<2x128xf32>
    %178 = arith.mulf %169, %123 : vector<2x128xf32>
    %179 = arith.mulf %163, %171 : vector<2x128xf32>
    %180 = arith.addf %178, %179 : vector<2x128xf32>
    %181 = math.tanh %180 : vector<2x128xf32>
    %182 = arith.mulf %177, %181 : vector<2x128xf32>
    %c4_46 = arith.constant 4 : index
    %c0_47 = arith.constant 0 : index
    %183 = vector.load %arg10[%c4_46, %c0_47] : memref<16x128xf32, #tpu.memory_space<vmem>>, vector<2x128xf32>
    tpu.vector_store %arg10[%c4_46, %c0_47], %182 {strides = array<i32>} : memref<16x128xf32, #tpu.memory_space<vmem>>, vector<2x128xf32>,
    %c6 = arith.constant 6 : index
    %c0_48 = arith.constant 0 : index
    %184 = vector.load %arg9[%c6, %c0_48] : memref<16x512xf32, #tpu.memory_space<vmem>>, vector<2x512xf32>
    %cst_49 = arith.constant dense<0.000000e+00> : vector<2x512xf32>
    %185 = tpu.matmul %154, %0, %cst_49 {dimension_numbers = #tpu.dot_dimension_numbers<[1], [0], [0], [1], [0, 0, 1, 1], [], []>} : vector<2x128xf32>, vector<128x512xf32>, vector<2x512xf32> -> vector<2x512xf32>
    %186 = arith.addf %184, %185 : vector<2x512xf32>
    %187 = vector.extract_strided_slice %186 {offsets = [0, 0], sizes = [2, 128], strides = [1, 1]} : vector<2x512xf32> to vector<2x128xf32>
    %188 = arith.negf %187 : vector<2x128xf32>
    %189 = math.exp %188 : vector<2x128xf32>
    %cst_50 = arith.constant 1.000000e+00 : f32
    %190 = vector.broadcast %cst_50 : f32 to vector<2x128xf32>
    %191 = arith.addf %190, %189 : vector<2x128xf32>
    %192 = arith.divf %190, %191 : vector<2x128xf32>
    %193 = vector.extract_strided_slice %186 {offsets = [0, 128], sizes = [2, 128], strides = [1, 1]} : vector<2x512xf32> to vector<2x128xf32>
    %194 = arith.negf %193 : vector<2x128xf32>
    %195 = math.exp %194 : vector<2x128xf32>
    %cst_51 = arith.constant 1.000000e+00 : f32
    %196 = vector.broadcast %cst_51 : f32 to vector<2x128xf32>
    %197 = arith.addf %196, %195 : vector<2x128xf32>
    %198 = arith.divf %196, %197 : vector<2x128xf32>
    %199 = vector.extract_strided_slice %186 {offsets = [0, 256], sizes = [2, 128], strides = [1, 1]} : vector<2x512xf32> to vector<2x128xf32>
    %200 = math.tanh %199 : vector<2x128xf32>
    %201 = vector.extract_strided_slice %186 {offsets = [0, 384], sizes = [2, 128], strides = [1, 1]} : vector<2x512xf32> to vector<2x128xf32>
    %202 = arith.negf %201 : vector<2x128xf32>
    %203 = math.exp %202 : vector<2x128xf32>
    %cst_52 = arith.constant 1.000000e+00 : f32
    %204 = vector.broadcast %cst_52 : f32 to vector<2x128xf32>
    %205 = arith.addf %204, %203 : vector<2x128xf32>
    %206 = arith.divf %204, %205 : vector<2x128xf32>
    %207 = arith.mulf %198, %152 : vector<2x128xf32>
    %208 = arith.mulf %192, %200 : vector<2x128xf32>
    %209 = arith.addf %207, %208 : vector<2x128xf32>
    %210 = math.tanh %209 : vector<2x128xf32>
    %211 = arith.mulf %206, %210 : vector<2x128xf32>
    %212 = tpu.concatenate %211, %182 in 1 : vector<2x128xf32>, vector<2x128xf32> -> vector<2x256xf32>
    %cst_53 = arith.constant dense<0.000000e+00> : vector<2x512xf32>
    %213 = tpu.matmul %212, %1, %cst_53 {dimension_numbers = #tpu.dot_dimension_numbers<[1], [0], [0], [1], [0, 0, 1, 1], [], []>} : vector<2x256xf32>, vector<256x512xf32>, vector<2x512xf32> -> vector<2x512xf32>
    %214 = arith.addf %213, %4 : vector<2x512xf32>
    %215 = vector.extract_strided_slice %214 {offsets = [0, 0], sizes = [2, 128], strides = [1, 1]} : vector<2x512xf32> to vector<2x128xf32>
    %216 = arith.negf %215 : vector<2x128xf32>
    %217 = math.exp %216 : vector<2x128xf32>
    %cst_54 = arith.constant 1.000000e+00 : f32
    %218 = vector.broadcast %cst_54 : f32 to vector<2x128xf32>
    %219 = arith.addf %218, %217 : vector<2x128xf32>
    %220 = arith.divf %218, %219 : vector<2x128xf32>
    %221 = vector.extract_strided_slice %214 {offsets = [0, 128], sizes = [2, 128], strides = [1, 1]} : vector<2x512xf32> to vector<2x128xf32>
    %222 = arith.negf %221 : vector<2x128xf32>
    %223 = math.exp %222 : vector<2x128xf32>
    %cst_55 = arith.constant 1.000000e+00 : f32
    %224 = vector.broadcast %cst_55 : f32 to vector<2x128xf32>
    %225 = arith.addf %224, %223 : vector<2x128xf32>
    %226 = arith.divf %224, %225 : vector<2x128xf32>
    %227 = vector.extract_strided_slice %214 {offsets = [0, 256], sizes = [2, 128], strides = [1, 1]} : vector<2x512xf32> to vector<2x128xf32>
    %228 = math.tanh %227 : vector<2x128xf32>
    %229 = vector.extract_strided_slice %214 {offsets = [0, 384], sizes = [2, 128], strides = [1, 1]} : vector<2x512xf32> to vector<2x128xf32>
    %230 = arith.negf %229 : vector<2x128xf32>
    %231 = math.exp %230 : vector<2x128xf32>
    %cst_56 = arith.constant 1.000000e+00 : f32
    %232 = vector.broadcast %cst_56 : f32 to vector<2x128xf32>
    %233 = arith.addf %232, %231 : vector<2x128xf32>
    %234 = arith.divf %232, %233 : vector<2x128xf32>
    %235 = arith.mulf %226, %180 : vector<2x128xf32>
    %236 = arith.mulf %220, %228 : vector<2x128xf32>
    %237 = arith.addf %235, %236 : vector<2x128xf32>
    %238 = math.tanh %237 : vector<2x128xf32>
    %239 = arith.mulf %234, %238 : vector<2x128xf32>
    %c6_57 = arith.constant 6 : index
    %c0_58 = arith.constant 0 : index
    %240 = vector.load %arg10[%c6_57, %c0_58] : memref<16x128xf32, #tpu.memory_space<vmem>>, vector<2x128xf32>
    tpu.vector_store %arg10[%c6_57, %c0_58], %239 {strides = array<i32>} : memref<16x128xf32, #tpu.memory_space<vmem>>, vector<2x128xf32>,
    %c8 = arith.constant 8 : index
    %c0_59 = arith.constant 0 : index
    %241 = vector.load %arg9[%c8, %c0_59] : memref<16x512xf32, #tpu.memory_space<vmem>>, vector<2x512xf32>
    %cst_60 = arith.constant dense<0.000000e+00> : vector<2x512xf32>
    %242 = tpu.matmul %211, %0, %cst_60 {dimension_numbers = #tpu.dot_dimension_numbers<[1], [0], [0], [1], [0, 0, 1, 1], [], []>} : vector<2x128xf32>, vector<128x512xf32>, vector<2x512xf32> -> vector<2x512xf32>
    %243 = arith.addf %241, %242 : vector<2x512xf32>
    %244 = vector.extract_strided_slice %243 {offsets = [0, 0], sizes = [2, 128], strides = [1, 1]} : vector<2x512xf32> to vector<2x128xf32>
    %245 = arith.negf %244 : vector<2x128xf32>
    %246 = math.exp %245 : vector<2x128xf32>
    %cst_61 = arith.constant 1.000000e+00 : f32
    %247 = vector.broadcast %cst_61 : f32 to vector<2x128xf32>
    %248 = arith.addf %247, %246 : vector<2x128xf32>
    %249 = arith.divf %247, %248 : vector<2x128xf32>
    %250 = vector.extract_strided_slice %243 {offsets = [0, 128], sizes = [2, 128], strides = [1, 1]} : vector<2x512xf32> to vector<2x128xf32>
    %251 = arith.negf %250 : vector<2x128xf32>
    %252 = math.exp %251 : vector<2x128xf32>
    %cst_62 = arith.constant 1.000000e+00 : f32
    %253 = vector.broadcast %cst_62 : f32 to vector<2x128xf32>
    %254 = arith.addf %253, %252 : vector<2x128xf32>
    %255 = arith.divf %253, %254 : vector<2x128xf32>
    %256 = vector.extract_strided_slice %243 {offsets = [0, 256], sizes = [2, 128], strides = [1, 1]} : vector<2x512xf32> to vector<2x128xf32>
    %257 = math.tanh %256 : vector<2x128xf32>
    %258 = vector.extract_strided_slice %243 {offsets = [0, 384], sizes = [2, 128], strides = [1, 1]} : vector<2x512xf32> to vector<2x128xf32>
    %259 = arith.negf %258 : vector<2x128xf32>
    %260 = math.exp %259 : vector<2x128xf32>
    %cst_63 = arith.constant 1.000000e+00 : f32
    %261 = vector.broadcast %cst_63 : f32 to vector<2x128xf32>
    %262 = arith.addf %261, %260 : vector<2x128xf32>
    %263 = arith.divf %261, %262 : vector<2x128xf32>
    %264 = arith.mulf %255, %209 : vector<2x128xf32>
    %265 = arith.mulf %249, %257 : vector<2x128xf32>
    %266 = arith.addf %264, %265 : vector<2x128xf32>
    %267 = math.tanh %266 : vector<2x128xf32>
    %268 = arith.mulf %263, %267 : vector<2x128xf32>
    %269 = tpu.concatenate %268, %239 in 1 : vector<2x128xf32>, vector<2x128xf32> -> vector<2x256xf32>
    %cst_64 = arith.constant dense<0.000000e+00> : vector<2x512xf32>
    %270 = tpu.matmul %269, %1, %cst_64 {dimension_numbers = #tpu.dot_dimension_numbers<[1], [0], [0], [1], [0, 0, 1, 1], [], []>} : vector<2x256xf32>, vector<256x512xf32>, vector<2x512xf32> -> vector<2x512xf32>
    %271 = arith.addf %270, %4 : vector<2x512xf32>
    %272 = vector.extract_strided_slice %271 {offsets = [0, 0], sizes = [2, 128], strides = [1, 1]} : vector<2x512xf32> to vector<2x128xf32>
    %273 = arith.negf %272 : vector<2x128xf32>
    %274 = math.exp %273 : vector<2x128xf32>
    %cst_65 = arith.constant 1.000000e+00 : f32
    %275 = vector.broadcast %cst_65 : f32 to vector<2x128xf32>
    %276 = arith.addf %275, %274 : vector<2x128xf32>
    %277 = arith.divf %275, %276 : vector<2x128xf32>
    %278 = vector.extract_strided_slice %271 {offsets = [0, 128], sizes = [2, 128], strides = [1, 1]} : vector<2x512xf32> to vector<2x128xf32>
    %279 = arith.negf %278 : vector<2x128xf32>
    %280 = math.exp %279 : vector<2x128xf32>
    %cst_66 = arith.constant 1.000000e+00 : f32
    %281 = vector.broadcast %cst_66 : f32 to vector<2x128xf32>
    %282 = arith.addf %281, %280 : vector<2x128xf32>
    %283 = arith.divf %281, %282 : vector<2x128xf32>
    %284 = vector.extract_strided_slice %271 {offsets = [0, 256], sizes = [2, 128], strides = [1, 1]} : vector<2x512xf32> to vector<2x128xf32>
    %285 = math.tanh %284 : vector<2x128xf32>
    %286 = vector.extract_strided_slice %271 {offsets = [0, 384], sizes = [2, 128], strides = [1, 1]} : vector<2x512xf32> to vector<2x128xf32>
    %287 = arith.negf %286 : vector<2x128xf32>
    %288 = math.exp %287 : vector<2x128xf32>
    %cst_67 = arith.constant 1.000000e+00 : f32
    %289 = vector.broadcast %cst_67 : f32 to vector<2x128xf32>
    %290 = arith.addf %289, %288 : vector<2x128xf32>
    %291 = arith.divf %289, %290 : vector<2x128xf32>
    %292 = arith.mulf %283, %237 : vector<2x128xf32>
    %293 = arith.mulf %277, %285 : vector<2x128xf32>
    %294 = arith.addf %292, %293 : vector<2x128xf32>
    %295 = math.tanh %294 : vector<2x128xf32>
    %296 = arith.mulf %291, %295 : vector<2x128xf32>
    %c8_68 = arith.constant 8 : index
    %c0_69 = arith.constant 0 : index
    %297 = vector.load %arg10[%c8_68, %c0_69] : memref<16x128xf32, #tpu.memory_space<vmem>>, vector<2x128xf32>
    tpu.vector_store %arg10[%c8_68, %c0_69], %296 {strides = array<i32>} : memref<16x128xf32, #tpu.memory_space<vmem>>, vector<2x128xf32>,
    %c10 = arith.constant 10 : index
    %c0_70 = arith.constant 0 : index
    %298 = vector.load %arg9[%c10, %c0_70] : memref<16x512xf32, #tpu.memory_space<vmem>>, vector<2x512xf32>
    %cst_71 = arith.constant dense<0.000000e+00> : vector<2x512xf32>
    %299 = tpu.matmul %268, %0, %cst_71 {dimension_numbers = #tpu.dot_dimension_numbers<[1], [0], [0], [1], [0, 0, 1, 1], [], []>} : vector<2x128xf32>, vector<128x512xf32>, vector<2x512xf32> -> vector<2x512xf32>
    %300 = arith.addf %298, %299 : vector<2x512xf32>
    %301 = vector.extract_strided_slice %300 {offsets = [0, 0], sizes = [2, 128], strides = [1, 1]} : vector<2x512xf32> to vector<2x128xf32>
    %302 = arith.negf %301 : vector<2x128xf32>
    %303 = math.exp %302 : vector<2x128xf32>
    %cst_72 = arith.constant 1.000000e+00 : f32
    %304 = vector.broadcast %cst_72 : f32 to vector<2x128xf32>
    %305 = arith.addf %304, %303 : vector<2x128xf32>
    %306 = arith.divf %304, %305 : vector<2x128xf32>
    %307 = vector.extract_strided_slice %300 {offsets = [0, 128], sizes = [2, 128], strides = [1, 1]} : vector<2x512xf32> to vector<2x128xf32>
    %308 = arith.negf %307 : vector<2x128xf32>
    %309 = math.exp %308 : vector<2x128xf32>
    %cst_73 = arith.constant 1.000000e+00 : f32
    %310 = vector.broadcast %cst_73 : f32 to vector<2x128xf32>
    %311 = arith.addf %310, %309 : vector<2x128xf32>
    %312 = arith.divf %310, %311 : vector<2x128xf32>
    %313 = vector.extract_strided_slice %300 {offsets = [0, 256], sizes = [2, 128], strides = [1, 1]} : vector<2x512xf32> to vector<2x128xf32>
    %314 = math.tanh %313 : vector<2x128xf32>
    %315 = vector.extract_strided_slice %300 {offsets = [0, 384], sizes = [2, 128], strides = [1, 1]} : vector<2x512xf32> to vector<2x128xf32>
    %316 = arith.negf %315 : vector<2x128xf32>
    %317 = math.exp %316 : vector<2x128xf32>
    %cst_74 = arith.constant 1.000000e+00 : f32
    %318 = vector.broadcast %cst_74 : f32 to vector<2x128xf32>
    %319 = arith.addf %318, %317 : vector<2x128xf32>
    %320 = arith.divf %318, %319 : vector<2x128xf32>
    %321 = arith.mulf %312, %266 : vector<2x128xf32>
    %322 = arith.mulf %306, %314 : vector<2x128xf32>
    %323 = arith.addf %321, %322 : vector<2x128xf32>
    %324 = math.tanh %323 : vector<2x128xf32>
    %325 = arith.mulf %320, %324 : vector<2x128xf32>
    %326 = tpu.concatenate %325, %296 in 1 : vector<2x128xf32>, vector<2x128xf32> -> vector<2x256xf32>
    %cst_75 = arith.constant dense<0.000000e+00> : vector<2x512xf32>
    %327 = tpu.matmul %326, %1, %cst_75 {dimension_numbers = #tpu.dot_dimension_numbers<[1], [0], [0], [1], [0, 0, 1, 1], [], []>} : vector<2x256xf32>, vector<256x512xf32>, vector<2x512xf32> -> vector<2x512xf32>
    %328 = arith.addf %327, %4 : vector<2x512xf32>
    %329 = vector.extract_strided_slice %328 {offsets = [0, 0], sizes = [2, 128], strides = [1, 1]} : vector<2x512xf32> to vector<2x128xf32>
    %330 = arith.negf %329 : vector<2x128xf32>
    %331 = math.exp %330 : vector<2x128xf32>
    %cst_76 = arith.constant 1.000000e+00 : f32
    %332 = vector.broadcast %cst_76 : f32 to vector<2x128xf32>
    %333 = arith.addf %332, %331 : vector<2x128xf32>
    %334 = arith.divf %332, %333 : vector<2x128xf32>
    %335 = vector.extract_strided_slice %328 {offsets = [0, 128], sizes = [2, 128], strides = [1, 1]} : vector<2x512xf32> to vector<2x128xf32>
    %336 = arith.negf %335 : vector<2x128xf32>
    %337 = math.exp %336 : vector<2x128xf32>
    %cst_77 = arith.constant 1.000000e+00 : f32
    %338 = vector.broadcast %cst_77 : f32 to vector<2x128xf32>
    %339 = arith.addf %338, %337 : vector<2x128xf32>
    %340 = arith.divf %338, %339 : vector<2x128xf32>
    %341 = vector.extract_strided_slice %328 {offsets = [0, 256], sizes = [2, 128], strides = [1, 1]} : vector<2x512xf32> to vector<2x128xf32>
    %342 = math.tanh %341 : vector<2x128xf32>
    %343 = vector.extract_strided_slice %328 {offsets = [0, 384], sizes = [2, 128], strides = [1, 1]} : vector<2x512xf32> to vector<2x128xf32>
    %344 = arith.negf %343 : vector<2x128xf32>
    %345 = math.exp %344 : vector<2x128xf32>
    %cst_78 = arith.constant 1.000000e+00 : f32
    %346 = vector.broadcast %cst_78 : f32 to vector<2x128xf32>
    %347 = arith.addf %346, %345 : vector<2x128xf32>
    %348 = arith.divf %346, %347 : vector<2x128xf32>
    %349 = arith.mulf %340, %294 : vector<2x128xf32>
    %350 = arith.mulf %334, %342 : vector<2x128xf32>
    %351 = arith.addf %349, %350 : vector<2x128xf32>
    %352 = math.tanh %351 : vector<2x128xf32>
    %353 = arith.mulf %348, %352 : vector<2x128xf32>
    %c10_79 = arith.constant 10 : index
    %c0_80 = arith.constant 0 : index
    %354 = vector.load %arg10[%c10_79, %c0_80] : memref<16x128xf32, #tpu.memory_space<vmem>>, vector<2x128xf32>
    tpu.vector_store %arg10[%c10_79, %c0_80], %353 {strides = array<i32>} : memref<16x128xf32, #tpu.memory_space<vmem>>, vector<2x128xf32>,
    %c12 = arith.constant 12 : index
    %c0_81 = arith.constant 0 : index
    %355 = vector.load %arg9[%c12, %c0_81] : memref<16x512xf32, #tpu.memory_space<vmem>>, vector<2x512xf32>
    %cst_82 = arith.constant dense<0.000000e+00> : vector<2x512xf32>
    %356 = tpu.matmul %325, %0, %cst_82 {dimension_numbers = #tpu.dot_dimension_numbers<[1], [0], [0], [1], [0, 0, 1, 1], [], []>} : vector<2x128xf32>, vector<128x512xf32>, vector<2x512xf32> -> vector<2x512xf32>
    %357 = arith.addf %355, %356 : vector<2x512xf32>
    %358 = vector.extract_strided_slice %357 {offsets = [0, 0], sizes = [2, 128], strides = [1, 1]} : vector<2x512xf32> to vector<2x128xf32>
    %359 = arith.negf %358 : vector<2x128xf32>
    %360 = math.exp %359 : vector<2x128xf32>
    %cst_83 = arith.constant 1.000000e+00 : f32
    %361 = vector.broadcast %cst_83 : f32 to vector<2x128xf32>
    %362 = arith.addf %361, %360 : vector<2x128xf32>
    %363 = arith.divf %361, %362 : vector<2x128xf32>
    %364 = vector.extract_strided_slice %357 {offsets = [0, 128], sizes = [2, 128], strides = [1, 1]} : vector<2x512xf32> to vector<2x128xf32>
    %365 = arith.negf %364 : vector<2x128xf32>
    %366 = math.exp %365 : vector<2x128xf32>
    %cst_84 = arith.constant 1.000000e+00 : f32
    %367 = vector.broadcast %cst_84 : f32 to vector<2x128xf32>
    %368 = arith.addf %367, %366 : vector<2x128xf32>
    %369 = arith.divf %367, %368 : vector<2x128xf32>
    %370 = vector.extract_strided_slice %357 {offsets = [0, 256], sizes = [2, 128], strides = [1, 1]} : vector<2x512xf32> to vector<2x128xf32>
    %371 = math.tanh %370 : vector<2x128xf32>
    %372 = vector.extract_strided_slice %357 {offsets = [0, 384], sizes = [2, 128], strides = [1, 1]} : vector<2x512xf32> to vector<2x128xf32>
    %373 = arith.negf %372 : vector<2x128xf32>
    %374 = math.exp %373 : vector<2x128xf32>
    %cst_85 = arith.constant 1.000000e+00 : f32
    %375 = vector.broadcast %cst_85 : f32 to vector<2x128xf32>
    %376 = arith.addf %375, %374 : vector<2x128xf32>
    %377 = arith.divf %375, %376 : vector<2x128xf32>
    %378 = arith.mulf %369, %323 : vector<2x128xf32>
    %379 = arith.mulf %363, %371 : vector<2x128xf32>
    %380 = arith.addf %378, %379 : vector<2x128xf32>
    %381 = math.tanh %380 : vector<2x128xf32>
    %382 = arith.mulf %377, %381 : vector<2x128xf32>
    %383 = tpu.concatenate %382, %353 in 1 : vector<2x128xf32>, vector<2x128xf32> -> vector<2x256xf32>
    %cst_86 = arith.constant dense<0.000000e+00> : vector<2x512xf32>
    %384 = tpu.matmul %383, %1, %cst_86 {dimension_numbers = #tpu.dot_dimension_numbers<[1], [0], [0], [1], [0, 0, 1, 1], [], []>} : vector<2x256xf32>, vector<256x512xf32>, vector<2x512xf32> -> vector<2x512xf32>
    %385 = arith.addf %384, %4 : vector<2x512xf32>
    %386 = vector.extract_strided_slice %385 {offsets = [0, 0], sizes = [2, 128], strides = [1, 1]} : vector<2x512xf32> to vector<2x128xf32>
    %387 = arith.negf %386 : vector<2x128xf32>
    %388 = math.exp %387 : vector<2x128xf32>
    %cst_87 = arith.constant 1.000000e+00 : f32
    %389 = vector.broadcast %cst_87 : f32 to vector<2x128xf32>
    %390 = arith.addf %389, %388 : vector<2x128xf32>
    %391 = arith.divf %389, %390 : vector<2x128xf32>
    %392 = vector.extract_strided_slice %385 {offsets = [0, 128], sizes = [2, 128], strides = [1, 1]} : vector<2x512xf32> to vector<2x128xf32>
    %393 = arith.negf %392 : vector<2x128xf32>
    %394 = math.exp %393 : vector<2x128xf32>
    %cst_88 = arith.constant 1.000000e+00 : f32
    %395 = vector.broadcast %cst_88 : f32 to vector<2x128xf32>
    %396 = arith.addf %395, %394 : vector<2x128xf32>
    %397 = arith.divf %395, %396 : vector<2x128xf32>
    %398 = vector.extract_strided_slice %385 {offsets = [0, 256], sizes = [2, 128], strides = [1, 1]} : vector<2x512xf32> to vector<2x128xf32>
    %399 = math.tanh %398 : vector<2x128xf32>
    %400 = vector.extract_strided_slice %385 {offsets = [0, 384], sizes = [2, 128], strides = [1, 1]} : vector<2x512xf32> to vector<2x128xf32>
    %401 = arith.negf %400 : vector<2x128xf32>
    %402 = math.exp %401 : vector<2x128xf32>
    %cst_89 = arith.constant 1.000000e+00 : f32
    %403 = vector.broadcast %cst_89 : f32 to vector<2x128xf32>
    %404 = arith.addf %403, %402 : vector<2x128xf32>
    %405 = arith.divf %403, %404 : vector<2x128xf32>
    %406 = arith.mulf %397, %351 : vector<2x128xf32>
    %407 = arith.mulf %391, %399 : vector<2x128xf32>
    %408 = arith.addf %406, %407 : vector<2x128xf32>
    %409 = math.tanh %408 : vector<2x128xf32>
    %410 = arith.mulf %405, %409 : vector<2x128xf32>
    %c12_90 = arith.constant 12 : index
    %c0_91 = arith.constant 0 : index
    %411 = vector.load %arg10[%c12_90, %c0_91] : memref<16x128xf32, #tpu.memory_space<vmem>>, vector<2x128xf32>
    tpu.vector_store %arg10[%c12_90, %c0_91], %410 {strides = array<i32>} : memref<16x128xf32, #tpu.memory_space<vmem>>, vector<2x128xf32>,
    %c14 = arith.constant 14 : index
    %c0_92 = arith.constant 0 : index
    %412 = vector.load %arg9[%c14, %c0_92] : memref<16x512xf32, #tpu.memory_space<vmem>>, vector<2x512xf32>
    %cst_93 = arith.constant dense<0.000000e+00> : vector<2x512xf32>
    %413 = tpu.matmul %382, %0, %cst_93 {dimension_numbers = #tpu.dot_dimension_numbers<[1], [0], [0], [1], [0, 0, 1, 1], [], []>} : vector<2x128xf32>, vector<128x512xf32>, vector<2x512xf32> -> vector<2x512xf32>
    %414 = arith.addf %412, %413 : vector<2x512xf32>
    %415 = vector.extract_strided_slice %414 {offsets = [0, 0], sizes = [2, 128], strides = [1, 1]} : vector<2x512xf32> to vector<2x128xf32>
    %416 = arith.negf %415 : vector<2x128xf32>
    %417 = math.exp %416 : vector<2x128xf32>
    %cst_94 = arith.constant 1.000000e+00 : f32
    %418 = vector.broadcast %cst_94 : f32 to vector<2x128xf32>
    %419 = arith.addf %418, %417 : vector<2x128xf32>
    %420 = arith.divf %418, %419 : vector<2x128xf32>
    %421 = vector.extract_strided_slice %414 {offsets = [0, 128], sizes = [2, 128], strides = [1, 1]} : vector<2x512xf32> to vector<2x128xf32>
    %422 = arith.negf %421 : vector<2x128xf32>
    %423 = math.exp %422 : vector<2x128xf32>
    %cst_95 = arith.constant 1.000000e+00 : f32
    %424 = vector.broadcast %cst_95 : f32 to vector<2x128xf32>
    %425 = arith.addf %424, %423 : vector<2x128xf32>
    %426 = arith.divf %424, %425 : vector<2x128xf32>
    %427 = vector.extract_strided_slice %414 {offsets = [0, 256], sizes = [2, 128], strides = [1, 1]} : vector<2x512xf32> to vector<2x128xf32>
    %428 = math.tanh %427 : vector<2x128xf32>
    %429 = vector.extract_strided_slice %414 {offsets = [0, 384], sizes = [2, 128], strides = [1, 1]} : vector<2x512xf32> to vector<2x128xf32>
    %430 = arith.negf %429 : vector<2x128xf32>
    %431 = math.exp %430 : vector<2x128xf32>
    %cst_96 = arith.constant 1.000000e+00 : f32
    %432 = vector.broadcast %cst_96 : f32 to vector<2x128xf32>
    %433 = arith.addf %432, %431 : vector<2x128xf32>
    %434 = arith.divf %432, %433 : vector<2x128xf32>
    %435 = arith.mulf %426, %380 : vector<2x128xf32>
    %436 = arith.mulf %420, %428 : vector<2x128xf32>
    %437 = arith.addf %435, %436 : vector<2x128xf32>
    %438 = math.tanh %437 : vector<2x128xf32>
    %439 = arith.mulf %434, %438 : vector<2x128xf32>
    %440 = tpu.concatenate %439, %410 in 1 : vector<2x128xf32>, vector<2x128xf32> -> vector<2x256xf32>
    %cst_97 = arith.constant dense<0.000000e+00> : vector<2x512xf32>
    %441 = tpu.matmul %440, %1, %cst_97 {dimension_numbers = #tpu.dot_dimension_numbers<[1], [0], [0], [1], [0, 0, 1, 1], [], []>} : vector<2x256xf32>, vector<256x512xf32>, vector<2x512xf32> -> vector<2x512xf32>
    %442 = arith.addf %441, %4 : vector<2x512xf32>
    %443 = vector.extract_strided_slice %442 {offsets = [0, 0], sizes = [2, 128], strides = [1, 1]} : vector<2x512xf32> to vector<2x128xf32>
    %444 = arith.negf %443 : vector<2x128xf32>
    %445 = math.exp %444 : vector<2x128xf32>
    %cst_98 = arith.constant 1.000000e+00 : f32
    %446 = vector.broadcast %cst_98 : f32 to vector<2x128xf32>
    %447 = arith.addf %446, %445 : vector<2x128xf32>
    %448 = arith.divf %446, %447 : vector<2x128xf32>
    %449 = vector.extract_strided_slice %442 {offsets = [0, 128], sizes = [2, 128], strides = [1, 1]} : vector<2x512xf32> to vector<2x128xf32>
    %450 = arith.negf %449 : vector<2x128xf32>
    %451 = math.exp %450 : vector<2x128xf32>
    %cst_99 = arith.constant 1.000000e+00 : f32
    %452 = vector.broadcast %cst_99 : f32 to vector<2x128xf32>
    %453 = arith.addf %452, %451 : vector<2x128xf32>
    %454 = arith.divf %452, %453 : vector<2x128xf32>
    %455 = vector.extract_strided_slice %442 {offsets = [0, 256], sizes = [2, 128], strides = [1, 1]} : vector<2x512xf32> to vector<2x128xf32>
    %456 = math.tanh %455 : vector<2x128xf32>
    %457 = vector.extract_strided_slice %442 {offsets = [0, 384], sizes = [2, 128], strides = [1, 1]} : vector<2x512xf32> to vector<2x128xf32>
    %458 = arith.negf %457 : vector<2x128xf32>
    %459 = math.exp %458 : vector<2x128xf32>
    %cst_100 = arith.constant 1.000000e+00 : f32
    %460 = vector.broadcast %cst_100 : f32 to vector<2x128xf32>
    %461 = arith.addf %460, %459 : vector<2x128xf32>
    %462 = arith.divf %460, %461 : vector<2x128xf32>
    %463 = arith.mulf %454, %408 : vector<2x128xf32>
    %464 = arith.mulf %448, %456 : vector<2x128xf32>
    %465 = arith.addf %463, %464 : vector<2x128xf32>
    %466 = math.tanh %465 : vector<2x128xf32>
    %467 = arith.mulf %462, %466 : vector<2x128xf32>
    %c14_101 = arith.constant 14 : index
    %c0_102 = arith.constant 0 : index
    %468 = vector.load %arg10[%c14_101, %c0_102] : memref<16x128xf32, #tpu.memory_space<vmem>>, vector<2x128xf32>
    tpu.vector_store %arg10[%c14_101, %c0_102], %467 {strides = array<i32>} : memref<16x128xf32, #tpu.memory_space<vmem>>, vector<2x128xf32>,
    %c0_103 = arith.constant 0 : index
    %c0_104 = arith.constant 0 : index
    %469 = vector.load %arg10[%c0_103, %c0_104] : memref<16x128xf32, #tpu.memory_space<vmem>>, vector<16x128xf32>
    %c0_105 = arith.constant 0 : index
    %c0_106 = arith.constant 0 : index
    %470 = vector.load %arg6[%c0_105, %c0_106] : memref<128x128xf32, #tpu.memory_space<vmem>>, vector<128x128xf32>
    %cst_107 = arith.constant dense<0.000000e+00> : vector<16x128xf32>
    %471 = tpu.matmul %469, %470, %cst_107 {dimension_numbers = #tpu.dot_dimension_numbers<[1], [0], [0], [1], [0, 0, 1, 1], [], []>} : vector<16x128xf32>, vector<128x128xf32>, vector<16x128xf32> -> vector<16x128xf32>
    %c0_108 = arith.constant 0 : index
    %c0_109 = arith.constant 0 : index
    %472 = vector.load %arg7[%c0_108, %c0_109] : memref<1x128xf32, #tpu.memory_space<vmem>>, vector<1x128xf32>
    %473 = vector.broadcast %472 : vector<1x128xf32> to vector<16x128xf32>
    %474 = arith.addf %471, %473 : vector<16x128xf32>
    %c0_110 = arith.constant 0 : index
    %c0_111 = arith.constant 0 : index
    %475 = vector.load %arg8[%c0_110, %c0_111] : memref<16x128xf32, #tpu.memory_space<vmem>>, vector<16x128xf32>
    tpu.vector_store %arg8[%c0_110, %c0_111], %474 {strides = array<i32>} : memref<16x128xf32, #tpu.memory_space<vmem>>, vector<16x128xf32>,
    return
  }
}

</mosaic_0001>

<bundles_post_ra>
// kernel: tpu_custom_call.1
= control target key start
LH: loop header
LB: loop body
LE: loop exit
PB: predicated region body
PF: predicated region fallthrough
CT: control target
= control target key end

     0   :  { %13 = vsyncpa [#allocation5], 0  ;;  %s8377_s0 = inlined_call_operand.hbm [shape: f32[16,42], index: 0, kind: input, shape index: {}]   ;;  %s8378_s1 = inlined_call_operand.hbm [shape: f32[42,512], index: 1, kind: input, shape index: {}]   ;;  %s8379_s2 = inlined_call_operand.hbm [shape: f32[128,512], index: 2, kind: input, shape index: {}]   ;;  %s8380_s3 = inlined_call_operand.hbm [shape: f32[1,512], index: 3, kind: input, shape index: {}]   ;;  %s8381_s4 = inlined_call_operand.hbm [shape: f32[256,512], index: 4, kind: input, shape index: {}]   ;;  %s8382_s5 = inlined_call_operand.vmem [shape: f32[1,512], index: 5, kind: input, shape index: {}]   ;;  %s8383_s6 = inlined_call_operand.hbm [shape: f32[128,128], index: 6, kind: input, shape index: {}]   ;;  %s8384_s7 = inlined_call_operand.vmem [shape: f32[1,128], index: 7, kind: input, shape index: {}]   ;;  %s8385_s8 = inlined_call_operand.hbm [shape: f32[16,128], index: 8, kind: output, shape index: {}]  }
   0x1   :  { %14 = vsyncpa [#allocation8], 0 }
   0x2   :  { %15 = vsyncpa [#allocation11], 0 }
   0x3   :  { %16 = vsyncpa [#allocation14], 0  ;;  %s35_s29 = sshll.u32 %s8378_s1, 4  ;;  %s36_s29 = int_to_ptr.hbm [resolvable:$true] %s35_s29 }
   0x4   :  { %17 = vsyncpa [#allocation6], 0  ;;  %s4796_s30 = smov [#allocation7]   ;;  %s62_s12 = sshll.u32 %s8380_s3, 4  ;;  %s63_s12 = int_to_ptr.hbm [resolvable:$true] %s62_s12 }
   0x5   :  { %s37_s9 = sshll.u32 %s4796_s30, 4  ;;  %s4797_s13 = smov 512   ;;  %s38_s9 = int_to_ptr.vmem [resolvable:$true] %s37_s9 }
   0x6   :  { %s4798_s14 = smov 32   ;;  %s4799_s15 = smov [#allocation10]  }
   0x7   :  { %43 = dma.hbm_to_vmem [thread:$0]  %s36_s29, 3072, %s38_s9, [#allocation8], %s4797_s13, %s4797_s13, %s4798_s14  }
   0x8   :  { %s64_s16 = sshll.u32 %s4799_s15, 4  ;;  %s22_s18 = sshll.u32 %s8377_s0, 4  ;;  %s65_s16 = int_to_ptr.vmem [resolvable:$true] %s64_s16  ;;  %s23_s18 = int_to_ptr.hbm [resolvable:$true] %s22_s18 }
   0x9   :  { %67 = dma.hbm_to_vmem [thread:$0]  %s63_s12, 64, %s65_s16, [#allocation11]  }
   0xa   :  { %s4800_s19 = smov [#allocation4]   ;;  %s48_s22 = sshll.u32 %s8379_s2, 4  ;;  %s49_s22 = int_to_ptr.hbm [resolvable:$true] %s48_s22 }
   0xb   :  { %s24_s20 = sshll.u32 %s4800_s19, 4  ;;  %s4801_s23 = smov 128   ;;  %s25_s20 = int_to_ptr.vmem [resolvable:$true] %s24_s20 }
   0xc   :  { %s4802_s24 = smov 8   ;;  %s4803_s25 = smov [#allocation9]  }
   0xd   :  { %30 = dma.hbm_to_vmem [thread:$0]  %s23_s18, 256, %s25_s20, [#allocation5], %s4801_s23, %s4801_s23, %s4802_s24  }
   0xe   :  { %s50_s26 = sshll.u32 %s4803_s25, 4  ;;  %s72_s28 = sshll.u32 %s8381_s4, 4  ;;  %s51_s26 = int_to_ptr.vmem [resolvable:$true] %s50_s26  ;;  %s73_s28 = int_to_ptr.hbm [resolvable:$true] %s72_s28 }
   0xf   :  { %56 = dma.hbm_to_vmem [thread:$0]  %s49_s22, 8192, %s51_s26, [#allocation8], %s4797_s13, %s4797_s13, %s4798_s14  }
  0x10   :  { %s87_s30 = sshll.u32 %s8383_s6, 4  ;;  %s4804_s9 = smov [#allocation12]   ;;  %s88_s30 = int_to_ptr.hbm [resolvable:$true] %s87_s30 }
  0x11   :  { %s74_s10 = sshll.u32 %s4804_s9, 4  ;;  %s4805_s11 = smov [#allocation13]   ;;  %s75_s10 = int_to_ptr.vmem [resolvable:$true] %s74_s10 }
  0x12   :  { %80 = dma.hbm_to_vmem [thread:$0]  %s73_s28, 16384, %s75_s10, [#allocation11], %s4797_s13, %s4797_s13, %s4798_s14  }
  0x13   :  { %s89_s4 = sshll.u32 %s4805_s11, 4  ;;  %s90_s4 = int_to_ptr.vmem [resolvable:$true] %s89_s4 }
  0x14   :  { %95 = dma.hbm_to_vmem [thread:$0]  %s88_s30, 2048, %s90_s4, [#allocation14], %s4801_s23, %s4801_s23, %s4802_s24  }
  0x15   :  { %4786 = dma.done.wait [#allocation5], 256  }
  0x16   :  { %4787 = vsyncadd [#allocation5], 4294967040 }
  0x17   :  { %4788 = dma.done.wait [#allocation8], 11264  }
  0x18   :  { %4789 = vsyncadd [#allocation8], 4294956032 }
  0x19   :  { %4790 = dma.done.wait [#allocation11], 16448  }
  0x1a   :  { %4791 = vsyncadd [#allocation11], 4294950848 }
  0x1b   :  { %4792 = dma.done.wait [#allocation14], 2048  }
  0x1c   :  { %4793 = vsyncadd [#allocation14], 4294965248  ;;  %vm367_vm0 = vcmask 1041408   ;;  %v346_v0 = vld [vmem:[#allocation7 + $0xa0] sm:$0x3]  ;;  %v345_v4 = vld [vmem:[#allocation7 + $0x98] sm:$0xff] }
  0x1d   :  { %v349_v1 = vld [vmem:[#allocation7 + $0xb8] sm:$0x3]  ;;  %v182_v2 = vld [vmem:[#allocation9 + $0x1e0] sm:$0xff]  ;;  %3684 = vmatpush.msk.msra.mxu1 %vm367_vm0, %v346_v0  ;;  %v348_v7 = vld [vmem:[#allocation7 + $0xb0] sm:$0x3]  ;;  %vm360_vm1 = vcmask 343040  }
  0x1e   :  { %3693 = vmatpush.msk.msra.mxu3 %vm367_vm0, %v349_v1  ;;  %v342_v3 = vld [vmem:[#allocation7 + $0x80] sm:$0xff]  ;;  %484 = vmatpush.msra.mxu0 %v182_v2  ;;  %v341_v8 = vld [vmem:[#allocation7 + $0x78] sm:$0xff]  ;;  %v344_v10 = vld [vmem:[#allocation7 + $0x90] sm:$0xff]  ;;  %s3668_s17 = sshll.u32 %s8385_s8, 4  ;;  %s3669_s17 = int_to_ptr.hbm [resolvable:$true] %s3668_s17 }
  0x1f   :  { %v178_v5 = vld [vmem:[#allocation9 + $0x1c0] sm:$0xff]  ;;  %391 = vmatpush.msra.mxu1 %v342_v3  ;;  %3690 = vmatpush.msk.msra.mxu2 %vm367_vm0, %v348_v7  ;;  %v337_v12 = vld [vmem:[#allocation7 + $0x58] sm:$0xff]  ;;  %v340_v14 = vld [vmem:[#allocation7 + $0x70] sm:$0xff] }
  0x20   :  { %v338_v6 = vld [vmem:[#allocation7 + $0x60] sm:$0xff]  ;;  %460 = vmatpush.msra.mxu3 %v345_v4  ;;  %485 = vmatpush.msra.mxu0 %v178_v5  ;;  %v333_v16 = vld [vmem:[#allocation7 + $0x38] sm:$0xff]  ;;  %v336_v18 = vld [vmem:[#allocation7 + $0x50] sm:$0xff]  ;;  %v8386_v5 = vmov 0.0  }
  0x21   :  { %v174_v9 = vld [vmem:[#allocation9 + $0x1a0] sm:$0xff]  ;;  %392 = vmatpush.msra.mxu1 %v338_v6  ;;  %437 = vmatpush.msra.mxu2 %v344_v10  ;;  %v329_v20 = vld [vmem:[#allocation7 + $0x18] sm:$0xff]  ;;  %v347_v22 = vld [vmem:[#allocation7 + $0xa8] sm:$0x3] }
  0x22   :  { %v334_v11 = vld [vmem:[#allocation7 + $0x40] sm:$0xff]  ;;  %461 = vmatpush.msra.mxu3 %v341_v8  ;;  %486 = vmatpush.msra.mxu0 %v174_v9  ;;  %v4889_v23 = vld [vmem:[#allocation9 + $0x1f8] sm:$0xff]  ;;  %v332_v24 = vld [vmem:[#allocation7 + $0x30] sm:$0xff] }
  0x23   :  { %v170_v13 = vld [vmem:[#allocation9 + $0x180] sm:$0xff]  ;;  %393 = vmatpush.msra.mxu1 %v334_v11  ;;  %438 = vmatpush.msra.mxu2 %v340_v14  ;;  %v343_v26 = vld [vmem:[#allocation7 + $0x88] sm:$0xff]  ;;  %v4892_v27 = vld [vmem:[#allocation9 + $0x1d8] sm:$0xff] }
  0x24   :  { %v330_v15 = vld [vmem:[#allocation7 + $0x20] sm:$0xff]  ;;  %462 = vmatpush.msra.mxu3 %v337_v12  ;;  %487 = vmatpush.msra.mxu0 %v170_v13  ;;  %v328_v28 = vld [vmem:[#allocation7 + $0x10] sm:$0xff]  ;;  %v339_v30 = vld [vmem:[#allocation7 + $0x68] sm:$0xff] }
  0x25   :  { %v166_v17 = vld [vmem:[#allocation9 + $0x160] sm:$0xff]  ;;  %394 = vmatpush.msra.mxu1 %v330_v15  ;;  %439 = vmatpush.msra.mxu2 %v336_v18  ;;  %v184_v31 = vld [vmem:[#allocation9 + $0x1f0] sm:$0xff]  ;;  %v4895_v32 = vld [vmem:[#allocation9 + $0x1b8] sm:$0xff] }
  0x26   :  { %v326_v19 = vld [vmem:[#allocation7] sm:$0xff]  ;;  %463 = vmatpush.msra.mxu3 %v333_v16  ;;  %488 = vmatpush.msra.mxu0 %v166_v17  ;;  %v335_v34 = vld [vmem:[#allocation7 + $0x48] sm:$0xff]  ;;  %v180_v35 = vld [vmem:[#allocation9 + $0x1d0] sm:$0xff] }
  0x27   :  { %v162_v21 = vld [vmem:[#allocation9 + $0x140] sm:$0xff]  ;;  %395 = vmatpush.msra.mxu1 %v326_v19  ;;  %440 = vmatpush.msra.mxu2 %v332_v24  ;;  %v4898_v36 = vld [vmem:[#allocation9 + $0x198] sm:$0xff]  ;;  %v331_v38 = vld [vmem:[#allocation7 + $0x28] sm:$0xff] }
  0x28   :  { %464 = vmatpush.msra.mxu3 %v329_v20  ;;  %v158_v25 = vld [vmem:[#allocation9 + $0x120] sm:$0xff]  ;;  %489 = vmatpush.msra.mxu0 %v162_v21  ;;  %v176_v39 = vld [vmem:[#allocation9 + $0x1b0] sm:$0xff]  ;;  %v4901_v40 = vld [vmem:[#allocation9 + $0x178] sm:$0xff] }
  0x29   :  { %3687 = vmatpush.msk.msrb.mxu1 %vm367_vm0, %v347_v22  ;;  %v154_v29 = vld [vmem:[#allocation9 + $0x100] sm:$0xff]  ;;  %441 = vmatpush.msra.mxu2 %v328_v28  ;;  %v4904_v42 = vld [vmem:[#allocation4] sm:$0xff]  ;;  %v327_v43 = vld [vmem:[#allocation7 + $0x8] sm:$0xff] }
  0x2a   :  { %544 = vmatpush.msrb.mxu3 %v4889_v23  ;;  %490 = vmatpush.msra.mxu0 %v158_v25  ;;  %v150_v33 = vld [vmem:[#allocation9 + $0xe0] sm:$0xff]  ;;  %v172_v44 = vld [vmem:[#allocation9 + $0x190] sm:$0xff]  ;;  %v4907_v45 = vld [vmem:[#allocation9 + $0x158] sm:$0xff] }
  0x2b   :  { %414 = vmatpush.msrb.mxu1 %v343_v26  ;;  %524 = vmatpush.msrb.mxu2 %v184_v31  ;;  %v146_v37 = vld [vmem:[#allocation9 + $0xc0] sm:$0xff]  ;;  %v4911_v47 = vld [vmem:[#allocation9 + $0x1e8] sm:$0xff]  ;;  %v168_v48 = vld [vmem:[#allocation9 + $0x170] sm:$0xff] }
  0x2c   :  { %545 = vmatpush.msrb.mxu3 %v4892_v27  ;;  %491 = vmatpush.msra.mxu0 %v154_v29  ;;  %v142_v41 = vld [vmem:[#allocation9 + $0xa0] sm:$0xff]  ;;  %v4913_v49 = vld [vmem:[#allocation9 + $0x138] sm:$0xff]  ;;  %v4916_v51 = vld [vmem:[#allocation9 + $0x1c8] sm:$0xff] }
  0x2d   :  { %415 = vmatpush.msrb.mxu1 %v339_v30  ;;  %525 = vmatpush.msrb.mxu2 %v180_v35  ;;  %v138_v46 = vld [vmem:[#allocation9 + $0x80] sm:$0xff]  ;;  %v164_v52 = vld [vmem:[#allocation9 + $0x150] sm:$0xff]  ;;  %v4919_v53 = vld [vmem:[#allocation9 + $0x118] sm:$0xff] }
  0x2e   :  { %546 = vmatpush.msrb.mxu3 %v4895_v32  ;;  %492 = vmatpush.msra.mxu0 %v150_v33  ;;  %v134_v50 = vld [vmem:[#allocation9 + $0x60] sm:$0xff]  ;;  %v4922_v55 = vld [vmem:[#allocation9 + $0x1a8] sm:$0xff]  ;;  %v160_v56 = vld [vmem:[#allocation9 + $0x130] sm:$0xff] }
  0x2f   :  { %416 = vmatpush.msrb.mxu1 %v335_v34  ;;  %526 = vmatpush.msrb.mxu2 %v176_v39  ;;  %v130_v54 = vld [vmem:[#allocation9 + $0x40] sm:$0xff]  ;;  %v4925_v57 = vld [vmem:[#allocation9 + $0xf8] sm:$0xff]  ;;  %v4928_v59 = vld [vmem:[#allocation9 + $0x188] sm:$0xff] }
  0x30   :  { %547 = vmatpush.msrb.mxu3 %v4898_v36  ;;  %493 = vmatpush.msra.mxu0 %v146_v37  ;;  %v126_v58 = vld [vmem:[#allocation9 + $0x20] sm:$0xff]  ;;  %v4933_v60 = vld [vmem:[#allocation4 + $0x8] sm:$0xff]  ;;  %v156_v61 = vld [vmem:[#allocation9 + $0x110] sm:$0xff] }
  0x31   :  { %417 = vmatpush.msrb.mxu1 %v331_v38  ;;  %527 = vmatpush.msrb.mxu2 %v172_v44  ;;  %v4936_v62 = vld [vmem:[#allocation9 + $0xd8] sm:$0xff]  ;;  %v122_v63 = vld [vmem:[#allocation9] sm:$0xff]  ;;  %v4939_v0 = vld [vmem:[#allocation9 + $0x168] sm:$0xff] }
  0x32   :  { %548 = vmatpush.msrb.mxu3 %v4901_v40  ;;  %494 = vmatpush.msra.mxu0 %v142_v41  ;;  %v152_v1 = vld [vmem:[#allocation9 + $0xf0] sm:$0xff]  ;;  %v4946_v2 = vld [vmem:[#allocation9 + $0xb8] sm:$0xff]  ;;  %v4948_v3 = vld [vmem:[#allocation9 + $0x148] sm:$0xff] }
  0x33   :  { %3685 = vmatmul.msk.f32.vlgmr.msra.gmra.mxu1 %vm360_vm1, %v4904_v42  ;;  %528 = vmatpush.msrb.mxu2 %v168_v48  ;;  %v148_v4 = vld [vmem:[#allocation9 + $0xd0] sm:$0xff]  ;;  %v4952_v6 = vld [vmem:[#allocation9 + $0x98] sm:$0xff]  ;;  %v4954_v7 = vld [vmem:[#allocation9 + $0x128] sm:$0xff] }
  0x34   :  { %418 = vmatpush.msrb.mxu1 %v327_v43  ;;  %549 = vmatpush.msrb.mxu3 %v4907_v45  ;;  %v144_v8 = vld [vmem:[#allocation9 + $0xb0] sm:$0xff]  ;;  %v4960_v9 = vld [vmem:[#allocation9 + $0x78] sm:$0xff]  ;;  %v4962_v10 = vld [vmem:[#allocation9 + $0x108] sm:$0xff] }
  0x35   :  { %495 = vmatpush.msra.mxu0 %v138_v46  ;;  %529 = vmatpush.msrb.mxu2 %v164_v52  ;;  %v140_v11 = vld [vmem:[#allocation9 + $0x90] sm:$0xff]  ;;  %v4966_v12 = vld [vmem:[#allocation9 + $0x58] sm:$0xff]  ;;  %v4970_v13 = vld [vmem:[#allocation9 + $0xe8] sm:$0xff] }
  0x36   :  { %504 = vmatpush.msra.mxu1 %v4911_v47  ;;  %550 = vmatpush.msrb.mxu3 %v4913_v49  ;;  %v136_v14 = vld [vmem:[#allocation9 + $0x70] sm:$0xff]  ;;  %v4974_v15 = vld [vmem:[#allocation9 + $0x38] sm:$0xff]  ;;  %v4979_v16 = vld [vmem:[#allocation9 + $0xc8] sm:$0xff] }
  0x37   :  { %496 = vmatpush.msra.mxu0 %v134_v50  ;;  %3694 = vmatmul.msk.f32.vlgmr.msra.gmra.mxu3 %vm360_vm1, %v4904_v42  ;;  %v4981_v17 = vld [vmem:[#allocation9 + $0x50] sm:$0xff]  ;;  %v4984_v18 = vld [vmem:[#allocation9 + $0x18] sm:$0xff]  ;;  %v4987_v19 = vld [vmem:[#allocation9 + $0xa8] sm:$0xff] }
  0x38   :  { %505 = vmatpush.msra.mxu1 %v4916_v51  ;;  %551 = vmatpush.msrb.mxu3 %v4919_v53  ;;  %8875 = vst [vmem:[#allocation21_spill] sm:$0xff] %v4981_v17  ;;  %v4991_v20 = vld [vmem:[#allocation9 + $0x30] sm:$0xff]  ;;  %v4996_v22 = vld [vmem:[#allocation9 + $0x88] sm:$0xff] }
  0x39   :  { %497 = vmatpush.msra.mxu0 %v130_v54  ;;  %530 = vmatpush.msrb.mxu2 %v160_v56  ;;  %8876 = vst [vmem:[#allocation22_spill] sm:$0xff] %v4991_v20  ;;  %v4993_v21 = vld [vmem:[#allocation12 + $0x3e8] sm:$0xff]  ;;  %v5030_v35 = vld [vmem:[#allocation12 + $0x3e0] sm:$0xff] }
  0x3a   :  { %506 = vmatpush.msra.mxu1 %v4922_v55  ;;  %552 = vmatpush.msrb.mxu3 %v4925_v57  ;;  %v5000_v24 = vld [vmem:[#allocation9 + $0x10] sm:$0xff]  ;;  %v5003_v25 = vld [vmem:[#allocation9 + $0x68] sm:$0xff] }
  0x3b   :  { %498 = vmatpush.msra.mxu0 %v126_v58  ;;  %3686 = vmatmul.msk.f32.gmra.mxu1 %vm360_vm1, %v4933_v60  ;;  %8877 = vst [vmem:[#allocation23_spill] sm:$0xff] %v5000_v24  ;;  %v5007_v26 = vld [vmem:[#allocation12 + $0x3c8] sm:$0xff]  ;;  %v5037_v38 = vld [vmem:[#allocation12 + $0x3c0] sm:$0xff] }
  0x3c   :  { %507 = vmatpush.msra.mxu1 %v4928_v59  ;;  %531 = vmatpush.msrb.mxu2 %v156_v61  ;;  %v5012_v28 = vld [vmem:[#allocation9 + $0x48] sm:$0xff] }
  0x3d   :  { %553 = vmatpush.msrb.mxu3 %v4936_v62  ;;  %3691 = vmatmul.msk.f32.vlgmr.msra.gmra.mxu2 %vm360_vm1, %v4904_v42  ;;  %v5016_v29 = vld [vmem:[#allocation12 + $0x3a8] sm:$0xff]  ;;  %v5043_v41 = vld [vmem:[#allocation12 + $0x3a0] sm:$0xff] }
  0x3e   :  { %499 = vmatpush.msra.mxu0 %v122_v63  ;;  %508 = vmatpush.msra.mxu1 %v4939_v0  ;;  %v5018_v30 = vld [vmem:[#allocation9 + $0x28] sm:$0xff] }
  0x3f   :  { %500 = vmatmul.f32.vlgmr.msra.gmra.mxu0 %v8386_v5  ;;  %532 = vmatpush.msrb.mxu2 %v152_v1  ;;  %v5022_v31 = vld [vmem:[#allocation12 + $0x388] sm:$0xff]  ;;  %v5049_v43 = vld [vmem:[#allocation12 + $0x380] sm:$0xff] }
  0x40   :  { %554 = vmatpush.msrb.mxu3 %v4946_v2  ;;  %509 = vmatpush.msra.mxu1 %v4948_v3  ;;  %v5024_v33 = vld [vmem:[#allocation9 + $0x8] sm:$0xff] }
  0x41   :  { %533 = vmatpush.msrb.mxu2 %v148_v4  ;;  %3695 = vmatmul.msk.f32.gmra.mxu3 %vm360_vm1, %v4933_v60  ;;  %v5028_v34 = vld [vmem:[#allocation12 + $0x368] sm:$0xff]  ;;  %v5055_v46 = vld [vmem:[#allocation12 + $0x360] sm:$0xff] }
  0x42   :  { %555 = vmatpush.msrb.mxu3 %v4952_v6  ;;  %510 = vmatpush.msra.mxu1 %v4954_v7  ;;  %v5034_v37 = vld [vmem:[#allocation12 + $0x348] sm:$0xff]  ;;  %v5059_v48 = vld [vmem:[#allocation12 + $0x340] sm:$0xff] }
  0x43   :  { %534 = vmatpush.msrb.mxu2 %v144_v8  ;;  %3688 = vmatmul.msk.f32.vlgmr.msrb.gmra.mxu1 %vm360_vm1, %v4904_v42  ;;  %v5041_v39 = vld [vmem:[#allocation12 + $0x328] sm:$0xff]  ;;  %v5063_v50 = vld [vmem:[#allocation12 + $0x320] sm:$0xff] }
  0x44   :  { %556 = vmatpush.msrb.mxu3 %v4960_v9  ;;  %511 = vmatpush.msra.mxu1 %v4962_v10  ;;  %v5047_v42 = vld [vmem:[#allocation12 + $0x308] sm:$0xff]  ;;  %v5066_v52 = vld [vmem:[#allocation12 + $0x300] sm:$0xff] }
  0x45   :  { %535 = vmatpush.msrb.mxu2 %v140_v11  ;;  %v5053_v44 = vld [vmem:[#allocation12 + $0x2e8] sm:$0xff]  ;;  %v5069_v54 = vld [vmem:[#allocation12 + $0x2e0] sm:$0xff] }
  0x46   :  { %557 = vmatpush.msrb.mxu3 %v4966_v12  ;;  %3692 = vmatmul.msk.f32.gmra.mxu2 %vm360_vm1, %v4933_v60  ;;  %8878 = vst [vmem:[#allocation24_spill] sm:$0xff] %v5053_v44  ;;  %v5073_v56 = vld [vmem:[#allocation12 + $0x2c0] sm:$0xff]  ;;  %v5075_v58 = vld [vmem:[#allocation12 + $0x2c8] sm:$0xff] }
  0x47   :  { %512 = vmatpush.msra.mxu1 %v4970_v13  ;;  %536 = vmatpush.msrb.mxu2 %v136_v14  ;;  %8879 = vst [vmem:[#allocation25_spill] sm:$0xff] %v5069_v54  ;;  %v5081_v61 = vld [vmem:[#allocation12 + $0x2a8] sm:$0xff]  ;;  %v5083_v63 = vld [vmem:[#allocation12 + $0x280] sm:$0xff] }
  0x48   :  { %558 = vmatpush.msrb.mxu3 %v4974_v15  ;;  %8880 = vst [vmem:[#allocation26_spill] sm:$0xff] %v5073_v56  ;;  %v5085_v1 = vld [vmem:[#allocation12 + $0x288] sm:$0xff]  ;;  %v5089_v4 = vld [vmem:[#allocation12 + $0x260] sm:$0xff] }
  0x49   :  { %513 = vmatpush.msra.mxu1 %v4979_v16  ;;  %537 = vmatpush.msrb.mxu2 %v4981_v17  ;;  %8881 = vst [vmem:[#allocation27_spill] sm:$0xff] %v5075_v58  ;;  %v5091_v8 = vld [vmem:[#allocation12 + $0x268] sm:$0xff]  ;;  %v5097_v11 = vld [vmem:[#allocation12 + $0x240] sm:$0xff] }
  0x4a   :  { %559 = vmatpush.msrb.mxu3 %v4984_v18  ;;  %8883 = vst [vmem:[#allocation29_spill] sm:$0xff] %v5081_v61  ;;  %v5099_v14 = vld [vmem:[#allocation12 + $0x248] sm:$0xff] }
  0x4b   :  { %514 = vmatpush.msra.mxu1 %v4987_v19  ;;  %560 = vmatmul.f32.vlgmr.msrb.gmra.mxu3 %v8386_v5  ;;  %8884 = vst [vmem:[#allocation30_spill] sm:$0xff] %v5083_v63  ;;  %v5111_v17 = vld [vmem:[#allocation12 + $0x208] sm:$0xff] }
  0x4c   :  { %538 = vmatpush.msrb.mxu2 %v4991_v20  ;;  %691 = vmatpush.msra.mxu3 %v4993_v21  ;;  %8885 = vst [vmem:[#allocation31_spill] sm:$0xff] %v5085_v1  ;;  %v5109_v20 = vld [vmem:[#allocation12 + $0x200] sm:$0xff] }
  0x4d   :  { %515 = vmatpush.msra.mxu1 %v4996_v22  ;;  %8886 = vst [vmem:[#allocation32_spill] sm:$0xff] %v5089_v4 }
  0x4e   :  { %3689 = vmatmul.msk.f32.gmra.mxu1 %vm360_vm1, %v4933_v60  ;;  %539 = vmatpush.msrb.mxu2 %v5000_v24  ;;  %v5077_v60 = vld [vmem:[#allocation12 + $0x2a0] sm:$0xff]  ;;  %8887 = vst [vmem:[#allocation33_spill] sm:$0xff] %v5091_v8  ;;  %v5105_v24 = vld [vmem:[#allocation12 + $0x228] sm:$0xff] }
  0x4f   :  { %516 = vmatpush.msra.mxu1 %v5003_v25  ;;  %540 = vmatmul.f32.vlgmr.msrb.gmra.mxu2 %v8386_v5  ;;  %8882 = vst [vmem:[#allocation28_spill] sm:$0xff] %v5077_v60 }
  0x50   :  { %692 = vmatpush.msra.mxu3 %v5007_v26  ;;  %8888 = vst [vmem:[#allocation34_spill] sm:$0xff] %v5097_v11 }
  0x51   :  { %517 = vmatpush.msra.mxu1 %v5012_v28  ;;  %8889 = vst [vmem:[#allocation35_spill] sm:$0xff] %v5099_v14 }
  0x52   :  { %693 = vmatpush.msra.mxu3 %v5016_v29  ;;  %8891 = vst [vmem:[#allocation37_spill] sm:$0xff] %v5105_v24 }
  0x53   :  { %518 = vmatpush.msra.mxu1 %v5018_v30  ;;  %8892 = vst [vmem:[#allocation38_spill] sm:$0xff] %v5109_v20 }
  0x54   :  { %694 = vmatpush.msra.mxu3 %v5022_v31  ;;  %8893 = vst [vmem:[#allocation39_spill] sm:$0xff] %v5111_v17 }
  0x55   :  { %519 = vmatpush.msra.mxu1 %v5024_v33 }
  0x56   :  { %520 = vmatmul.f32.vlgmr.msra.gmra.mxu1 %v8386_v5  ;;  %695 = vmatpush.msra.mxu3 %v5028_v34  ;;  %v5103_v5 = vld [vmem:[#allocation12 + $0x220] sm:$0xff] }
  0x57   :  { %651 = vmatpush.msrb.mxu1 %v5030_v35  ;;  %8890 = vst [vmem:[#allocation36_spill] sm:$0xff] %v5103_v5 }
  0x58   :  { %696 = vmatpush.msra.mxu3 %v5034_v37 }
  0x59   :  { %652 = vmatpush.msrb.mxu1 %v5037_v38 }
  0x5a   :  { %697 = vmatpush.msra.mxu3 %v5041_v39 }
  0x5b   :  { %653 = vmatpush.msrb.mxu1 %v5043_v41 }
  0x5c   :  { %698 = vmatpush.msra.mxu3 %v5047_v42 }
  0x5d   :  { %654 = vmatpush.msrb.mxu1 %v5049_v43 }
  0x5e   :  { %699 = vmatpush.msra.mxu3 %v5053_v44  ;;  %v5292_v44 = vld [vmem:[#allocation12 + $0x20] sm:$0xff] }
  0x5f   :  { %655 = vmatpush.msrb.mxu1 %v5055_v46  ;;  %8952 = vst [vmem:[#allocation96_spill] sm:$0xff] %v5292_v44 }
  0x60   :  { %700 = vmatpush.msra.mxu3 %v5075_v58 }
  0x61   :  { %656 = vmatpush.msrb.mxu1 %v5059_v48 }
  0x62   :  { %701 = vmatpush.msra.mxu3 %v5081_v61  ;;  %v5218_v61 = vld [vmem:[#allocation12 + $0x2f0] sm:$0xff] }
  0x63   :  { %657 = vmatpush.msrb.mxu1 %v5063_v50  ;;  %8928 = vst [vmem:[#allocation74_spill] sm:$0xff] %v5218_v61 }
  0x64   :  { %702 = vmatpush.msra.mxu3 %v5085_v1  ;;  %v5185_v1 = vld [vmem:[#allocation12 + $0x358] sm:$0xff] }
  0x65   :  { %658 = vmatpush.msrb.mxu1 %v5066_v52  ;;  %8917 = vst [vmem:[#allocation63_spill] sm:$0xff] %v5185_v1 }
  0x66   :  { %703 = vmatpush.msra.mxu3 %v5091_v8  ;;  %v5115_v8 = vld [vmem:[#allocation12 + $0x1e0] sm:$0xff] }
  0x67   :  { %659 = vmatpush.msrb.mxu1 %v5069_v54  ;;  %8894 = vst [vmem:[#allocation40_spill] sm:$0xff] %v5115_v8  ;;  %631 = vmatpush.msrb.mxu0 %v5115_v8  ;;  %v5141_v8 = vld [vmem:[#allocation12 + $0x1a8] sm:$0xff]  ;;  %v5296_v54 = vld [vmem:[#allocation12 + $0x230] sm:$0xff] }
  0x68   :  { %704 = vmatpush.msra.mxu3 %v5099_v14  ;;  %v5119_v14 = vld [vmem:[#allocation12 + $0x3f0] sm:$0xff]  ;;  %8903 = vst [vmem:[#allocation49_spill] sm:$0xff] %v5141_v8 }
  0x69   :  { %660 = vmatpush.msrb.mxu1 %v5073_v56  ;;  %8896 = vst [vmem:[#allocation42_spill] sm:$0xff] %v5119_v14 }
  0x6a   :  { %705 = vmatpush.msra.mxu3 %v5105_v24  ;;  %v5127_v24 = vld [vmem:[#allocation12 + $0x1c0] sm:$0xff]  ;;  %8954 = vst [vmem:[#allocation98_spill] sm:$0xff] %v5296_v54 }
  0x6b   :  { %661 = vmatpush.msrb.mxu1 %v5077_v60  ;;  %8898 = vst [vmem:[#allocation44_spill] sm:$0xff] %v5127_v24  ;;  %632 = vmatpush.msrb.mxu0 %v5127_v24  ;;  %v5153_v24 = vld [vmem:[#allocation12 + $0x188] sm:$0xff] }
  0x6c   :  { %706 = vmatpush.msra.mxu3 %v5111_v17  ;;  %v5131_v17 = vld [vmem:[#allocation12 + $0x3d0] sm:$0xff]  ;;  %8907 = vst [vmem:[#allocation53_spill] sm:$0xff] %v5153_v24 }
  0x6d   :  { %662 = vmatpush.msrb.mxu1 %v5083_v63  ;;  %8900 = vst [vmem:[#allocation46_spill] sm:$0xff] %v5131_v17 }
  0x6f   :  { %663 = vmatpush.msrb.mxu1 %v5089_v4  ;;  %v5135_v4 = vld [vmem:[#allocation12 + $0x3d8] sm:$0xff] }
  0x70   :  { %8901 = vst [vmem:[#allocation47_spill] sm:$0xff] %v5135_v4 }
  0x71   :  { %664 = vmatpush.msrb.mxu1 %v5097_v11  ;;  %v5117_v11 = vld [vmem:[#allocation12 + $0x1e8] sm:$0xff] }
  0x72   :  { %8895 = vst [vmem:[#allocation41_spill] sm:$0xff] %v5117_v11  ;;  %671 = vmatpush.msra.mxu2 %v5117_v11  ;;  %v5139_v11 = vld [vmem:[#allocation12 + $0x1a0] sm:$0xff] }
  0x73   :  { %665 = vmatpush.msrb.mxu1 %v5103_v5  ;;  %v5123_v5 = vld [vmem:[#allocation12 + $0x3f8] sm:$0xff]  ;;  %8902 = vst [vmem:[#allocation48_spill] sm:$0xff] %v5139_v11  ;;  %633 = vmatpush.msrb.mxu0 %v5139_v11  ;;  %v5165_v11 = vld [vmem:[#allocation12 + $0x168] sm:$0xff] }
  0x74   :  { %8897 = vst [vmem:[#allocation43_spill] sm:$0xff] %v5123_v5  ;;  %771 = vmatpush.msrb.mxu3 %v5123_v5  ;;  %v5143_v5 = vld [vmem:[#allocation12 + $0x3b0] sm:$0xff] }
  0x75   :  { %666 = vmatpush.msrb.mxu1 %v5109_v20  ;;  %v5129_v20 = vld [vmem:[#allocation12 + $0x1c8] sm:$0xff]  ;;  %8904 = vst [vmem:[#allocation50_spill] sm:$0xff] %v5143_v5 }
  0x76   :  { %8899 = vst [vmem:[#allocation45_spill] sm:$0xff] %v5129_v20  ;;  %672 = vmatpush.msra.mxu2 %v5129_v20  ;;  %772 = vmatpush.msrb.mxu3 %v5135_v4  ;;  %v5151_v20 = vld [vmem:[#allocation12 + $0x180] sm:$0xff]  ;;  %v5155_v4 = vld [vmem:[#allocation12 + $0x390] sm:$0xff] }
  0x77   :  { %731 = vmatpush.msra.mxu1 %v5119_v14  ;;  %v5147_v14 = vld [vmem:[#allocation12 + $0x3b8] sm:$0xff]  ;;  %8906 = vst [vmem:[#allocation52_spill] sm:$0xff] %v5151_v20  ;;  %634 = vmatpush.msrb.mxu0 %v5151_v20 }
  0x78   :  { %673 = vmatpush.msra.mxu2 %v5141_v8  ;;  %8905 = vst [vmem:[#allocation51_spill] sm:$0xff] %v5147_v14  ;;  %773 = vmatpush.msrb.mxu3 %v5147_v14  ;;  %v5163_v8 = vld [vmem:[#allocation12 + $0x160] sm:$0xff]  ;;  %v5167_v14 = vld [vmem:[#allocation12 + $0x370] sm:$0xff]  ;;  %v5173_v20 = vld [vmem:[#allocation12 + $0x378] sm:$0xff] }
  0x79   :  { %732 = vmatpush.msra.mxu1 %v5131_v17  ;;  %8908 = vst [vmem:[#allocation54_spill] sm:$0xff] %v5155_v4  ;;  %v5159_v17 = vld [vmem:[#allocation12 + $0x398] sm:$0xff]  ;;  %635 = vmatpush.msrb.mxu0 %v5163_v8 }
  0x7a   :  { %674 = vmatpush.msra.mxu2 %v5153_v24  ;;  %8909 = vst [vmem:[#allocation55_spill] sm:$0xff] %v5159_v17  ;;  %774 = vmatpush.msrb.mxu3 %v5159_v17  ;;  %v5177_v24 = vld [vmem:[#allocation12 + $0x140] sm:$0xff]  ;;  %v5179_v17 = vld [vmem:[#allocation12 + $0x148] sm:$0xff] }
  0x7b   :  { %733 = vmatpush.msra.mxu1 %v5143_v5  ;;  %8910 = vst [vmem:[#allocation56_spill] sm:$0xff] %v5163_v8  ;;  %v5169_v5 = vld [vmem:[#allocation10] sm:$0xf]  ;;  %636 = vmatpush.msrb.mxu0 %v5177_v24  ;;  %v5190_v8 = vld [vmem:[#allocation12 + $0x120] sm:$0xff] }
  0x7c   :  { %8911 = vst [vmem:[#allocation57_spill] sm:$0xff] %v5165_v11  ;;  %675 = vmatpush.msra.mxu2 %v5165_v11  ;;  %775 = vmatpush.msrb.mxu3 %v5173_v20  ;;  %v352_v11 = vperm.slane %v5169_v5, 0 }
  0x7d   :  { %734 = vmatpush.msra.mxu1 %v5155_v4  ;;  %8912 = vst [vmem:[#allocation58_spill] sm:$0xff] %v5167_v14  ;;  %v5181_v4 = vld [vmem:[#allocation12 + $0x350] sm:$0xff]  ;;  %637 = vmatpush.msrb.mxu0 %v5190_v8 }
  0x7e   :  { %8913 = vst [vmem:[#allocation59_spill] sm:$0xff] %v5173_v20  ;;  %676 = vmatpush.msra.mxu2 %v5179_v17  ;;  %776 = vmatpush.msrb.mxu3 %v5185_v1  ;;  %v5192_v20 = vld [vmem:[#allocation12 + $0x128] sm:$0xff]  ;;  %v5206_v1 = vld [vmem:[#allocation12 + $0x310] sm:$0xff] }
  0x7f   :  { %735 = vmatpush.msra.mxu1 %v5167_v14  ;;  %8914 = vst [vmem:[#allocation60_spill] sm:$0xff] %v5177_v24  ;;  %v5194_v14 = vld [vmem:[#allocation12 + $0x330] sm:$0xff]  ;;  %v5198_v24 = vld [vmem:[#allocation12 + $0x338] sm:$0xff] }
  0x80   :  { %8915 = vst [vmem:[#allocation61_spill] sm:$0xff] %v5179_v17  ;;  %677 = vmatpush.msra.mxu2 %v5192_v20  ;;  %777 = vmatpush.msrb.mxu3 %v5198_v24  ;;  %v5202_v17 = vld [vmem:[#allocation12 + $0x100] sm:$0xff] }
  0x81   :  { %8916 = vst [vmem:[#allocation62_spill] sm:$0xff] %v5181_v4  ;;  %736 = vmatpush.msra.mxu1 %v5181_v4  ;;  %v5204_v4 = vld [vmem:[#allocation12 + $0x108] sm:$0xff]  ;;  %638 = vmatpush.msrb.mxu0 %v5202_v17 }
  0x82   :  { %8918 = vst [vmem:[#allocation64_spill] sm:$0xff] %v5190_v8  ;;  %678 = vmatpush.msra.mxu2 %v5204_v4  ;;  %v5210_v8 = vld [vmem:[#allocation12 + $0x318] sm:$0xff] }
  0x83   :  { %8919 = vst [vmem:[#allocation65_spill] sm:$0xff] %v5192_v20  ;;  %737 = vmatpush.msra.mxu1 %v5194_v14  ;;  %778 = vmatpush.msrb.mxu3 %v5210_v8 }
  0x84   :  { %8920 = vst [vmem:[#allocation66_spill] sm:$0xff] %v5194_v14  ;;  %v5214_v14 = vld [vmem:[#allocation12 + $0xe0] sm:$0xff] }
  0x85   :  { %8921 = vst [vmem:[#allocation67_spill] sm:$0xff] %v5198_v24  ;;  %738 = vmatpush.msra.mxu1 %v5206_v1  ;;  %v5216_v24 = vld [vmem:[#allocation12 + $0xe8] sm:$0xff]  ;;  %639 = vmatpush.msrb.mxu0 %v5214_v14 }
  0x86   :  { %8922 = vst [vmem:[#allocation68_spill] sm:$0xff] %v5202_v17  ;;  %679 = vmatpush.msra.mxu2 %v5216_v24  ;;  %v5222_v17 = vld [vmem:[#allocation12 + $0x2f8] sm:$0xff] }
  0x87   :  { %8923 = vst [vmem:[#allocation69_spill] sm:$0xff] %v5204_v4  ;;  %739 = vmatpush.msra.mxu1 %v5218_v61  ;;  %779 = vmatpush.msrb.mxu3 %v5222_v17  ;;  %v5228_v4 = vld [vmem:[#allocation12 + $0xc8] sm:$0xff]  ;;  %v5248_v61 = vld [vmem:[#allocation12 + $0x2b8] sm:$0xff] }
  0x88   :  { %8924 = vst [vmem:[#allocation70_spill] sm:$0xff] %v5206_v1  ;;  %v8933_v1 = vmov 0.0   ;;  %680 = vmatpush.msra.mxu2 %v5228_v4 }
  0x89   :  { %8925 = vst [vmem:[#allocation71_spill] sm:$0xff] %v5210_v8  ;;  %v5230_v8 = vld [vmem:[#allocation12 + $0x2d0] sm:$0xff]  ;;  %667 = vmatmul.f32.vlgmr.msrb.gmra.mxu1 %v8933_v1  ;;  %707 = vmatmul.f32.vlgmr.msra.gmra.mxu3 %v8933_v1 }
  0x8a   :  { %8926 = vst [vmem:[#allocation72_spill] sm:$0xff] %v5214_v14  ;;  %740 = vmatpush.msra.mxu1 %v5230_v8  ;;  %v5242_v14 = vld [vmem:[#allocation12 + $0xa8] sm:$0xff] }
  0x8b   :  { %8927 = vst [vmem:[#allocation73_spill] sm:$0xff] %v5216_v24  ;;  %v5236_v24 = vld [vmem:[#allocation12 + $0x2d8] sm:$0xff]  ;;  %681 = vmatpush.msra.mxu2 %v5242_v14 }
  0x8c   :  { %8929 = vst [vmem:[#allocation75_spill] sm:$0xff] %v5222_v17  ;;  %780 = vmatpush.msrb.mxu3 %v5236_v24  ;;  %v5244_v17 = vld [vmem:[#allocation12 + $0x2b0] sm:$0xff] }
  0x8d   :  { %8931 = vst [vmem:[#allocation77_spill] sm:$0xff] %v5228_v4  ;;  %741 = vmatpush.msra.mxu1 %v5244_v17  ;;  %v5252_v4 = vld [vmem:[#allocation12 + $0x80] sm:$0xff] }
  0x8e   :  { %8932 = vst [vmem:[#allocation78_spill] sm:$0xff] %v5230_v8  ;;  %781 = vmatpush.msrb.mxu3 %v5248_v61  ;;  %v5260_v8 = vld [vmem:[#allocation12 + $0x298] sm:$0xff] }
  0x8f   :  { %8934 = vst [vmem:[#allocation79_spill] sm:$0xff] %v5236_v24  ;;  %v5256_v24 = vld [vmem:[#allocation12 + $0x290] sm:$0xff] }
  0x90   :  { %8936 = vst [vmem:[#allocation81_spill] sm:$0xff] %v5242_v14  ;;  %742 = vmatpush.msra.mxu1 %v5256_v24  ;;  %782 = vmatpush.msrb.mxu3 %v5260_v8  ;;  %v5277_v14 = vld [vmem:[#allocation12 + $0x40] sm:$0xff] }
  0x91   :  { %8937 = vst [vmem:[#allocation82_spill] sm:$0xff] %v5244_v17  ;;  %v5267_v17 = vld [vmem:[#allocation12 + $0x68] sm:$0xff] }
  0x92   :  { %8938 = vst [vmem:[#allocation83_spill] sm:$0xff] %v5248_v61  ;;  %v5265_v61 = vld [vmem:[#allocation12 + $0x60] sm:$0xff] }
  0x93   :  { %8939 = vst [vmem:[#allocation84_spill] sm:$0xff] %v5252_v4 }
  0x94   :  { %8941 = vst [vmem:[#allocation86_spill] sm:$0xff] %v5256_v24  ;;  %v5281_v24 = vld [vmem:[#allocation12 + $0x250] sm:$0xff] }
  0x95   :  { %8942 = vst [vmem:[#allocation87_spill] sm:$0xff] %v5260_v8  ;;  %v5279_v8 = vld [vmem:[#allocation12 + $0x48] sm:$0xff] }
  0x96   :  { %8943 = vst [vmem:[#allocation88_spill] sm:$0xff] %v5265_v61 }
  0x97   :  { %8944 = vst [vmem:[#allocation89_spill] sm:$0xff] %v5267_v17 }
  0x98   :  { %8947 = vst [vmem:[#allocation92_spill] sm:$0xff] %v5277_v14 }
  0x99   :  { %8948 = vst [vmem:[#allocation93_spill] sm:$0xff] %v5279_v8 }
  0x9a   :  { %8949 = vst [vmem:[#allocation94_spill] sm:$0xff] %v5281_v24 }
  0xb0   :  { %v397_v63 = vpop.f32.mrf.mxu1 }
  0xb1   :  { %v398_v20 = vadd.f32 %v397_v63, %v352_v11  ;;  %v5226_v63 = vld [vmem:[#allocation12 + $0xc0] sm:$0xff] }
  0xb2   :  { %8930 = vst [vmem:[#allocation76_spill] sm:$0xff] %v5226_v63  ;;  %640 = vmatpush.msrb.mxu0 %v5226_v63  ;;  %v5254_v63 = vld [vmem:[#allocation12 + $0x88] sm:$0xff] }
  0xb3   :  { %472 = vst [vmem:[#allocation2 + $0x30] sm:$0xff] %v398_v20  ;;  %v5240_v20 = vld [vmem:[#allocation12 + $0xa0] sm:$0xff]  ;;  %682 = vmatpush.msra.mxu2 %v5254_v63 }
  0xb4   :  { %8935 = vst [vmem:[#allocation80_spill] sm:$0xff] %v5240_v20  ;;  %641 = vmatpush.msrb.mxu0 %v5240_v20 }
  0xb5   :  { %8940 = vst [vmem:[#allocation85_spill] sm:$0xff] %v5254_v63  ;;  %683 = vmatpush.msra.mxu2 %v5267_v17  ;;  %v5271_v63 = vld [vmem:[#allocation12 + $0x270] sm:$0xff]  ;;  %v5285_v17 = vld [vmem:[#allocation12 + $0x258] sm:$0xff] }
  0xb6   :  { %642 = vmatpush.msrb.mxu0 %v5252_v4  ;;  %8945 = vst [vmem:[#allocation90_spill] sm:$0xff] %v5271_v63  ;;  %v5273_v4 = vld [vmem:[#allocation12 + $0x278] sm:$0xff]  ;;  %743 = vmatpush.msra.mxu1 %v5271_v63  ;;  %v8951_v63 = vperm.slane %v5169_v5, 3 }
  0xb7   :  { %8946 = vst [vmem:[#allocation91_spill] sm:$0xff] %v5273_v4  ;;  %783 = vmatpush.msrb.mxu3 %v5273_v4  ;;  %684 = vmatpush.msra.mxu2 %v5279_v8  ;;  %v354_v4 = vperm.slane %v5169_v5, 2  ;;  %v5309_v8 = vld [vmem:[#allocation12 + $0x210] sm:$0xff] }
  0xb8   :  { %v400_v20 = vpop.f32.mrf.mxu1  ;;  %643 = vmatpush.msrb.mxu0 %v5265_v61  ;;  %8950 = vst [vmem:[#allocation95_spill] sm:$0xff] %v5285_v17  ;;  %744 = vmatpush.msra.mxu1 %v5281_v24 }
  0xb9   :  { %v401_v60 = vadd.f32 %v400_v20, %v352_v11  ;;  %784 = vmatpush.msrb.mxu3 %v5285_v17 }
  0xba   :  { %v480_v58 = vld [vmem:[#allocation2 + $0x30] sm:$0x3]  ;;  %v466_v20 = vpop.f32.mrf.mxu3  ;;  %644 = vmatpush.msrb.mxu0 %v5277_v14  ;;  %745 = vmatpush.msra.mxu1 %v5296_v54 }
  0xbb   :  { %476 = vst [vmem:[#allocation2 + $0x8] sm:$0xff] %v401_v60  ;;  %v467_v56 = vadd.f32 %v466_v20, %v8951_v63  ;;  %v5294_v60 = vld [vmem:[#allocation12 + $0x28] sm:$0xff]  ;;  %v353_v63 = vperm.slane %v5169_v5, 1 }
  0xbc   :  { %v501_v11 = vpop.f32.mrf.mxu0  ;;  %8953 = vst [vmem:[#allocation97_spill] sm:$0xff] %v5294_v60  ;;  %645 = vmatpush.msrb.mxu0 %v5292_v44  ;;  %685 = vmatpush.msra.mxu2 %v5294_v60  ;;  %v5307_v20 = vld [vmem:[#allocation12 + $0x8] sm:$0xff]  ;;  %v5313_v60 = vld [vmem:[#allocation12 + $0x218] sm:$0xff] }
  0xbd   :  { %v564_v61 = vadd.f32 %v501_v11, %v480_v58  ;;  %v5300_v58 = vld [vmem:[#allocation12 + $0x238] sm:$0xff]  ;;  %475 = vst [vmem:[#allocation2 + $0x10] sm:$0xff] %v467_v56  ;;  %v5305_v11 = vld [vmem:[#allocation12] sm:$0xff]  ;;  %v5315_v56 = vld [vmem:[#allocation12 + $0x1f0] sm:$0xff]  ;;  %746 = vmatpush.msra.mxu1 %v5309_v8 }
  0xbe   :  { %8955 = vst [vmem:[#allocation99_spill] sm:$0xff] %v5300_v58  ;;  %785 = vmatpush.msrb.mxu3 %v5300_v58  ;;  %646 = vmatpush.msrb.mxu0 %v5305_v11  ;;  %v5317_v44 = vld [vmem:[#allocation12 + $0x1f8] sm:$0xff] }
  0xbf   :  { %8956 = vst [vmem:[#allocation100_spill] sm:$0xff] %v5305_v11  ;;  %686 = vmatpush.msra.mxu2 %v5307_v20  ;;  %v3696_v54 = vmul.f32 -1.442695, %v564_v61  ;;  %v5323_v11 = vld [vmem:[#allocation12 + $0x1d0] sm:$0xff]  ;;  %879 = vmatpush.msrb.mxu1 %v4911_v47  ;;  %v5343_v47 = vld [vmem:[#allocation12 + $0x198] sm:$0xff] }
  0xc0   :  { %8957 = vst [vmem:[#allocation101_spill] sm:$0xff] %v5307_v20  ;;  %v443_v14 = vpop.f32.mrf.mxu2  ;;  %786 = vmatpush.msrb.mxu3 %v5313_v60  ;;  %v420_v58 = vpop.f32.mrf.mxu1  ;;  %711 = vmatpush.msra.mxu0 %v5315_v56  ;;  %v5325_v20 = vld [vmem:[#allocation12 + $0x1d8] sm:$0xff] }
  0xc1   :  { %8958 = vst [vmem:[#allocation102_spill] sm:$0xff] %v5313_v60  ;;  %v444_v17 = vadd.f32 %v443_v14, %v354_v4  ;;  %751 = vmatpush.msrb.mxu2 %v5317_v44  ;;  %v421_v24 = vadd.f32 %v420_v58, %v353_v63  ;;  %v5331_v14 = vld [vmem:[#allocation12 + $0x1b0] sm:$0xff]  ;;  %3757 = vpow2.f32 %v3696_v54  ;;  %880 = vmatpush.msrb.mxu1 %v4916_v51  ;;  %v5377_v58 = vld [vmem:[#allocation12 + $0x118] sm:$0xff] }
  0xc2   :  { %8959 = vst [vmem:[#allocation103_spill] sm:$0xff] %v5315_v56  ;;  %919 = vmatpush.msra.mxu3 %v4889_v23  ;;  %712 = vmatpush.msra.mxu0 %v5323_v11  ;;  %v5333_v56 = vld [vmem:[#allocation12 + $0x1b8] sm:$0xff]  ;;  %v5341_v23 = vld [vmem:[#allocation12 + $0x190] sm:$0xff] }
  0xc3   :  { %8960 = vst [vmem:[#allocation104_spill] sm:$0xff] %v5317_v44  ;;  %752 = vmatpush.msrb.mxu2 %v5325_v20  ;;  %v8961_v44 = vperm.slane %v5169_v5, 3  ;;  %881 = vmatpush.msrb.mxu1 %v4922_v55  ;;  %v5349_v51 = vld [vmem:[#allocation12 + $0x170] sm:$0xff] }
  0xc4   :  { %474 = vst [vmem:[#allocation2 + $0x18] sm:$0xff] %v444_v17  ;;  %v469_v61 = vpop.f32.mrf.mxu3  ;;  %920 = vmatpush.msra.mxu3 %v4892_v27  ;;  %713 = vmatpush.msra.mxu0 %v5331_v14  ;;  %v5351_v27 = vld [vmem:[#allocation12 + $0x178] sm:$0xff]  ;;  %v5357_v55 = vld [vmem:[#allocation12 + $0x150] sm:$0xff] }
  0xc5   :  { %473 = vst [vmem:[#allocation2] sm:$0xff] %v421_v24  ;;  %v470_v60 = vadd.f32 %v469_v61, %v8961_v44  ;;  %753 = vmatpush.msrb.mxu2 %v5333_v56  ;;  %882 = vmatpush.msrb.mxu1 %v4928_v59  ;;  %v483_v59 = vld [vmem:[#allocation2 + $0x10] sm:$0x3] }
  0xc6   :  { %921 = vmatpush.msra.mxu3 %v4895_v32  ;;  %714 = vmatpush.msra.mxu0 %v5341_v23  ;;  %v5359_v32 = vld [vmem:[#allocation12 + $0x158] sm:$0xff] }
  0xc7   :  { %479 = vst [vmem:[#allocation2 + $0x38] sm:$0xff] %v470_v60  ;;  %754 = vmatpush.msrb.mxu2 %v5343_v47  ;;  %v3758_v24 = vpop.eup %3757  ;;  %883 = vmatpush.msrb.mxu1 %v4939_v0 }
  0xc8   :  { %922 = vmatpush.msra.mxu3 %v4898_v36  ;;  %715 = vmatpush.msra.mxu0 %v5349_v51  ;;  %v5365_v36 = vld [vmem:[#allocation12 + $0x130] sm:$0xff]  ;;  %v5371_v60 = vadd.f32 1.0, %v3758_v24  ;;  %v5402_v24 = vld [vmem:[#allocation12 + $0xb8] sm:$0xff] }
  0xc9   :  { %v446_v5 = vpop.f32.mrf.mxu2  ;;  %755 = vmatpush.msrb.mxu2 %v5351_v27  ;;  %884 = vmatpush.msrb.mxu1 %v4948_v3  ;;  %v5385_v3 = vld [vmem:[#allocation12 + $0xf8] sm:$0xff] }
  0xca   :  { %v447_v17 = vadd.f32 %v446_v5, %v354_v4  ;;  %923 = vmatpush.msra.mxu3 %v4901_v40  ;;  %716 = vmatpush.msra.mxu0 %v5357_v55  ;;  %v5367_v4 = vld [vmem:[#allocation12 + $0x138] sm:$0xff]  ;;  %v5375_v40 = vld [vmem:[#allocation12 + $0x110] sm:$0xff]  ;;  %3759 = vrcp.f32 %v5371_v60  ;;  %vm577_vm3 = vweird.f32 %v5371_v60 }
  0xcb   :  { %v423_v44 = vpop.f32.mrf.mxu1  ;;  %756 = vmatpush.msrb.mxu2 %v5359_v32  ;;  %885 = vmatpush.msrb.mxu1 %v4954_v7  ;;  %v5394_v7 = vld [vmem:[#allocation12 + $0xd8] sm:$0xff] }
  0xcc   :  { %478 = vst [vmem:[#allocation2 + $0x28] sm:$0xff] %v447_v17  ;;  %v424_v54 = vadd.f32 %v423_v44, %v353_v63  ;;  %924 = vmatpush.msra.mxu3 %v4907_v45  ;;  %717 = vmatpush.msra.mxu0 %v5365_v36  ;;  %v5383_v45 = vld [vmem:[#allocation12 + $0xf0] sm:$0xff]  ;;  %v481_v5 = vld [vmem:[#allocation2] sm:$0x3] }
  0xcd   :  { %757 = vmatpush.msrb.mxu2 %v5367_v4  ;;  %886 = vmatpush.msrb.mxu1 %v4962_v10 }
  0xce   :  { %477 = vst [vmem:[#allocation2 + $0x20] sm:$0xff] %v424_v54  ;;  %v561_v0 = vpop.f32.mrf.mxu3  ;;  %925 = vmatpush.msra.mxu3 %v4913_v49  ;;  %718 = vmatpush.msra.mxu0 %v5375_v40  ;;  %v5392_v49 = vld [vmem:[#allocation12 + $0xd0] sm:$0xff] }
  0xcf   :  { %v567_v63 = vadd.f32 %v561_v0, %v483_v59  ;;  %758 = vmatpush.msrb.mxu2 %v5377_v58  ;;  %887 = vmatpush.msrb.mxu1 %v4970_v13  ;;  %v5408_v13 = vld [vmem:[#allocation12 + $0x90] sm:$0xff] }
  0xd0   :  { %926 = vmatpush.msra.mxu3 %v4919_v53  ;;  %719 = vmatpush.msra.mxu0 %v5383_v45  ;;  %v5400_v53 = vld [vmem:[#allocation12 + $0xb0] sm:$0xff]  ;;  %v5414_v54 = vpop.eup %3759 }
  0xd1   :  { %v3698_v61 = vmul.f32 -1.442695, %v567_v63  ;;  %759 = vmatpush.msrb.mxu2 %v5385_v3  ;;  %888 = vmatpush.msrb.mxu1 %v4979_v16  ;;  %v5420_v16 = vld [vmem:[#allocation12 + $0x78] sm:$0xff]  ;;  %v573_v0 = vmul.f32 %v5414_v54, %v5371_v60  ;;  %vm578_vm2 = vweird.f32 %v5414_v54 }
  0xd2   :  { %927 = vmatpush.msra.mxu3 %v4925_v57  ;;  %720 = vmatpush.msra.mxu0 %v5392_v49  ;;  %v5410_v57 = vld [vmem:[#allocation12 + $0x98] sm:$0xff]  ;;  %vm5477_vm4 = vmor %vm577_vm3, %vm578_vm2 }
  0xd3   :  { %3761 = vpow2.f32 %v3698_v61  ;;  %v521_v17 = vpop.f32.mrf.mxu1  ;;  %760 = vmatpush.msrb.mxu2 %v5394_v7  ;;  %889 = vmatpush.msrb.mxu1 %v4987_v19  ;;  %v5428_v19 = vld [vmem:[#allocation12 + $0x58] sm:$0xff]  ;;  %v5446_v61 = vld [vmem:[#allocation12 + $0x10] sm:$0xff] }
  0xd4   :  { %v565_v10 = vadd.f32 %v521_v17, %v481_v5  ;;  %928 = vmatpush.msra.mxu3 %v4936_v62  ;;  %721 = vmatpush.msra.mxu0 %v5400_v53  ;;  %v5418_v62 = vld [vmem:[#allocation12 + $0x70] sm:$0xff]  ;;  %v5448_v5 = vld [vmem:[#allocation12 + $0x18] sm:$0xff] }
  0xd5   :  { %761 = vmatpush.msrb.mxu2 %v5402_v24  ;;  %890 = vmatpush.msrb.mxu1 %v4996_v22  ;;  %v5440_v22 = vld [vmem:[#allocation12 + $0x38] sm:$0xff] }
  0xd6   :  { %v3697_v44 = vmul.f32 -1.442695, %v565_v10  ;;  %929 = vmatpush.msra.mxu3 %v4946_v2  ;;  %722 = vmatpush.msra.mxu0 %v5408_v13  ;;  %v5426_v2 = vld [vmem:[#allocation12 + $0x50] sm:$0xff] }
  0xd7   :  { %762 = vmatpush.msrb.mxu2 %v5410_v57  ;;  %747 = vmatmul.f32.vlgmr.msra.gmra.mxu1 %v8933_v1 }
  0xd8   :  { %3763 = vpow2.f32 %v3697_v44  ;;  %930 = vmatpush.msra.mxu3 %v4952_v6  ;;  %723 = vmatpush.msra.mxu0 %v5418_v62  ;;  %v5438_v6 = vld [vmem:[#allocation12 + $0x30] sm:$0xff] }
  0xd9   :  { %v3762_v59 = vpop.eup %3761  ;;  %787 = vmatmul.f32.vlgmr.msrb.gmra.mxu3 %v8933_v1  ;;  %763 = vmatpush.msrb.mxu2 %v5420_v16 }
  0xda   :  { %v5434_v63 = vadd.f32 1.0, %v3762_v59  ;;  %891 = vmatpush.msrb.mxu1 %v5003_v25  ;;  %931 = vmatpush.msra.mxu3 %v4960_v9  ;;  %v574_v9 = vsub.f32 1.0, %v573_v0 }
  0xdb   :  { %724 = vmatpush.msra.mxu0 %v5426_v2  ;;  %764 = vmatpush.msrb.mxu2 %v5428_v19 }
  0xdc   :  { %892 = vmatpush.msrb.mxu1 %v5012_v28  ;;  %932 = vmatpush.msra.mxu3 %v4966_v12  ;;  %3765 = vrcp.f32 %v5434_v63  ;;  %v482_v12 = vld [vmem:[#allocation2 + $0x18] sm:$0x3]  ;;  %v541_v28 = vpop.f32.mrf.mxu2  ;;  %v575_v17 = vmul.f32 %v5414_v54, %v574_v9  ;;  %vm616_vm10 = vweird.f32 %v5434_v63 }
  0xdd   :  { %725 = vmatpush.msra.mxu0 %v5438_v6  ;;  %765 = vmatpush.msrb.mxu2 %v5440_v22 }
  0xde   :  { %v3764_v1 = vpop.eup %3763  ;;  %893 = vmatpush.msrb.mxu1 %v5018_v30  ;;  %933 = vmatpush.msra.mxu3 %v4974_v15  ;;  %v566_v30 = vadd.f32 %v541_v28, %v482_v12  ;;  %v8965_v28 = vld [vmem:[#allocation24_spill] sm:$0xff] }
  0xdf   :  { %v590_v25 = vadd.f32 1.0, %v3764_v1  ;;  %726 = vmatpush.msra.mxu0 %v5446_v61  ;;  %766 = vmatpush.msrb.mxu2 %v5448_v5 }
  0xe0   :  { %894 = vmatpush.msrb.mxu1 %v5024_v33  ;;  %934 = vmatpush.msra.mxu3 %v4984_v18  ;;  %v576_v18 = vadd.f32 %v5414_v54, %v575_v17 }
  0xe1   :  { %3767 = vrcp.f32 %v590_v25  ;;  %vm596_vm7 = vweird.f32 %v590_v25 }
  0xe2   :  { %1048 = vmatpush.msra.mxu1 %v5030_v35  ;;  %1088 = vmatpush.msrb.mxu3 %v4993_v21  ;;  %v5464_v15 = vpop.eup %3765  ;;  %v583_v35 = vand.u32 2147483648, %v5371_v60  ;;  %3769 = vtanh.f32 %v566_v30  ;;  %v8967_v30 = vld [vmem:[#allocation27_spill] sm:$0xff] }
  0xe3   :  { %v612_v21 = vmul.f32 %v5464_v15, %v5434_v63  ;;  %vm617_vm11 = vweird.f32 %v5464_v15 }
  0xe4   :  { %1049 = vmatpush.msra.mxu1 %v5037_v38  ;;  %1089 = vmatpush.msrb.mxu3 %v5007_v26  ;;  %v581_v26 = vand.u32 2147483647, %v5371_v60  ;;  %v584_v0 = vor.u32 1.1754944e-38, %v583_v35  ;;  %vm618_vm12 = vmor %vm616_vm10, %vm617_vm11  ;;  %v8971_v35 = vld [vmem:[#allocation31_spill] sm:$0xff]  ;;  %v8973_v38 = vld [vmem:[#allocation33_spill] sm:$0xff] }
  0xe5   :  { %v613_v59 = vsub.f32 1.0, %v612_v21  ;;  %v8970_v21 = vld [vmem:[#allocation30_spill] sm:$0xff] }
  0xe6   :  { %1050 = vmatpush.msra.mxu1 %v5043_v41  ;;  %1090 = vmatpush.msrb.mxu3 %v5016_v29  ;;  %v602_v41 = vand.u32 2147483648, %v590_v25  ;;  %vm582_vm6 = vcmp.eq.f32.partialorder %v581_v26, 8.507059e+37 }
  0xe7   :  { %v3768_v10 = vpop.eup %3767  ;;  %v614_v9 = vmul.f32 %v5464_v15, %v613_v59  ;;  %v5522_v59 = vld [vmem:[#allocation9 + $0x1f0] sm:$0xff] }
  0xe8   :  { %v592_v33 = vmul.f32 %v3768_v10, %v590_v25  ;;  %1051 = vmatpush.msra.mxu1 %v5049_v43  ;;  %1091 = vmatpush.msrb.mxu3 %v5022_v31  ;;  %v580_v43 = vsel %vm5477_vm4, %v5414_v54, %v576_v18  ;;  %vm597_vm5 = vweird.f32 %v3768_v10  ;;  %v600_v31 = vand.u32 2147483647, %v590_v25  ;;  %v3770_v1 = vpop.eup %3769  ;;  %v8964_v25 = vld [vmem:[#allocation25_spill] sm:$0xff] }
  0xe9   :  { %vm598_vm8 = vmor %vm596_vm7, %vm597_vm5  ;;  %v8969_v18 = vld [vmem:[#allocation29_spill] sm:$0xff] }
  0xea   :  { %v593_v29 = vsub.f32 1.0, %v592_v33  ;;  %1052 = vmatpush.msra.mxu1 %v5055_v46  ;;  %1092 = vmatpush.msrb.mxu3 %v5028_v34  ;;  %v585_v46 = vsel %vm582_vm6, %v584_v0, %v580_v43  ;;  %v603_v34 = vor.u32 1.1754944e-38, %v602_v41  ;;  %vm601_vm9 = vcmp.eq.f32.partialorder %v600_v31, 8.507059e+37  ;;  %v8975_v31 = vld [vmem:[#allocation35_spill] sm:$0xff] }
  0xeb   :  { %v5526_v0 = vld [vmem:[#allocation9 + $0x1c0] sm:$0xff] }
  0xec   :  { %v594_v44 = vmul.f32 %v3768_v10, %v593_v29  ;;  %1053 = vmatpush.msra.mxu1 %v5059_v48  ;;  %1093 = vmatpush.msrb.mxu3 %v5034_v37  ;;  %v627_v37 = vmul.f32 %v3770_v1, %v585_v46  ;;  %v8972_v29 = vld [vmem:[#allocation32_spill] sm:$0xff]  ;;  %v8977_v46 = vld [vmem:[#allocation37_spill] sm:$0xff] }
  0xed   :  { %v5530_v1 = vld [vmem:[#allocation9 + $0x1d0] sm:$0xff] }
  0xee   :  { %v595_v60 = vadd.f32 %v3768_v10, %v594_v44  ;;  %1054 = vmatpush.msra.mxu1 %v5063_v50  ;;  %1094 = vmatpush.msrb.mxu3 %v5041_v39  ;;  %v615_v50 = vadd.f32 %v5464_v15, %v614_v9  ;;  %v8966_v39 = vld [vmem:[#allocation26_spill] sm:$0xff]  ;;  %v5538_v9 = vld [vmem:[#allocation9 + $0x1b0] sm:$0xff] }
  0xef   :  { %v8974_v44 = vld [vmem:[#allocation34_spill] sm:$0xff] }
  0xf0   :  { %v599_v54 = vsel %vm598_vm8, %v3768_v10, %v595_v60  ;;  %1055 = vmatpush.msra.mxu1 %v5066_v52  ;;  %1095 = vmatpush.msrb.mxu3 %v5047_v42  ;;  %v622_v42 = vand.u32 2147483648, %v5434_v63  ;;  %v620_v52 = vand.u32 2147483647, %v5434_v63  ;;  %v8968_v10 = vld [vmem:[#allocation28_spill] sm:$0xff]  ;;  %v619_v33 = vsel %vm618_vm12, %v5464_v15, %v615_v50  ;;  %v5518_v15 = vld [vmem:[#allocation9 + $0x1e0] sm:$0xff] }
  0xf1   :  { %v604_v12 = vsel %vm601_vm9, %v603_v34, %v599_v54  ;;  %v8976_v60 = vld [vmem:[#allocation36_spill] sm:$0xff]  ;;  %v5534_v34 = vld [vmem:[#allocation9 + $0x1a0] sm:$0xff] }
  0xf2   :  { %v626_v48 = vmul.f32 0.0, %v604_v12  ;;  %1056 = vmatpush.msra.mxu1 %v8964_v25  ;;  %1096 = vmatpush.msrb.mxu3 %v8965_v28  ;;  %v623_v26 = vor.u32 1.1754944e-38, %v622_v42  ;;  %vm621_vm13 = vcmp.eq.f32.partialorder %v620_v52, 8.507059e+37  ;;  %v8978_v54 = vld [vmem:[#allocation38_spill] sm:$0xff]  ;;  %v8979_v12 = vld [vmem:[#allocation39_spill] sm:$0xff]  ;;  %v5546_v25 = vld [vmem:[#allocation9 + $0x190] sm:$0xff] }
  0xf3   :  { %v5551_v28 = vld [vmem:[#allocation9 + $0x160] sm:$0xff]  ;;  %v5554_v50 = vld [vmem:[#allocation9 + $0x170] sm:$0xff] }
  0xf4   :  { %v5495_v17 = vadd.f32 %v627_v37, %v626_v48  ;;  %1057 = vmatpush.msra.mxu1 %v8966_v39  ;;  %1097 = vmatpush.msrb.mxu3 %v8967_v30  ;;  %v624_v43 = vsel %vm621_vm13, %v623_v26, %v619_v33  ;;  %v5542_v37 = vld [vmem:[#allocation9 + $0x180] sm:$0xff]  ;;  %v5562_v52 = vld [vmem:[#allocation9 + $0x150] sm:$0xff] }
  0xf5   :  { %v8980_v48 = vld [vmem:[#allocation42_spill] sm:$0xff]  ;;  %v8981_v39 = vld [vmem:[#allocation43_spill] sm:$0xff] }
  0xf6   :  { %3771 = vtanh.f32 %v5495_v17  ;;  %1058 = vmatpush.msra.mxu1 %v8968_v10  ;;  %1098 = vmatpush.msrb.mxu3 %v8969_v18  ;;  %v5558_v30 = vld [vmem:[#allocation9 + $0x140] sm:$0xff] }
  0xf7   :  { %v8982_v42 = vld [vmem:[#allocation46_spill] sm:$0xff]  ;;  %v8983_v10 = vld [vmem:[#allocation47_spill] sm:$0xff] }
  0xf8   :  { %1059 = vmatpush.msra.mxu1 %v8970_v21  ;;  %1099 = vmatpush.msrb.mxu3 %v8971_v35  ;;  %v5566_v18 = vld [vmem:[#allocation9 + $0x120] sm:$0xff]  ;;  %v5570_v21 = vld [vmem:[#allocation9 + $0x130] sm:$0xff] }
  0xf9   :  { %v8984_v33 = vld [vmem:[#allocation50_spill] sm:$0xff]  ;;  %v8985_v35 = vld [vmem:[#allocation51_spill] sm:$0xff] }
  0xfa   :  { %1060 = vmatpush.msra.mxu1 %v8972_v29  ;;  %1100 = vmatpush.msrb.mxu3 %v8973_v38  ;;  %v5574_v26 = vld [vmem:[#allocation9 + $0x100] sm:$0xff]  ;;  %v5578_v38 = vld [vmem:[#allocation9 + $0x110] sm:$0xff] }
  0xfb   :  { %v8986_v29 = vld [vmem:[#allocation54_spill] sm:$0xff] }
  0xfc   :  { %v3772_v41 = vpop.eup %3771  ;;  %1061 = vmatpush.msra.mxu1 %v8974_v44  ;;  %1101 = vmatpush.msrb.mxu3 %v8975_v31  ;;  %v8988_v44 = vld [vmem:[#allocation58_spill] sm:$0xff]  ;;  %v5586_v31 = vld [vmem:[#allocation9 + $0xf0] sm:$0xff] }
  0xfd   :  { %v5512_v63 = vmul.f32 %v3772_v41, %v624_v43  ;;  %v8987_v41 = vld [vmem:[#allocation55_spill] sm:$0xff] }
  0xfe   :  { %1062 = vmatpush.msra.mxu1 %v8976_v60  ;;  %1102 = vmatpush.msrb.mxu3 %v8977_v46  ;;  %v5582_v43 = vld [vmem:[#allocation9 + $0xe0] sm:$0xff] }
  0xff   :  { %647 = vmatmul.f32.vlgmr.msrb.gmra.mxu0 %v5512_v63  ;;  %687 = vmatmul.f32.vlgmr.msra.gmra.mxu2 %v5512_v63  ;;  %v8989_v60 = vld [vmem:[#allocation59_spill] sm:$0xff] }
 0x100   :  { %859 = vmatpush.msrb.mxu0 %v5518_v15  ;;  %895 = vmatmul.f32.vlgmr.msrb.gmra.mxu1 %v5512_v63  ;;  %v5590_v46 = vld [vmem:[#allocation9 + $0xc0] sm:$0xff] }
 0x101   :  { %899 = vmatpush.msra.mxu2 %v5522_v59  ;;  %935 = vmatmul.f32.vlgmr.msra.gmra.mxu3 %v5512_v63 }
 0x102   :  { %860 = vmatpush.msrb.mxu0 %v5526_v0  ;;  %1063 = vmatpush.msra.mxu1 %v8978_v54  ;;  %v8990_v54 = vld [vmem:[#allocation62_spill] sm:$0xff] }
 0x103   :  { %900 = vmatpush.msra.mxu2 %v5530_v1  ;;  %1103 = vmatpush.msrb.mxu3 %v8979_v12  ;;  %v5594_v12 = vld [vmem:[#allocation9 + $0xd0] sm:$0xff] }
 0x104   :  { %861 = vmatpush.msrb.mxu0 %v5534_v34  ;;  %1128 = vmatpush.msrb.mxu1 %v8980_v48  ;;  %v8991_v48 = vld [vmem:[#allocation63_spill] sm:$0xff] }
 0x105   :  { %901 = vmatpush.msra.mxu2 %v5538_v9  ;;  %1168 = vmatpush.msra.mxu3 %v8981_v39  ;;  %v5598_v39 = vld [vmem:[#allocation9 + $0xa0] sm:$0xff] }
 0x106   :  { %862 = vmatpush.msrb.mxu0 %v5542_v37  ;;  %1129 = vmatpush.msrb.mxu1 %v8982_v42  ;;  %v8992_v42 = vld [vmem:[#allocation66_spill] sm:$0xff] }
 0x107   :  { %902 = vmatpush.msra.mxu2 %v5546_v25  ;;  %727 = vmatmul.f32.vlgmr.msra.gmra.mxu0 %v5512_v63 }
 0x108   :  { %767 = vmatmul.f32.vlgmr.msrb.gmra.mxu2 %v5512_v63  ;;  %863 = vmatpush.msrb.mxu0 %v5551_v28 }
 0x109   :  { %903 = vmatpush.msra.mxu2 %v5554_v50  ;;  %1169 = vmatpush.msra.mxu3 %v8983_v10  ;;  %v5602_v10 = vld [vmem:[#allocation9 + $0xb0] sm:$0xff] }
 0x10a   :  { %864 = vmatpush.msrb.mxu0 %v5558_v30  ;;  %1130 = vmatpush.msrb.mxu1 %v8984_v33  ;;  %8993 = vst [vmem:[#allocation25_spill] sm:$0xff] %v5602_v10  ;;  %v8994_v33 = vld [vmem:[#allocation67_spill] sm:$0xff] }
 0x10b   :  { %904 = vmatpush.msra.mxu2 %v5562_v52  ;;  %1170 = vmatpush.msra.mxu3 %v8985_v35  ;;  %v5606_v35 = vld [vmem:[#allocation9 + $0x80] sm:$0xff] }
 0x10c   :  { %865 = vmatpush.msrb.mxu0 %v5566_v18  ;;  %1131 = vmatpush.msrb.mxu1 %v8986_v29  ;;  %8995 = vst [vmem:[#allocation24_spill] sm:$0xff] %v5606_v35  ;;  %v8996_v29 = vld [vmem:[#allocation70_spill] sm:$0xff] }
 0x10d   :  { %905 = vmatpush.msra.mxu2 %v5570_v21  ;;  %1171 = vmatpush.msra.mxu3 %v8987_v41  ;;  %v5610_v41 = vld [vmem:[#allocation9 + $0x90] sm:$0xff] }
 0x10e   :  { %866 = vmatpush.msrb.mxu0 %v5574_v26  ;;  %1132 = vmatpush.msrb.mxu1 %v8988_v44  ;;  %8997 = vst [vmem:[#allocation26_spill] sm:$0xff] %v5610_v41  ;;  %v8998_v44 = vld [vmem:[#allocation71_spill] sm:$0xff] }
 0x10f   :  { %906 = vmatpush.msra.mxu2 %v5578_v38  ;;  %1172 = vmatpush.msra.mxu3 %v8989_v60  ;;  %v5614_v60 = vld [vmem:[#allocation9 + $0x60] sm:$0xff] }
 0x110   :  { %867 = vmatpush.msrb.mxu0 %v5582_v43  ;;  %1133 = vmatpush.msrb.mxu1 %v8990_v54  ;;  %8999 = vst [vmem:[#allocation27_spill] sm:$0xff] %v5614_v60  ;;  %v9000_v54 = vld [vmem:[#allocation74_spill] sm:$0xff] }
 0x111   :  { %907 = vmatpush.msra.mxu2 %v5586_v31  ;;  %1173 = vmatpush.msra.mxu3 %v8991_v48  ;;  %v5618_v48 = vld [vmem:[#allocation9 + $0x70] sm:$0xff] }
 0x112   :  { %868 = vmatpush.msrb.mxu0 %v5590_v46  ;;  %1134 = vmatpush.msrb.mxu1 %v8992_v42  ;;  %9001 = vst [vmem:[#allocation28_spill] sm:$0xff] %v5618_v48  ;;  %v9002_v42 = vld [vmem:[#allocation75_spill] sm:$0xff] }
 0x113   :  { %908 = vmatpush.msra.mxu2 %v5594_v12  ;;  %1174 = vmatpush.msra.mxu3 %v8994_v33  ;;  %v5622_v33 = vld [vmem:[#allocation9 + $0x40] sm:$0xff] }
 0x114   :  { %869 = vmatpush.msrb.mxu0 %v5598_v39  ;;  %1135 = vmatpush.msrb.mxu1 %v8996_v29  ;;  %9003 = vst [vmem:[#allocation29_spill] sm:$0xff] %v5622_v33  ;;  %v9004_v29 = vld [vmem:[#allocation78_spill] sm:$0xff] }
 0x115   :  { %909 = vmatpush.msra.mxu2 %v5602_v10  ;;  %1175 = vmatpush.msra.mxu3 %v8998_v44  ;;  %v9006_v44 = vld [vmem:[#allocation79_spill] sm:$0xff]  ;;  %v9023_v10 = vld [vmem:[#allocation49_spill] sm:$0xff] }
 0x116   :  { %870 = vmatpush.msrb.mxu0 %v5606_v35  ;;  %1136 = vmatpush.msrb.mxu1 %v9000_v54  ;;  %v5628_v35 = vld [vmem:[#allocation9 + $0x20] sm:$0xff] }
 0x117   :  { %910 = vmatpush.msra.mxu2 %v5610_v41  ;;  %1176 = vmatpush.msra.mxu3 %v9002_v42  ;;  %v9005_v41 = vld [vmem:[#allocation21_spill] sm:$0xff]  ;;  %9007 = vst [vmem:[#allocation30_spill] sm:$0xff] %v5628_v35  ;;  %v9008_v54 = vld [vmem:[#allocation82_spill] sm:$0xff] }
 0x118   :  { %871 = vmatpush.msrb.mxu0 %v5614_v60  ;;  %1137 = vmatpush.msrb.mxu1 %v9004_v29  ;;  %v9009_v60 = vld [vmem:[#allocation22_spill] sm:$0xff]  ;;  %v9013_v29 = vld [vmem:[#allocation23_spill] sm:$0xff] }
 0x119   :  { %911 = vmatpush.msra.mxu2 %v5618_v48  ;;  %1177 = vmatpush.msra.mxu3 %v9006_v44  ;;  %v9010_v48 = vld [vmem:[#allocation83_spill] sm:$0xff]  ;;  %v9015_v44 = vld [vmem:[#allocation41_spill] sm:$0xff] }
 0x11a   :  { %872 = vmatpush.msrb.mxu0 %v5622_v33  ;;  %1138 = vmatpush.msrb.mxu1 %v9008_v54  ;;  %v5634_v42 = vld [vmem:[#allocation9] sm:$0xff] }
 0x11b   :  { %912 = vmatpush.msra.mxu2 %v9005_v41  ;;  %1178 = vmatpush.msra.mxu3 %v9010_v48  ;;  %9011 = vst [vmem:[#allocation31_spill] sm:$0xff] %v5634_v42  ;;  %v9012_v33 = vld [vmem:[#allocation86_spill] sm:$0xff]  ;;  %v9014_v41 = vld [vmem:[#allocation40_spill] sm:$0xff]  ;;  %v9016_v54 = vld [vmem:[#allocation87_spill] sm:$0xff] }
 0x11c   :  { %873 = vmatpush.msrb.mxu0 %v5628_v35  ;;  %1139 = vmatpush.msrb.mxu1 %v9012_v33  ;;  %v9018_v48 = vld [vmem:[#allocation90_spill] sm:$0xff]  ;;  %v9019_v35 = vld [vmem:[#allocation45_spill] sm:$0xff]  ;;  %v9021_v33 = vld [vmem:[#allocation48_spill] sm:$0xff] }
 0x11d   :  { %913 = vmatpush.msra.mxu2 %v9009_v60  ;;  %1179 = vmatpush.msra.mxu3 %v9016_v54  ;;  %v9017_v60 = vld [vmem:[#allocation44_spill] sm:$0xff]  ;;  %v9027_v54 = vld [vmem:[#allocation53_spill] sm:$0xff] }
 0x11e   :  { %874 = vmatpush.msrb.mxu0 %v5634_v42  ;;  %1140 = vmatpush.msrb.mxu1 %v9018_v48  ;;  %v9020_v42 = vld [vmem:[#allocation91_spill] sm:$0xff]  ;;  %v9029_v48 = vld [vmem:[#allocation56_spill] sm:$0xff] }
 0x11f   :  { %914 = vmatpush.msra.mxu2 %v9013_v29  ;;  %875 = vmatmul.f32.vlgmr.msrb.gmra.mxu0 %v5512_v63  ;;  %v9022_v29 = vld [vmem:[#allocation94_spill] sm:$0xff] }
 0x120   :  { %915 = vmatmul.f32.vlgmr.msra.gmra.mxu2 %v5512_v63  ;;  %1028 = vmatpush.msra.mxu0 %v9014_v41  ;;  %v9024_v63 = vld [vmem:[#allocation95_spill] sm:$0xff]  ;;  %v9025_v41 = vld [vmem:[#allocation52_spill] sm:$0xff] }
 0x121   :  { %1068 = vmatpush.msrb.mxu2 %v9015_v44  ;;  %1180 = vmatpush.msra.mxu3 %v9020_v42  ;;  %v9026_v44 = vld [vmem:[#allocation98_spill] sm:$0xff] }
 0x122   :  { %1029 = vmatpush.msra.mxu0 %v9017_v60  ;;  %1141 = vmatpush.msrb.mxu1 %v9022_v29  ;;  %v9028_v60 = vld [vmem:[#allocation99_spill] sm:$0xff]  ;;  %v9031_v42 = vld [vmem:[#allocation102_spill] sm:$0xff]  ;;  %v9034_v29 = vld [vmem:[#allocation64_spill] sm:$0xff] }
 0x123   :  { %1069 = vmatpush.msrb.mxu2 %v9019_v35  ;;  %1181 = vmatpush.msra.mxu3 %v9024_v63  ;;  %v9030_v35 = vld [vmem:[#allocation57_spill] sm:$0xff] }
 0x124   :  { %1030 = vmatpush.msra.mxu0 %v9021_v33  ;;  %1142 = vmatpush.msrb.mxu1 %v9026_v44  ;;  %v9032_v33 = vld [vmem:[#allocation60_spill] sm:$0xff]  ;;  %v9035_v63 = vld [vmem:[#allocation65_spill] sm:$0xff] }
 0x125   :  { %1070 = vmatpush.msrb.mxu2 %v9023_v10  ;;  %1182 = vmatpush.msra.mxu3 %v9028_v60  ;;  %v9033_v10 = vld [vmem:[#allocation61_spill] sm:$0xff] }
 0x126   :  { %1031 = vmatpush.msra.mxu0 %v9025_v41  ;;  %1143 = vmatpush.msrb.mxu1 %v5309_v8  ;;  %v9036_v41 = vld [vmem:[#allocation68_spill] sm:$0xff]  ;;  %v9037_v44 = vld [vmem:[#allocation69_spill] sm:$0xff] }
 0x127   :  { %1071 = vmatpush.msrb.mxu2 %v9027_v54  ;;  %1183 = vmatpush.msra.mxu3 %v9031_v42  ;;  %v9038_v54 = vld [vmem:[#allocation72_spill] sm:$0xff]  ;;  %v9039_v60 = vld [vmem:[#allocation73_spill] sm:$0xff] }
 0x128   :  { %1032 = vmatpush.msra.mxu0 %v9029_v48  ;;  %v9040_v8 = vld [vmem:[#allocation76_spill] sm:$0xff]  ;;  %v9041_v48 = vld [vmem:[#allocation77_spill] sm:$0xff] }
 0x129   :  { %1072 = vmatpush.msrb.mxu2 %v9030_v35  ;;  %v9042_v35 = vld [vmem:[#allocation80_spill] sm:$0xff]  ;;  %v9043_v42 = vld [vmem:[#allocation81_spill] sm:$0xff] }
 0x12a   :  { %1033 = vmatpush.msra.mxu0 %v9032_v33  ;;  %v9044_v33 = vld [vmem:[#allocation84_spill] sm:$0xff] }
 0x12b   :  { %1073 = vmatpush.msrb.mxu2 %v9033_v10  ;;  %v9045_v10 = vld [vmem:[#allocation85_spill] sm:$0xff] }
 0x12c   :  { %1034 = vmatpush.msra.mxu0 %v9034_v29  ;;  %v9046_v29 = vld [vmem:[#allocation88_spill] sm:$0xff] }
 0x12d   :  { %1074 = vmatpush.msrb.mxu2 %v9035_v63  ;;  %v9047_v63 = vld [vmem:[#allocation89_spill] sm:$0xff] }
 0x12e   :  { %1035 = vmatpush.msra.mxu0 %v9036_v41  ;;  %v9048_v41 = vld [vmem:[#allocation92_spill] sm:$0xff] }
 0x12f   :  { %1075 = vmatpush.msrb.mxu2 %v9037_v44  ;;  %v9049_v44 = vld [vmem:[#allocation93_spill] sm:$0xff] }
 0x130   :  { %1036 = vmatpush.msra.mxu0 %v9038_v54  ;;  %v9050_v54 = vld [vmem:[#allocation96_spill] sm:$0xff] }
 0x131   :  { %1076 = vmatpush.msrb.mxu2 %v9039_v60  ;;  %v9051_v60 = vld [vmem:[#allocation97_spill] sm:$0xff] }
 0x132   :  { %1037 = vmatpush.msra.mxu0 %v9040_v8  ;;  %v9052_v8 = vld [vmem:[#allocation100_spill] sm:$0xff] }
 0x133   :  { %1077 = vmatpush.msrb.mxu2 %v9041_v48  ;;  %v9053_v48 = vld [vmem:[#allocation101_spill] sm:$0xff] }
 0x134   :  { %1038 = vmatpush.msra.mxu0 %v9042_v35  ;;  %v9054_v35 = vld [vmem:[#allocation103_spill] sm:$0xff] }
 0x135   :  { %1078 = vmatpush.msrb.mxu2 %v9043_v42  ;;  %v9055_v42 = vld [vmem:[#allocation104_spill] sm:$0xff] }
 0x136   :  { %1039 = vmatpush.msra.mxu0 %v9044_v33 }
 0x137   :  { %1079 = vmatpush.msrb.mxu2 %v9045_v10 }
 0x138   :  { %1040 = vmatpush.msra.mxu0 %v9046_v29  ;;  %v858_v29 = vld [vmem:[#allocation2 + $0x10] sm:$0xc] }
 0x139   :  { %1080 = vmatpush.msrb.mxu2 %v9047_v63 }
 0x13a   :  { %1041 = vmatpush.msra.mxu0 %v9048_v41 }
 0x13b   :  { %1081 = vmatpush.msrb.mxu2 %v9049_v44 }
 0x13c   :  { %1042 = vmatpush.msra.mxu0 %v9050_v54 }
 0x13d   :  { %1082 = vmatpush.msrb.mxu2 %v9051_v60 }
 0x13e   :  { %1043 = vmatpush.msra.mxu0 %v9052_v8 }
 0x13f   :  { %1083 = vmatpush.msrb.mxu2 %v9053_v48 }
 0x140   :  { %1108 = vmatpush.msrb.mxu0 %v9054_v35 }
 0x141   :  { %1148 = vmatpush.msra.mxu2 %v9055_v42 }
 0x142   :  { %1109 = vmatpush.msrb.mxu0 %v5323_v11  ;;  %v668_v11 = vpop.f32.mrf.mxu1 }
 0x143   :  { %1149 = vmatpush.msra.mxu2 %v5325_v20 }
 0x144   :  { %1110 = vmatpush.msrb.mxu0 %v5331_v14  ;;  %v708_v14 = vpop.f32.mrf.mxu3 }
 0x145   :  { %1150 = vmatpush.msra.mxu2 %v5333_v56  ;;  %v314_v56 = vld [vmem:[%s8382_s5] sm:$0xf] }
 0x146   :  { %1111 = vmatpush.msrb.mxu0 %v5341_v23  ;;  %v5717_v23 = vperm.slane %v314_v56, 0 }
 0x147   :  { %1151 = vmatpush.msra.mxu2 %v5343_v47 }
 0x148   :  { %1112 = vmatpush.msrb.mxu0 %v5349_v51  ;;  %9056 = vst [vmem:[#allocation32_spill] sm:$0xff] %v5717_v23 }
 0x149   :  { %1152 = vmatpush.msra.mxu2 %v5351_v27 }
 0x14a   :  { %1113 = vmatpush.msrb.mxu0 %v5357_v55 }
 0x14b   :  { %1153 = vmatpush.msra.mxu2 %v5359_v32  ;;  %v5720_v32 = vperm.slane %v314_v56, 1 }
 0x14c   :  { %1114 = vmatpush.msrb.mxu0 %v5365_v36 }
 0x14d   :  { %1154 = vmatpush.msra.mxu2 %v5367_v4  ;;  %9057 = vst [vmem:[#allocation33_spill] sm:$0xff] %v5720_v32 }
 0x14e   :  { %1115 = vmatpush.msrb.mxu0 %v5375_v40 }
 0x14f   :  { %1155 = vmatpush.msra.mxu2 %v5377_v58 }
 0x150   :  { %1116 = vmatpush.msrb.mxu0 %v5383_v45 }
 0x151   :  { %1156 = vmatpush.msra.mxu2 %v5385_v3  ;;  %v856_v3 = vld [vmem:[#allocation2] sm:$0xc] }
 0x152   :  { %1117 = vmatpush.msrb.mxu0 %v5392_v49 }
 0x153   :  { %1157 = vmatpush.msra.mxu2 %v5394_v7 }
 0x154   :  { %1118 = vmatpush.msrb.mxu0 %v5400_v53  ;;  %v748_v20 = vpop.f32.mrf.mxu1 }
 0x155   :  { %1158 = vmatpush.msra.mxu2 %v5402_v24 }
 0x156   :  { %1119 = vmatpush.msrb.mxu0 %v5408_v13  ;;  %v5723_v13 = vperm.slane %v314_v56, 3 }
 0x157   :  { %1159 = vmatpush.msra.mxu2 %v5410_v57 }
 0x158   :  { %1120 = vmatpush.msrb.mxu0 %v5418_v62  ;;  %9058 = vst [vmem:[#allocation34_spill] sm:$0xff] %v5723_v13 }
 0x159   :  { %1160 = vmatpush.msra.mxu2 %v5420_v16 }
 0x15a   :  { %1121 = vmatpush.msrb.mxu0 %v5426_v2 }
 0x15b   :  { %1161 = vmatpush.msra.mxu2 %v5428_v19  ;;  %v5725_v19 = vperm.slane %v314_v56, 2 }
 0x15c   :  { %1122 = vmatpush.msrb.mxu0 %v5438_v6  ;;  %v788_v36 = vpop.f32.mrf.mxu3 }
 0x15d   :  { %1162 = vmatpush.msra.mxu2 %v5440_v22  ;;  %9059 = vst [vmem:[#allocation35_spill] sm:$0xff] %v5725_v19 }
 0x15e   :  { %1123 = vmatpush.msrb.mxu0 %v5446_v61 }
 0x15f   :  { %1163 = vmatpush.msra.mxu2 %v5448_v5 }
 0x17c   :  { %v648_v47 = vpop.f32.mrf.mxu0 }
 0x17d   :  { %v649_v51 = vadd.f32 %v648_v47, %v5717_v23  ;;  %v896_v55 = vpop.f32.mrf.mxu1 }
 0x17e   :  { %v944_v40 = vrot.slane %v896_v55, 6 }
 0x17f   :  { %v669_v27 = vadd.f32 %v668_v11, %v649_v51 }
 0x180   :  { %v952_v7 = vadd.f32 %v944_v40, %v856_v3 }
 0x181   :  { %v3699_v4 = vmul.f32 -1.442695, %v669_v27 }
 0x182   :  { %v688_v58 = vpop.f32.mrf.mxu2  ;;  %v3703_v62 = vmul.f32 -1.442695, %v952_v7 }
 0x183   :  { %3773 = vpow2.f32 %v3699_v4  ;;  %v689_v45 = vadd.f32 %v688_v58, %v5720_v32 }
 0x184   :  { %v936_v16 = vpop.f32.mrf.mxu3  ;;  %v728_v61 = vpop.f32.mrf.mxu0 }
 0x185   :  { %v709_v49 = vadd.f32 %v708_v14, %v689_v45  ;;  %v946_v22 = vrot.slane %v936_v16, 6  ;;  %v729_v63 = vadd.f32 %v728_v61, %v5725_v19 }
 0x187   :  { %v3700_v53 = vmul.f32 -1.442695, %v709_v49  ;;  %v954_v54 = vadd.f32 %v946_v22, %v858_v29  ;;  %v749_v35 = vadd.f32 %v748_v20, %v729_v63 }
 0x189   :  { %v3774_v24 = vpop.eup %3773  ;;  %3775 = vpow2.f32 %v3700_v53  ;;  %v3704_v42 = vmul.f32 -1.442695, %v954_v54 }
 0x18a   :  { %v794_v57 = vadd.f32 1.0, %v3774_v24 }
 0x18b   :  { %v768_v2 = vpop.f32.mrf.mxu2 }
 0x18c   :  { %3777 = vrcp.f32 %v794_v57  ;;  %v769_v6 = vadd.f32 %v768_v2, %v5723_v13  ;;  %v806_v55 = vand.u32 2147483648, %v794_v57  ;;  %vm800_vm15 = vweird.f32 %v794_v57 }
 0x18d   :  { %3779 = vpow2.f32 %v3703_v62  ;;  %v804_v40 = vand.u32 2147483647, %v794_v57  ;;  %v855_v62 = vld [vmem:[#allocation2 + $0x30] sm:$0xc] }
 0x18e   :  { %v789_v33 = vadd.f32 %v788_v36, %v769_v6  ;;  %v807_v24 = vor.u32 1.1754944e-38, %v806_v55 }
 0x18f   :  { %v3776_v5 = vpop.eup %3775  ;;  %vm805_vm3 = vcmp.eq.f32.partialorder %v804_v40, 8.507059e+37 }
 0x190   :  { %v813_v10 = vadd.f32 1.0, %v3776_v5  ;;  %v3701_v41 = vmul.f32 -1.442695, %v789_v33 }
 0x192   :  { %v3778_v44 = vpop.eup %3777  ;;  %3781 = vrcp.f32 %v813_v10  ;;  %v825_v58 = vand.u32 2147483648, %v813_v10  ;;  %v823_v45 = vand.u32 2147483647, %v813_v10  ;;  %vm819_vm2 = vweird.f32 %v813_v10 }
 0x193   :  { %v796_v60 = vmul.f32 %v3778_v44, %v794_v57  ;;  %3783 = vpow2.f32 %v3701_v41  ;;  %v3780_v8 = vpop.eup %3779  ;;  %vm801_vm14 = vweird.f32 %v3778_v44 }
 0x194   :  { %v5729_v11 = vadd.f32 1.0, %v3780_v8  ;;  %3785 = vtanh.f32 %v749_v35  ;;  %vm5732_vm0 = vmor %vm800_vm15, %vm801_vm14  ;;  %v826_v22 = vor.u32 1.1754944e-38, %v825_v58  ;;  %vm824_vm5 = vcmp.eq.f32.partialorder %v823_v45, 8.507059e+37 }
 0x195   :  { %v797_v48 = vsub.f32 1.0, %v796_v60  ;;  %3787 = vpow2.f32 %v3704_v42 }
 0x196   :  { %3789 = vrcp.f32 %v5729_v11  ;;  %vm983_vm11 = vweird.f32 %v5729_v11 }
 0x197   :  { %v798_v56 = vmul.f32 %v3778_v44, %v797_v48 }
 0x198   :  { %v3782_v14 = vpop.eup %3781 }
 0x199   :  { %v3784_v47 = vpop.eup %3783  ;;  %v815_v51 = vmul.f32 %v3782_v14, %v813_v10  ;;  %v799_v27 = vadd.f32 %v3778_v44, %v798_v56  ;;  %vm820_vm1 = vweird.f32 %v3782_v14 }
 0x19a   :  { %v833_v36 = vadd.f32 1.0, %v3784_v47  ;;  %v3786_v16 = vpop.eup %3785  ;;  %vm821_vm4 = vmor %vm819_vm2, %vm820_vm1 }
 0x19b   :  { %v816_v4 = vsub.f32 1.0, %v815_v51  ;;  %v803_v7 = vsel %vm5732_vm0, %v3778_v44, %v799_v27  ;;  %v3788_v6 = vpop.eup %3787 }
 0x19c   :  { %3791 = vrcp.f32 %v833_v36  ;;  %v876_v3 = vpop.f32.mrf.mxu0  ;;  %v808_v61 = vsel %vm805_vm3, %v807_v24, %v803_v7  ;;  %v5738_v5 = vpop.eup %3789  ;;  %v5744_v35 = vadd.f32 1.0, %v3788_v6  ;;  %v845_v56 = vand.u32 2147483648, %v833_v36 }
 0x19d   :  { %v817_v49 = vmul.f32 %v3782_v14, %v816_v4  ;;  %v943_v53 = vrot.slane %v876_v3, 6  ;;  %v850_v54 = vmul.f32 %v3786_v16, %v808_v61  ;;  %v979_v48 = vmul.f32 %v5738_v5, %v5729_v11 }
 0x19e   :  { %vm839_vm7 = vweird.f32 %v833_v36  ;;  %v846_v58 = vor.u32 1.1754944e-38, %v845_v56  ;;  %vm984_vm10 = vweird.f32 %v5738_v5  ;;  %vm1003_vm3 = vweird.f32 %v5744_v35 }
 0x19f   :  { %v818_v57 = vadd.f32 %v3782_v14, %v817_v49  ;;  %v951_v2 = vadd.f32 %v943_v53, %v855_v62  ;;  %v980_v55 = vsub.f32 1.0, %v979_v48  ;;  %vm5764_vm12 = vmor %vm983_vm11, %vm984_vm10  ;;  %v5771_v48 = vld [vmem:[#allocation9 + $0x1c8] sm:$0xff] }
 0x1a1   :  { %v822_v33 = vsel %vm821_vm4, %v3782_v14, %v818_v57  ;;  %v3702_v29 = vmul.f32 -1.442695, %v951_v2  ;;  %v843_v14 = vand.u32 2147483647, %v833_v36  ;;  %v981_v7 = vmul.f32 %v5738_v5, %v980_v55  ;;  %v5780_v55 = vld [vmem:[#allocation9 + $0x1b8] sm:$0xff] }
 0x1a2   :  { %v3792_v63 = vpop.eup %3791  ;;  %v827_v41 = vsel %vm824_vm5, %v826_v22, %v822_v33  ;;  %v989_v22 = vand.u32 2147483648, %v5729_v11 }
 0x1a3   :  { %v849_v44 = vmul.f32 0.0, %v827_v41  ;;  %v835_v60 = vmul.f32 %v3792_v63, %v833_v36  ;;  %3793 = vpow2.f32 %v3702_v29  ;;  %vm840_vm6 = vweird.f32 %v3792_v63  ;;  %v916_v4 = vpop.f32.mrf.mxu2  ;;  %v857_v36 = vld [vmem:[#allocation2 + $0x18] sm:$0xc] }
 0x1a4   :  { %vm841_vm8 = vmor %vm839_vm7, %vm840_vm6  ;;  %vm844_vm9 = vcmp.eq.f32.partialorder %v843_v14, 8.507059e+37  ;;  %v945_v3 = vrot.slane %v916_v4, 6  ;;  %v982_v6 = vadd.f32 %v5738_v5, %v981_v7  ;;  %v987_v29 = vand.u32 2147483647, %v5729_v11  ;;  %v5761_v41 = vld [vmem:[#allocation9 + $0x1f8] sm:$0xff] }
 0x1a5   :  { %v5740_v8 = vadd.f32 %v850_v54, %v849_v44  ;;  %v836_v10 = vsub.f32 1.0, %v835_v60  ;;  %v990_v56 = vor.u32 1.1754944e-38, %v989_v22  ;;  %v5810_v22 = vld [vmem:[#allocation9 + $0x128] sm:$0xff]  ;;  %v5821_v44 = vld [vmem:[#allocation9 + $0x118] sm:$0xff] }
 0x1a6   :  { %v953_v16 = vadd.f32 %v945_v3, %v857_v36  ;;  %v986_v11 = vsel %vm5764_vm12, %v5738_v5, %v982_v6  ;;  %vm988_vm15 = vcmp.eq.f32.partialorder %v987_v29, 8.507059e+37  ;;  %v5792_v36 = vld [vmem:[#allocation9 + $0x168] sm:$0xff]  ;;  %v1009_v6 = vand.u32 2147483648, %v5744_v35 }
 0x1a7   :  { %3795 = vtanh.f32 %v5740_v8  ;;  %v837_v42 = vmul.f32 %v3792_v63, %v836_v10  ;;  %v991_v4 = vsel %vm988_vm15, %v990_v56, %v986_v11  ;;  %v5818_v29 = vld [vmem:[#allocation9 + $0x108] sm:$0xff]  ;;  %v5828_v11 = vld [vmem:[#allocation9 + $0xf8] sm:$0xff] }
 0x1a8   :  { %3797 = vrcp.f32 %v5744_v35 }
 0x1a9   :  { %v3794_v47 = vpop.eup %3793  ;;  %v838_v51 = vadd.f32 %v3792_v63, %v837_v42  ;;  %v5774_v42 = vld [vmem:[#allocation9 + $0x1d8] sm:$0xff] }
 0x1aa   :  { %v958_v27 = vadd.f32 1.0, %v3794_v47 }
 0x1ab   :  { %v842_v40 = vsel %vm841_vm8, %v3792_v63, %v838_v51  ;;  %v5758_v63 = vld [vmem:[#allocation9 + $0x1e8] sm:$0xff] }
 0x1ac   :  { %3799 = vrcp.f32 %v958_v27  ;;  %v847_v45 = vsel %vm844_vm9, %v846_v58, %v842_v40  ;;  %v970_v54 = vand.u32 2147483648, %v958_v27  ;;  %v968_v10 = vand.u32 2147483647, %v958_v27  ;;  %v5777_v51 = vld [vmem:[#allocation9 + $0x1a8] sm:$0xff] }
 0x1ad   :  { %v3796_v20 = vpop.eup %3795  ;;  %3801 = vtanh.f32 %v953_v16  ;;  %vm964_vm14 = vweird.f32 %v958_v27  ;;  %v1014_v58 = vrot.slane %v5495_v17, 6  ;;  %v5795_v17 = vld [vmem:[#allocation9 + $0x178] sm:$0xff]  ;;  %v5800_v16 = vld [vmem:[#allocation9 + $0x148] sm:$0xff] }
 0x1ae   :  { %v853_v49 = vmul.f32 %v3796_v20, %v847_v45  ;;  %v5749_v24 = vpop.eup %3797  ;;  %v971_v5 = vor.u32 1.1754944e-38, %v970_v54  ;;  %vm969_vm1 = vcmp.eq.f32.partialorder %v968_v10, 8.507059e+37  ;;  %v5785_v20 = vld [vmem:[#allocation9 + $0x188] sm:$0xff] }
 0x1af   :  { %v999_v61 = vmul.f32 %v5749_v24, %v5744_v35  ;;  %v1016_v7 = vmul.f32 %v1014_v58, %v991_v4  ;;  %vm1004_vm2 = vweird.f32 %v5749_v24  ;;  %v5825_v10 = vld [vmem:[#allocation9 + $0xe8] sm:$0xff]  ;;  %v5840_v4 = vld [vmem:[#allocation9 + $0xb8] sm:$0xff] }
 0x1b0   :  { %854 = vst [vmem:[#allocation3] sm:$0x3] %v853_v49  ;;  %v1022_v53 = vrot.slane %v853_v49, 6  ;;  %vm1005_vm4 = vmor %vm1003_vm3, %vm1004_vm2  ;;  %v5845_v58 = vld [vmem:[#allocation9 + $0x88] sm:$0xff] }
 0x1b1   :  { %v1000_v14 = vsub.f32 1.0, %v999_v61  ;;  %v5813_v61 = vld [vmem:[#allocation9 + $0x138] sm:$0xff] }
 0x1b2   :  { %v3800_v62 = vpop.eup %3799  ;;  %v1025_v57 = vrot.slane %v1022_v53, 2 }
 0x1b3   :  { %v960_v2 = vmul.f32 %v3800_v62, %v958_v27  ;;  %vm965_vm13 = vweird.f32 %v3800_v62  ;;  %v5788_v27 = vld [vmem:[#allocation9 + $0x198] sm:$0xff]  ;;  %v3802_v45 = vpop.eup %3801  ;;  %v1001_v3 = vmul.f32 %v5749_v24, %v1000_v14  ;;  %v5831_v14 = vld [vmem:[#allocation9 + $0xc8] sm:$0xff] }
 0x1b4   :  { %1064 = vmatmul.f32.vlgmr.msra.gmra.mxu1 %v1025_v57  ;;  %1104 = vmatmul.f32.vlgmr.msrb.gmra.mxu3 %v1025_v57  ;;  %vm966_vm0 = vmor %vm964_vm14, %vm965_vm13 }
 0x1b5   :  { %v961_v33 = vsub.f32 1.0, %v960_v2  ;;  %1276 = vmatpush.msra.mxu1 %v5758_v63  ;;  %1316 = vmatpush.msrb.mxu3 %v5761_v41  ;;  %v5803_v2 = vld [vmem:[#allocation9 + $0x158] sm:$0xff] }
 0x1b7   :  { %v962_v60 = vmul.f32 %v3800_v62, %v961_v33  ;;  %1277 = vmatpush.msra.mxu1 %v5771_v48  ;;  %1317 = vmatpush.msrb.mxu3 %v5774_v42  ;;  %v1007_v33 = vand.u32 2147483647, %v5744_v35 }
 0x1b9   :  { %v963_v47 = vadd.f32 %v3800_v62, %v962_v60  ;;  %1278 = vmatpush.msra.mxu1 %v5777_v51  ;;  %1318 = vmatpush.msrb.mxu3 %v5780_v55  ;;  %v1010_v60 = vor.u32 1.1754944e-38, %v1009_v6  ;;  %vm1008_vm5 = vcmp.eq.f32.partialorder %v1007_v33, 8.507059e+37  ;;  %v5948_v6 = vld [vmem:[#allocation12 + $0x300] sm:$0xff]  ;;  %v9079_v33 = vld [vmem:[#allocation28_spill] sm:$0xff] }
 0x1ba   :  { %9078 = vst [vmem:[#allocation54_spill] sm:$0xff] %v5948_v6 }
 0x1bb   :  { %v967_v40 = vsel %vm966_vm0, %v3800_v62, %v963_v47  ;;  %1279 = vmatpush.msra.mxu1 %v5785_v20  ;;  %1319 = vmatpush.msrb.mxu3 %v5788_v27  ;;  %v5834_v47 = vld [vmem:[#allocation9 + $0xd8] sm:$0xff] }
 0x1bc   :  { %v972_v49 = vsel %vm969_vm1, %v971_v5, %v967_v40  ;;  %1144 = vmatmul.f32.vlgmr.msrb.gmra.mxu1 %v1025_v57  ;;  %1184 = vmatmul.f32.vlgmr.msra.gmra.mxu3 %v1025_v57  ;;  %v1002_v57 = vadd.f32 %v5749_v24, %v1001_v3  ;;  %v5837_v5 = vld [vmem:[#allocation9 + $0xa8] sm:$0xff] }
 0x1bd   :  { %v1017_v53 = vmul.f32 %v3802_v45, %v972_v49  ;;  %1280 = vmatpush.msra.mxu1 %v5792_v36  ;;  %1320 = vmatpush.msrb.mxu3 %v5795_v17  ;;  %v5848_v45 = vld [vmem:[#allocation9 + $0x98] sm:$0xff]  ;;  %v5855_v3 = vld [vmem:[#allocation9 + $0x68] sm:$0xff] }
 0x1be   :  { %v1006_v54 = vsel %vm1005_vm4, %v5749_v24, %v1002_v57  ;;  %v5858_v49 = vld [vmem:[#allocation9 + $0x78] sm:$0xff]  ;;  %v5944_v57 = vld [vmem:[#allocation12 + $0x328] sm:$0xff] }
 0x1bf   :  { %v5798_v62 = vadd.f32 %v1017_v53, %v1016_v7  ;;  %1281 = vmatpush.msra.mxu1 %v5800_v16  ;;  %1321 = vmatpush.msrb.mxu3 %v5803_v2  ;;  %v1011_v56 = vsel %vm1008_vm5, %v1010_v60, %v1006_v54  ;;  %v5863_v7 = vld [vmem:[#allocation9 + $0x48] sm:$0xff]  ;;  %v5866_v53 = vld [vmem:[#allocation9 + $0x58] sm:$0xff]  ;;  %9076 = vst [vmem:[#allocation51_spill] sm:$0xff] %v5944_v57 }
 0x1c0   :  { %v5952_v54 = vld [vmem:[#allocation12 + $0x308] sm:$0xff]  ;;  %v9081_v60 = vld [vmem:[#allocation29_spill] sm:$0xff] }
 0x1c1   :  { %3803 = vtanh.f32 %v5798_v62  ;;  %1282 = vmatpush.msra.mxu1 %v5810_v22  ;;  %1322 = vmatpush.msrb.mxu3 %v5813_v61  ;;  %9080 = vst [vmem:[#allocation55_spill] sm:$0xff] %v5952_v54 }
 0x1c3   :  { %1283 = vmatpush.msra.mxu1 %v5818_v29  ;;  %1323 = vmatpush.msrb.mxu3 %v5821_v44 }
 0x1c5   :  { %1284 = vmatpush.msra.mxu1 %v5825_v10  ;;  %1324 = vmatpush.msrb.mxu3 %v5828_v11 }
 0x1c7   :  { %v3804_v35 = vpop.eup %3803  ;;  %1285 = vmatpush.msra.mxu1 %v5831_v14  ;;  %1325 = vmatpush.msrb.mxu3 %v5834_v47 }
 0x1c8   :  { %v1020_v24 = vmul.f32 %v3804_v35, %v1011_v56  ;;  %v5956_v35 = vld [vmem:[#allocation12 + $0x2e0] sm:$0xff]  ;;  %v5959_v56 = vld [vmem:[#allocation9 + $0x50] sm:$0xff] }
 0x1c9   :  { %1286 = vmatpush.msra.mxu1 %v5837_v5  ;;  %1326 = vmatpush.msrb.mxu3 %v5840_v4  ;;  %9082 = vst [vmem:[#allocation58_spill] sm:$0xff] %v5956_v35 }
 0x1ca   :  { %v5843_v40 = vrot.slane %v1020_v24, 2  ;;  %9083 = vst [vmem:[#allocation59_spill] sm:$0xff] %v5959_v56  ;;  %v5962_v24 = vld [vmem:[#allocation12 + $0x2e8] sm:$0xff] }
 0x1cb   :  { %1287 = vmatpush.msra.mxu1 %v5845_v58  ;;  %1327 = vmatpush.msrb.mxu3 %v5848_v45  ;;  %9084 = vst [vmem:[#allocation62_spill] sm:$0xff] %v5962_v24 }
 0x1cc   :  { %1044 = vmatmul.f32.vlgmr.msra.gmra.mxu0 %v5843_v40  ;;  %1084 = vmatmul.f32.vlgmr.msrb.gmra.mxu2 %v5843_v40 }
 0x1cd   :  { %1256 = vmatpush.msra.mxu0 %v5518_v15  ;;  %1296 = vmatpush.msrb.mxu2 %v5522_v59  ;;  %v5871_v15 = vld [vmem:[#allocation9 + $0x28] sm:$0xff]  ;;  %v5874_v59 = vld [vmem:[#allocation9 + $0x38] sm:$0xff] }
 0x1ce   :  { %1288 = vmatpush.msra.mxu1 %v5855_v3  ;;  %1328 = vmatpush.msrb.mxu3 %v5858_v49 }
 0x1cf   :  { %1257 = vmatpush.msra.mxu0 %v5526_v0  ;;  %1297 = vmatpush.msrb.mxu2 %v5530_v1  ;;  %v5879_v0 = vld [vmem:[#allocation9 + $0x8] sm:$0xff]  ;;  %v5882_v1 = vld [vmem:[#allocation9 + $0x18] sm:$0xff] }
 0x1d0   :  { %1289 = vmatpush.msra.mxu1 %v5863_v7  ;;  %1329 = vmatpush.msrb.mxu3 %v5866_v53 }
 0x1d1   :  { %1258 = vmatpush.msra.mxu0 %v5534_v34  ;;  %1298 = vmatpush.msrb.mxu2 %v5538_v9  ;;  %v5892_v34 = vld [vmem:[#allocation12 + $0x3e0] sm:$0xff]  ;;  %v5896_v9 = vld [vmem:[#allocation12 + $0x3e8] sm:$0xff] }
 0x1d2   :  { %1290 = vmatpush.msra.mxu1 %v5871_v15  ;;  %1330 = vmatpush.msrb.mxu3 %v5874_v59 }
 0x1d3   :  { %1259 = vmatpush.msra.mxu0 %v5542_v37  ;;  %1299 = vmatpush.msrb.mxu2 %v5546_v25  ;;  %v5900_v37 = vld [vmem:[#allocation12 + $0x3c0] sm:$0xff]  ;;  %v5904_v25 = vld [vmem:[#allocation12 + $0x3c8] sm:$0xff] }
 0x1d4   :  { %1291 = vmatpush.msra.mxu1 %v5879_v0  ;;  %1331 = vmatpush.msrb.mxu3 %v5882_v1 }
 0x1d5   :  { %1124 = vmatmul.f32.vlgmr.msrb.gmra.mxu0 %v5843_v40  ;;  %1164 = vmatmul.f32.vlgmr.msra.gmra.mxu2 %v5843_v40 }
 0x1d6   :  { %1260 = vmatpush.msra.mxu0 %v5551_v28  ;;  %1292 = vmatmul.f32.vlgmr.msra.gmra.mxu1 %v5843_v40  ;;  %v5908_v28 = vld [vmem:[#allocation12 + $0x3a0] sm:$0xff] }
 0x1d7   :  { %1300 = vmatpush.msrb.mxu2 %v5554_v50  ;;  %1332 = vmatmul.f32.vlgmr.msrb.gmra.mxu3 %v5843_v40  ;;  %9064 = vst [vmem:[#allocation36_spill] sm:$0xff] %v5908_v28  ;;  %v5912_v50 = vld [vmem:[#allocation12 + $0x3a8] sm:$0xff] }
 0x1d8   :  { %1261 = vmatpush.msra.mxu0 %v5558_v30  ;;  %1445 = vmatpush.msrb.mxu1 %v5892_v34  ;;  %9065 = vst [vmem:[#allocation37_spill] sm:$0xff] %v5912_v50  ;;  %v5916_v30 = vld [vmem:[#allocation12 + $0x380] sm:$0xff] }
 0x1d9   :  { %1301 = vmatpush.msrb.mxu2 %v5562_v52  ;;  %1485 = vmatpush.msra.mxu3 %v5896_v9  ;;  %9066 = vst [vmem:[#allocation38_spill] sm:$0xff] %v5916_v30  ;;  %v5920_v52 = vld [vmem:[#allocation12 + $0x388] sm:$0xff] }
 0x1da   :  { %1262 = vmatpush.msra.mxu0 %v5566_v18  ;;  %1446 = vmatpush.msrb.mxu1 %v5900_v37  ;;  %9067 = vst [vmem:[#allocation39_spill] sm:$0xff] %v5920_v52  ;;  %v5924_v18 = vld [vmem:[#allocation12 + $0x360] sm:$0xff] }
 0x1db   :  { %1302 = vmatpush.msrb.mxu2 %v5570_v21  ;;  %1486 = vmatpush.msra.mxu3 %v5904_v25  ;;  %9068 = vst [vmem:[#allocation42_spill] sm:$0xff] %v5924_v18  ;;  %v5928_v21 = vld [vmem:[#allocation12 + $0x368] sm:$0xff] }
 0x1dc   :  { %1263 = vmatpush.msra.mxu0 %v5574_v26  ;;  %1447 = vmatpush.msrb.mxu1 %v5908_v28  ;;  %9069 = vst [vmem:[#allocation43_spill] sm:$0xff] %v5928_v21  ;;  %v5932_v26 = vld [vmem:[#allocation12 + $0x340] sm:$0xff] }
 0x1dd   :  { %1303 = vmatpush.msrb.mxu2 %v5578_v38  ;;  %1487 = vmatpush.msra.mxu3 %v5912_v50  ;;  %9070 = vst [vmem:[#allocation46_spill] sm:$0xff] %v5932_v26  ;;  %v9071_v38 = vld [vmem:[#allocation25_spill] sm:$0xff] }
 0x1de   :  { %1264 = vmatpush.msra.mxu0 %v5582_v43  ;;  %1448 = vmatpush.msrb.mxu1 %v5916_v30  ;;  %v5936_v43 = vld [vmem:[#allocation12 + $0x348] sm:$0xff] }
 0x1df   :  { %1304 = vmatpush.msrb.mxu2 %v5586_v31  ;;  %1488 = vmatpush.msra.mxu3 %v5920_v52  ;;  %9072 = vst [vmem:[#allocation47_spill] sm:$0xff] %v5936_v43  ;;  %v9073_v31 = vld [vmem:[#allocation24_spill] sm:$0xff] }
 0x1e0   :  { %1265 = vmatpush.msra.mxu0 %v5590_v46  ;;  %1449 = vmatpush.msrb.mxu1 %v5924_v18  ;;  %v5940_v46 = vld [vmem:[#allocation12 + $0x320] sm:$0xff] }
 0x1e1   :  { %1305 = vmatpush.msrb.mxu2 %v5594_v12  ;;  %1489 = vmatpush.msra.mxu3 %v5928_v21  ;;  %9074 = vst [vmem:[#allocation50_spill] sm:$0xff] %v5940_v46  ;;  %v9075_v12 = vld [vmem:[#allocation26_spill] sm:$0xff]  ;;  %v1253_v21 = vld [vmem:[#allocation2] sm:$0x30] }
 0x1e2   :  { %1266 = vmatpush.msra.mxu0 %v5598_v39  ;;  %1450 = vmatpush.msrb.mxu1 %v5932_v26  ;;  %v9077_v39 = vld [vmem:[#allocation27_spill] sm:$0xff] }
 0x1e3   :  { %1306 = vmatpush.msrb.mxu2 %v9071_v38  ;;  %1490 = vmatpush.msra.mxu3 %v5936_v43  ;;  %v9085_v38 = vld [vmem:[#allocation30_spill] sm:$0xff] }
 0x1e4   :  { %1267 = vmatpush.msra.mxu0 %v9073_v31  ;;  %1451 = vmatpush.msrb.mxu1 %v5940_v46  ;;  %v5966_v31 = vld [vmem:[#allocation12 + $0x2c0] sm:$0xff] }
 0x1e5   :  { %1307 = vmatpush.msrb.mxu2 %v9075_v12  ;;  %1491 = vmatpush.msra.mxu3 %v5944_v57  ;;  %9086 = vst [vmem:[#allocation63_spill] sm:$0xff] %v5966_v31  ;;  %v5969_v12 = vld [vmem:[#allocation9 + $0x30] sm:$0xff] }
 0x1e6   :  { %1268 = vmatpush.msra.mxu0 %v9077_v39  ;;  %1452 = vmatpush.msrb.mxu1 %v5948_v6  ;;  %9087 = vst [vmem:[#allocation66_spill] sm:$0xff] %v5969_v12  ;;  %v5972_v39 = vld [vmem:[#allocation12 + $0x2c8] sm:$0xff] }
 0x1e7   :  { %1308 = vmatpush.msrb.mxu2 %v9079_v33  ;;  %1492 = vmatpush.msra.mxu3 %v5952_v54  ;;  %9088 = vst [vmem:[#allocation67_spill] sm:$0xff] %v5972_v39  ;;  %v9089_v33 = vld [vmem:[#allocation31_spill] sm:$0xff] }
 0x1e8   :  { %1269 = vmatpush.msra.mxu0 %v9081_v60  ;;  %1453 = vmatpush.msrb.mxu1 %v5956_v35  ;;  %v5976_v60 = vld [vmem:[#allocation12 + $0x2a0] sm:$0xff] }
 0x1e9   :  { %1309 = vmatpush.msrb.mxu2 %v5959_v56  ;;  %1493 = vmatpush.msra.mxu3 %v5962_v24  ;;  %9090 = vst [vmem:[#allocation70_spill] sm:$0xff] %v5976_v60  ;;  %v5979_v24 = vld [vmem:[#allocation9 + $0x10] sm:$0xff] }
 0x1ea   :  { %1270 = vmatpush.msra.mxu0 %v9085_v38  ;;  %1454 = vmatpush.msrb.mxu1 %v5966_v31  ;;  %9091 = vst [vmem:[#allocation71_spill] sm:$0xff] %v5979_v24  ;;  %v5984_v38 = vld [vmem:[#allocation12 + $0x2a8] sm:$0xff] }
 0x1eb   :  { %1310 = vmatpush.msrb.mxu2 %v5969_v12  ;;  %1494 = vmatpush.msra.mxu3 %v5972_v39  ;;  %9092 = vst [vmem:[#allocation74_spill] sm:$0xff] %v5984_v38  ;;  %v5987_v12 = vld [vmem:[#allocation12 + $0x280] sm:$0xff] }
 0x1ec   :  { %1271 = vmatpush.msra.mxu0 %v9089_v33  ;;  %1455 = vmatpush.msrb.mxu1 %v5976_v60  ;;  %9093 = vst [vmem:[#allocation75_spill] sm:$0xff] %v5987_v12  ;;  %v5990_v33 = vld [vmem:[#allocation12 + $0x1e0] sm:$0xff]  ;;  %v5993_v60 = vld [vmem:[#allocation12 + $0x288] sm:$0xff] }
 0x1ed   :  { %1311 = vmatpush.msrb.mxu2 %v5979_v24  ;;  %1272 = vmatmul.f32.vlgmr.msra.gmra.mxu0 %v5843_v40  ;;  %9094 = vst [vmem:[#allocation78_spill] sm:$0xff] %v5990_v33  ;;  %v5996_v24 = vld [vmem:[#allocation12 + $0x1e8] sm:$0xff] }
 0x1ee   :  { %1312 = vmatmul.f32.vlgmr.msrb.gmra.mxu2 %v5843_v40  ;;  %1495 = vmatpush.msra.mxu3 %v5984_v38  ;;  %9095 = vst [vmem:[#allocation21_spill] sm:$0xff] %v5993_v60  ;;  %v5999_v40 = vld [vmem:[#allocation12 + $0x260] sm:$0xff] }
 0x1ef   :  { %1456 = vmatpush.msrb.mxu1 %v5987_v12  ;;  %1425 = vmatpush.msrb.mxu0 %v5990_v33  ;;  %9096 = vst [vmem:[#allocation79_spill] sm:$0xff] %v5996_v24  ;;  %v6002_v38 = vld [vmem:[#allocation12 + $0x1c0] sm:$0xff]  ;;  %v6005_v12 = vld [vmem:[#allocation12 + $0x268] sm:$0xff] }
 0x1f0   :  { %1496 = vmatpush.msra.mxu3 %v5993_v60  ;;  %1465 = vmatpush.msra.mxu2 %v5996_v24  ;;  %9097 = vst [vmem:[#allocation82_spill] sm:$0xff] %v5999_v40  ;;  %v6008_v33 = vld [vmem:[#allocation12 + $0x1c8] sm:$0xff]  ;;  %v6011_v60 = vld [vmem:[#allocation12 + $0x240] sm:$0xff] }
 0x1f1   :  { %1457 = vmatpush.msrb.mxu1 %v5999_v40  ;;  %9098 = vst [vmem:[#allocation22_spill] sm:$0xff] %v6002_v38  ;;  %1426 = vmatpush.msrb.mxu0 %v6002_v38  ;;  %v6014_v24 = vld [vmem:[#allocation12 + $0x1a0] sm:$0xff]  ;;  %v6017_v40 = vld [vmem:[#allocation12 + $0x248] sm:$0xff] }
 0x1f2   :  { %9099 = vst [vmem:[#allocation83_spill] sm:$0xff] %v6005_v12  ;;  %1497 = vmatpush.msra.mxu3 %v6005_v12  ;;  %1466 = vmatpush.msra.mxu2 %v6008_v33  ;;  %v6020_v38 = vld [vmem:[#allocation12 + $0x1a8] sm:$0xff]  ;;  %v6023_v12 = vld [vmem:[#allocation12 + $0x220] sm:$0xff] }
 0x1f3   :  { %9100 = vst [vmem:[#allocation86_spill] sm:$0xff] %v6008_v33  ;;  %1458 = vmatpush.msrb.mxu1 %v6011_v60  ;;  %1427 = vmatpush.msrb.mxu0 %v6014_v24  ;;  %v6026_v33 = vld [vmem:[#allocation12 + $0x180] sm:$0xff] }
 0x1f4   :  { %9101 = vst [vmem:[#allocation23_spill] sm:$0xff] %v6011_v60  ;;  %1498 = vmatpush.msra.mxu3 %v6017_v40  ;;  %1467 = vmatpush.msra.mxu2 %v6020_v38  ;;  %v6029_v60 = vld [vmem:[#allocation12 + $0x228] sm:$0xff] }
 0x1f5   :  { %9102 = vst [vmem:[#allocation40_spill] sm:$0xff] %v6014_v24  ;;  %1459 = vmatpush.msrb.mxu1 %v6023_v12  ;;  %1428 = vmatpush.msrb.mxu0 %v6026_v33  ;;  %v6032_v24 = vld [vmem:[#allocation12 + $0x188] sm:$0xff] }
 0x1f6   :  { %9103 = vst [vmem:[#allocation41_spill] sm:$0xff] %v6017_v40  ;;  %1499 = vmatpush.msra.mxu3 %v6029_v60  ;;  %1468 = vmatpush.msra.mxu2 %v6032_v24  ;;  %v6035_v40 = vld [vmem:[#allocation12 + $0x200] sm:$0xff] }
 0x1f7   :  { %9104 = vst [vmem:[#allocation87_spill] sm:$0xff] %v6020_v38  ;;  %1460 = vmatpush.msrb.mxu1 %v6035_v40  ;;  %v6038_v38 = vld [vmem:[#allocation12 + $0x160] sm:$0xff] }
 0x1f8   :  { %9105 = vst [vmem:[#allocation44_spill] sm:$0xff] %v6023_v12  ;;  %1429 = vmatpush.msrb.mxu0 %v6038_v38  ;;  %v6041_v12 = vld [vmem:[#allocation12 + $0x208] sm:$0xff] }
 0x1f9   :  { %9106 = vst [vmem:[#allocation90_spill] sm:$0xff] %v6026_v33  ;;  %1500 = vmatpush.msra.mxu3 %v6041_v12  ;;  %v6044_v33 = vld [vmem:[#allocation12 + $0x168] sm:$0xff] }
 0x1fa   :  { %9107 = vst [vmem:[#allocation45_spill] sm:$0xff] %v6029_v60  ;;  %1469 = vmatpush.msra.mxu2 %v6044_v33  ;;  %v6047_v60 = vld [vmem:[#allocation12 + $0x3f0] sm:$0xff] }
 0x1fb   :  { %9108 = vst [vmem:[#allocation91_spill] sm:$0xff] %v6032_v24  ;;  %1525 = vmatpush.msra.mxu1 %v6047_v60  ;;  %v6050_v24 = vld [vmem:[#allocation12 + $0x3f8] sm:$0xff] }
 0x1fc   :  { %9109 = vst [vmem:[#allocation48_spill] sm:$0xff] %v6035_v40  ;;  %1565 = vmatpush.msrb.mxu3 %v6050_v24  ;;  %v6053_v40 = vld [vmem:[#allocation12 + $0x140] sm:$0xff] }
 0x1fd   :  { %9110 = vst [vmem:[#allocation94_spill] sm:$0xff] %v6038_v38  ;;  %1430 = vmatpush.msrb.mxu0 %v6053_v40  ;;  %v6056_v38 = vld [vmem:[#allocation12 + $0x148] sm:$0xff] }
 0x1fe   :  { %9111 = vst [vmem:[#allocation49_spill] sm:$0xff] %v6041_v12  ;;  %1470 = vmatpush.msra.mxu2 %v6056_v38  ;;  %v6059_v12 = vld [vmem:[#allocation12 + $0x3d0] sm:$0xff] }
 0x1ff   :  { %9112 = vst [vmem:[#allocation95_spill] sm:$0xff] %v6044_v33  ;;  %1526 = vmatpush.msra.mxu1 %v6059_v12  ;;  %v6062_v33 = vld [vmem:[#allocation12 + $0x3d8] sm:$0xff] }
 0x200   :  { %9113 = vst [vmem:[#allocation52_spill] sm:$0xff] %v6047_v60  ;;  %1566 = vmatpush.msrb.mxu3 %v6062_v33  ;;  %v6065_v60 = vld [vmem:[#allocation12 + $0x120] sm:$0xff] }
 0x201   :  { %9114 = vst [vmem:[#allocation98_spill] sm:$0xff] %v6050_v24  ;;  %1431 = vmatpush.msrb.mxu0 %v6065_v60  ;;  %v6068_v24 = vld [vmem:[#allocation12 + $0x128] sm:$0xff] }
 0x202   :  { %9115 = vst [vmem:[#allocation53_spill] sm:$0xff] %v6053_v40  ;;  %1471 = vmatpush.msra.mxu2 %v6068_v24  ;;  %v6071_v40 = vld [vmem:[#allocation12 + $0x3b0] sm:$0xff] }
 0x203   :  { %9116 = vst [vmem:[#allocation99_spill] sm:$0xff] %v6056_v38  ;;  %1527 = vmatpush.msra.mxu1 %v6071_v40  ;;  %v6074_v38 = vld [vmem:[#allocation12 + $0x3b8] sm:$0xff] }
 0x204   :  { %9117 = vst [vmem:[#allocation56_spill] sm:$0xff] %v6059_v12  ;;  %1567 = vmatpush.msrb.mxu3 %v6074_v38  ;;  %v6077_v12 = vld [vmem:[#allocation12 + $0x100] sm:$0xff] }
 0x205   :  { %9118 = vst [vmem:[#allocation57_spill] sm:$0xff] %v6062_v33  ;;  %1432 = vmatpush.msrb.mxu0 %v6077_v12  ;;  %v6080_v33 = vld [vmem:[#allocation12 + $0x108] sm:$0xff] }
 0x206   :  { %9119 = vst [vmem:[#allocation102_spill] sm:$0xff] %v6065_v60  ;;  %1472 = vmatpush.msra.mxu2 %v6080_v33  ;;  %v6083_v60 = vld [vmem:[#allocation12 + $0x390] sm:$0xff] }
 0x207   :  { %9120 = vst [vmem:[#allocation60_spill] sm:$0xff] %v6068_v24  ;;  %1528 = vmatpush.msra.mxu1 %v6083_v60  ;;  %v6086_v24 = vld [vmem:[#allocation12 + $0x398] sm:$0xff] }
 0x208   :  { %9121 = vst [vmem:[#allocation61_spill] sm:$0xff] %v6071_v40  ;;  %1568 = vmatpush.msrb.mxu3 %v6086_v24  ;;  %v6089_v40 = vld [vmem:[#allocation12 + $0xe0] sm:$0xff] }
 0x209   :  { %9122 = vst [vmem:[#allocation64_spill] sm:$0xff] %v6074_v38  ;;  %1433 = vmatpush.msrb.mxu0 %v6089_v40  ;;  %v6092_v38 = vld [vmem:[#allocation12 + $0xe8] sm:$0xff] }
 0x20a   :  { %9123 = vst [vmem:[#allocation65_spill] sm:$0xff] %v6077_v12  ;;  %1473 = vmatpush.msra.mxu2 %v6092_v38  ;;  %v6095_v12 = vld [vmem:[#allocation12 + $0x370] sm:$0xff] }
 0x20b   :  { %9124 = vst [vmem:[#allocation68_spill] sm:$0xff] %v6080_v33  ;;  %1529 = vmatpush.msra.mxu1 %v6095_v12  ;;  %v6098_v33 = vld [vmem:[#allocation12 + $0x378] sm:$0xff] }
 0x20c   :  { %9125 = vst [vmem:[#allocation69_spill] sm:$0xff] %v6083_v60  ;;  %1569 = vmatpush.msrb.mxu3 %v6098_v33  ;;  %v6101_v60 = vld [vmem:[#allocation12 + $0xc0] sm:$0xff] }
 0x20d   :  { %9126 = vst [vmem:[#allocation72_spill] sm:$0xff] %v6086_v24  ;;  %1434 = vmatpush.msrb.mxu0 %v6101_v60  ;;  %v6104_v24 = vld [vmem:[#allocation12 + $0xc8] sm:$0xff] }
 0x20e   :  { %9127 = vst [vmem:[#allocation73_spill] sm:$0xff] %v6089_v40  ;;  %1474 = vmatpush.msra.mxu2 %v6104_v24  ;;  %v6107_v40 = vld [vmem:[#allocation12 + $0x350] sm:$0xff] }
 0x20f   :  { %9128 = vst [vmem:[#allocation76_spill] sm:$0xff] %v6092_v38  ;;  %1530 = vmatpush.msra.mxu1 %v6107_v40  ;;  %v6110_v38 = vld [vmem:[#allocation12 + $0x358] sm:$0xff] }
 0x210   :  { %9129 = vst [vmem:[#allocation77_spill] sm:$0xff] %v6095_v12  ;;  %1570 = vmatpush.msrb.mxu3 %v6110_v38  ;;  %v6113_v12 = vld [vmem:[#allocation12 + $0xa0] sm:$0xff] }
 0x211   :  { %9130 = vst [vmem:[#allocation80_spill] sm:$0xff] %v6098_v33  ;;  %1435 = vmatpush.msrb.mxu0 %v6113_v12  ;;  %v6116_v33 = vld [vmem:[#allocation12 + $0xa8] sm:$0xff] }
 0x212   :  { %9131 = vst [vmem:[#allocation81_spill] sm:$0xff] %v6101_v60  ;;  %1475 = vmatpush.msra.mxu2 %v6116_v33  ;;  %v6119_v60 = vld [vmem:[#allocation12 + $0x330] sm:$0xff] }
 0x213   :  { %9132 = vst [vmem:[#allocation84_spill] sm:$0xff] %v6104_v24  ;;  %1531 = vmatpush.msra.mxu1 %v6119_v60  ;;  %v6122_v24 = vld [vmem:[#allocation12 + $0x338] sm:$0xff] }
 0x214   :  { %9133 = vst [vmem:[#allocation85_spill] sm:$0xff] %v6107_v40  ;;  %1571 = vmatpush.msrb.mxu3 %v6122_v24  ;;  %v6125_v40 = vld [vmem:[#allocation12 + $0x80] sm:$0xff] }
 0x215   :  { %9134 = vst [vmem:[#allocation88_spill] sm:$0xff] %v6110_v38  ;;  %1436 = vmatpush.msrb.mxu0 %v6125_v40  ;;  %v6128_v38 = vld [vmem:[#allocation12 + $0x88] sm:$0xff] }
 0x216   :  { %9135 = vst [vmem:[#allocation89_spill] sm:$0xff] %v6113_v12  ;;  %1476 = vmatpush.msra.mxu2 %v6128_v38  ;;  %v6131_v12 = vld [vmem:[#allocation12 + $0x310] sm:$0xff] }
 0x217   :  { %9136 = vst [vmem:[#allocation92_spill] sm:$0xff] %v6116_v33  ;;  %1532 = vmatpush.msra.mxu1 %v6131_v12  ;;  %v6134_v33 = vld [vmem:[#allocation12 + $0x318] sm:$0xff] }
 0x218   :  { %9137 = vst [vmem:[#allocation93_spill] sm:$0xff] %v6119_v60  ;;  %1572 = vmatpush.msrb.mxu3 %v6134_v33  ;;  %v6137_v60 = vld [vmem:[#allocation12 + $0x60] sm:$0xff] }
 0x219   :  { %9138 = vst [vmem:[#allocation96_spill] sm:$0xff] %v6122_v24  ;;  %1437 = vmatpush.msrb.mxu0 %v6137_v60  ;;  %v6140_v24 = vld [vmem:[#allocation12 + $0x68] sm:$0xff] }
 0x21a   :  { %9139 = vst [vmem:[#allocation97_spill] sm:$0xff] %v6125_v40  ;;  %1477 = vmatpush.msra.mxu2 %v6140_v24  ;;  %v6143_v40 = vld [vmem:[#allocation12 + $0x2f0] sm:$0xff] }
 0x21b   :  { %9140 = vst [vmem:[#allocation100_spill] sm:$0xff] %v6128_v38  ;;  %1533 = vmatpush.msra.mxu1 %v6143_v40  ;;  %v6146_v38 = vld [vmem:[#allocation12 + $0x2f8] sm:$0xff] }
 0x21c   :  { %9141 = vst [vmem:[#allocation101_spill] sm:$0xff] %v6131_v12  ;;  %1573 = vmatpush.msrb.mxu3 %v6146_v38  ;;  %v6149_v12 = vld [vmem:[#allocation12 + $0x40] sm:$0xff] }
 0x21d   :  { %9142 = vst [vmem:[#allocation103_spill] sm:$0xff] %v6134_v33  ;;  %1438 = vmatpush.msrb.mxu0 %v6149_v12  ;;  %v6152_v33 = vld [vmem:[#allocation12 + $0x48] sm:$0xff] }
 0x21e   :  { %9143 = vst [vmem:[#allocation104_spill] sm:$0xff] %v6137_v60  ;;  %1478 = vmatpush.msra.mxu2 %v6152_v33  ;;  %v6155_v60 = vld [vmem:[#allocation12 + $0x2d0] sm:$0xff] }
 0x21f   :  { %9144 = vst [vmem:[#allocation25_spill] sm:$0xff] %v6140_v24  ;;  %1534 = vmatpush.msra.mxu1 %v6155_v60  ;;  %v6158_v24 = vld [vmem:[#allocation12 + $0x2d8] sm:$0xff] }
 0x220   :  { %9145 = vst [vmem:[#allocation24_spill] sm:$0xff] %v6143_v40  ;;  %1574 = vmatpush.msrb.mxu3 %v6158_v24  ;;  %v6161_v40 = vld [vmem:[#allocation12 + $0x20] sm:$0xff] }
 0x221   :  { %9146 = vst [vmem:[#allocation26_spill] sm:$0xff] %v6146_v38  ;;  %1439 = vmatpush.msrb.mxu0 %v6161_v40  ;;  %v6164_v38 = vld [vmem:[#allocation12 + $0x28] sm:$0xff] }
 0x222   :  { %9147 = vst [vmem:[#allocation27_spill] sm:$0xff] %v6149_v12  ;;  %1479 = vmatpush.msra.mxu2 %v6164_v38  ;;  %v6167_v12 = vld [vmem:[#allocation12 + $0x2b0] sm:$0xff] }
 0x223   :  { %9148 = vst [vmem:[#allocation28_spill] sm:$0xff] %v6152_v33  ;;  %1535 = vmatpush.msra.mxu1 %v6167_v12  ;;  %v6170_v33 = vld [vmem:[#allocation12 + $0x2b8] sm:$0xff] }
 0x224   :  { %9149 = vst [vmem:[#allocation29_spill] sm:$0xff] %v6155_v60  ;;  %1575 = vmatpush.msrb.mxu3 %v6170_v33  ;;  %v6173_v60 = vld [vmem:[#allocation12] sm:$0xff] }
 0x225   :  { %9150 = vst [vmem:[#allocation30_spill] sm:$0xff] %v6158_v24  ;;  %1440 = vmatpush.msrb.mxu0 %v6173_v60  ;;  %v6176_v24 = vld [vmem:[#allocation12 + $0x8] sm:$0xff] }
 0x226   :  { %9151 = vst [vmem:[#allocation31_spill] sm:$0xff] %v6161_v40  ;;  %1480 = vmatpush.msra.mxu2 %v6176_v24  ;;  %v6179_v40 = vld [vmem:[#allocation12 + $0x290] sm:$0xff] }
 0x227   :  { %9152 = vst [vmem:[#allocation105_spill] sm:$0xff] %v6164_v38  ;;  %1536 = vmatpush.msra.mxu1 %v6179_v40  ;;  %v6182_v38 = vld [vmem:[#allocation12 + $0x298] sm:$0xff] }
 0x228   :  { %9153 = vst [vmem:[#allocation106_spill] sm:$0xff] %v6167_v12  ;;  %1576 = vmatpush.msrb.mxu3 %v6182_v38  ;;  %v6185_v12 = vld [vmem:[#allocation12 + $0x1f0] sm:$0xff] }
 0x229   :  { %9154 = vst [vmem:[#allocation107_spill] sm:$0xff] %v6170_v33  ;;  %1505 = vmatpush.msra.mxu0 %v6185_v12  ;;  %v6188_v33 = vld [vmem:[#allocation12 + $0x1f8] sm:$0xff] }
 0x22a   :  { %9155 = vst [vmem:[#allocation108_spill] sm:$0xff] %v6173_v60  ;;  %1545 = vmatpush.msrb.mxu2 %v6188_v33  ;;  %v6191_v60 = vld [vmem:[#allocation12 + $0x270] sm:$0xff] }
 0x22b   :  { %9156 = vst [vmem:[#allocation109_spill] sm:$0xff] %v6176_v24  ;;  %1537 = vmatpush.msra.mxu1 %v6191_v60  ;;  %v6194_v24 = vld [vmem:[#allocation12 + $0x278] sm:$0xff] }
 0x22c   :  { %9157 = vst [vmem:[#allocation110_spill] sm:$0xff] %v6179_v40  ;;  %1577 = vmatpush.msrb.mxu3 %v6194_v24  ;;  %v6197_v40 = vld [vmem:[#allocation12 + $0x1d0] sm:$0xff] }
 0x22d   :  { %9158 = vst [vmem:[#allocation111_spill] sm:$0xff] %v6182_v38  ;;  %1506 = vmatpush.msra.mxu0 %v6197_v40  ;;  %v6200_v38 = vld [vmem:[#allocation12 + $0x1d8] sm:$0xff] }
 0x22e   :  { %9159 = vst [vmem:[#allocation112_spill] sm:$0xff] %v6185_v12  ;;  %1546 = vmatpush.msrb.mxu2 %v6200_v38  ;;  %v6203_v12 = vld [vmem:[#allocation12 + $0x250] sm:$0xff] }
 0x22f   :  { %9160 = vst [vmem:[#allocation113_spill] sm:$0xff] %v6188_v33  ;;  %1538 = vmatpush.msra.mxu1 %v6203_v12  ;;  %v6206_v33 = vld [vmem:[#allocation12 + $0x258] sm:$0xff] }
 0x230   :  { %9161 = vst [vmem:[#allocation114_spill] sm:$0xff] %v6191_v60  ;;  %1578 = vmatpush.msrb.mxu3 %v6206_v33  ;;  %v6209_v60 = vld [vmem:[#allocation12 + $0x1b0] sm:$0xff] }
 0x231   :  { %9162 = vst [vmem:[#allocation115_spill] sm:$0xff] %v6194_v24  ;;  %1507 = vmatpush.msra.mxu0 %v6209_v60  ;;  %v6212_v24 = vld [vmem:[#allocation12 + $0x1b8] sm:$0xff] }
 0x232   :  { %9163 = vst [vmem:[#allocation116_spill] sm:$0xff] %v6197_v40  ;;  %1547 = vmatpush.msrb.mxu2 %v6212_v24  ;;  %v6215_v40 = vld [vmem:[#allocation12 + $0x230] sm:$0xff] }
 0x233   :  { %9164 = vst [vmem:[#allocation117_spill] sm:$0xff] %v6200_v38  ;;  %1539 = vmatpush.msra.mxu1 %v6215_v40  ;;  %v6218_v38 = vld [vmem:[#allocation12 + $0x238] sm:$0xff] }
 0x234   :  { %9165 = vst [vmem:[#allocation118_spill] sm:$0xff] %v6203_v12  ;;  %1579 = vmatpush.msrb.mxu3 %v6218_v38  ;;  %v6221_v12 = vld [vmem:[#allocation12 + $0x190] sm:$0xff] }
 0x235   :  { %9166 = vst [vmem:[#allocation119_spill] sm:$0xff] %v6206_v33  ;;  %1508 = vmatpush.msra.mxu0 %v6221_v12  ;;  %v6224_v33 = vld [vmem:[#allocation12 + $0x198] sm:$0xff] }
 0x236   :  { %9167 = vst [vmem:[#allocation120_spill] sm:$0xff] %v6209_v60  ;;  %1548 = vmatpush.msrb.mxu2 %v6224_v33  ;;  %v6227_v60 = vld [vmem:[#allocation12 + $0x210] sm:$0xff] }
 0x237   :  { %9168 = vst [vmem:[#allocation121_spill] sm:$0xff] %v6212_v24  ;;  %1540 = vmatpush.msra.mxu1 %v6227_v60  ;;  %v6230_v24 = vld [vmem:[#allocation12 + $0x218] sm:$0xff]  ;;  %v1105_v56 = vpop.f32.mrf.mxu3 }
 0x238   :  { %9169 = vst [vmem:[#allocation122_spill] sm:$0xff] %v6215_v40  ;;  %1580 = vmatpush.msrb.mxu3 %v6230_v24  ;;  %v6233_v40 = vld [vmem:[#allocation12 + $0x170] sm:$0xff] }
 0x239   :  { %9170 = vst [vmem:[#allocation123_spill] sm:$0xff] %v6218_v38  ;;  %1509 = vmatpush.msra.mxu0 %v6233_v40  ;;  %v6236_v38 = vld [vmem:[#allocation12 + $0x178] sm:$0xff] }
 0x23a   :  { %9171 = vst [vmem:[#allocation124_spill] sm:$0xff] %v6221_v12  ;;  %1549 = vmatpush.msrb.mxu2 %v6236_v38  ;;  %v6239_v12 = vld [vmem:[#allocation12 + $0x150] sm:$0xff] }
 0x23b   :  { %9172 = vst [vmem:[#allocation125_spill] sm:$0xff] %v6224_v33  ;;  %1510 = vmatpush.msra.mxu0 %v6239_v12  ;;  %v6242_v33 = vld [vmem:[#allocation12 + $0x158] sm:$0xff] }
 0x23c   :  { %9173 = vst [vmem:[#allocation126_spill] sm:$0xff] %v6227_v60  ;;  %1550 = vmatpush.msrb.mxu2 %v6242_v33  ;;  %v6245_v60 = vld [vmem:[#allocation12 + $0x130] sm:$0xff] }
 0x23d   :  { %9174 = vst [vmem:[#allocation127_spill] sm:$0xff] %v6230_v24  ;;  %1511 = vmatpush.msra.mxu0 %v6245_v60  ;;  %v6248_v24 = vld [vmem:[#allocation12 + $0x138] sm:$0xff] }
 0x23e   :  { %9175 = vst [vmem:[#allocation128_spill] sm:$0xff] %v6233_v40  ;;  %1551 = vmatpush.msrb.mxu2 %v6248_v24  ;;  %v6251_v40 = vld [vmem:[#allocation12 + $0x110] sm:$0xff] }
 0x23f   :  { %9176 = vst [vmem:[#allocation129_spill] sm:$0xff] %v6236_v38  ;;  %1512 = vmatpush.msra.mxu0 %v6251_v40  ;;  %v6254_v38 = vld [vmem:[#allocation12 + $0x118] sm:$0xff]  ;;  %v1185_v26 = vpop.f32.mrf.mxu3 }
 0x240   :  { %9177 = vst [vmem:[#allocation130_spill] sm:$0xff] %v6239_v12  ;;  %1552 = vmatpush.msrb.mxu2 %v6254_v38  ;;  %v6257_v12 = vld [vmem:[#allocation12 + $0xf0] sm:$0xff] }
 0x241   :  { %9178 = vst [vmem:[#allocation131_spill] sm:$0xff] %v6242_v33  ;;  %1513 = vmatpush.msra.mxu0 %v6257_v12  ;;  %v6260_v33 = vld [vmem:[#allocation12 + $0xf8] sm:$0xff] }
 0x242   :  { %9179 = vst [vmem:[#allocation132_spill] sm:$0xff] %v6245_v60  ;;  %1553 = vmatpush.msrb.mxu2 %v6260_v33  ;;  %v6263_v60 = vld [vmem:[#allocation12 + $0xd0] sm:$0xff] }
 0x243   :  { %9180 = vst [vmem:[#allocation133_spill] sm:$0xff] %v6248_v24  ;;  %1514 = vmatpush.msra.mxu0 %v6263_v60  ;;  %v6266_v24 = vld [vmem:[#allocation12 + $0xd8] sm:$0xff] }
 0x244   :  { %9181 = vst [vmem:[#allocation134_spill] sm:$0xff] %v6251_v40  ;;  %1554 = vmatpush.msrb.mxu2 %v6266_v24  ;;  %v6269_v40 = vld [vmem:[#allocation12 + $0xb0] sm:$0xff] }
 0x245   :  { %9182 = vst [vmem:[#allocation135_spill] sm:$0xff] %v6254_v38  ;;  %1515 = vmatpush.msra.mxu0 %v6269_v40  ;;  %v6272_v38 = vld [vmem:[#allocation12 + $0xb8] sm:$0xff] }
 0x246   :  { %9183 = vst [vmem:[#allocation136_spill] sm:$0xff] %v6257_v12  ;;  %1555 = vmatpush.msrb.mxu2 %v6272_v38  ;;  %v6275_v12 = vld [vmem:[#allocation12 + $0x90] sm:$0xff] }
 0x247   :  { %9184 = vst [vmem:[#allocation137_spill] sm:$0xff] %v6260_v33  ;;  %1516 = vmatpush.msra.mxu0 %v6275_v12  ;;  %v6278_v33 = vld [vmem:[#allocation12 + $0x98] sm:$0xff] }
 0x248   :  { %9185 = vst [vmem:[#allocation138_spill] sm:$0xff] %v6263_v60  ;;  %1556 = vmatpush.msrb.mxu2 %v6278_v33  ;;  %v6281_v60 = vld [vmem:[#allocation12 + $0x70] sm:$0xff] }
 0x249   :  { %9186 = vst [vmem:[#allocation139_spill] sm:$0xff] %v6266_v24  ;;  %1517 = vmatpush.msra.mxu0 %v6281_v60  ;;  %v6284_v24 = vld [vmem:[#allocation12 + $0x78] sm:$0xff]  ;;  %v1045_v39 = vpop.f32.mrf.mxu0 }
 0x24a   :  { %9187 = vst [vmem:[#allocation140_spill] sm:$0xff] %v6269_v40  ;;  %1557 = vmatpush.msrb.mxu2 %v6284_v24  ;;  %v6287_v40 = vld [vmem:[#allocation12 + $0x50] sm:$0xff] }
 0x24b   :  { %9188 = vst [vmem:[#allocation141_spill] sm:$0xff] %v6272_v38  ;;  %1518 = vmatpush.msra.mxu0 %v6287_v40  ;;  %v6290_v38 = vld [vmem:[#allocation12 + $0x58] sm:$0xff] }
 0x24c   :  { %9189 = vst [vmem:[#allocation142_spill] sm:$0xff] %v6275_v12  ;;  %1558 = vmatpush.msrb.mxu2 %v6290_v38  ;;  %v6293_v12 = vld [vmem:[#allocation12 + $0x30] sm:$0xff] }
 0x24d   :  { %9190 = vst [vmem:[#allocation143_spill] sm:$0xff] %v6278_v33  ;;  %1519 = vmatpush.msra.mxu0 %v6293_v12  ;;  %v6296_v33 = vld [vmem:[#allocation12 + $0x38] sm:$0xff] }
 0x24e   :  { %9191 = vst [vmem:[#allocation144_spill] sm:$0xff] %v6281_v60  ;;  %1559 = vmatpush.msrb.mxu2 %v6296_v33  ;;  %v6299_v60 = vld [vmem:[#allocation12 + $0x10] sm:$0xff] }
 0x24f   :  { %9192 = vst [vmem:[#allocation145_spill] sm:$0xff] %v6284_v24  ;;  %1520 = vmatpush.msra.mxu0 %v6299_v60  ;;  %v6302_v24 = vld [vmem:[#allocation12 + $0x18] sm:$0xff]  ;;  %v1085_v54 = vpop.f32.mrf.mxu2 }
 0x250   :  { %9193 = vst [vmem:[#allocation146_spill] sm:$0xff] %v6287_v40  ;;  %1560 = vmatpush.msrb.mxu2 %v6302_v24  ;;  %v1065_v40 = vpop.f32.mrf.mxu1 }
 0x251   :  { %9194 = vst [vmem:[#allocation147_spill] sm:$0xff] %v6290_v38  ;;  %v1046_v38 = vadd.f32 %v1045_v39, %v5717_v23 }
 0x252   :  { %9195 = vst [vmem:[#allocation148_spill] sm:$0xff] %v6293_v12 }
 0x253   :  { %9196 = vst [vmem:[#allocation149_spill] sm:$0xff] %v6296_v33  ;;  %v1066_v35 = vadd.f32 %v1065_v40, %v1046_v38  ;;  %v1086_v33 = vadd.f32 %v1085_v54, %v5720_v32 }
 0x254   :  { %9197 = vst [vmem:[#allocation150_spill] sm:$0xff] %v6299_v60 }
 0x255   :  { %9198 = vst [vmem:[#allocation151_spill] sm:$0xff] %v6302_v24  ;;  %v3705_v12 = vmul.f32 -1.442695, %v1066_v35  ;;  %v1106_v6 = vadd.f32 %v1105_v56, %v1086_v33 }
 0x257   :  { %3805 = vpow2.f32 %v3705_v12  ;;  %v3706_v46 = vmul.f32 -1.442695, %v1106_v6  ;;  %v1125_v12 = vpop.f32.mrf.mxu0 }
 0x258   :  { %v1145_v31 = vpop.f32.mrf.mxu1  ;;  %v1165_v18 = vpop.f32.mrf.mxu2  ;;  %v1126_v6 = vadd.f32 %v1125_v12, %v5725_v19 }
 0x259   :  { %3807 = vpow2.f32 %v3706_v46  ;;  %v1166_v23 = vadd.f32 %v1165_v18, %v5723_v13 }
 0x25a   :  { %v1333_v56 = vpop.f32.mrf.mxu3  ;;  %v1146_v32 = vadd.f32 %v1145_v31, %v1126_v6 }
 0x25b   :  { %v1186_v35 = vadd.f32 %v1185_v26, %v1166_v23 }
 0x25d   :  { %v3806_v43 = vpop.eup %3805  ;;  %v3707_v54 = vmul.f32 -1.442695, %v1186_v35 }
 0x25e   :  { %v1191_v24 = vadd.f32 1.0, %v3806_v43  ;;  %v1343_v43 = vrot.slane %v1333_v56, 4 }
 0x25f   :  { %v3808_v38 = vpop.eup %3807 }
 0x260   :  { %v1293_v57 = vpop.f32.mrf.mxu1  ;;  %3809 = vrcp.f32 %v1191_v24  ;;  %v1210_v40 = vadd.f32 1.0, %v3808_v38  ;;  %v1203_v35 = vand.u32 2147483648, %v1191_v24  ;;  %vm1197_vm7 = vweird.f32 %v1191_v24 }
 0x261   :  { %v1341_v60 = vrot.slane %v1293_v57, 4  ;;  %v1201_v28 = vand.u32 2147483647, %v1191_v24 }
 0x262   :  { %3811 = vrcp.f32 %v1210_v40  ;;  %v1222_v12 = vand.u32 2147483648, %v1210_v40  ;;  %v1220_v31 = vand.u32 2147483647, %v1210_v40  ;;  %vm1216_vm10 = vweird.f32 %v1210_v40 }
 0x263   :  { %v1349_v39 = vadd.f32 %v1341_v60, %v1253_v21  ;;  %3813 = vpow2.f32 %v3707_v54  ;;  %v1255_v60 = vld [vmem:[#allocation2 + $0x10] sm:$0x30]  ;;  %vm1202_vm11 = vcmp.eq.f32.partialorder %v1201_v28, 8.507059e+37 }
 0x264   :  { %v1351_v13 = vadd.f32 %v1343_v43, %v1255_v60  ;;  %vm1221_vm13 = vcmp.eq.f32.partialorder %v1220_v31, 8.507059e+37 }
 0x265   :  { %v3709_v52 = vmul.f32 -1.442695, %v1349_v39 }
 0x266   :  { %v3810_v33 = vpop.eup %3809  ;;  %v3710_v54 = vmul.f32 -1.442695, %v1351_v13 }
 0x267   :  { %v1193_v57 = vmul.f32 %v3810_v33, %v1191_v24  ;;  %3815 = vpow2.f32 %v3709_v52  ;;  %vm1198_vm6 = vweird.f32 %v3810_v33 }
 0x268   :  { %v3812_v18 = vpop.eup %3811  ;;  %3817 = vtanh.f32 %v1146_v32  ;;  %vm6309_vm8 = vmor %vm1197_vm7, %vm1198_vm6 }
 0x269   :  { %v1194_v46 = vsub.f32 1.0, %v1193_v57  ;;  %v3814_v23 = vpop.eup %3813  ;;  %v1212_v26 = vmul.f32 %v3812_v18, %v1210_v40  ;;  %vm1217_vm9 = vweird.f32 %v3812_v18 }
 0x26a   :  { %v1230_v30 = vadd.f32 1.0, %v3814_v23  ;;  %v1273_v43 = vpop.f32.mrf.mxu0  ;;  %vm1218_vm12 = vmor %vm1216_vm10, %vm1217_vm9  ;;  %v1252_v23 = vld [vmem:[#allocation2 + $0x30] sm:$0x30] }
 0x26b   :  { %v1195_v21 = vmul.f32 %v3810_v33, %v1194_v46  ;;  %v1213_v50 = vsub.f32 1.0, %v1212_v26  ;;  %v1204_v46 = vor.u32 1.1754944e-38, %v1203_v35  ;;  %v1340_v24 = vrot.slane %v1273_v43, 4 }
 0x26c   :  { %3819 = vrcp.f32 %v1230_v30  ;;  %v1242_v31 = vand.u32 2147483648, %v1230_v30  ;;  %vm1236_vm15 = vweird.f32 %v1230_v30 }
 0x26d   :  { %v1196_v38 = vadd.f32 %v3810_v33, %v1195_v21  ;;  %v3816_v39 = vpop.eup %3815  ;;  %v1214_v56 = vmul.f32 %v3812_v18, %v1213_v50  ;;  %v1223_v21 = vor.u32 1.1754944e-38, %v1222_v12  ;;  %3821 = vpow2.f32 %v3710_v54 }
 0x26e   :  { %v6315_v6 = vadd.f32 1.0, %v3816_v39  ;;  %v3818_v26 = vpop.eup %3817  ;;  %v1348_v50 = vadd.f32 %v1340_v24, %v1252_v23  ;;  %v1243_v24 = vor.u32 1.1754944e-38, %v1242_v31 }
 0x26f   :  { %v1200_v57 = vsel %vm6309_vm8, %v3810_v33, %v1196_v38  ;;  %v1215_v32 = vadd.f32 %v3812_v18, %v1214_v56 }
 0x270   :  { %v1205_v60 = vsel %vm1202_vm11, %v1204_v46, %v1200_v57  ;;  %3823 = vrcp.f32 %v6315_v6  ;;  %v3708_v28 = vmul.f32 -1.442695, %v1348_v50  ;;  %v1240_v57 = vand.u32 2147483647, %v1230_v30 }
 0x271   :  { %v1219_v13 = vsel %vm1218_vm12, %v3812_v18, %v1215_v32  ;;  %v1247_v35 = vmul.f32 %v3818_v26, %v1205_v60  ;;  %v1313_v50 = vpop.f32.mrf.mxu2  ;;  %vm1380_vm3 = vweird.f32 %v6315_v6 }
 0x272   :  { %v3820_v33 = vpop.eup %3819  ;;  %v1224_v38 = vsel %vm1221_vm13, %v1223_v21, %v1219_v13  ;;  %3825 = vpow2.f32 %v3708_v28  ;;  %vm1241_vm1 = vcmp.eq.f32.partialorder %v1240_v57, 8.507059e+37  ;;  %v1386_v57 = vand.u32 2147483648, %v6315_v6 }
 0x273   :  { %v1246_v39 = vmul.f32 %v1224_v38, %v5740_v8  ;;  %v1232_v40 = vmul.f32 %v3820_v33, %v1230_v30  ;;  %v3822_v12 = vpop.eup %3821  ;;  %vm1237_vm14 = vweird.f32 %v3820_v33 }
 0x274   :  { %v6326_v46 = vadd.f32 1.0, %v3822_v12  ;;  %vm1238_vm0 = vmor %vm1236_vm15, %vm1237_vm14 }
 0x275   :  { %v6319_v52 = vadd.f32 %v1247_v35, %v1246_v39  ;;  %v1233_v56 = vsub.f32 1.0, %v1232_v40  ;;  %v1342_v39 = vrot.slane %v1313_v50, 4 }
 0x276   :  { %v6321_v54 = vpop.eup %3823  ;;  %vm1400_vm11 = vweird.f32 %v6326_v46 }
 0x277   :  { %3827 = vtanh.f32 %v6319_v52  ;;  %v1234_v18 = vmul.f32 %v3820_v33, %v1233_v56  ;;  %v1376_v8 = vmul.f32 %v6321_v54, %v6315_v6  ;;  %vm1381_vm2 = vweird.f32 %v6321_v54 }
 0x278   :  { %v3826_v21 = vpop.eup %3825  ;;  %3829 = vrcp.f32 %v6326_v46  ;;  %vm6343_vm4 = vmor %vm1380_vm3, %vm1381_vm2 }
 0x279   :  { %v1235_v43 = vadd.f32 %v3820_v33, %v1234_v18  ;;  %v1355_v23 = vadd.f32 1.0, %v3826_v21  ;;  %v1377_v13 = vsub.f32 1.0, %v1376_v8  ;;  %v1387_v21 = vor.u32 1.1754944e-38, %v1386_v57  ;;  %v9211_v57 = vld [vmem:[#allocation50_spill] sm:$0xff] }
 0x27b   :  { %v1239_v32 = vsel %vm1238_vm0, %v3820_v33, %v1235_v43  ;;  %3831 = vrcp.f32 %v1355_v23  ;;  %v1378_v35 = vmul.f32 %v6321_v54, %v1377_v13  ;;  %v1254_v33 = vld [vmem:[#allocation2 + $0x18] sm:$0x30]  ;;  %vm1361_vm6 = vweird.f32 %v1355_v23 }
 0x27c   :  { %v1244_v26 = vsel %vm1241_vm1, %v1243_v24, %v1239_v32  ;;  %v1350_v12 = vadd.f32 %v1342_v39, %v1254_v33  ;;  %v1367_v32 = vand.u32 2147483648, %v1355_v23  ;;  %v6459_v39 = vld [vmem:[#allocation9 + $0xc0] sm:$0xff] }
 0x27d   :  { %v3828_v60 = vpop.eup %3827  ;;  %v1379_v31 = vadd.f32 %v6321_v54, %v1378_v35  ;;  %v9207_v35 = vld [vmem:[#allocation42_spill] sm:$0xff] }
 0x27e   :  { %v1250_v38 = vmul.f32 %v3828_v60, %v1244_v26  ;;  %v6330_v28 = vpop.eup %3829  ;;  %3833 = vtanh.f32 %v1350_v12  ;;  %v6467_v33 = vld [vmem:[#allocation9 + $0xa0] sm:$0xff]  ;;  %v6471_v12 = vld [vmem:[#allocation9 + $0xb0] sm:$0xff] }
 0x27f   :  { %v1396_v43 = vmul.f32 %v6330_v28, %v6326_v46  ;;  %vm1401_vm10 = vweird.f32 %v6330_v28 }
 0x280   :  { %1251 = vst [vmem:[#allocation3 + $0x2] sm:$0x3] %v1250_v38  ;;  %v1419_v30 = vrot.slane %v1250_v38, 4  ;;  %vm1402_vm12 = vmor %vm1400_vm11, %vm1401_vm10  ;;  %v6451_v38 = vld [vmem:[#allocation9 + $0xe0] sm:$0xff] }
 0x281   :  { %v3832_v56 = vpop.eup %3831  ;;  %v1397_v60 = vsub.f32 1.0, %v1396_v43  ;;  %v6479_v43 = vld [vmem:[#allocation9 + $0x90] sm:$0xff] }
 0x282   :  { %v1422_v40 = vrot.slane %v1419_v30, 4  ;;  %v1357_v18 = vmul.f32 %v3832_v56, %v1355_v23  ;;  %vm1362_vm5 = vweird.f32 %v3832_v56  ;;  %v6455_v30 = vld [vmem:[#allocation9 + $0xf0] sm:$0xff] }
 0x283   :  { %vm1363_vm8 = vmor %vm1361_vm6, %vm1362_vm5 }
 0x284   :  { %1461 = vmatmul.f32.vlgmr.msrb.gmra.mxu1 %v1422_v40  ;;  %1501 = vmatmul.f32.vlgmr.msra.gmra.mxu3 %v1422_v40  ;;  %v1358_v8 = vsub.f32 1.0, %v1357_v18  ;;  %v3834_v13 = vpop.eup %3833  ;;  %v9210_v18 = vld [vmem:[#allocation47_spill] sm:$0xff] }
 0x285   :  { %1673 = vmatpush.msrb.mxu1 %v5758_v63  ;;  %1713 = vmatpush.msra.mxu3 %v5761_v41  ;;  %v1384_v63 = vand.u32 2147483647, %v6315_v6  ;;  %v9213_v41 = vld [vmem:[#allocation54_spill] sm:$0xff] }
 0x286   :  { %v1359_v24 = vmul.f32 %v3832_v56, %v1358_v8  ;;  %v9212_v8 = vld [vmem:[#allocation51_spill] sm:$0xff] }
 0x287   :  { %1674 = vmatpush.msrb.mxu1 %v5771_v48  ;;  %1714 = vmatpush.msra.mxu3 %v5774_v42  ;;  %v1365_v48 = vand.u32 2147483647, %v1355_v23  ;;  %v1383_v42 = vsel %vm6343_vm4, %v6321_v54, %v1379_v31  ;;  %vm1385_vm7 = vcmp.eq.f32.partialorder %v1384_v63, 8.507059e+37  ;;  %v1411_v54 = vrot.slane %v5798_v62, 6  ;;  %v6475_v31 = vld [vmem:[#allocation9 + $0x80] sm:$0xff] }
 0x288   :  { %v1360_v6 = vadd.f32 %v3832_v56, %v1359_v24  ;;  %v1406_v62 = vand.u32 2147483648, %v6326_v46  ;;  %v6483_v63 = vld [vmem:[#allocation9 + $0x60] sm:$0xff] }
 0x289   :  { %1675 = vmatpush.msrb.mxu1 %v5777_v51  ;;  %1715 = vmatpush.msra.mxu3 %v5780_v55  ;;  %v1368_v51 = vor.u32 1.1754944e-38, %v1367_v32  ;;  %v1388_v55 = vsel %vm1385_vm7, %v1387_v21, %v1383_v42  ;;  %vm1366_vm9 = vcmp.eq.f32.partialorder %v1365_v48, 8.507059e+37  ;;  %v6487_v32 = vld [vmem:[#allocation9 + $0x70] sm:$0xff]  ;;  %v9214_v24 = vld [vmem:[#allocation55_spill] sm:$0xff]  ;;  %v9215_v42 = vld [vmem:[#allocation58_spill] sm:$0xff] }
 0x28a   :  { %v1364_v26 = vsel %vm1363_vm8, %v3832_v56, %v1360_v6  ;;  %v1413_v23 = vmul.f32 %v1411_v54, %v1388_v55  ;;  %v9209_v56 = vld [vmem:[#allocation46_spill] sm:$0xff]  ;;  %v9216_v21 = vld [vmem:[#allocation59_spill] sm:$0xff] }
 0x28b   :  { %1676 = vmatpush.msrb.mxu1 %v5785_v20  ;;  %1716 = vmatpush.msra.mxu3 %v5788_v27  ;;  %v1398_v20 = vmul.f32 %v6330_v28, %v1397_v60  ;;  %v1369_v27 = vsel %vm1366_vm9, %v1368_v51, %v1364_v26  ;;  %v6491_v48 = vld [vmem:[#allocation9 + $0x40] sm:$0xff] }
 0x28c   :  { %1541 = vmatmul.f32.vlgmr.msra.gmra.mxu1 %v1422_v40  ;;  %1581 = vmatmul.f32.vlgmr.msrb.gmra.mxu3 %v1422_v40  ;;  %v1414_v50 = vmul.f32 %v3834_v13, %v1369_v27  ;;  %v6463_v40 = vld [vmem:[#allocation9 + $0xd0] sm:$0xff]  ;;  %v9217_v60 = vld [vmem:[#allocation62_spill] sm:$0xff]  ;;  %v9218_v51 = vld [vmem:[#allocation63_spill] sm:$0xff] }
 0x28d   :  { %1677 = vmatpush.msrb.mxu1 %v5792_v36  ;;  %1717 = vmatpush.msra.mxu3 %v5795_v17  ;;  %v1399_v17 = vadd.f32 %v6330_v28, %v1398_v20  ;;  %v6497_v6 = vld [vmem:[#allocation9 + $0x20] sm:$0xff] }
 0x28e   :  { %v6362_v36 = vadd.f32 %v1414_v50, %v1413_v23  ;;  %v9219_v55 = vld [vmem:[#allocation66_spill] sm:$0xff]  ;;  %v9220_v54 = vld [vmem:[#allocation67_spill] sm:$0xff] }
 0x28f   :  { %1678 = vmatpush.msrb.mxu1 %v5800_v16  ;;  %1718 = vmatpush.msra.mxu3 %v5803_v2  ;;  %v1404_v16 = vand.u32 2147483647, %v6326_v46  ;;  %v1403_v2 = vsel %vm1402_vm12, %v6330_v28, %v1399_v17  ;;  %v6447_v46 = vld [vmem:[#allocation9 + $0x110] sm:$0xff]  ;;  %v9208_v28 = vld [vmem:[#allocation43_spill] sm:$0xff]  ;;  %v9221_v13 = vld [vmem:[#allocation70_spill] sm:$0xff] }
 0x290   :  { %3835 = vtanh.f32 %v6362_v36  ;;  %v6503_v26 = vld [vmem:[#allocation9] sm:$0xff]  ;;  %v9226_v17 = vld [vmem:[#allocation21_spill] sm:$0xff] }
 0x291   :  { %1679 = vmatpush.msrb.mxu1 %v5810_v22  ;;  %1719 = vmatpush.msra.mxu3 %v5813_v61  ;;  %v1407_v22 = vor.u32 1.1754944e-38, %v1406_v62  ;;  %vm1405_vm13 = vcmp.eq.f32.partialorder %v1404_v16, 8.507059e+37  ;;  %v9222_v20 = vld [vmem:[#allocation71_spill] sm:$0xff]  ;;  %v9223_v27 = vld [vmem:[#allocation74_spill] sm:$0xff] }
 0x292   :  { %v9224_v23 = vld [vmem:[#allocation75_spill] sm:$0xff]  ;;  %v9225_v50 = vld [vmem:[#allocation78_spill] sm:$0xff] }
 0x293   :  { %1680 = vmatpush.msrb.mxu1 %v5818_v29  ;;  %1720 = vmatpush.msra.mxu3 %v5821_v44  ;;  %v1408_v29 = vsel %vm1405_vm13, %v1407_v22, %v1403_v2  ;;  %v9227_v62 = vld [vmem:[#allocation79_spill] sm:$0xff]  ;;  %v9228_v16 = vld [vmem:[#allocation82_spill] sm:$0xff] }
 0x294   :  { %v9229_v2 = vld [vmem:[#allocation22_spill] sm:$0xff]  ;;  %v9230_v22 = vld [vmem:[#allocation83_spill] sm:$0xff] }
 0x295   :  { %1681 = vmatpush.msrb.mxu1 %v5825_v10  ;;  %1721 = vmatpush.msra.mxu3 %v5828_v11  ;;  %v6387_v11 = vld [vmem:[#allocation9 + $0x1e0] sm:$0xff] }
 0x296   :  { %v3836_v61 = vpop.eup %3835 }
 0x297   :  { %1682 = vmatpush.msrb.mxu1 %v5831_v14  ;;  %1722 = vmatpush.msra.mxu3 %v5834_v47  ;;  %v1417_v44 = vmul.f32 %v3836_v61, %v1408_v29  ;;  %v6390_v14 = vld [vmem:[#allocation9 + $0x1f0] sm:$0xff]  ;;  %v6395_v47 = vld [vmem:[#allocation9 + $0x1c0] sm:$0xff] }
 0x298   :  { %v9231_v61 = vld [vmem:[#allocation86_spill] sm:$0xff]  ;;  %v9232_v29 = vld [vmem:[#allocation23_spill] sm:$0xff] }
 0x299   :  { %1683 = vmatpush.msrb.mxu1 %v5837_v5  ;;  %1723 = vmatpush.msra.mxu3 %v5840_v4  ;;  %v6381_v10 = vrot.slane %v1417_v44, 4  ;;  %v6398_v5 = vld [vmem:[#allocation9 + $0x1d0] sm:$0xff]  ;;  %v6403_v4 = vld [vmem:[#allocation9 + $0x1a0] sm:$0xff] }
 0x29a   :  { %v9233_v44 = vld [vmem:[#allocation40_spill] sm:$0xff] }
 0x29b   :  { %1684 = vmatpush.msrb.mxu1 %v5845_v58  ;;  %1724 = vmatpush.msra.mxu3 %v5848_v45  ;;  %v6406_v58 = vld [vmem:[#allocation9 + $0x1b0] sm:$0xff]  ;;  %v6411_v45 = vld [vmem:[#allocation9 + $0x180] sm:$0xff] }
 0x29c   :  { %1441 = vmatmul.f32.vlgmr.msrb.gmra.mxu0 %v6381_v10  ;;  %1481 = vmatmul.f32.vlgmr.msra.gmra.mxu2 %v6381_v10 }
 0x29d   :  { %1685 = vmatpush.msrb.mxu1 %v5855_v3  ;;  %1725 = vmatpush.msra.mxu3 %v5858_v49  ;;  %v6414_v3 = vld [vmem:[#allocation9 + $0x190] sm:$0xff]  ;;  %v6419_v49 = vld [vmem:[#allocation9 + $0x160] sm:$0xff] }
 0x29e   :  { %1653 = vmatpush.msrb.mxu0 %v6387_v11  ;;  %1693 = vmatpush.msra.mxu2 %v6390_v14 }
 0x29f   :  { %1686 = vmatpush.msrb.mxu1 %v5863_v7  ;;  %1726 = vmatpush.msra.mxu3 %v5866_v53  ;;  %v6423_v7 = vld [vmem:[#allocation9 + $0x170] sm:$0xff]  ;;  %v6427_v53 = vld [vmem:[#allocation9 + $0x140] sm:$0xff] }
 0x2a0   :  { %1654 = vmatpush.msrb.mxu0 %v6395_v47  ;;  %1694 = vmatpush.msra.mxu2 %v6398_v5 }
 0x2a1   :  { %1687 = vmatpush.msrb.mxu1 %v5871_v15  ;;  %1727 = vmatpush.msra.mxu3 %v5874_v59  ;;  %v6431_v15 = vld [vmem:[#allocation9 + $0x150] sm:$0xff]  ;;  %v6435_v59 = vld [vmem:[#allocation9 + $0x120] sm:$0xff] }
 0x2a2   :  { %1655 = vmatpush.msrb.mxu0 %v6403_v4  ;;  %1695 = vmatpush.msra.mxu2 %v6406_v58 }
 0x2a3   :  { %1688 = vmatpush.msrb.mxu1 %v5879_v0  ;;  %1728 = vmatpush.msra.mxu3 %v5882_v1  ;;  %v6439_v0 = vld [vmem:[#allocation9 + $0x130] sm:$0xff]  ;;  %v6443_v1 = vld [vmem:[#allocation9 + $0x100] sm:$0xff] }
 0x2a4   :  { %1656 = vmatpush.msrb.mxu0 %v6411_v45  ;;  %1696 = vmatpush.msra.mxu2 %v6414_v3 }
 0x2a5   :  { %1521 = vmatmul.f32.vlgmr.msra.gmra.mxu0 %v6381_v10  ;;  %1561 = vmatmul.f32.vlgmr.msrb.gmra.mxu2 %v6381_v10 }
 0x2a6   :  { %1657 = vmatpush.msrb.mxu0 %v6419_v49  ;;  %1689 = vmatmul.f32.vlgmr.msrb.gmra.mxu1 %v6381_v10 }
 0x2a7   :  { %1697 = vmatpush.msra.mxu2 %v6423_v7  ;;  %1729 = vmatmul.f32.vlgmr.msra.gmra.mxu3 %v6381_v10 }
 0x2a8   :  { %1658 = vmatpush.msrb.mxu0 %v6427_v53  ;;  %1842 = vmatpush.msra.mxu1 %v5892_v34  ;;  %v9203_v34 = vld [vmem:[#allocation36_spill] sm:$0xff] }
 0x2a9   :  { %1698 = vmatpush.msra.mxu2 %v6431_v15  ;;  %1882 = vmatpush.msrb.mxu3 %v5896_v9  ;;  %v9204_v9 = vld [vmem:[#allocation37_spill] sm:$0xff] }
 0x2aa   :  { %1659 = vmatpush.msrb.mxu0 %v6435_v59  ;;  %1843 = vmatpush.msra.mxu1 %v5900_v37  ;;  %v9205_v37 = vld [vmem:[#allocation38_spill] sm:$0xff] }
 0x2ab   :  { %1699 = vmatpush.msra.mxu2 %v6439_v0  ;;  %1883 = vmatpush.msrb.mxu3 %v5904_v25  ;;  %v9206_v25 = vld [vmem:[#allocation39_spill] sm:$0xff] }
 0x2ac   :  { %1660 = vmatpush.msrb.mxu0 %v6443_v1  ;;  %1844 = vmatpush.msra.mxu1 %v9203_v34  ;;  %v9235_v34 = vld [vmem:[#allocation87_spill] sm:$0xff] }
 0x2ad   :  { %1700 = vmatpush.msra.mxu2 %v6447_v46  ;;  %1884 = vmatpush.msrb.mxu3 %v9204_v9  ;;  %v9236_v9 = vld [vmem:[#allocation44_spill] sm:$0xff] }
 0x2ae   :  { %1661 = vmatpush.msrb.mxu0 %v6451_v38  ;;  %1845 = vmatpush.msra.mxu1 %v9205_v37  ;;  %v9237_v37 = vld [vmem:[#allocation90_spill] sm:$0xff] }
 0x2af   :  { %1701 = vmatpush.msra.mxu2 %v6455_v30  ;;  %1885 = vmatpush.msrb.mxu3 %v9206_v25  ;;  %v9238_v25 = vld [vmem:[#allocation45_spill] sm:$0xff] }
 0x2b0   :  { %1662 = vmatpush.msrb.mxu0 %v6459_v39  ;;  %1846 = vmatpush.msra.mxu1 %v9207_v35  ;;  %v9239_v35 = vld [vmem:[#allocation91_spill] sm:$0xff] }
 0x2b1   :  { %1702 = vmatpush.msra.mxu2 %v6463_v40  ;;  %1886 = vmatpush.msrb.mxu3 %v9208_v28  ;;  %v9240_v28 = vld [vmem:[#allocation48_spill] sm:$0xff] }
 0x2b2   :  { %1663 = vmatpush.msrb.mxu0 %v6467_v33  ;;  %1847 = vmatpush.msra.mxu1 %v9209_v56  ;;  %v9241_v56 = vld [vmem:[#allocation94_spill] sm:$0xff] }
 0x2b3   :  { %1703 = vmatpush.msra.mxu2 %v6471_v12  ;;  %1887 = vmatpush.msrb.mxu3 %v9210_v18  ;;  %v9242_v18 = vld [vmem:[#allocation49_spill] sm:$0xff] }
 0x2b4   :  { %1664 = vmatpush.msrb.mxu0 %v6475_v31  ;;  %1848 = vmatpush.msra.mxu1 %v9211_v57  ;;  %v9243_v57 = vld [vmem:[#allocation95_spill] sm:$0xff] }
 0x2b5   :  { %1704 = vmatpush.msra.mxu2 %v6479_v43  ;;  %1888 = vmatpush.msrb.mxu3 %v9212_v8  ;;  %v9244_v8 = vld [vmem:[#allocation52_spill] sm:$0xff] }
 0x2b6   :  { %1665 = vmatpush.msrb.mxu0 %v6483_v63  ;;  %1849 = vmatpush.msra.mxu1 %v9213_v41  ;;  %v9245_v41 = vld [vmem:[#allocation98_spill] sm:$0xff] }
 0x2b7   :  { %1705 = vmatpush.msra.mxu2 %v6487_v32  ;;  %1889 = vmatpush.msrb.mxu3 %v9214_v24  ;;  %v9246_v24 = vld [vmem:[#allocation53_spill] sm:$0xff] }
 0x2b8   :  { %1666 = vmatpush.msrb.mxu0 %v6491_v48  ;;  %1850 = vmatpush.msra.mxu1 %v9215_v42  ;;  %v9247_v42 = vld [vmem:[#allocation99_spill] sm:$0xff] }
 0x2b9   :  { %1706 = vmatpush.msra.mxu2 %v9216_v21  ;;  %1890 = vmatpush.msrb.mxu3 %v9217_v60  ;;  %v9248_v21 = vld [vmem:[#allocation56_spill] sm:$0xff]  ;;  %v9249_v60 = vld [vmem:[#allocation57_spill] sm:$0xff] }
 0x2ba   :  { %1667 = vmatpush.msrb.mxu0 %v6497_v6  ;;  %1851 = vmatpush.msra.mxu1 %v9218_v51  ;;  %v9250_v51 = vld [vmem:[#allocation102_spill] sm:$0xff] }
 0x2bb   :  { %1707 = vmatpush.msra.mxu2 %v9219_v55  ;;  %1891 = vmatpush.msrb.mxu3 %v9220_v54  ;;  %v9251_v55 = vld [vmem:[#allocation60_spill] sm:$0xff]  ;;  %v9252_v54 = vld [vmem:[#allocation61_spill] sm:$0xff] }
 0x2bc   :  { %1668 = vmatpush.msrb.mxu0 %v6503_v26  ;;  %1852 = vmatpush.msra.mxu1 %v9221_v13  ;;  %v9253_v13 = vld [vmem:[#allocation64_spill] sm:$0xff] }
 0x2bd   :  { %1708 = vmatpush.msra.mxu2 %v9222_v20  ;;  %1669 = vmatmul.f32.vlgmr.msrb.gmra.mxu0 %v6381_v10  ;;  %v9254_v20 = vld [vmem:[#allocation65_spill] sm:$0xff] }
 0x2be   :  { %1709 = vmatmul.f32.vlgmr.msra.gmra.mxu2 %v6381_v10  ;;  %1892 = vmatpush.msrb.mxu3 %v9223_v27  ;;  %v9234_v10 = vld [vmem:[#allocation41_spill] sm:$0xff]  ;;  %v9255_v27 = vld [vmem:[#allocation68_spill] sm:$0xff] }
 0x2bf   :  { %1853 = vmatpush.msra.mxu1 %v9224_v23  ;;  %1822 = vmatpush.msra.mxu0 %v9225_v50  ;;  %v9256_v23 = vld [vmem:[#allocation69_spill] sm:$0xff]  ;;  %v9257_v50 = vld [vmem:[#allocation72_spill] sm:$0xff] }
 0x2c0   :  { %1893 = vmatpush.msrb.mxu3 %v9226_v17  ;;  %1862 = vmatpush.msrb.mxu2 %v9227_v62  ;;  %v9258_v17 = vld [vmem:[#allocation73_spill] sm:$0xff]  ;;  %v9259_v62 = vld [vmem:[#allocation76_spill] sm:$0xff] }
 0x2c1   :  { %1854 = vmatpush.msra.mxu1 %v9228_v16  ;;  %1823 = vmatpush.msra.mxu0 %v9229_v2  ;;  %v9260_v16 = vld [vmem:[#allocation77_spill] sm:$0xff]  ;;  %v9261_v2 = vld [vmem:[#allocation80_spill] sm:$0xff] }
 0x2c2   :  { %1894 = vmatpush.msrb.mxu3 %v9230_v22  ;;  %1863 = vmatpush.msrb.mxu2 %v9231_v61  ;;  %v9262_v22 = vld [vmem:[#allocation81_spill] sm:$0xff]  ;;  %v9263_v61 = vld [vmem:[#allocation84_spill] sm:$0xff] }
 0x2c3   :  { %1855 = vmatpush.msra.mxu1 %v9232_v29  ;;  %1824 = vmatpush.msra.mxu0 %v9233_v44  ;;  %v9264_v29 = vld [vmem:[#allocation85_spill] sm:$0xff]  ;;  %v9265_v44 = vld [vmem:[#allocation88_spill] sm:$0xff] }
 0x2c4   :  { %1895 = vmatpush.msrb.mxu3 %v9234_v10  ;;  %1864 = vmatpush.msrb.mxu2 %v9235_v34  ;;  %v9266_v10 = vld [vmem:[#allocation89_spill] sm:$0xff]  ;;  %v9267_v34 = vld [vmem:[#allocation92_spill] sm:$0xff] }
 0x2c5   :  { %1856 = vmatpush.msra.mxu1 %v9236_v9  ;;  %1825 = vmatpush.msra.mxu0 %v9237_v37  ;;  %v9268_v9 = vld [vmem:[#allocation93_spill] sm:$0xff]  ;;  %v9269_v37 = vld [vmem:[#allocation96_spill] sm:$0xff] }
 0x2c6   :  { %1896 = vmatpush.msrb.mxu3 %v9238_v25  ;;  %1865 = vmatpush.msrb.mxu2 %v9239_v35  ;;  %v9270_v25 = vld [vmem:[#allocation97_spill] sm:$0xff]  ;;  %v9271_v35 = vld [vmem:[#allocation100_spill] sm:$0xff] }
 0x2c7   :  { %1857 = vmatpush.msra.mxu1 %v9240_v28  ;;  %1826 = vmatpush.msra.mxu0 %v9241_v56  ;;  %v9272_v28 = vld [vmem:[#allocation101_spill] sm:$0xff]  ;;  %v9273_v56 = vld [vmem:[#allocation103_spill] sm:$0xff] }
 0x2c8   :  { %1897 = vmatpush.msrb.mxu3 %v9242_v18  ;;  %1866 = vmatpush.msrb.mxu2 %v9243_v57  ;;  %v9274_v18 = vld [vmem:[#allocation104_spill] sm:$0xff]  ;;  %v9275_v57 = vld [vmem:[#allocation25_spill] sm:$0xff] }
 0x2c9   :  { %1922 = vmatpush.msrb.mxu1 %v9244_v8  ;;  %1827 = vmatpush.msra.mxu0 %v9246_v24  ;;  %v9276_v8 = vld [vmem:[#allocation24_spill] sm:$0xff]  ;;  %v9278_v24 = vld [vmem:[#allocation27_spill] sm:$0xff] }
 0x2ca   :  { %1962 = vmatpush.msra.mxu3 %v9245_v41  ;;  %1867 = vmatpush.msrb.mxu2 %v9247_v42  ;;  %v9277_v41 = vld [vmem:[#allocation26_spill] sm:$0xff]  ;;  %v9279_v42 = vld [vmem:[#allocation28_spill] sm:$0xff] }
 0x2cb   :  { %1923 = vmatpush.msrb.mxu1 %v9248_v21  ;;  %1828 = vmatpush.msra.mxu0 %v9250_v51  ;;  %v9280_v21 = vld [vmem:[#allocation29_spill] sm:$0xff]  ;;  %v9282_v51 = vld [vmem:[#allocation31_spill] sm:$0xff] }
 0x2cc   :  { %1963 = vmatpush.msra.mxu3 %v9249_v60  ;;  %1868 = vmatpush.msrb.mxu2 %v9251_v55  ;;  %v9281_v60 = vld [vmem:[#allocation30_spill] sm:$0xff]  ;;  %v9283_v55 = vld [vmem:[#allocation105_spill] sm:$0xff] }
 0x2cd   :  { %1924 = vmatpush.msrb.mxu1 %v9252_v54  ;;  %1829 = vmatpush.msra.mxu0 %v9254_v20  ;;  %v9284_v54 = vld [vmem:[#allocation106_spill] sm:$0xff]  ;;  %v9286_v20 = vld [vmem:[#allocation108_spill] sm:$0xff] }
 0x2ce   :  { %1964 = vmatpush.msra.mxu3 %v9253_v13  ;;  %1869 = vmatpush.msrb.mxu2 %v9255_v27  ;;  %v9285_v13 = vld [vmem:[#allocation107_spill] sm:$0xff]  ;;  %v9287_v27 = vld [vmem:[#allocation109_spill] sm:$0xff] }
 0x2cf   :  { %1925 = vmatpush.msrb.mxu1 %v9256_v23  ;;  %1830 = vmatpush.msra.mxu0 %v9258_v17  ;;  %v9288_v23 = vld [vmem:[#allocation110_spill] sm:$0xff]  ;;  %v9290_v17 = vld [vmem:[#allocation112_spill] sm:$0xff] }
 0x2d0   :  { %1965 = vmatpush.msra.mxu3 %v9257_v50  ;;  %1870 = vmatpush.msrb.mxu2 %v9259_v62  ;;  %v9289_v50 = vld [vmem:[#allocation111_spill] sm:$0xff]  ;;  %v9291_v62 = vld [vmem:[#allocation113_spill] sm:$0xff] }
 0x2d1   :  { %1926 = vmatpush.msrb.mxu1 %v9260_v16  ;;  %1831 = vmatpush.msra.mxu0 %v9262_v22  ;;  %v9292_v16 = vld [vmem:[#allocation114_spill] sm:$0xff]  ;;  %v9294_v22 = vld [vmem:[#allocation116_spill] sm:$0xff] }
 0x2d2   :  { %1966 = vmatpush.msra.mxu3 %v9261_v2  ;;  %1871 = vmatpush.msrb.mxu2 %v9263_v61  ;;  %v9293_v2 = vld [vmem:[#allocation115_spill] sm:$0xff]  ;;  %v9295_v61 = vld [vmem:[#allocation117_spill] sm:$0xff] }
 0x2d3   :  { %1927 = vmatpush.msrb.mxu1 %v9264_v29  ;;  %1832 = vmatpush.msra.mxu0 %v9266_v10  ;;  %v9296_v29 = vld [vmem:[#allocation118_spill] sm:$0xff]  ;;  %v9298_v10 = vld [vmem:[#allocation120_spill] sm:$0xff] }
 0x2d4   :  { %1967 = vmatpush.msra.mxu3 %v9265_v44  ;;  %1872 = vmatpush.msrb.mxu2 %v9267_v34  ;;  %v9297_v44 = vld [vmem:[#allocation119_spill] sm:$0xff]  ;;  %v9299_v34 = vld [vmem:[#allocation121_spill] sm:$0xff] }
 0x2d5   :  { %1928 = vmatpush.msrb.mxu1 %v9268_v9  ;;  %1833 = vmatpush.msra.mxu0 %v9270_v25  ;;  %v9300_v9 = vld [vmem:[#allocation122_spill] sm:$0xff]  ;;  %v9302_v25 = vld [vmem:[#allocation124_spill] sm:$0xff] }
 0x2d6   :  { %1968 = vmatpush.msra.mxu3 %v9269_v37  ;;  %1873 = vmatpush.msrb.mxu2 %v9271_v35  ;;  %v9301_v37 = vld [vmem:[#allocation123_spill] sm:$0xff]  ;;  %v9303_v35 = vld [vmem:[#allocation125_spill] sm:$0xff] }
 0x2d7   :  { %1929 = vmatpush.msrb.mxu1 %v9272_v28  ;;  %1834 = vmatpush.msra.mxu0 %v9274_v18  ;;  %v9304_v28 = vld [vmem:[#allocation126_spill] sm:$0xff]  ;;  %v9306_v18 = vld [vmem:[#allocation128_spill] sm:$0xff] }
 0x2d8   :  { %1969 = vmatpush.msra.mxu3 %v9273_v56  ;;  %1874 = vmatpush.msrb.mxu2 %v9275_v57  ;;  %v9305_v56 = vld [vmem:[#allocation127_spill] sm:$0xff]  ;;  %v9307_v57 = vld [vmem:[#allocation129_spill] sm:$0xff] }
 0x2d9   :  { %1930 = vmatpush.msrb.mxu1 %v9276_v8  ;;  %1835 = vmatpush.msra.mxu0 %v9278_v24  ;;  %v9308_v8 = vld [vmem:[#allocation130_spill] sm:$0xff]  ;;  %v9310_v24 = vld [vmem:[#allocation132_spill] sm:$0xff] }
 0x2da   :  { %1970 = vmatpush.msra.mxu3 %v9277_v41  ;;  %1875 = vmatpush.msrb.mxu2 %v9279_v42  ;;  %v9309_v41 = vld [vmem:[#allocation131_spill] sm:$0xff]  ;;  %v9311_v42 = vld [vmem:[#allocation133_spill] sm:$0xff] }
 0x2db   :  { %1931 = vmatpush.msrb.mxu1 %v9280_v21  ;;  %1836 = vmatpush.msra.mxu0 %v9282_v51  ;;  %v9312_v21 = vld [vmem:[#allocation134_spill] sm:$0xff]  ;;  %v9314_v51 = vld [vmem:[#allocation136_spill] sm:$0xff] }
 0x2dc   :  { %1971 = vmatpush.msra.mxu3 %v9281_v60  ;;  %1876 = vmatpush.msrb.mxu2 %v9283_v55  ;;  %v9313_v60 = vld [vmem:[#allocation135_spill] sm:$0xff]  ;;  %v9315_v55 = vld [vmem:[#allocation137_spill] sm:$0xff] }
 0x2dd   :  { %1932 = vmatpush.msrb.mxu1 %v9284_v54  ;;  %1837 = vmatpush.msra.mxu0 %v9286_v20  ;;  %v9316_v54 = vld [vmem:[#allocation138_spill] sm:$0xff]  ;;  %v9318_v20 = vld [vmem:[#allocation140_spill] sm:$0xff] }
 0x2de   :  { %1972 = vmatpush.msra.mxu3 %v9285_v13  ;;  %1877 = vmatpush.msrb.mxu2 %v9287_v27  ;;  %v9317_v13 = vld [vmem:[#allocation139_spill] sm:$0xff]  ;;  %v9319_v27 = vld [vmem:[#allocation141_spill] sm:$0xff] }
 0x2df   :  { %1933 = vmatpush.msrb.mxu1 %v9288_v23  ;;  %1902 = vmatpush.msrb.mxu0 %v9290_v17  ;;  %v9320_v23 = vld [vmem:[#allocation142_spill] sm:$0xff]  ;;  %v9322_v17 = vld [vmem:[#allocation144_spill] sm:$0xff] }
 0x2e0   :  { %1973 = vmatpush.msra.mxu3 %v9289_v50  ;;  %1942 = vmatpush.msra.mxu2 %v9291_v62  ;;  %v9321_v50 = vld [vmem:[#allocation143_spill] sm:$0xff]  ;;  %v9323_v62 = vld [vmem:[#allocation145_spill] sm:$0xff] }
 0x2e1   :  { %1934 = vmatpush.msrb.mxu1 %v9292_v16  ;;  %1903 = vmatpush.msrb.mxu0 %v9294_v22  ;;  %v9324_v16 = vld [vmem:[#allocation146_spill] sm:$0xff]  ;;  %v9326_v22 = vld [vmem:[#allocation148_spill] sm:$0xff] }
 0x2e2   :  { %1974 = vmatpush.msra.mxu3 %v9293_v2  ;;  %1943 = vmatpush.msra.mxu2 %v9295_v61  ;;  %v9325_v2 = vld [vmem:[#allocation147_spill] sm:$0xff]  ;;  %v9327_v61 = vld [vmem:[#allocation149_spill] sm:$0xff] }
 0x2e3   :  { %1935 = vmatpush.msrb.mxu1 %v9296_v29  ;;  %1904 = vmatpush.msrb.mxu0 %v9298_v10  ;;  %v9328_v29 = vld [vmem:[#allocation150_spill] sm:$0xff] }
 0x2e4   :  { %1975 = vmatpush.msra.mxu3 %v9297_v44  ;;  %1944 = vmatpush.msra.mxu2 %v9299_v34  ;;  %v9329_v44 = vld [vmem:[#allocation151_spill] sm:$0xff] }
 0x2e5   :  { %1936 = vmatpush.msrb.mxu1 %v9300_v9  ;;  %1905 = vmatpush.msrb.mxu0 %v9302_v25  ;;  %v9330_v25 = vld [vmem:[#allocation32_spill] sm:$0xff] }
 0x2e6   :  { %1976 = vmatpush.msra.mxu3 %v9301_v37  ;;  %1945 = vmatpush.msra.mxu2 %v9303_v35 }
 0x2e7   :  { %1937 = vmatpush.msrb.mxu1 %v9304_v28  ;;  %1906 = vmatpush.msrb.mxu0 %v9306_v18 }
 0x2e8   :  { %1977 = vmatpush.msra.mxu3 %v9305_v56  ;;  %1946 = vmatpush.msra.mxu2 %v9307_v57  ;;  %v9331_v57 = vld [vmem:[#allocation33_spill] sm:$0xff] }
 0x2e9   :  { %1907 = vmatpush.msrb.mxu0 %v9308_v8 }
 0x2ea   :  { %1947 = vmatpush.msra.mxu2 %v9309_v41 }
 0x2eb   :  { %1908 = vmatpush.msrb.mxu0 %v9310_v24 }
 0x2ec   :  { %1948 = vmatpush.msra.mxu2 %v9311_v42 }
 0x2ed   :  { %1909 = vmatpush.msrb.mxu0 %v9312_v21 }
 0x2ee   :  { %1949 = vmatpush.msra.mxu2 %v9313_v60 }
 0x2ef   :  { %1910 = vmatpush.msrb.mxu0 %v9314_v51  ;;  %v1650_v51 = vld [vmem:[#allocation2] sm:$0xc0] }
 0x2f0   :  { %1950 = vmatpush.msra.mxu2 %v9315_v55 }
 0x2f1   :  { %1911 = vmatpush.msrb.mxu0 %v9316_v54 }
 0x2f2   :  { %1951 = vmatpush.msra.mxu2 %v9317_v13 }
 0x2f3   :  { %1912 = vmatpush.msrb.mxu0 %v9318_v20 }
 0x2f4   :  { %1952 = vmatpush.msra.mxu2 %v9319_v27  ;;  %v9332_v27 = vld [vmem:[#allocation34_spill] sm:$0xff] }
 0x2f5   :  { %1913 = vmatpush.msrb.mxu0 %v9320_v23 }
 0x2f6   :  { %1953 = vmatpush.msra.mxu2 %v9321_v50 }
 0x2f7   :  { %1914 = vmatpush.msrb.mxu0 %v9322_v17 }
 0x2f8   :  { %1954 = vmatpush.msra.mxu2 %v9323_v62 }
 0x2f9   :  { %1915 = vmatpush.msrb.mxu0 %v9324_v16 }
 0x2fa   :  { %1955 = vmatpush.msra.mxu2 %v9325_v2 }
 0x2fb   :  { %1916 = vmatpush.msrb.mxu0 %v9326_v22 }
 0x2fc   :  { %1956 = vmatpush.msra.mxu2 %v9327_v61 }
 0x2fd   :  { %1917 = vmatpush.msrb.mxu0 %v9328_v29 }
 0x2fe   :  { %1957 = vmatpush.msra.mxu2 %v9329_v44 }
 0x301   :  { %v1462_v10 = vpop.f32.mrf.mxu1 }
 0x307   :  { %v1502_v9 = vpop.f32.mrf.mxu3 }
 0x309   :  { %v1542_v37 = vpop.f32.mrf.mxu1 }
 0x30f   :  { %v1582_v21 = vpop.f32.mrf.mxu3 }
 0x319   :  { %v1442_v34 = vpop.f32.mrf.mxu0 }
 0x31a   :  { %v1443_v35 = vadd.f32 %v1442_v34, %v9330_v25 }
 0x31c   :  { %v1463_v28 = vadd.f32 %v1462_v10, %v1443_v35  ;;  %v1652_v35 = vld [vmem:[#allocation2 + $0x10] sm:$0xc0] }
 0x31e   :  { %v3711_v56 = vmul.f32 -1.442695, %v1463_v28 }
 0x31f   :  { %v1482_v18 = vpop.f32.mrf.mxu2 }
 0x320   :  { %3837 = vpow2.f32 %v3711_v56  ;;  %v1483_v8 = vadd.f32 %v1482_v18, %v9331_v57 }
 0x322   :  { %v1503_v41 = vadd.f32 %v1502_v9, %v1483_v8  ;;  %v1522_v61 = vpop.f32.mrf.mxu0 }
 0x323   :  { %v1690_v24 = vpop.f32.mrf.mxu1  ;;  %v1523_v34 = vadd.f32 %v1522_v61, %v5725_v19 }
 0x324   :  { %v1738_v42 = vrot.slane %v1690_v24, 2  ;;  %v3712_v60 = vmul.f32 -1.442695, %v1503_v41 }
 0x325   :  { %v1543_v24 = vadd.f32 %v1542_v37, %v1523_v34 }
 0x326   :  { %v1746_v55 = vadd.f32 %v1738_v42, %v1650_v51  ;;  %v3838_v54 = vpop.eup %3837  ;;  %3839 = vpow2.f32 %v3712_v60 }
 0x327   :  { %v1588_v13 = vadd.f32 1.0, %v3838_v54 }
 0x328   :  { %v1562_v20 = vpop.f32.mrf.mxu2  ;;  %v3715_v50 = vmul.f32 -1.442695, %v1746_v55 }
 0x329   :  { %v1563_v23 = vadd.f32 %v1562_v20, %v9332_v27  ;;  %3841 = vrcp.f32 %v1588_v13  ;;  %v1600_v51 = vand.u32 2147483648, %v1588_v13  ;;  %vm1594_vm15 = vweird.f32 %v1588_v13 }
 0x32a   :  { %v1730_v2 = vpop.f32.mrf.mxu3  ;;  %3843 = vpow2.f32 %v3715_v50  ;;  %v1598_v20 = vand.u32 2147483647, %v1588_v13 }
 0x32b   :  { %v1583_v17 = vadd.f32 %v1582_v21, %v1563_v23  ;;  %v1740_v44 = vrot.slane %v1730_v2, 2  ;;  %v1601_v61 = vor.u32 1.1754944e-38, %v1600_v51 }
 0x32c   :  { %v3840_v62 = vpop.eup %3839  ;;  %vm1599_vm3 = vcmp.eq.f32.partialorder %v1598_v20, 8.507059e+37 }
 0x32d   :  { %v3713_v16 = vmul.f32 -1.442695, %v1583_v17  ;;  %v1607_v22 = vadd.f32 1.0, %v3840_v62  ;;  %v1748_v56 = vadd.f32 %v1740_v44, %v1652_v35 }
 0x32f   :  { %3845 = vpow2.f32 %v3713_v16  ;;  %v3842_v29 = vpop.eup %3841  ;;  %v3716_v55 = vmul.f32 -1.442695, %v1748_v56  ;;  %v1619_v50 = vand.u32 2147483648, %v1607_v22  ;;  %v1617_v2 = vand.u32 2147483647, %v1607_v22 }
 0x330   :  { %3847 = vrcp.f32 %v1607_v22  ;;  %v1590_v10 = vmul.f32 %v3842_v29, %v1588_v13  ;;  %v3844_v28 = vpop.eup %3843  ;;  %vm1595_vm14 = vweird.f32 %v3842_v29  ;;  %vm1613_vm2 = vweird.f32 %v1607_v22 }
 0x331   :  { %v6621_v23 = vadd.f32 1.0, %v3844_v28  ;;  %vm6623_vm0 = vmor %vm1594_vm15, %vm1595_vm14  ;;  %vm1618_vm5 = vcmp.eq.f32.partialorder %v1617_v2, 8.507059e+37 }
 0x332   :  { %v1591_v9 = vsub.f32 1.0, %v1590_v10  ;;  %v1649_v10 = vld [vmem:[#allocation2 + $0x30] sm:$0xc0] }
 0x333   :  { %vm1777_vm11 = vweird.f32 %v6621_v23 }
 0x334   :  { %v1592_v8 = vmul.f32 %v3842_v29, %v1591_v9  ;;  %v1620_v9 = vor.u32 1.1754944e-38, %v1619_v50 }
 0x335   :  { %v3846_v18 = vpop.eup %3845 }
 0x336   :  { %v3848_v41 = vpop.eup %3847  ;;  %v1627_v42 = vadd.f32 1.0, %v3846_v18  ;;  %v1593_v60 = vadd.f32 %v3842_v29, %v1592_v8 }
 0x337   :  { %v1609_v21 = vmul.f32 %v3848_v41, %v1607_v22  ;;  %vm1614_vm1 = vweird.f32 %v3848_v41 }
 0x338   :  { %3849 = vrcp.f32 %v1627_v42  ;;  %v1597_v16 = vsel %vm6623_vm0, %v3842_v29, %v1593_v60  ;;  %vm1615_vm4 = vmor %vm1613_vm2, %vm1614_vm1  ;;  %v1639_v50 = vand.u32 2147483648, %v1627_v42  ;;  %vm1633_vm7 = vweird.f32 %v1627_v42 }
 0x339   :  { %v1610_v54 = vsub.f32 1.0, %v1609_v21  ;;  %3851 = vtanh.f32 %v1543_v24  ;;  %v1602_v35 = vsel %vm1599_vm3, %v1601_v61, %v1597_v16 }
 0x33a   :  { %v1670_v62 = vpop.f32.mrf.mxu0  ;;  %3853 = vpow2.f32 %v3716_v55  ;;  %v1640_v61 = vor.u32 1.1754944e-38, %v1639_v50 }
 0x33b   :  { %v1611_v37 = vmul.f32 %v3848_v41, %v1610_v54  ;;  %v1737_v44 = vrot.slane %v1670_v62, 2  ;;  %3855 = vrcp.f32 %v6621_v23 }
 0x33d   :  { %v1612_v13 = vadd.f32 %v3848_v41, %v1611_v37  ;;  %v1745_v28 = vadd.f32 %v1737_v44, %v1649_v10 }
 0x33e   :  { %v3850_v34 = vpop.eup %3849 }
 0x33f   :  { %v1616_v56 = vsel %vm1615_vm4, %v3848_v41, %v1612_v13  ;;  %v1629_v18 = vmul.f32 %v3850_v34, %v1627_v42  ;;  %v3852_v8 = vpop.eup %3851  ;;  %v3714_v24 = vmul.f32 -1.442695, %v1745_v28  ;;  %vm1634_vm6 = vweird.f32 %v3850_v34 }
 0x340   :  { %v1621_v29 = vsel %vm1618_vm5, %v1620_v9, %v1616_v56  ;;  %v1644_v60 = vmul.f32 %v3852_v8, %v1602_v35  ;;  %v3854_v51 = vpop.eup %3853  ;;  %vm1635_vm8 = vmor %vm1633_vm7, %vm1634_vm6 }
 0x341   :  { %v1643_v21 = vmul.f32 %v1621_v29, %v6319_v52  ;;  %v1630_v22 = vsub.f32 1.0, %v1629_v18  ;;  %3857 = vpow2.f32 %v3714_v24  ;;  %v6631_v55 = vpop.eup %3855  ;;  %v6638_v62 = vadd.f32 1.0, %v3854_v51  ;;  %v1710_v13 = vpop.f32.mrf.mxu2 }
 0x342   :  { %v1773_v17 = vmul.f32 %v6631_v55, %v6621_v23  ;;  %v1637_v52 = vand.u32 2147483647, %v1627_v42  ;;  %v1739_v28 = vrot.slane %v1710_v13, 2  ;;  %vm1778_vm10 = vweird.f32 %v6631_v55 }
 0x343   :  { %v6633_v54 = vadd.f32 %v1644_v60, %v1643_v21  ;;  %v1631_v20 = vmul.f32 %v3850_v34, %v1630_v22  ;;  %v1783_v22 = vand.u32 2147483648, %v6621_v23  ;;  %vm6661_vm12 = vmor %vm1777_vm11, %vm1778_vm10  ;;  %vm1797_vm3 = vweird.f32 %v6638_v62 }
 0x344   :  { %v1774_v44 = vsub.f32 1.0, %v1773_v17  ;;  %vm1638_vm9 = vcmp.eq.f32.partialorder %v1637_v52, 8.507059e+37  ;;  %v1781_v17 = vand.u32 2147483647, %v6621_v23 }
 0x345   :  { %3859 = vtanh.f32 %v6633_v54  ;;  %v1632_v41 = vadd.f32 %v3850_v34, %v1631_v20  ;;  %v6653_v20 = vld [vmem:[#allocation9 + $0x1e8] sm:$0xff] }
 0x346   :  { %3861 = vrcp.f32 %v6638_v62  ;;  %v1775_v56 = vmul.f32 %v6631_v55, %v1774_v44  ;;  %vm1782_vm15 = vcmp.eq.f32.partialorder %v1781_v17, 8.507059e+37  ;;  %v6694_v17 = vld [vmem:[#allocation9 + $0x178] sm:$0xff] }
 0x347   :  { %v3858_v37 = vpop.eup %3857  ;;  %v1636_v16 = vsel %vm1635_vm8, %v3850_v34, %v1632_v41  ;;  %v1651_v34 = vld [vmem:[#allocation2 + $0x18] sm:$0xc0] }
 0x348   :  { %v6640_v2 = vadd.f32 1.0, %v3858_v37  ;;  %v1641_v9 = vsel %vm1638_vm9, %v1640_v61, %v1636_v16  ;;  %v1747_v24 = vadd.f32 %v1739_v28, %v1651_v34  ;;  %v1776_v60 = vadd.f32 %v6631_v55, %v1775_v56  ;;  %v6656_v41 = vld [vmem:[#allocation9 + $0x1f8] sm:$0xff]  ;;  %v6666_v16 = vld [vmem:[#allocation9 + $0x1c8] sm:$0xff] }
 0x349   :  { %v6669_v61 = vld [vmem:[#allocation9 + $0x1d8] sm:$0xff] }
 0x34a   :  { %3863 = vrcp.f32 %v6640_v2  ;;  %v1764_v37 = vand.u32 2147483648, %v6640_v2  ;;  %v1762_v13 = vand.u32 2147483647, %v6640_v2  ;;  %v1780_v23 = vsel %vm6661_vm12, %v6631_v55, %v1776_v60  ;;  %v6679_v28 = vld [vmem:[#allocation9 + $0x1b8] sm:$0xff] }
 0x34b   :  { %v3860_v10 = vpop.eup %3859  ;;  %3865 = vtanh.f32 %v1747_v24  ;;  %vm1758_vm14 = vweird.f32 %v6640_v2  ;;  %v6683_v24 = vld [vmem:[#allocation9 + $0x188] sm:$0xff]  ;;  %v6686_v55 = vld [vmem:[#allocation9 + $0x198] sm:$0xff] }
 0x34c   :  { %v1647_v35 = vmul.f32 %v3860_v10, %v1641_v9  ;;  %v6645_v18 = vpop.eup %3861  ;;  %v1784_v10 = vor.u32 1.1754944e-38, %v1783_v22  ;;  %vm1763_vm1 = vcmp.eq.f32.partialorder %v1762_v13, 8.507059e+37  ;;  %v6707_v13 = vld [vmem:[#allocation9 + $0x128] sm:$0xff] }
 0x34d   :  { %v1793_v51 = vmul.f32 %v6645_v18, %v6638_v62  ;;  %vm1798_vm2 = vweird.f32 %v6645_v18 }
 0x34e   :  { %1648 = vst [vmem:[#allocation3 + $0x4] sm:$0x3] %v1647_v35  ;;  %v1816_v42 = vrot.slane %v1647_v35, 2  ;;  %v6676_v35 = vld [vmem:[#allocation9 + $0x1a8] sm:$0xff]  ;;  %v1785_v34 = vsel %vm1782_vm15, %v1784_v10, %v1780_v23  ;;  %v6710_v23 = vld [vmem:[#allocation9 + $0x138] sm:$0xff]  ;;  %v1803_v10 = vand.u32 2147483648, %v6638_v62  ;;  %vm1799_vm4 = vmor %vm1797_vm3, %vm1798_vm2 }
 0x34f   :  { %v1794_v9 = vsub.f32 1.0, %v1793_v51 }
 0x350   :  { %v1819_v8 = vrot.slane %v1816_v42, 6  ;;  %v3864_v29 = vpop.eup %3863  ;;  %v1765_v42 = vor.u32 1.1754944e-38, %v1764_v37 }
 0x351   :  { %v1754_v21 = vmul.f32 %v3864_v29, %v6640_v2  ;;  %vm1759_vm13 = vweird.f32 %v3864_v29  ;;  %v3866_v22 = vpop.eup %3865  ;;  %v1795_v2 = vmul.f32 %v6645_v18, %v1794_v9  ;;  %v1801_v9 = vand.u32 2147483647, %v6638_v62 }
 0x352   :  { %1858 = vmatmul.f32.vlgmr.msra.gmra.mxu1 %v1819_v8  ;;  %1898 = vmatmul.f32.vlgmr.msrb.gmra.mxu3 %v1819_v8  ;;  %vm1760_vm0 = vmor %vm1758_vm14, %vm1759_vm13  ;;  %v1804_v62 = vor.u32 1.1754944e-38, %v1803_v10 }
 0x353   :  { %2070 = vmatpush.msra.mxu1 %v6653_v20  ;;  %2110 = vmatpush.msrb.mxu3 %v6656_v41  ;;  %v1755_v50 = vsub.f32 1.0, %v1754_v21  ;;  %v1808_v21 = vrot.slane %v6362_v36, 6  ;;  %v6700_v36 = vld [vmem:[#allocation9 + $0x158] sm:$0xff]  ;;  %vm1802_vm5 = vcmp.eq.f32.partialorder %v1801_v9, 8.507059e+37  ;;  %v6744_v9 = vld [vmem:[#allocation9 + $0x88] sm:$0xff] }
 0x355   :  { %2071 = vmatpush.msra.mxu1 %v6666_v16  ;;  %2111 = vmatpush.msrb.mxu3 %v6669_v61  ;;  %v1756_v44 = vmul.f32 %v3864_v29, %v1755_v50  ;;  %v6691_v50 = vld [vmem:[#allocation9 + $0x168] sm:$0xff]  ;;  %v1810_v52 = vmul.f32 %v1808_v21, %v1785_v34 }
 0x356   :  { %v6724_v21 = vld [vmem:[#allocation9 + $0xe8] sm:$0xff] }
 0x357   :  { %2072 = vmatpush.msra.mxu1 %v6676_v35  ;;  %2112 = vmatpush.msrb.mxu3 %v6679_v28  ;;  %v1757_v56 = vadd.f32 %v3864_v29, %v1756_v44  ;;  %v6697_v44 = vld [vmem:[#allocation9 + $0x148] sm:$0xff] }
 0x359   :  { %2073 = vmatpush.msra.mxu1 %v6683_v24  ;;  %2113 = vmatpush.msrb.mxu3 %v6686_v55  ;;  %v1761_v60 = vsel %vm1760_vm0, %v3864_v29, %v1757_v56  ;;  %v1796_v29 = vadd.f32 %v6645_v18, %v1795_v2  ;;  %v6717_v56 = vld [vmem:[#allocation9 + $0x108] sm:$0xff]  ;;  %v6733_v2 = vld [vmem:[#allocation9 + $0xd8] sm:$0xff] }
 0x35a   :  { %1938 = vmatmul.f32.vlgmr.msrb.gmra.mxu1 %v1819_v8  ;;  %1978 = vmatmul.f32.vlgmr.msra.gmra.mxu3 %v1819_v8  ;;  %v1766_v51 = vsel %vm1763_vm1, %v1765_v42, %v1761_v60  ;;  %v6720_v42 = vld [vmem:[#allocation9 + $0x118] sm:$0xff] }
 0x35b   :  { %2074 = vmatpush.msra.mxu1 %v6691_v50  ;;  %2114 = vmatpush.msrb.mxu3 %v6694_v17  ;;  %v1811_v37 = vmul.f32 %v3866_v22, %v1766_v51  ;;  %v1800_v34 = vsel %vm1799_vm4, %v6645_v18, %v1796_v29  ;;  %v6727_v60 = vld [vmem:[#allocation9 + $0xf8] sm:$0xff]  ;;  %v6730_v22 = vld [vmem:[#allocation9 + $0xc8] sm:$0xff] }
 0x35c   :  { %9337 = vst [vmem:[#allocation36_spill] sm:$0xff] %v6730_v22  ;;  %v1805_v18 = vsel %vm1802_vm5, %v1804_v62, %v1800_v34  ;;  %v6739_v29 = vld [vmem:[#allocation9 + $0xb8] sm:$0xff]  ;;  %v6754_v34 = vld [vmem:[#allocation9 + $0x68] sm:$0xff] }
 0x35d   :  { %2075 = vmatpush.msra.mxu1 %v6697_v44  ;;  %2115 = vmatpush.msrb.mxu3 %v6700_v36  ;;  %v6703_v8 = vadd.f32 %v1811_v37, %v1810_v52  ;;  %v6736_v37 = vld [vmem:[#allocation9 + $0xa8] sm:$0xff]  ;;  %v6757_v62 = vld [vmem:[#allocation9 + $0x78] sm:$0xff] }
 0x35f   :  { %2076 = vmatpush.msra.mxu1 %v6707_v13  ;;  %2116 = vmatpush.msrb.mxu3 %v6710_v23  ;;  %3867 = vtanh.f32 %v6703_v8 }
 0x361   :  { %2077 = vmatpush.msra.mxu1 %v6717_v56  ;;  %2117 = vmatpush.msrb.mxu3 %v6720_v42 }
 0x363   :  { %2078 = vmatpush.msra.mxu1 %v6724_v21  ;;  %2118 = vmatpush.msrb.mxu3 %v6727_v60 }
 0x365   :  { %2079 = vmatpush.msra.mxu1 %v6730_v22  ;;  %2119 = vmatpush.msrb.mxu3 %v6733_v2  ;;  %v3868_v51 = vpop.eup %3867  ;;  %v6747_v22 = vld [vmem:[#allocation9 + $0x98] sm:$0xff] }
 0x366   :  { %v1814_v52 = vmul.f32 %v3868_v51, %v1805_v18  ;;  %v6762_v51 = vld [vmem:[#allocation9 + $0x48] sm:$0xff]  ;;  %v6765_v18 = vld [vmem:[#allocation9 + $0x58] sm:$0xff] }
 0x367   :  { %2080 = vmatpush.msra.mxu1 %v6736_v37  ;;  %2120 = vmatpush.msrb.mxu3 %v6739_v29 }
 0x368   :  { %v6742_v10 = vrot.slane %v1814_v52, 6  ;;  %v6878_v52 = vld [vmem:[#allocation9 + $0x10] sm:$0xff] }
 0x369   :  { %2081 = vmatpush.msra.mxu1 %v6744_v9  ;;  %2121 = vmatpush.msrb.mxu3 %v6747_v22  ;;  %9356 = vst [vmem:[#allocation71_spill] sm:$0xff] %v6878_v52 }
 0x36a   :  { %1838 = vmatmul.f32.vlgmr.msra.gmra.mxu0 %v6742_v10  ;;  %1878 = vmatmul.f32.vlgmr.msrb.gmra.mxu2 %v6742_v10 }
 0x36b   :  { %2050 = vmatpush.msra.mxu0 %v6387_v11  ;;  %2090 = vmatpush.msrb.mxu2 %v6390_v14  ;;  %v6770_v11 = vld [vmem:[#allocation9 + $0x28] sm:$0xff]  ;;  %v6773_v14 = vld [vmem:[#allocation9 + $0x38] sm:$0xff] }
 0x36c   :  { %2082 = vmatpush.msra.mxu1 %v6754_v34  ;;  %2122 = vmatpush.msrb.mxu3 %v6757_v62 }
 0x36d   :  { %2051 = vmatpush.msra.mxu0 %v6395_v47  ;;  %2091 = vmatpush.msrb.mxu2 %v6398_v5  ;;  %v6778_v47 = vld [vmem:[#allocation9 + $0x8] sm:$0xff]  ;;  %v6781_v5 = vld [vmem:[#allocation9 + $0x18] sm:$0xff] }
 0x36e   :  { %2083 = vmatpush.msra.mxu1 %v6762_v51  ;;  %2123 = vmatpush.msrb.mxu3 %v6765_v18 }
 0x36f   :  { %2052 = vmatpush.msra.mxu0 %v6403_v4  ;;  %2092 = vmatpush.msrb.mxu2 %v6406_v58  ;;  %v6791_v4 = vld [vmem:[#allocation12 + $0x3e0] sm:$0xff]  ;;  %v6795_v58 = vld [vmem:[#allocation12 + $0x3e8] sm:$0xff] }
 0x370   :  { %2084 = vmatpush.msra.mxu1 %v6770_v11  ;;  %2124 = vmatpush.msrb.mxu3 %v6773_v14 }
 0x371   :  { %2053 = vmatpush.msra.mxu0 %v6411_v45  ;;  %2093 = vmatpush.msrb.mxu2 %v6414_v3  ;;  %v6799_v45 = vld [vmem:[#allocation12 + $0x3c0] sm:$0xff]  ;;  %v6803_v3 = vld [vmem:[#allocation12 + $0x3c8] sm:$0xff] }
 0x372   :  { %2085 = vmatpush.msra.mxu1 %v6778_v47  ;;  %2125 = vmatpush.msrb.mxu3 %v6781_v5 }
 0x373   :  { %1918 = vmatmul.f32.vlgmr.msrb.gmra.mxu0 %v6742_v10  ;;  %1958 = vmatmul.f32.vlgmr.msra.gmra.mxu2 %v6742_v10 }
 0x374   :  { %2054 = vmatpush.msra.mxu0 %v6419_v49  ;;  %2086 = vmatmul.f32.vlgmr.msra.gmra.mxu1 %v6742_v10  ;;  %v6807_v49 = vld [vmem:[#allocation12 + $0x3a0] sm:$0xff] }
 0x375   :  { %2094 = vmatpush.msrb.mxu2 %v6423_v7  ;;  %2126 = vmatmul.f32.vlgmr.msrb.gmra.mxu3 %v6742_v10  ;;  %v6811_v7 = vld [vmem:[#allocation12 + $0x3a8] sm:$0xff] }
 0x376   :  { %2055 = vmatpush.msra.mxu0 %v6427_v53  ;;  %2220 = vmatpush.msrb.mxu1 %v6791_v4  ;;  %9338 = vst [vmem:[#allocation37_spill] sm:$0xff] %v6811_v7  ;;  %v6815_v53 = vld [vmem:[#allocation12 + $0x380] sm:$0xff] }
 0x377   :  { %2095 = vmatpush.msrb.mxu2 %v6431_v15  ;;  %2260 = vmatpush.msra.mxu3 %v6795_v58  ;;  %9339 = vst [vmem:[#allocation38_spill] sm:$0xff] %v6815_v53  ;;  %v6819_v15 = vld [vmem:[#allocation12 + $0x388] sm:$0xff] }
 0x378   :  { %2056 = vmatpush.msra.mxu0 %v6435_v59  ;;  %2221 = vmatpush.msrb.mxu1 %v6799_v45  ;;  %9340 = vst [vmem:[#allocation39_spill] sm:$0xff] %v6819_v15  ;;  %v6823_v59 = vld [vmem:[#allocation12 + $0x360] sm:$0xff] }
 0x379   :  { %2096 = vmatpush.msrb.mxu2 %v6439_v0  ;;  %2261 = vmatpush.msra.mxu3 %v6803_v3  ;;  %9341 = vst [vmem:[#allocation42_spill] sm:$0xff] %v6823_v59  ;;  %v6827_v0 = vld [vmem:[#allocation12 + $0x368] sm:$0xff] }
 0x37a   :  { %2057 = vmatpush.msra.mxu0 %v6443_v1  ;;  %2222 = vmatpush.msrb.mxu1 %v6807_v49  ;;  %9342 = vst [vmem:[#allocation43_spill] sm:$0xff] %v6827_v0  ;;  %v6831_v1 = vld [vmem:[#allocation12 + $0x340] sm:$0xff] }
 0x37b   :  { %2097 = vmatpush.msrb.mxu2 %v6447_v46  ;;  %2262 = vmatpush.msra.mxu3 %v6811_v7  ;;  %9343 = vst [vmem:[#allocation46_spill] sm:$0xff] %v6831_v1  ;;  %v6835_v46 = vld [vmem:[#allocation12 + $0x348] sm:$0xff] }
 0x37c   :  { %2058 = vmatpush.msra.mxu0 %v6451_v38  ;;  %2223 = vmatpush.msrb.mxu1 %v6815_v53  ;;  %9344 = vst [vmem:[#allocation47_spill] sm:$0xff] %v6835_v46  ;;  %v6839_v38 = vld [vmem:[#allocation12 + $0x320] sm:$0xff] }
 0x37d   :  { %2098 = vmatpush.msrb.mxu2 %v6455_v30  ;;  %2263 = vmatpush.msra.mxu3 %v6819_v15  ;;  %9345 = vst [vmem:[#allocation50_spill] sm:$0xff] %v6839_v38  ;;  %v6843_v30 = vld [vmem:[#allocation12 + $0x328] sm:$0xff] }
 0x37e   :  { %2059 = vmatpush.msra.mxu0 %v6459_v39  ;;  %2224 = vmatpush.msrb.mxu1 %v6823_v59  ;;  %9346 = vst [vmem:[#allocation51_spill] sm:$0xff] %v6843_v30  ;;  %v6847_v39 = vld [vmem:[#allocation12 + $0x300] sm:$0xff] }
 0x37f   :  { %2099 = vmatpush.msrb.mxu2 %v6463_v40  ;;  %2264 = vmatpush.msra.mxu3 %v6827_v0  ;;  %9347 = vst [vmem:[#allocation54_spill] sm:$0xff] %v6847_v39  ;;  %v6851_v40 = vld [vmem:[#allocation12 + $0x308] sm:$0xff] }
 0x380   :  { %2060 = vmatpush.msra.mxu0 %v6467_v33  ;;  %2225 = vmatpush.msrb.mxu1 %v6831_v1  ;;  %9348 = vst [vmem:[#allocation55_spill] sm:$0xff] %v6851_v40  ;;  %v6855_v33 = vld [vmem:[#allocation12 + $0x2e0] sm:$0xff] }
 0x381   :  { %2100 = vmatpush.msrb.mxu2 %v6471_v12  ;;  %2265 = vmatpush.msra.mxu3 %v6835_v46  ;;  %9349 = vst [vmem:[#allocation58_spill] sm:$0xff] %v6855_v33  ;;  %v6858_v12 = vld [vmem:[#allocation9 + $0x50] sm:$0xff] }
 0x382   :  { %2061 = vmatpush.msra.mxu0 %v6475_v31  ;;  %2226 = vmatpush.msrb.mxu1 %v6839_v38  ;;  %9350 = vst [vmem:[#allocation59_spill] sm:$0xff] %v6858_v12  ;;  %v6861_v31 = vld [vmem:[#allocation12 + $0x2e8] sm:$0xff] }
 0x383   :  { %2101 = vmatpush.msrb.mxu2 %v6479_v43  ;;  %2266 = vmatpush.msra.mxu3 %v6843_v30  ;;  %9351 = vst [vmem:[#allocation62_spill] sm:$0xff] %v6861_v31  ;;  %v6865_v43 = vld [vmem:[#allocation12 + $0x2c0] sm:$0xff] }
 0x384   :  { %2062 = vmatpush.msra.mxu0 %v6483_v63  ;;  %2227 = vmatpush.msrb.mxu1 %v6847_v39  ;;  %9352 = vst [vmem:[#allocation63_spill] sm:$0xff] %v6865_v43  ;;  %v6868_v63 = vld [vmem:[#allocation9 + $0x30] sm:$0xff] }
 0x385   :  { %2102 = vmatpush.msrb.mxu2 %v6487_v32  ;;  %2267 = vmatpush.msra.mxu3 %v6851_v40  ;;  %9353 = vst [vmem:[#allocation66_spill] sm:$0xff] %v6868_v63  ;;  %v6871_v32 = vld [vmem:[#allocation12 + $0x2c8] sm:$0xff] }
 0x386   :  { %2063 = vmatpush.msra.mxu0 %v6491_v48  ;;  %2228 = vmatpush.msrb.mxu1 %v6855_v33  ;;  %9354 = vst [vmem:[#allocation67_spill] sm:$0xff] %v6871_v32  ;;  %v6875_v48 = vld [vmem:[#allocation12 + $0x2a0] sm:$0xff] }
 0x387   :  { %2103 = vmatpush.msrb.mxu2 %v6858_v12  ;;  %2268 = vmatpush.msra.mxu3 %v6861_v31  ;;  %9355 = vst [vmem:[#allocation70_spill] sm:$0xff] %v6875_v48 }
 0x388   :  { %2064 = vmatpush.msra.mxu0 %v6497_v6  ;;  %2229 = vmatpush.msrb.mxu1 %v6865_v43  ;;  %v6883_v6 = vld [vmem:[#allocation12 + $0x2a8] sm:$0xff] }
 0x389   :  { %2104 = vmatpush.msrb.mxu2 %v6868_v63  ;;  %2269 = vmatpush.msra.mxu3 %v6871_v32  ;;  %9357 = vst [vmem:[#allocation74_spill] sm:$0xff] %v6883_v6  ;;  %v6886_v63 = vld [vmem:[#allocation12 + $0x280] sm:$0xff] }
 0x38a   :  { %2065 = vmatpush.msra.mxu0 %v6503_v26  ;;  %2230 = vmatpush.msrb.mxu1 %v6875_v48  ;;  %9358 = vst [vmem:[#allocation75_spill] sm:$0xff] %v6886_v63  ;;  %v6889_v26 = vld [vmem:[#allocation12 + $0x1e0] sm:$0xff]  ;;  %v6892_v48 = vld [vmem:[#allocation12 + $0x288] sm:$0xff] }
 0x38b   :  { %2105 = vmatpush.msrb.mxu2 %v6878_v52  ;;  %2066 = vmatmul.f32.vlgmr.msra.gmra.mxu0 %v6742_v10  ;;  %9359 = vst [vmem:[#allocation78_spill] sm:$0xff] %v6889_v26  ;;  %v6895_v52 = vld [vmem:[#allocation12 + $0x1e8] sm:$0xff] }
 0x38c   :  { %2106 = vmatmul.f32.vlgmr.msrb.gmra.mxu2 %v6742_v10  ;;  %2270 = vmatpush.msra.mxu3 %v6883_v6  ;;  %9360 = vst [vmem:[#allocation21_spill] sm:$0xff] %v6892_v48  ;;  %v6898_v10 = vld [vmem:[#allocation12 + $0x260] sm:$0xff] }
 0x38d   :  { %2231 = vmatpush.msrb.mxu1 %v6886_v63  ;;  %2200 = vmatpush.msrb.mxu0 %v6889_v26  ;;  %9361 = vst [vmem:[#allocation79_spill] sm:$0xff] %v6895_v52  ;;  %v6901_v6 = vld [vmem:[#allocation12 + $0x1c0] sm:$0xff]  ;;  %v6904_v63 = vld [vmem:[#allocation12 + $0x268] sm:$0xff] }
 0x38e   :  { %2271 = vmatpush.msra.mxu3 %v6892_v48  ;;  %2240 = vmatpush.msra.mxu2 %v6895_v52  ;;  %9362 = vst [vmem:[#allocation82_spill] sm:$0xff] %v6898_v10  ;;  %v6907_v26 = vld [vmem:[#allocation12 + $0x1c8] sm:$0xff]  ;;  %v6910_v48 = vld [vmem:[#allocation12 + $0x240] sm:$0xff] }
 0x38f   :  { %2232 = vmatpush.msrb.mxu1 %v6898_v10  ;;  %9363 = vst [vmem:[#allocation22_spill] sm:$0xff] %v6901_v6  ;;  %2201 = vmatpush.msrb.mxu0 %v6901_v6  ;;  %v6913_v52 = vld [vmem:[#allocation12 + $0x1a0] sm:$0xff]  ;;  %v6916_v10 = vld [vmem:[#allocation12 + $0x248] sm:$0xff] }
 0x390   :  { %9364 = vst [vmem:[#allocation83_spill] sm:$0xff] %v6904_v63  ;;  %2272 = vmatpush.msra.mxu3 %v6904_v63  ;;  %2241 = vmatpush.msra.mxu2 %v6907_v26  ;;  %v6919_v6 = vld [vmem:[#allocation12 + $0x1a8] sm:$0xff]  ;;  %v6922_v63 = vld [vmem:[#allocation12 + $0x220] sm:$0xff] }
 0x391   :  { %9365 = vst [vmem:[#allocation86_spill] sm:$0xff] %v6907_v26  ;;  %2233 = vmatpush.msrb.mxu1 %v6910_v48  ;;  %2202 = vmatpush.msrb.mxu0 %v6913_v52  ;;  %v6925_v26 = vld [vmem:[#allocation12 + $0x180] sm:$0xff] }
 0x392   :  { %9366 = vst [vmem:[#allocation23_spill] sm:$0xff] %v6910_v48  ;;  %2273 = vmatpush.msra.mxu3 %v6916_v10  ;;  %2242 = vmatpush.msra.mxu2 %v6919_v6  ;;  %v6928_v48 = vld [vmem:[#allocation12 + $0x228] sm:$0xff] }
 0x393   :  { %9367 = vst [vmem:[#allocation40_spill] sm:$0xff] %v6913_v52  ;;  %2234 = vmatpush.msrb.mxu1 %v6922_v63  ;;  %2203 = vmatpush.msrb.mxu0 %v6925_v26  ;;  %v6931_v52 = vld [vmem:[#allocation12 + $0x188] sm:$0xff] }
 0x394   :  { %9368 = vst [vmem:[#allocation41_spill] sm:$0xff] %v6916_v10  ;;  %2274 = vmatpush.msra.mxu3 %v6928_v48  ;;  %2243 = vmatpush.msra.mxu2 %v6931_v52  ;;  %v6934_v10 = vld [vmem:[#allocation12 + $0x200] sm:$0xff] }
 0x395   :  { %9369 = vst [vmem:[#allocation87_spill] sm:$0xff] %v6919_v6  ;;  %2235 = vmatpush.msrb.mxu1 %v6934_v10  ;;  %v6937_v6 = vld [vmem:[#allocation12 + $0x160] sm:$0xff] }
 0x396   :  { %9370 = vst [vmem:[#allocation44_spill] sm:$0xff] %v6922_v63  ;;  %2204 = vmatpush.msrb.mxu0 %v6937_v6  ;;  %v6940_v63 = vld [vmem:[#allocation12 + $0x208] sm:$0xff] }
 0x397   :  { %9371 = vst [vmem:[#allocation90_spill] sm:$0xff] %v6925_v26  ;;  %2275 = vmatpush.msra.mxu3 %v6940_v63  ;;  %v6943_v26 = vld [vmem:[#allocation12 + $0x168] sm:$0xff] }
 0x398   :  { %9372 = vst [vmem:[#allocation45_spill] sm:$0xff] %v6928_v48  ;;  %2244 = vmatpush.msra.mxu2 %v6943_v26  ;;  %v6946_v48 = vld [vmem:[#allocation12 + $0x3f0] sm:$0xff] }
 0x399   :  { %9373 = vst [vmem:[#allocation91_spill] sm:$0xff] %v6931_v52  ;;  %2300 = vmatpush.msra.mxu1 %v6946_v48  ;;  %v6949_v52 = vld [vmem:[#allocation12 + $0x3f8] sm:$0xff] }
 0x39a   :  { %9374 = vst [vmem:[#allocation48_spill] sm:$0xff] %v6934_v10  ;;  %2340 = vmatpush.msrb.mxu3 %v6949_v52  ;;  %v6952_v10 = vld [vmem:[#allocation12 + $0x140] sm:$0xff] }
 0x39b   :  { %9375 = vst [vmem:[#allocation94_spill] sm:$0xff] %v6937_v6  ;;  %2205 = vmatpush.msrb.mxu0 %v6952_v10  ;;  %v6955_v6 = vld [vmem:[#allocation12 + $0x148] sm:$0xff] }
 0x39c   :  { %9376 = vst [vmem:[#allocation49_spill] sm:$0xff] %v6940_v63  ;;  %2245 = vmatpush.msra.mxu2 %v6955_v6  ;;  %v6958_v63 = vld [vmem:[#allocation12 + $0x3d0] sm:$0xff] }
 0x39d   :  { %9377 = vst [vmem:[#allocation95_spill] sm:$0xff] %v6943_v26  ;;  %2301 = vmatpush.msra.mxu1 %v6958_v63  ;;  %v6961_v26 = vld [vmem:[#allocation12 + $0x3d8] sm:$0xff] }
 0x39e   :  { %9378 = vst [vmem:[#allocation52_spill] sm:$0xff] %v6946_v48  ;;  %2341 = vmatpush.msrb.mxu3 %v6961_v26  ;;  %v6964_v48 = vld [vmem:[#allocation12 + $0x120] sm:$0xff] }
 0x39f   :  { %9379 = vst [vmem:[#allocation98_spill] sm:$0xff] %v6949_v52  ;;  %2206 = vmatpush.msrb.mxu0 %v6964_v48  ;;  %v6967_v52 = vld [vmem:[#allocation12 + $0x128] sm:$0xff] }
 0x3a0   :  { %9380 = vst [vmem:[#allocation53_spill] sm:$0xff] %v6952_v10  ;;  %2246 = vmatpush.msra.mxu2 %v6967_v52  ;;  %v6970_v10 = vld [vmem:[#allocation12 + $0x3b0] sm:$0xff] }
 0x3a1   :  { %9381 = vst [vmem:[#allocation99_spill] sm:$0xff] %v6955_v6  ;;  %2302 = vmatpush.msra.mxu1 %v6970_v10  ;;  %v6973_v6 = vld [vmem:[#allocation12 + $0x3b8] sm:$0xff] }
 0x3a2   :  { %9382 = vst [vmem:[#allocation56_spill] sm:$0xff] %v6958_v63  ;;  %2342 = vmatpush.msrb.mxu3 %v6973_v6  ;;  %v6976_v63 = vld [vmem:[#allocation12 + $0x100] sm:$0xff] }
 0x3a3   :  { %9383 = vst [vmem:[#allocation57_spill] sm:$0xff] %v6961_v26  ;;  %2207 = vmatpush.msrb.mxu0 %v6976_v63  ;;  %v6979_v26 = vld [vmem:[#allocation12 + $0x108] sm:$0xff] }
 0x3a4   :  { %9384 = vst [vmem:[#allocation102_spill] sm:$0xff] %v6964_v48  ;;  %2247 = vmatpush.msra.mxu2 %v6979_v26  ;;  %v6982_v48 = vld [vmem:[#allocation12 + $0x390] sm:$0xff] }
 0x3a5   :  { %9385 = vst [vmem:[#allocation60_spill] sm:$0xff] %v6967_v52  ;;  %2303 = vmatpush.msra.mxu1 %v6982_v48  ;;  %v6985_v52 = vld [vmem:[#allocation12 + $0x398] sm:$0xff] }
 0x3a6   :  { %9386 = vst [vmem:[#allocation61_spill] sm:$0xff] %v6970_v10  ;;  %2343 = vmatpush.msrb.mxu3 %v6985_v52  ;;  %v6988_v10 = vld [vmem:[#allocation12 + $0xe0] sm:$0xff] }
 0x3a7   :  { %9387 = vst [vmem:[#allocation64_spill] sm:$0xff] %v6973_v6  ;;  %2208 = vmatpush.msrb.mxu0 %v6988_v10  ;;  %v6991_v6 = vld [vmem:[#allocation12 + $0xe8] sm:$0xff] }
 0x3a8   :  { %9388 = vst [vmem:[#allocation65_spill] sm:$0xff] %v6976_v63  ;;  %2248 = vmatpush.msra.mxu2 %v6991_v6  ;;  %v6994_v63 = vld [vmem:[#allocation12 + $0x370] sm:$0xff] }
 0x3a9   :  { %9389 = vst [vmem:[#allocation68_spill] sm:$0xff] %v6979_v26  ;;  %2304 = vmatpush.msra.mxu1 %v6994_v63  ;;  %v6997_v26 = vld [vmem:[#allocation12 + $0x378] sm:$0xff] }
 0x3aa   :  { %9390 = vst [vmem:[#allocation69_spill] sm:$0xff] %v6982_v48  ;;  %2344 = vmatpush.msrb.mxu3 %v6997_v26  ;;  %v7000_v48 = vld [vmem:[#allocation12 + $0xc0] sm:$0xff] }
 0x3ab   :  { %9391 = vst [vmem:[#allocation72_spill] sm:$0xff] %v6985_v52  ;;  %2209 = vmatpush.msrb.mxu0 %v7000_v48  ;;  %v7003_v52 = vld [vmem:[#allocation12 + $0xc8] sm:$0xff] }
 0x3ac   :  { %9392 = vst [vmem:[#allocation73_spill] sm:$0xff] %v6988_v10  ;;  %2249 = vmatpush.msra.mxu2 %v7003_v52  ;;  %v7006_v10 = vld [vmem:[#allocation12 + $0x350] sm:$0xff] }
 0x3ad   :  { %9393 = vst [vmem:[#allocation76_spill] sm:$0xff] %v6991_v6  ;;  %2305 = vmatpush.msra.mxu1 %v7006_v10  ;;  %v7009_v6 = vld [vmem:[#allocation12 + $0x358] sm:$0xff] }
 0x3ae   :  { %9394 = vst [vmem:[#allocation77_spill] sm:$0xff] %v6994_v63  ;;  %2345 = vmatpush.msrb.mxu3 %v7009_v6  ;;  %v7012_v63 = vld [vmem:[#allocation12 + $0xa0] sm:$0xff] }
 0x3af   :  { %9395 = vst [vmem:[#allocation80_spill] sm:$0xff] %v6997_v26  ;;  %2210 = vmatpush.msrb.mxu0 %v7012_v63  ;;  %v7015_v26 = vld [vmem:[#allocation12 + $0xa8] sm:$0xff] }
 0x3b0   :  { %9396 = vst [vmem:[#allocation81_spill] sm:$0xff] %v7000_v48  ;;  %2250 = vmatpush.msra.mxu2 %v7015_v26  ;;  %v7018_v48 = vld [vmem:[#allocation12 + $0x330] sm:$0xff] }
 0x3b1   :  { %9397 = vst [vmem:[#allocation84_spill] sm:$0xff] %v7003_v52  ;;  %2306 = vmatpush.msra.mxu1 %v7018_v48  ;;  %v7021_v52 = vld [vmem:[#allocation12 + $0x338] sm:$0xff] }
 0x3b2   :  { %9398 = vst [vmem:[#allocation85_spill] sm:$0xff] %v7006_v10  ;;  %2346 = vmatpush.msrb.mxu3 %v7021_v52  ;;  %v7024_v10 = vld [vmem:[#allocation12 + $0x80] sm:$0xff] }
 0x3b3   :  { %9399 = vst [vmem:[#allocation88_spill] sm:$0xff] %v7009_v6  ;;  %2211 = vmatpush.msrb.mxu0 %v7024_v10  ;;  %v7027_v6 = vld [vmem:[#allocation12 + $0x88] sm:$0xff] }
 0x3b4   :  { %9400 = vst [vmem:[#allocation89_spill] sm:$0xff] %v7012_v63  ;;  %2251 = vmatpush.msra.mxu2 %v7027_v6  ;;  %v7030_v63 = vld [vmem:[#allocation12 + $0x310] sm:$0xff] }
 0x3b5   :  { %9401 = vst [vmem:[#allocation92_spill] sm:$0xff] %v7015_v26  ;;  %2307 = vmatpush.msra.mxu1 %v7030_v63  ;;  %v7033_v26 = vld [vmem:[#allocation12 + $0x318] sm:$0xff] }
 0x3b6   :  { %9402 = vst [vmem:[#allocation93_spill] sm:$0xff] %v7018_v48  ;;  %2347 = vmatpush.msrb.mxu3 %v7033_v26  ;;  %v7036_v48 = vld [vmem:[#allocation12 + $0x60] sm:$0xff] }
 0x3b7   :  { %9403 = vst [vmem:[#allocation96_spill] sm:$0xff] %v7021_v52  ;;  %2212 = vmatpush.msrb.mxu0 %v7036_v48  ;;  %v7039_v52 = vld [vmem:[#allocation12 + $0x68] sm:$0xff] }
 0x3b8   :  { %9404 = vst [vmem:[#allocation97_spill] sm:$0xff] %v7024_v10  ;;  %2252 = vmatpush.msra.mxu2 %v7039_v52  ;;  %v7042_v10 = vld [vmem:[#allocation12 + $0x2f0] sm:$0xff] }
 0x3b9   :  { %9405 = vst [vmem:[#allocation100_spill] sm:$0xff] %v7027_v6  ;;  %2308 = vmatpush.msra.mxu1 %v7042_v10  ;;  %v7045_v6 = vld [vmem:[#allocation12 + $0x2f8] sm:$0xff] }
 0x3ba   :  { %9406 = vst [vmem:[#allocation101_spill] sm:$0xff] %v7030_v63  ;;  %2348 = vmatpush.msrb.mxu3 %v7045_v6  ;;  %v7048_v63 = vld [vmem:[#allocation12 + $0x40] sm:$0xff] }
 0x3bb   :  { %9407 = vst [vmem:[#allocation103_spill] sm:$0xff] %v7033_v26  ;;  %2213 = vmatpush.msrb.mxu0 %v7048_v63  ;;  %v7051_v26 = vld [vmem:[#allocation12 + $0x48] sm:$0xff] }
 0x3bc   :  { %9408 = vst [vmem:[#allocation104_spill] sm:$0xff] %v7036_v48  ;;  %2253 = vmatpush.msra.mxu2 %v7051_v26  ;;  %v7054_v48 = vld [vmem:[#allocation12 + $0x2d0] sm:$0xff] }
 0x3bd   :  { %9409 = vst [vmem:[#allocation25_spill] sm:$0xff] %v7039_v52  ;;  %2309 = vmatpush.msra.mxu1 %v7054_v48  ;;  %v7057_v52 = vld [vmem:[#allocation12 + $0x2d8] sm:$0xff] }
 0x3be   :  { %9410 = vst [vmem:[#allocation24_spill] sm:$0xff] %v7042_v10  ;;  %2349 = vmatpush.msrb.mxu3 %v7057_v52  ;;  %v7060_v10 = vld [vmem:[#allocation12 + $0x20] sm:$0xff] }
 0x3bf   :  { %9411 = vst [vmem:[#allocation26_spill] sm:$0xff] %v7045_v6  ;;  %2214 = vmatpush.msrb.mxu0 %v7060_v10  ;;  %v7063_v6 = vld [vmem:[#allocation12 + $0x28] sm:$0xff] }
 0x3c0   :  { %9412 = vst [vmem:[#allocation27_spill] sm:$0xff] %v7048_v63  ;;  %2254 = vmatpush.msra.mxu2 %v7063_v6  ;;  %v7066_v63 = vld [vmem:[#allocation12 + $0x2b0] sm:$0xff] }
 0x3c1   :  { %9413 = vst [vmem:[#allocation28_spill] sm:$0xff] %v7051_v26  ;;  %2310 = vmatpush.msra.mxu1 %v7066_v63  ;;  %v7069_v26 = vld [vmem:[#allocation12 + $0x2b8] sm:$0xff] }
 0x3c2   :  { %9414 = vst [vmem:[#allocation29_spill] sm:$0xff] %v7054_v48  ;;  %2350 = vmatpush.msrb.mxu3 %v7069_v26  ;;  %v7072_v48 = vld [vmem:[#allocation12] sm:$0xff] }
 0x3c3   :  { %9415 = vst [vmem:[#allocation30_spill] sm:$0xff] %v7057_v52  ;;  %2215 = vmatpush.msrb.mxu0 %v7072_v48  ;;  %v7075_v52 = vld [vmem:[#allocation12 + $0x8] sm:$0xff] }
 0x3c4   :  { %9416 = vst [vmem:[#allocation31_spill] sm:$0xff] %v7060_v10  ;;  %2255 = vmatpush.msra.mxu2 %v7075_v52  ;;  %v7078_v10 = vld [vmem:[#allocation12 + $0x290] sm:$0xff] }
 0x3c5   :  { %9417 = vst [vmem:[#allocation105_spill] sm:$0xff] %v7063_v6  ;;  %2311 = vmatpush.msra.mxu1 %v7078_v10  ;;  %v7081_v6 = vld [vmem:[#allocation12 + $0x298] sm:$0xff] }
 0x3c6   :  { %9418 = vst [vmem:[#allocation106_spill] sm:$0xff] %v7066_v63  ;;  %2351 = vmatpush.msrb.mxu3 %v7081_v6  ;;  %v7084_v63 = vld [vmem:[#allocation12 + $0x1f0] sm:$0xff] }
 0x3c7   :  { %9419 = vst [vmem:[#allocation107_spill] sm:$0xff] %v7069_v26  ;;  %2280 = vmatpush.msra.mxu0 %v7084_v63  ;;  %v7087_v26 = vld [vmem:[#allocation12 + $0x1f8] sm:$0xff] }
 0x3c8   :  { %9420 = vst [vmem:[#allocation108_spill] sm:$0xff] %v7072_v48  ;;  %2320 = vmatpush.msrb.mxu2 %v7087_v26  ;;  %v7090_v48 = vld [vmem:[#allocation12 + $0x270] sm:$0xff] }
 0x3c9   :  { %9421 = vst [vmem:[#allocation109_spill] sm:$0xff] %v7075_v52  ;;  %2312 = vmatpush.msra.mxu1 %v7090_v48  ;;  %v7093_v52 = vld [vmem:[#allocation12 + $0x278] sm:$0xff] }
 0x3ca   :  { %9422 = vst [vmem:[#allocation110_spill] sm:$0xff] %v7078_v10  ;;  %2352 = vmatpush.msrb.mxu3 %v7093_v52  ;;  %v7096_v10 = vld [vmem:[#allocation12 + $0x1d0] sm:$0xff] }
 0x3cb   :  { %9423 = vst [vmem:[#allocation111_spill] sm:$0xff] %v7081_v6  ;;  %2281 = vmatpush.msra.mxu0 %v7096_v10  ;;  %v7099_v6 = vld [vmem:[#allocation12 + $0x1d8] sm:$0xff] }
 0x3cc   :  { %9424 = vst [vmem:[#allocation112_spill] sm:$0xff] %v7084_v63  ;;  %2321 = vmatpush.msrb.mxu2 %v7099_v6  ;;  %v7102_v63 = vld [vmem:[#allocation12 + $0x250] sm:$0xff] }
 0x3cd   :  { %9425 = vst [vmem:[#allocation113_spill] sm:$0xff] %v7087_v26  ;;  %2313 = vmatpush.msra.mxu1 %v7102_v63  ;;  %v7105_v26 = vld [vmem:[#allocation12 + $0x258] sm:$0xff] }
 0x3ce   :  { %9426 = vst [vmem:[#allocation114_spill] sm:$0xff] %v7090_v48  ;;  %2353 = vmatpush.msrb.mxu3 %v7105_v26  ;;  %v7108_v48 = vld [vmem:[#allocation12 + $0x1b0] sm:$0xff] }
 0x3cf   :  { %9427 = vst [vmem:[#allocation115_spill] sm:$0xff] %v7093_v52  ;;  %2282 = vmatpush.msra.mxu0 %v7108_v48  ;;  %v7111_v52 = vld [vmem:[#allocation12 + $0x1b8] sm:$0xff] }
 0x3d0   :  { %9428 = vst [vmem:[#allocation116_spill] sm:$0xff] %v7096_v10  ;;  %2322 = vmatpush.msrb.mxu2 %v7111_v52  ;;  %v7114_v10 = vld [vmem:[#allocation12 + $0x230] sm:$0xff] }
 0x3d1   :  { %9429 = vst [vmem:[#allocation117_spill] sm:$0xff] %v7099_v6  ;;  %2314 = vmatpush.msra.mxu1 %v7114_v10  ;;  %v7117_v6 = vld [vmem:[#allocation12 + $0x238] sm:$0xff] }
 0x3d2   :  { %9430 = vst [vmem:[#allocation118_spill] sm:$0xff] %v7102_v63  ;;  %2354 = vmatpush.msrb.mxu3 %v7117_v6  ;;  %v7120_v63 = vld [vmem:[#allocation12 + $0x190] sm:$0xff] }
 0x3d3   :  { %9431 = vst [vmem:[#allocation119_spill] sm:$0xff] %v7105_v26  ;;  %2283 = vmatpush.msra.mxu0 %v7120_v63  ;;  %v7123_v26 = vld [vmem:[#allocation12 + $0x198] sm:$0xff] }
 0x3d4   :  { %9432 = vst [vmem:[#allocation120_spill] sm:$0xff] %v7108_v48  ;;  %2323 = vmatpush.msrb.mxu2 %v7123_v26  ;;  %v7126_v48 = vld [vmem:[#allocation12 + $0x210] sm:$0xff] }
 0x3d5   :  { %9433 = vst [vmem:[#allocation121_spill] sm:$0xff] %v7111_v52  ;;  %2315 = vmatpush.msra.mxu1 %v7126_v48  ;;  %v7129_v52 = vld [vmem:[#allocation12 + $0x218] sm:$0xff]  ;;  %v1899_v43 = vpop.f32.mrf.mxu3 }
 0x3d6   :  { %9434 = vst [vmem:[#allocation122_spill] sm:$0xff] %v7114_v10  ;;  %2355 = vmatpush.msrb.mxu3 %v7129_v52  ;;  %v7132_v10 = vld [vmem:[#allocation12 + $0x170] sm:$0xff] }
 0x3d7   :  { %9435 = vst [vmem:[#allocation123_spill] sm:$0xff] %v7117_v6  ;;  %2284 = vmatpush.msra.mxu0 %v7132_v10  ;;  %v7135_v6 = vld [vmem:[#allocation12 + $0x178] sm:$0xff] }
 0x3d8   :  { %9436 = vst [vmem:[#allocation124_spill] sm:$0xff] %v7120_v63  ;;  %2324 = vmatpush.msrb.mxu2 %v7135_v6  ;;  %v7138_v63 = vld [vmem:[#allocation12 + $0x150] sm:$0xff] }
 0x3d9   :  { %9437 = vst [vmem:[#allocation125_spill] sm:$0xff] %v7123_v26  ;;  %2285 = vmatpush.msra.mxu0 %v7138_v63  ;;  %v7141_v26 = vld [vmem:[#allocation12 + $0x158] sm:$0xff] }
 0x3da   :  { %9438 = vst [vmem:[#allocation126_spill] sm:$0xff] %v7126_v48  ;;  %2325 = vmatpush.msrb.mxu2 %v7141_v26  ;;  %v7144_v48 = vld [vmem:[#allocation12 + $0x130] sm:$0xff] }
 0x3db   :  { %9439 = vst [vmem:[#allocation127_spill] sm:$0xff] %v7129_v52  ;;  %2286 = vmatpush.msra.mxu0 %v7144_v48  ;;  %v7147_v52 = vld [vmem:[#allocation12 + $0x138] sm:$0xff] }
 0x3dc   :  { %9440 = vst [vmem:[#allocation128_spill] sm:$0xff] %v7132_v10  ;;  %2326 = vmatpush.msrb.mxu2 %v7147_v52  ;;  %v7150_v10 = vld [vmem:[#allocation12 + $0x110] sm:$0xff] }
 0x3dd   :  { %9441 = vst [vmem:[#allocation129_spill] sm:$0xff] %v7135_v6  ;;  %2287 = vmatpush.msra.mxu0 %v7150_v10  ;;  %v7153_v6 = vld [vmem:[#allocation12 + $0x118] sm:$0xff]  ;;  %v1979_v38 = vpop.f32.mrf.mxu3 }
 0x3de   :  { %9442 = vst [vmem:[#allocation130_spill] sm:$0xff] %v7138_v63  ;;  %2327 = vmatpush.msrb.mxu2 %v7153_v6  ;;  %v7156_v63 = vld [vmem:[#allocation12 + $0xf0] sm:$0xff] }
 0x3df   :  { %9443 = vst [vmem:[#allocation131_spill] sm:$0xff] %v7141_v26  ;;  %2288 = vmatpush.msra.mxu0 %v7156_v63  ;;  %v7159_v26 = vld [vmem:[#allocation12 + $0xf8] sm:$0xff] }
 0x3e0   :  { %9444 = vst [vmem:[#allocation132_spill] sm:$0xff] %v7144_v48  ;;  %2328 = vmatpush.msrb.mxu2 %v7159_v26  ;;  %v7162_v48 = vld [vmem:[#allocation12 + $0xd0] sm:$0xff] }
 0x3e1   :  { %9445 = vst [vmem:[#allocation133_spill] sm:$0xff] %v7147_v52  ;;  %2289 = vmatpush.msra.mxu0 %v7162_v48  ;;  %v7165_v52 = vld [vmem:[#allocation12 + $0xd8] sm:$0xff] }
 0x3e2   :  { %9446 = vst [vmem:[#allocation134_spill] sm:$0xff] %v7150_v10  ;;  %2329 = vmatpush.msrb.mxu2 %v7165_v52  ;;  %v7168_v10 = vld [vmem:[#allocation12 + $0xb0] sm:$0xff] }
 0x3e3   :  { %9447 = vst [vmem:[#allocation135_spill] sm:$0xff] %v7153_v6  ;;  %2290 = vmatpush.msra.mxu0 %v7168_v10  ;;  %v7171_v6 = vld [vmem:[#allocation12 + $0xb8] sm:$0xff] }
 0x3e4   :  { %9448 = vst [vmem:[#allocation136_spill] sm:$0xff] %v7156_v63  ;;  %2330 = vmatpush.msrb.mxu2 %v7171_v6  ;;  %v7174_v63 = vld [vmem:[#allocation12 + $0x90] sm:$0xff] }
 0x3e5   :  { %9449 = vst [vmem:[#allocation137_spill] sm:$0xff] %v7159_v26  ;;  %2291 = vmatpush.msra.mxu0 %v7174_v63  ;;  %v7177_v26 = vld [vmem:[#allocation12 + $0x98] sm:$0xff] }
 0x3e6   :  { %9450 = vst [vmem:[#allocation138_spill] sm:$0xff] %v7162_v48  ;;  %2331 = vmatpush.msrb.mxu2 %v7177_v26  ;;  %v7180_v48 = vld [vmem:[#allocation12 + $0x70] sm:$0xff] }
 0x3e7   :  { %9451 = vst [vmem:[#allocation139_spill] sm:$0xff] %v7165_v52  ;;  %2292 = vmatpush.msra.mxu0 %v7180_v48  ;;  %v7183_v52 = vld [vmem:[#allocation12 + $0x78] sm:$0xff]  ;;  %v1839_v32 = vpop.f32.mrf.mxu0 }
 0x3e8   :  { %9452 = vst [vmem:[#allocation140_spill] sm:$0xff] %v7168_v10  ;;  %2332 = vmatpush.msrb.mxu2 %v7183_v52  ;;  %v7186_v10 = vld [vmem:[#allocation12 + $0x50] sm:$0xff] }
 0x3e9   :  { %9453 = vst [vmem:[#allocation141_spill] sm:$0xff] %v7171_v6  ;;  %2293 = vmatpush.msra.mxu0 %v7186_v10  ;;  %v7189_v6 = vld [vmem:[#allocation12 + $0x58] sm:$0xff] }
 0x3ea   :  { %9454 = vst [vmem:[#allocation142_spill] sm:$0xff] %v7174_v63  ;;  %2333 = vmatpush.msrb.mxu2 %v7189_v6  ;;  %v7192_v63 = vld [vmem:[#allocation12 + $0x30] sm:$0xff] }
 0x3eb   :  { %9455 = vst [vmem:[#allocation143_spill] sm:$0xff] %v7177_v26  ;;  %2294 = vmatpush.msra.mxu0 %v7192_v63  ;;  %v7195_v26 = vld [vmem:[#allocation12 + $0x38] sm:$0xff] }
 0x3ec   :  { %9456 = vst [vmem:[#allocation144_spill] sm:$0xff] %v7180_v48  ;;  %2334 = vmatpush.msrb.mxu2 %v7195_v26  ;;  %v7198_v48 = vld [vmem:[#allocation12 + $0x10] sm:$0xff] }
 0x3ed   :  { %9457 = vst [vmem:[#allocation145_spill] sm:$0xff] %v7183_v52  ;;  %2295 = vmatpush.msra.mxu0 %v7198_v48  ;;  %v7201_v52 = vld [vmem:[#allocation12 + $0x18] sm:$0xff]  ;;  %v1879_v33 = vpop.f32.mrf.mxu2 }
 0x3ee   :  { %9458 = vst [vmem:[#allocation146_spill] sm:$0xff] %v7186_v10  ;;  %2335 = vmatpush.msrb.mxu2 %v7201_v52  ;;  %v1859_v10 = vpop.f32.mrf.mxu1 }
 0x3ef   :  { %9459 = vst [vmem:[#allocation147_spill] sm:$0xff] %v7189_v6  ;;  %v1840_v6 = vadd.f32 %v1839_v32, %v9330_v25 }
 0x3f0   :  { %9460 = vst [vmem:[#allocation148_spill] sm:$0xff] %v7192_v63 }
 0x3f1   :  { %9461 = vst [vmem:[#allocation149_spill] sm:$0xff] %v7195_v26  ;;  %v1860_v12 = vadd.f32 %v1859_v10, %v1840_v6  ;;  %v1880_v26 = vadd.f32 %v1879_v33, %v9331_v57 }
 0x3f2   :  { %9462 = vst [vmem:[#allocation150_spill] sm:$0xff] %v7198_v48  ;;  %v2047_v48 = vld [vmem:[#allocation2 + $0x20] sm:$0x3] }
 0x3f3   :  { %9463 = vst [vmem:[#allocation151_spill] sm:$0xff] %v7201_v52  ;;  %v3717_v63 = vmul.f32 -1.442695, %v1860_v12  ;;  %v1900_v40 = vadd.f32 %v1899_v43, %v1880_v26  ;;  %v1919_v12 = vpop.f32.mrf.mxu0 }
 0x3f5   :  { %3869 = vpow2.f32 %v3717_v63  ;;  %v3718_v30 = vmul.f32 -1.442695, %v1900_v40  ;;  %v1920_v40 = vadd.f32 %v1919_v12, %v5725_v19 }
 0x3f6   :  { %v1939_v31 = vpop.f32.mrf.mxu1  ;;  %v1959_v0 = vpop.f32.mrf.mxu2 }
 0x3f7   :  { %3871 = vpow2.f32 %v3718_v30  ;;  %v1960_v25 = vadd.f32 %v1959_v0, %v9332_v27 }
 0x3f8   :  { %v2127_v33 = vpop.f32.mrf.mxu3 }
 0x3f9   :  { %v1980_v10 = vadd.f32 %v1979_v38, %v1960_v25 }
 0x3fb   :  { %v3870_v1 = vpop.eup %3869  ;;  %v3719_v43 = vmul.f32 -1.442695, %v1980_v10 }
 0x3fc   :  { %v1985_v52 = vadd.f32 1.0, %v3870_v1 }
 0x3fd   :  { %v3872_v6 = vpop.eup %3871 }
 0x3fe   :  { %v2087_v39 = vpop.f32.mrf.mxu1  ;;  %3873 = vrcp.f32 %v1985_v52  ;;  %v2004_v63 = vadd.f32 1.0, %v3872_v6  ;;  %v1997_v6 = vand.u32 2147483648, %v1985_v52  ;;  %vm1991_vm7 = vweird.f32 %v1985_v52 }
 0x3ff   :  { %v2131_v46 = vadd.f32 %v2087_v39, %v2047_v48  ;;  %v2049_v39 = vld [vmem:[#allocation2 + $0x38] sm:$0x3]  ;;  %v1995_v19 = vand.u32 2147483647, %v1985_v52 }
 0x400   :  { %v2133_v1 = vadd.f32 %v2127_v33, %v2049_v39  ;;  %v2016_v33 = vand.u32 2147483648, %v2004_v63  ;;  %v2046_v39 = vld [vmem:[#allocation2 + $0x8] sm:$0x3]  ;;  %vm2010_vm10 = vweird.f32 %v2004_v63 }
 0x401   :  { %v3721_v32 = vmul.f32 -1.442695, %v2131_v46  ;;  %v1940_v46 = vadd.f32 %v1939_v31, %v1920_v40  ;;  %v2014_v31 = vand.u32 2147483647, %v2004_v63  ;;  %vm1996_vm11 = vcmp.eq.f32.partialorder %v1995_v19, 8.507059e+37 }
 0x402   :  { %v3722_v0 = vmul.f32 -1.442695, %v2133_v1 }
 0x403   :  { %3875 = vpow2.f32 %v3721_v32  ;;  %vm2015_vm13 = vcmp.eq.f32.partialorder %v2014_v31, 8.507059e+37 }
 0x404   :  { %v3874_v26 = vpop.eup %3873  ;;  %3877 = vrcp.f32 %v2004_v63 }
 0x405   :  { %v1987_v48 = vmul.f32 %v3874_v26, %v1985_v52  ;;  %3879 = vpow2.f32 %v3719_v43  ;;  %vm1992_vm6 = vweird.f32 %v3874_v26 }
 0x406   :  { %3881 = vtanh.f32 %v1940_v46  ;;  %vm7210_vm8 = vmor %vm1991_vm7, %vm1992_vm6 }
 0x407   :  { %v1988_v30 = vsub.f32 1.0, %v1987_v48  ;;  %3883 = vpow2.f32 %v3722_v0 }
 0x409   :  { %v3876_v57 = vpop.eup %3875  ;;  %v1989_v59 = vmul.f32 %v3874_v26, %v1988_v30  ;;  %v2017_v30 = vor.u32 1.1754944e-38, %v2016_v33 }
 0x40a   :  { %v3878_v27 = vpop.eup %3877  ;;  %v7208_v32 = vadd.f32 1.0, %v3876_v57 }
 0x40b   :  { %v3880_v15 = vpop.eup %3879  ;;  %v2006_v25 = vmul.f32 %v3878_v27, %v2004_v63  ;;  %v1990_v38 = vadd.f32 %v3874_v26, %v1989_v59  ;;  %vm2011_vm9 = vweird.f32 %v3878_v27  ;;  %v2067_v59 = vpop.f32.mrf.mxu0 }
 0x40c   :  { %v2024_v10 = vadd.f32 1.0, %v3880_v15  ;;  %v1998_v15 = vor.u32 1.1754944e-38, %v1997_v6  ;;  %v2130_v48 = vadd.f32 %v2067_v59, %v2046_v39  ;;  %v3882_v1 = vpop.eup %3881  ;;  %vm2012_vm12 = vmor %vm2010_vm10, %vm2011_vm9  ;;  %vm2162_vm3 = vweird.f32 %v7208_v32 }
 0x40d   :  { %v2007_v12 = vsub.f32 1.0, %v2006_v25  ;;  %v1994_v57 = vsel %vm7210_vm8, %v3874_v26, %v1990_v38  ;;  %v3884_v0 = vpop.eup %3883 }
 0x40e   :  { %3885 = vrcp.f32 %v2024_v10  ;;  %v1999_v46 = vsel %vm1996_vm11, %v1998_v15, %v1994_v57  ;;  %v2036_v31 = vand.u32 2147483648, %v2024_v10  ;;  %v2034_v57 = vand.u32 2147483647, %v2024_v10 }
 0x40f   :  { %v2008_v40 = vmul.f32 %v3878_v27, %v2007_v12  ;;  %3887 = vrcp.f32 %v7208_v32  ;;  %v3720_v12 = vmul.f32 -1.442695, %v2130_v48  ;;  %v2041_v6 = vmul.f32 %v3882_v1, %v1999_v46 }
 0x410   :  { %vm2030_vm15 = vweird.f32 %v2024_v10  ;;  %vm2035_vm1 = vcmp.eq.f32.partialorder %v2034_v57, 8.507059e+37 }
 0x411   :  { %v2009_v52 = vadd.f32 %v3878_v27, %v2008_v40  ;;  %3889 = vpow2.f32 %v3720_v12  ;;  %v7224_v40 = vadd.f32 1.0, %v3884_v0  ;;  %v2107_v0 = vpop.f32.mrf.mxu2 }
 0x413   :  { %v2013_v25 = vsel %vm2012_vm12, %v3878_v27, %v2009_v52  ;;  %v2037_v52 = vor.u32 1.1754944e-38, %v2036_v31  ;;  %vm2182_vm11 = vweird.f32 %v7224_v40 }
 0x414   :  { %v3886_v53 = vpop.eup %3885  ;;  %v2018_v43 = vsel %vm2015_vm13, %v2017_v30, %v2013_v25  ;;  %v2048_v25 = vld [vmem:[#allocation2 + $0x28] sm:$0x3] }
 0x415   :  { %v7217_v26 = vpop.eup %3887  ;;  %v2040_v38 = vmul.f32 %v2018_v43, %v6633_v54  ;;  %v2026_v7 = vmul.f32 %v3886_v53, %v2024_v10  ;;  %vm2031_vm14 = vweird.f32 %v3886_v53  ;;  %v2132_v12 = vadd.f32 %v2107_v0, %v2048_v25  ;;  %v7366_v0 = vld [vmem:[#allocation9 + $0xa0] sm:$0xff]  ;;  %v7370_v25 = vld [vmem:[#allocation9 + $0xb0] sm:$0xff] }
 0x416   :  { %v2158_v33 = vmul.f32 %v7217_v26, %v7208_v32  ;;  %vm2032_vm0 = vmor %vm2030_vm15, %vm2031_vm14  ;;  %vm2163_vm2 = vweird.f32 %v7217_v26 }
 0x417   :  { %v7220_v19 = vadd.f32 %v2041_v6, %v2040_v38  ;;  %v2027_v63 = vsub.f32 1.0, %v2026_v7  ;;  %v3890_v59 = vpop.eup %3889  ;;  %v2168_v6 = vand.u32 2147483648, %v7208_v32  ;;  %vm7244_vm4 = vmor %vm2162_vm3, %vm2163_vm2 }
 0x418   :  { %v2137_v15 = vadd.f32 1.0, %v3890_v59  ;;  %v2159_v39 = vsub.f32 1.0, %v2158_v33  ;;  %v9479_v33 = vld [vmem:[#allocation55_spill] sm:$0xff] }
 0x419   :  { %3891 = vtanh.f32 %v7220_v19  ;;  %v2028_v27 = vmul.f32 %v3886_v53, %v2027_v63 }
 0x41a   :  { %3893 = vrcp.f32 %v7224_v40  ;;  %v2160_v46 = vmul.f32 %v7217_v26, %v2159_v39  ;;  %vm2143_vm6 = vweird.f32 %v2137_v15 }
 0x41b   :  { %v2029_v54 = vadd.f32 %v3886_v53, %v2028_v27  ;;  %3895 = vrcp.f32 %v2137_v15  ;;  %v2147_v27 = vand.u32 2147483647, %v2137_v15 }
 0x41c   :  { %v2161_v38 = vadd.f32 %v7217_v26, %v2160_v46  ;;  %3897 = vtanh.f32 %v2132_v12  ;;  %v9473_v46 = vld [vmem:[#allocation43_spill] sm:$0xff] }
 0x41d   :  { %v2033_v7 = vsel %vm2032_vm0, %v3886_v53, %v2029_v54  ;;  %vm2148_vm9 = vcmp.eq.f32.partialorder %v2147_v27, 8.507059e+37  ;;  %v7374_v12 = vld [vmem:[#allocation9 + $0x80] sm:$0xff] }
 0x41e   :  { %v2038_v1 = vsel %vm2035_vm1, %v2037_v52, %v2033_v7  ;;  %v2165_v31 = vsel %vm7244_vm4, %v7217_v26, %v2161_v38  ;;  %v7350_v52 = vld [vmem:[#allocation9 + $0xe0] sm:$0xff]  ;;  %v7378_v38 = vld [vmem:[#allocation9 + $0x90] sm:$0xff] }
 0x41f   :  { %v3892_v48 = vpop.eup %3891  ;;  %v9481_v27 = vld [vmem:[#allocation59_spill] sm:$0xff] }
 0x420   :  { %v2044_v30 = vmul.f32 %v3892_v48, %v2038_v1  ;;  %v7229_v10 = vpop.eup %3893  ;;  %v7354_v48 = vld [vmem:[#allocation9 + $0xf0] sm:$0xff]  ;;  %v7358_v1 = vld [vmem:[#allocation9 + $0xc0] sm:$0xff] }
 0x421   :  { %v3896_v53 = vpop.eup %3895  ;;  %v2178_v63 = vmul.f32 %v7229_v10, %v7224_v40  ;;  %vm2183_vm10 = vweird.f32 %v7229_v10 }
 0x422   :  { %2045 = vst [vmem:[#allocation3 + $0x6] sm:$0x3] %v2044_v30  ;;  %2236 = vmatmul.f32.vlgmr.msrb.gmra.mxu1 %v2044_v30  ;;  %2276 = vmatmul.f32.vlgmr.msra.gmra.mxu3 %v2044_v30  ;;  %v2139_v43 = vmul.f32 %v3896_v53, %v2137_v15  ;;  %vm2144_vm5 = vweird.f32 %v3896_v53  ;;  %vm2184_vm12 = vmor %vm2182_vm11, %vm2183_vm10 }
 0x423   :  { %2448 = vmatpush.msrb.mxu1 %v6653_v20  ;;  %2488 = vmatpush.msra.mxu3 %v6656_v41  ;;  %v2166_v41 = vand.u32 2147483647, %v7208_v32  ;;  %v2179_v32 = vsub.f32 1.0, %v2178_v63  ;;  %vm2145_vm8 = vmor %vm2143_vm6, %vm2144_vm5  ;;  %v7382_v63 = vld [vmem:[#allocation9 + $0x60] sm:$0xff] }
 0x424   :  { %v2140_v20 = vsub.f32 1.0, %v2139_v43  ;;  %v9476_v43 = vld [vmem:[#allocation50_spill] sm:$0xff] }
 0x425   :  { %2449 = vmatpush.msrb.mxu1 %v6666_v16  ;;  %2489 = vmatpush.msra.mxu3 %v6669_v61  ;;  %v2149_v16 = vand.u32 2147483648, %v2137_v15  ;;  %vm2167_vm7 = vcmp.eq.f32.partialorder %v2166_v41, 8.507059e+37  ;;  %v2180_v26 = vmul.f32 %v7229_v10, %v2179_v32  ;;  %v7386_v41 = vld [vmem:[#allocation9 + $0x70] sm:$0xff]  ;;  %v9483_v32 = vld [vmem:[#allocation63_spill] sm:$0xff] }
 0x426   :  { %v2141_v61 = vmul.f32 %v3896_v53, %v2140_v20  ;;  %v9478_v20 = vld [vmem:[#allocation54_spill] sm:$0xff] }
 0x427   :  { %2450 = vmatpush.msrb.mxu1 %v6676_v35  ;;  %2490 = vmatpush.msra.mxu3 %v6679_v28  ;;  %v2169_v35 = vor.u32 1.1754944e-38, %v2168_v6  ;;  %v2150_v57 = vor.u32 1.1754944e-38, %v2149_v16  ;;  %v9477_v6 = vld [vmem:[#allocation51_spill] sm:$0xff] }
 0x428   :  { %v2142_v28 = vadd.f32 %v3896_v53, %v2141_v61  ;;  %v7390_v16 = vld [vmem:[#allocation9 + $0x40] sm:$0xff] }
 0x429   :  { %2451 = vmatpush.msrb.mxu1 %v6683_v24  ;;  %2491 = vmatpush.msra.mxu3 %v6686_v55  ;;  %v2170_v59 = vsel %vm2167_vm7, %v2169_v35, %v2165_v31  ;;  %v2193_v24 = vrot.slane %v6703_v8, 6  ;;  %v3898_v55 = vpop.eup %3897  ;;  %v9468_v8 = vld [vmem:[#allocation36_spill] sm:$0xff]  ;;  %v9480_v61 = vld [vmem:[#allocation58_spill] sm:$0xff] }
 0x42a   :  { %2316 = vmatmul.f32.vlgmr.msra.gmra.mxu1 %v2044_v30  ;;  %2356 = vmatmul.f32.vlgmr.msrb.gmra.mxu3 %v2044_v30  ;;  %v2146_v54 = vsel %vm2145_vm8, %v3896_v53, %v2142_v28  ;;  %v7362_v30 = vld [vmem:[#allocation9 + $0xd0] sm:$0xff]  ;;  %v9475_v53 = vld [vmem:[#allocation47_spill] sm:$0xff]  ;;  %v9482_v31 = vld [vmem:[#allocation62_spill] sm:$0xff] }
 0x42b   :  { %2452 = vmatpush.msrb.mxu1 %v6691_v50  ;;  %2492 = vmatpush.msra.mxu3 %v6694_v17  ;;  %v2151_v15 = vsel %vm2148_vm9, %v2150_v57, %v2146_v54  ;;  %v2195_v39 = vmul.f32 %v2193_v24, %v2170_v59  ;;  %v2181_v17 = vadd.f32 %v7229_v10, %v2180_v26  ;;  %v7396_v35 = vld [vmem:[#allocation9 + $0x20] sm:$0xff] }
 0x42c   :  { %v2196_v7 = vmul.f32 %v3898_v55, %v2151_v15  ;;  %v9484_v28 = vld [vmem:[#allocation66_spill] sm:$0xff]  ;;  %v9485_v57 = vld [vmem:[#allocation67_spill] sm:$0xff] }
 0x42d   :  { %2453 = vmatpush.msrb.mxu1 %v6697_v44  ;;  %2493 = vmatpush.msra.mxu3 %v6700_v36  ;;  %v2188_v44 = vand.u32 2147483648, %v7224_v40  ;;  %v2186_v36 = vand.u32 2147483647, %v7224_v40  ;;  %v7342_v40 = vld [vmem:[#allocation9 + $0x100] sm:$0xff] }
 0x42e   :  { %v7261_v50 = vadd.f32 %v2196_v7, %v2195_v39  ;;  %v7402_v59 = vld [vmem:[#allocation9] sm:$0xff]  ;;  %v9491_v39 = vld [vmem:[#allocation21_spill] sm:$0xff] }
 0x42f   :  { %2454 = vmatpush.msrb.mxu1 %v6707_v13  ;;  %2494 = vmatpush.msra.mxu3 %v6710_v23  ;;  %v2185_v13 = vsel %vm2184_vm12, %v7229_v10, %v2181_v17  ;;  %v2189_v23 = vor.u32 1.1754944e-38, %v2188_v44  ;;  %vm2187_vm13 = vcmp.eq.f32.partialorder %v2186_v36, 8.507059e+37  ;;  %v9474_v10 = vld [vmem:[#allocation46_spill] sm:$0xff]  ;;  %v9487_v24 = vld [vmem:[#allocation71_spill] sm:$0xff] }
 0x430   :  { %3899 = vtanh.f32 %v7261_v50  ;;  %v9486_v54 = vld [vmem:[#allocation70_spill] sm:$0xff]  ;;  %v9489_v26 = vld [vmem:[#allocation75_spill] sm:$0xff] }
 0x431   :  { %2455 = vmatpush.msrb.mxu1 %v6717_v56  ;;  %2495 = vmatpush.msra.mxu3 %v6720_v42  ;;  %v2190_v42 = vsel %vm2187_vm13, %v2189_v23, %v2185_v13  ;;  %v9488_v55 = vld [vmem:[#allocation74_spill] sm:$0xff]  ;;  %v9492_v7 = vld [vmem:[#allocation79_spill] sm:$0xff]  ;;  %v9498_v23 = vld [vmem:[#allocation40_spill] sm:$0xff] }
 0x432   :  { %v9490_v15 = vld [vmem:[#allocation78_spill] sm:$0xff]  ;;  %v9495_v36 = vld [vmem:[#allocation83_spill] sm:$0xff] }
 0x433   :  { %2456 = vmatpush.msrb.mxu1 %v6724_v21  ;;  %2496 = vmatpush.msra.mxu3 %v6727_v60  ;;  %v7286_v60 = vld [vmem:[#allocation9 + $0x1e0] sm:$0xff] }
 0x434   :  { %v9493_v17 = vld [vmem:[#allocation82_spill] sm:$0xff]  ;;  %v9497_v13 = vld [vmem:[#allocation23_spill] sm:$0xff] }
 0x435   :  { %2457 = vmatpush.msrb.mxu1 %v9468_v8  ;;  %2497 = vmatpush.msra.mxu3 %v6733_v2  ;;  %v7289_v2 = vld [vmem:[#allocation9 + $0x1f0] sm:$0xff]  ;;  %v9494_v44 = vld [vmem:[#allocation22_spill] sm:$0xff] }
 0x436   :  { %v3900_v56 = vpop.eup %3899  ;;  %v9496_v8 = vld [vmem:[#allocation86_spill] sm:$0xff] }
 0x437   :  { %2458 = vmatpush.msrb.mxu1 %v6736_v37  ;;  %2498 = vmatpush.msra.mxu3 %v6739_v29  ;;  %v7280_v21 = vmul.f32 %v3900_v56, %v2190_v42  ;;  %v7297_v37 = vld [vmem:[#allocation9 + $0x1d0] sm:$0xff]  ;;  %v7302_v29 = vld [vmem:[#allocation9 + $0x1a0] sm:$0xff] }
 0x438   :  { %v9499_v56 = vld [vmem:[#allocation41_spill] sm:$0xff]  ;;  %v9500_v42 = vld [vmem:[#allocation87_spill] sm:$0xff] }
 0x439   :  { %2459 = vmatpush.msrb.mxu1 %v6744_v9  ;;  %2499 = vmatpush.msra.mxu3 %v6747_v22  ;;  %v7294_v22 = vld [vmem:[#allocation9 + $0x1c0] sm:$0xff]  ;;  %v7305_v9 = vld [vmem:[#allocation9 + $0x1b0] sm:$0xff] }
 0x43a   :  { %2216 = vmatmul.f32.vlgmr.msrb.gmra.mxu0 %v7280_v21  ;;  %2256 = vmatmul.f32.vlgmr.msra.gmra.mxu2 %v7280_v21 }
 0x43b   :  { %2460 = vmatpush.msrb.mxu1 %v6754_v34  ;;  %2500 = vmatpush.msra.mxu3 %v6757_v62  ;;  %v7310_v34 = vld [vmem:[#allocation9 + $0x180] sm:$0xff]  ;;  %v7313_v62 = vld [vmem:[#allocation9 + $0x190] sm:$0xff] }
 0x43c   :  { %2428 = vmatpush.msrb.mxu0 %v7286_v60  ;;  %2468 = vmatpush.msra.mxu2 %v7289_v2 }
 0x43d   :  { %2461 = vmatpush.msrb.mxu1 %v6762_v51  ;;  %2501 = vmatpush.msra.mxu3 %v6765_v18  ;;  %v7318_v51 = vld [vmem:[#allocation9 + $0x160] sm:$0xff]  ;;  %v7322_v18 = vld [vmem:[#allocation9 + $0x170] sm:$0xff] }
 0x43e   :  { %2429 = vmatpush.msrb.mxu0 %v7294_v22  ;;  %2469 = vmatpush.msra.mxu2 %v7297_v37 }
 0x43f   :  { %2462 = vmatpush.msrb.mxu1 %v6770_v11  ;;  %2502 = vmatpush.msra.mxu3 %v6773_v14  ;;  %v7326_v11 = vld [vmem:[#allocation9 + $0x140] sm:$0xff]  ;;  %v7330_v14 = vld [vmem:[#allocation9 + $0x150] sm:$0xff] }
 0x440   :  { %2430 = vmatpush.msrb.mxu0 %v7302_v29  ;;  %2470 = vmatpush.msra.mxu2 %v7305_v9 }
 0x441   :  { %2463 = vmatpush.msrb.mxu1 %v6778_v47  ;;  %2503 = vmatpush.msra.mxu3 %v6781_v5  ;;  %v7334_v47 = vld [vmem:[#allocation9 + $0x120] sm:$0xff]  ;;  %v7338_v5 = vld [vmem:[#allocation9 + $0x130] sm:$0xff] }
 0x442   :  { %2431 = vmatpush.msrb.mxu0 %v7310_v34  ;;  %2471 = vmatpush.msra.mxu2 %v7313_v62 }
 0x443   :  { %2296 = vmatmul.f32.vlgmr.msra.gmra.mxu0 %v7280_v21  ;;  %2336 = vmatmul.f32.vlgmr.msrb.gmra.mxu2 %v7280_v21 }
 0x444   :  { %2432 = vmatpush.msrb.mxu0 %v7318_v51  ;;  %2464 = vmatmul.f32.vlgmr.msrb.gmra.mxu1 %v7280_v21 }
 0x445   :  { %2472 = vmatpush.msra.mxu2 %v7322_v18  ;;  %2504 = vmatmul.f32.vlgmr.msra.gmra.mxu3 %v7280_v21 }
 0x446   :  { %2433 = vmatpush.msrb.mxu0 %v7326_v11  ;;  %2617 = vmatpush.msra.mxu1 %v6791_v4  ;;  %v7346_v4 = vld [vmem:[#allocation9 + $0x110] sm:$0xff] }
 0x447   :  { %2473 = vmatpush.msra.mxu2 %v7330_v14  ;;  %2657 = vmatpush.msrb.mxu3 %v6795_v58  ;;  %v9469_v58 = vld [vmem:[#allocation37_spill] sm:$0xff] }
 0x448   :  { %2434 = vmatpush.msrb.mxu0 %v7334_v47  ;;  %2618 = vmatpush.msra.mxu1 %v6799_v45  ;;  %v9470_v45 = vld [vmem:[#allocation38_spill] sm:$0xff] }
 0x449   :  { %2474 = vmatpush.msra.mxu2 %v7338_v5  ;;  %2658 = vmatpush.msrb.mxu3 %v6803_v3  ;;  %v9471_v3 = vld [vmem:[#allocation39_spill] sm:$0xff] }
 0x44a   :  { %2435 = vmatpush.msrb.mxu0 %v7342_v40  ;;  %2619 = vmatpush.msra.mxu1 %v6807_v49  ;;  %v9472_v49 = vld [vmem:[#allocation42_spill] sm:$0xff] }
 0x44b   :  { %2475 = vmatpush.msra.mxu2 %v7346_v4  ;;  %2659 = vmatpush.msrb.mxu3 %v9469_v58  ;;  %v9502_v58 = vld [vmem:[#allocation90_spill] sm:$0xff] }
 0x44c   :  { %2436 = vmatpush.msrb.mxu0 %v7350_v52  ;;  %2620 = vmatpush.msra.mxu1 %v9470_v45  ;;  %v9503_v45 = vld [vmem:[#allocation45_spill] sm:$0xff] }
 0x44d   :  { %2476 = vmatpush.msra.mxu2 %v7354_v48  ;;  %2660 = vmatpush.msrb.mxu3 %v9471_v3  ;;  %v9504_v3 = vld [vmem:[#allocation91_spill] sm:$0xff] }
 0x44e   :  { %2437 = vmatpush.msrb.mxu0 %v7358_v1  ;;  %2621 = vmatpush.msra.mxu1 %v9472_v49  ;;  %v9505_v49 = vld [vmem:[#allocation48_spill] sm:$0xff] }
 0x44f   :  { %2477 = vmatpush.msra.mxu2 %v7362_v30  ;;  %2661 = vmatpush.msrb.mxu3 %v9473_v46  ;;  %v9506_v46 = vld [vmem:[#allocation94_spill] sm:$0xff] }
 0x450   :  { %2438 = vmatpush.msrb.mxu0 %v7366_v0  ;;  %2622 = vmatpush.msra.mxu1 %v9474_v10  ;;  %v9507_v10 = vld [vmem:[#allocation49_spill] sm:$0xff] }
 0x451   :  { %2478 = vmatpush.msra.mxu2 %v7370_v25  ;;  %2662 = vmatpush.msrb.mxu3 %v9475_v53  ;;  %v9508_v53 = vld [vmem:[#allocation95_spill] sm:$0xff] }
 0x452   :  { %2439 = vmatpush.msrb.mxu0 %v7374_v12  ;;  %2623 = vmatpush.msra.mxu1 %v9476_v43  ;;  %v9509_v43 = vld [vmem:[#allocation52_spill] sm:$0xff] }
 0x453   :  { %2479 = vmatpush.msra.mxu2 %v7378_v38  ;;  %2663 = vmatpush.msrb.mxu3 %v9477_v6  ;;  %v9510_v6 = vld [vmem:[#allocation98_spill] sm:$0xff] }
 0x454   :  { %2440 = vmatpush.msrb.mxu0 %v7382_v63  ;;  %2624 = vmatpush.msra.mxu1 %v9478_v20  ;;  %v9511_v20 = vld [vmem:[#allocation53_spill] sm:$0xff] }
 0x455   :  { %2480 = vmatpush.msra.mxu2 %v7386_v41  ;;  %2664 = vmatpush.msrb.mxu3 %v9479_v33  ;;  %v9512_v33 = vld [vmem:[#allocation99_spill] sm:$0xff] }
 0x456   :  { %2441 = vmatpush.msrb.mxu0 %v7390_v16  ;;  %2625 = vmatpush.msra.mxu1 %v9480_v61  ;;  %v9513_v61 = vld [vmem:[#allocation56_spill] sm:$0xff] }
 0x457   :  { %2481 = vmatpush.msra.mxu2 %v9481_v27  ;;  %2665 = vmatpush.msrb.mxu3 %v9482_v31  ;;  %v9514_v27 = vld [vmem:[#allocation57_spill] sm:$0xff]  ;;  %v9515_v31 = vld [vmem:[#allocation102_spill] sm:$0xff] }
 0x458   :  { %2442 = vmatpush.msrb.mxu0 %v7396_v35  ;;  %2626 = vmatpush.msra.mxu1 %v9483_v32  ;;  %v9516_v32 = vld [vmem:[#allocation60_spill] sm:$0xff] }
 0x459   :  { %2482 = vmatpush.msra.mxu2 %v9484_v28  ;;  %2666 = vmatpush.msrb.mxu3 %v9485_v57  ;;  %v9517_v28 = vld [vmem:[#allocation61_spill] sm:$0xff]  ;;  %v9518_v57 = vld [vmem:[#allocation64_spill] sm:$0xff] }
 0x45a   :  { %2443 = vmatpush.msrb.mxu0 %v7402_v59  ;;  %2627 = vmatpush.msra.mxu1 %v9486_v54  ;;  %v9519_v54 = vld [vmem:[#allocation65_spill] sm:$0xff] }
 0x45b   :  { %2483 = vmatpush.msra.mxu2 %v9487_v24  ;;  %2444 = vmatmul.f32.vlgmr.msrb.gmra.mxu0 %v7280_v21  ;;  %v9520_v24 = vld [vmem:[#allocation68_spill] sm:$0xff] }
 0x45c   :  { %2484 = vmatmul.f32.vlgmr.msra.gmra.mxu2 %v7280_v21  ;;  %2667 = vmatpush.msrb.mxu3 %v9488_v55  ;;  %v9501_v21 = vld [vmem:[#allocation44_spill] sm:$0xff]  ;;  %v9521_v55 = vld [vmem:[#allocation69_spill] sm:$0xff] }
 0x45d   :  { %2628 = vmatpush.msra.mxu1 %v9489_v26  ;;  %2597 = vmatpush.msra.mxu0 %v9490_v15  ;;  %v9522_v26 = vld [vmem:[#allocation72_spill] sm:$0xff]  ;;  %v9523_v15 = vld [vmem:[#allocation73_spill] sm:$0xff] }
 0x45e   :  { %2668 = vmatpush.msrb.mxu3 %v9491_v39  ;;  %2637 = vmatpush.msrb.mxu2 %v9492_v7  ;;  %v9524_v39 = vld [vmem:[#allocation76_spill] sm:$0xff]  ;;  %v9525_v7 = vld [vmem:[#allocation77_spill] sm:$0xff] }
 0x45f   :  { %2629 = vmatpush.msra.mxu1 %v9493_v17  ;;  %2598 = vmatpush.msra.mxu0 %v9494_v44  ;;  %v9526_v17 = vld [vmem:[#allocation80_spill] sm:$0xff]  ;;  %v9527_v44 = vld [vmem:[#allocation81_spill] sm:$0xff] }
 0x460   :  { %2669 = vmatpush.msrb.mxu3 %v9495_v36  ;;  %2638 = vmatpush.msrb.mxu2 %v9496_v8  ;;  %v9528_v36 = vld [vmem:[#allocation84_spill] sm:$0xff]  ;;  %v9529_v8 = vld [vmem:[#allocation85_spill] sm:$0xff] }
 0x461   :  { %2630 = vmatpush.msra.mxu1 %v9497_v13  ;;  %2599 = vmatpush.msra.mxu0 %v9498_v23  ;;  %v9530_v13 = vld [vmem:[#allocation88_spill] sm:$0xff]  ;;  %v9531_v23 = vld [vmem:[#allocation89_spill] sm:$0xff] }
 0x462   :  { %2670 = vmatpush.msrb.mxu3 %v9499_v56  ;;  %2639 = vmatpush.msrb.mxu2 %v9500_v42  ;;  %v9532_v56 = vld [vmem:[#allocation92_spill] sm:$0xff]  ;;  %v9533_v42 = vld [vmem:[#allocation93_spill] sm:$0xff] }
 0x463   :  { %2631 = vmatpush.msra.mxu1 %v9501_v21  ;;  %2600 = vmatpush.msra.mxu0 %v9502_v58  ;;  %v9534_v21 = vld [vmem:[#allocation96_spill] sm:$0xff]  ;;  %v9535_v58 = vld [vmem:[#allocation97_spill] sm:$0xff] }
 0x464   :  { %2671 = vmatpush.msrb.mxu3 %v9503_v45  ;;  %2640 = vmatpush.msrb.mxu2 %v9504_v3  ;;  %v9536_v45 = vld [vmem:[#allocation100_spill] sm:$0xff]  ;;  %v9537_v3 = vld [vmem:[#allocation101_spill] sm:$0xff] }
 0x465   :  { %2632 = vmatpush.msra.mxu1 %v9505_v49  ;;  %2601 = vmatpush.msra.mxu0 %v9506_v46  ;;  %v9538_v49 = vld [vmem:[#allocation103_spill] sm:$0xff]  ;;  %v9539_v46 = vld [vmem:[#allocation104_spill] sm:$0xff] }
 0x466   :  { %2672 = vmatpush.msrb.mxu3 %v9507_v10  ;;  %2641 = vmatpush.msrb.mxu2 %v9508_v53  ;;  %v9540_v10 = vld [vmem:[#allocation25_spill] sm:$0xff]  ;;  %v9541_v53 = vld [vmem:[#allocation24_spill] sm:$0xff] }
 0x467   :  { %2697 = vmatpush.msrb.mxu1 %v9509_v43  ;;  %2602 = vmatpush.msra.mxu0 %v9511_v20  ;;  %v9542_v43 = vld [vmem:[#allocation26_spill] sm:$0xff]  ;;  %v9544_v20 = vld [vmem:[#allocation28_spill] sm:$0xff] }
 0x468   :  { %2737 = vmatpush.msra.mxu3 %v9510_v6  ;;  %2642 = vmatpush.msrb.mxu2 %v9512_v33  ;;  %v9543_v6 = vld [vmem:[#allocation27_spill] sm:$0xff]  ;;  %v9545_v33 = vld [vmem:[#allocation29_spill] sm:$0xff] }
 0x469   :  { %2698 = vmatpush.msrb.mxu1 %v9513_v61  ;;  %2603 = vmatpush.msra.mxu0 %v9515_v31  ;;  %v9546_v61 = vld [vmem:[#allocation30_spill] sm:$0xff]  ;;  %v9548_v31 = vld [vmem:[#allocation105_spill] sm:$0xff] }
 0x46a   :  { %2738 = vmatpush.msra.mxu3 %v9514_v27  ;;  %2643 = vmatpush.msrb.mxu2 %v9516_v32  ;;  %v9547_v27 = vld [vmem:[#allocation31_spill] sm:$0xff]  ;;  %v9549_v32 = vld [vmem:[#allocation106_spill] sm:$0xff] }
 0x46b   :  { %2699 = vmatpush.msrb.mxu1 %v9517_v28  ;;  %2604 = vmatpush.msra.mxu0 %v9519_v54  ;;  %v9550_v28 = vld [vmem:[#allocation107_spill] sm:$0xff]  ;;  %v9552_v54 = vld [vmem:[#allocation109_spill] sm:$0xff] }
 0x46c   :  { %2739 = vmatpush.msra.mxu3 %v9518_v57  ;;  %2644 = vmatpush.msrb.mxu2 %v9520_v24  ;;  %v9551_v57 = vld [vmem:[#allocation108_spill] sm:$0xff]  ;;  %v9553_v24 = vld [vmem:[#allocation110_spill] sm:$0xff] }
 0x46d   :  { %2700 = vmatpush.msrb.mxu1 %v9521_v55  ;;  %2605 = vmatpush.msra.mxu0 %v9523_v15  ;;  %v9554_v55 = vld [vmem:[#allocation111_spill] sm:$0xff]  ;;  %v9556_v15 = vld [vmem:[#allocation113_spill] sm:$0xff] }
 0x46e   :  { %2740 = vmatpush.msra.mxu3 %v9522_v26  ;;  %2645 = vmatpush.msrb.mxu2 %v9524_v39  ;;  %v9555_v26 = vld [vmem:[#allocation112_spill] sm:$0xff]  ;;  %v9557_v39 = vld [vmem:[#allocation114_spill] sm:$0xff] }
 0x46f   :  { %2701 = vmatpush.msrb.mxu1 %v9525_v7  ;;  %2606 = vmatpush.msra.mxu0 %v9527_v44  ;;  %v9558_v7 = vld [vmem:[#allocation115_spill] sm:$0xff]  ;;  %v9560_v44 = vld [vmem:[#allocation117_spill] sm:$0xff] }
 0x470   :  { %2741 = vmatpush.msra.mxu3 %v9526_v17  ;;  %2646 = vmatpush.msrb.mxu2 %v9528_v36  ;;  %v9559_v17 = vld [vmem:[#allocation116_spill] sm:$0xff]  ;;  %v9561_v36 = vld [vmem:[#allocation118_spill] sm:$0xff] }
 0x471   :  { %2702 = vmatpush.msrb.mxu1 %v9529_v8  ;;  %2607 = vmatpush.msra.mxu0 %v9531_v23  ;;  %v9562_v8 = vld [vmem:[#allocation119_spill] sm:$0xff]  ;;  %v9564_v23 = vld [vmem:[#allocation121_spill] sm:$0xff] }
 0x472   :  { %2742 = vmatpush.msra.mxu3 %v9530_v13  ;;  %2647 = vmatpush.msrb.mxu2 %v9532_v56  ;;  %v9563_v13 = vld [vmem:[#allocation120_spill] sm:$0xff]  ;;  %v9565_v56 = vld [vmem:[#allocation122_spill] sm:$0xff] }
 0x473   :  { %2703 = vmatpush.msrb.mxu1 %v9533_v42  ;;  %2608 = vmatpush.msra.mxu0 %v9535_v58  ;;  %v9566_v42 = vld [vmem:[#allocation123_spill] sm:$0xff]  ;;  %v9568_v58 = vld [vmem:[#allocation125_spill] sm:$0xff] }
 0x474   :  { %2743 = vmatpush.msra.mxu3 %v9534_v21  ;;  %2648 = vmatpush.msrb.mxu2 %v9536_v45  ;;  %v9567_v21 = vld [vmem:[#allocation124_spill] sm:$0xff]  ;;  %v9569_v45 = vld [vmem:[#allocation126_spill] sm:$0xff] }
 0x475   :  { %2704 = vmatpush.msrb.mxu1 %v9537_v3  ;;  %2609 = vmatpush.msra.mxu0 %v9539_v46  ;;  %v9570_v3 = vld [vmem:[#allocation127_spill] sm:$0xff]  ;;  %v9572_v46 = vld [vmem:[#allocation129_spill] sm:$0xff] }
 0x476   :  { %2744 = vmatpush.msra.mxu3 %v9538_v49  ;;  %2649 = vmatpush.msrb.mxu2 %v9540_v10  ;;  %v9571_v49 = vld [vmem:[#allocation128_spill] sm:$0xff]  ;;  %v9573_v10 = vld [vmem:[#allocation130_spill] sm:$0xff] }
 0x477   :  { %2705 = vmatpush.msrb.mxu1 %v9541_v53  ;;  %2610 = vmatpush.msra.mxu0 %v9543_v6  ;;  %v9574_v53 = vld [vmem:[#allocation131_spill] sm:$0xff]  ;;  %v9576_v6 = vld [vmem:[#allocation133_spill] sm:$0xff] }
 0x478   :  { %2745 = vmatpush.msra.mxu3 %v9542_v43  ;;  %2650 = vmatpush.msrb.mxu2 %v9544_v20  ;;  %v9575_v43 = vld [vmem:[#allocation132_spill] sm:$0xff]  ;;  %v9577_v20 = vld [vmem:[#allocation134_spill] sm:$0xff] }
 0x479   :  { %2706 = vmatpush.msrb.mxu1 %v9545_v33  ;;  %2611 = vmatpush.msra.mxu0 %v9547_v27  ;;  %v9578_v33 = vld [vmem:[#allocation135_spill] sm:$0xff]  ;;  %v9580_v27 = vld [vmem:[#allocation137_spill] sm:$0xff] }
 0x47a   :  { %2746 = vmatpush.msra.mxu3 %v9546_v61  ;;  %2651 = vmatpush.msrb.mxu2 %v9548_v31  ;;  %v9579_v61 = vld [vmem:[#allocation136_spill] sm:$0xff]  ;;  %v9581_v31 = vld [vmem:[#allocation138_spill] sm:$0xff] }
 0x47b   :  { %2707 = vmatpush.msrb.mxu1 %v9549_v32  ;;  %2612 = vmatpush.msra.mxu0 %v9551_v57  ;;  %v9582_v32 = vld [vmem:[#allocation139_spill] sm:$0xff]  ;;  %v9584_v57 = vld [vmem:[#allocation141_spill] sm:$0xff] }
 0x47c   :  { %2747 = vmatpush.msra.mxu3 %v9550_v28  ;;  %2652 = vmatpush.msrb.mxu2 %v9552_v54  ;;  %v9583_v28 = vld [vmem:[#allocation140_spill] sm:$0xff]  ;;  %v9585_v54 = vld [vmem:[#allocation142_spill] sm:$0xff] }
 0x47d   :  { %2708 = vmatpush.msrb.mxu1 %v9553_v24  ;;  %2677 = vmatpush.msrb.mxu0 %v9555_v26  ;;  %v9586_v24 = vld [vmem:[#allocation143_spill] sm:$0xff]  ;;  %v9588_v26 = vld [vmem:[#allocation145_spill] sm:$0xff] }
 0x47e   :  { %2748 = vmatpush.msra.mxu3 %v9554_v55  ;;  %2717 = vmatpush.msra.mxu2 %v9556_v15  ;;  %v9587_v55 = vld [vmem:[#allocation144_spill] sm:$0xff]  ;;  %v9589_v15 = vld [vmem:[#allocation146_spill] sm:$0xff] }
 0x47f   :  { %2709 = vmatpush.msrb.mxu1 %v9557_v39  ;;  %2678 = vmatpush.msrb.mxu0 %v9559_v17  ;;  %v9590_v39 = vld [vmem:[#allocation147_spill] sm:$0xff]  ;;  %v9592_v17 = vld [vmem:[#allocation149_spill] sm:$0xff] }
 0x480   :  { %2749 = vmatpush.msra.mxu3 %v9558_v7  ;;  %2718 = vmatpush.msra.mxu2 %v9560_v44  ;;  %v9591_v7 = vld [vmem:[#allocation148_spill] sm:$0xff]  ;;  %v9593_v44 = vld [vmem:[#allocation150_spill] sm:$0xff] }
 0x481   :  { %2710 = vmatpush.msrb.mxu1 %v9561_v36  ;;  %2679 = vmatpush.msrb.mxu0 %v9563_v13  ;;  %v9594_v36 = vld [vmem:[#allocation151_spill] sm:$0xff] }
 0x482   :  { %2750 = vmatpush.msra.mxu3 %v9562_v8  ;;  %2719 = vmatpush.msra.mxu2 %v9564_v23 }
 0x483   :  { %2711 = vmatpush.msrb.mxu1 %v9565_v56  ;;  %2680 = vmatpush.msrb.mxu0 %v9567_v21 }
 0x484   :  { %2751 = vmatpush.msra.mxu3 %v9566_v42  ;;  %2720 = vmatpush.msra.mxu2 %v9568_v58  ;;  %v9595_v42 = vld [vmem:[#allocation32_spill] sm:$0xff] }
 0x485   :  { %2712 = vmatpush.msrb.mxu1 %v9569_v45  ;;  %2681 = vmatpush.msrb.mxu0 %v9571_v49  ;;  %v9596_v49 = vld [vmem:[#allocation33_spill] sm:$0xff] }
 0x486   :  { %2752 = vmatpush.msra.mxu3 %v9570_v3  ;;  %2721 = vmatpush.msra.mxu2 %v9572_v46 }
 0x487   :  { %2682 = vmatpush.msrb.mxu0 %v9573_v10 }
 0x488   :  { %2722 = vmatpush.msra.mxu2 %v9574_v53 }
 0x489   :  { %2683 = vmatpush.msrb.mxu0 %v9575_v43 }
 0x48a   :  { %2723 = vmatpush.msra.mxu2 %v9576_v6 }
 0x48b   :  { %2684 = vmatpush.msrb.mxu0 %v9577_v20 }
 0x48c   :  { %2724 = vmatpush.msra.mxu2 %v9578_v33  ;;  %v2425_v33 = vld [vmem:[#allocation2 + $0x20] sm:$0xc] }
 0x48d   :  { %2685 = vmatpush.msrb.mxu0 %v9579_v61 }
 0x48e   :  { %2725 = vmatpush.msra.mxu2 %v9580_v27 }
 0x48f   :  { %2686 = vmatpush.msrb.mxu0 %v9581_v31 }
 0x490   :  { %2726 = vmatpush.msra.mxu2 %v9582_v32 }
 0x491   :  { %2687 = vmatpush.msrb.mxu0 %v9583_v28  ;;  %v9597_v28 = vld [vmem:[#allocation34_spill] sm:$0xff] }
 0x492   :  { %2727 = vmatpush.msra.mxu2 %v9584_v57 }
 0x493   :  { %2688 = vmatpush.msrb.mxu0 %v9585_v54 }
 0x494   :  { %2728 = vmatpush.msra.mxu2 %v9586_v24 }
 0x495   :  { %2689 = vmatpush.msrb.mxu0 %v9587_v55 }
 0x496   :  { %2729 = vmatpush.msra.mxu2 %v9588_v26 }
 0x497   :  { %2690 = vmatpush.msrb.mxu0 %v9589_v15 }
 0x498   :  { %2730 = vmatpush.msra.mxu2 %v9590_v39 }
 0x499   :  { %2691 = vmatpush.msrb.mxu0 %v9591_v7 }
 0x49a   :  { %2731 = vmatpush.msra.mxu2 %v9592_v17 }
 0x49b   :  { %2692 = vmatpush.msrb.mxu0 %v9593_v44 }
 0x49c   :  { %2732 = vmatpush.msra.mxu2 %v9594_v36 }
 0x49f   :  { %v2237_v8 = vpop.f32.mrf.mxu1 }
 0x4a5   :  { %v2277_v23 = vpop.f32.mrf.mxu3 }
 0x4a7   :  { %v2317_v56 = vpop.f32.mrf.mxu1 }
 0x4ad   :  { %v2357_v6 = vpop.f32.mrf.mxu3 }
 0x4b7   :  { %v2217_v13 = vpop.f32.mrf.mxu0 }
 0x4b8   :  { %v2218_v21 = vadd.f32 %v2217_v13, %v9595_v42 }
 0x4ba   :  { %v2238_v58 = vadd.f32 %v2237_v8, %v2218_v21  ;;  %v9598_v8 = vld [vmem:[#allocation35_spill] sm:$0xff]  ;;  %v2427_v21 = vld [vmem:[#allocation2 + $0x38] sm:$0xc] }
 0x4bc   :  { %v3723_v45 = vmul.f32 -1.442695, %v2238_v58 }
 0x4bd   :  { %v2257_v3 = vpop.f32.mrf.mxu2 }
 0x4be   :  { %3901 = vpow2.f32 %v3723_v45  ;;  %v2258_v46 = vadd.f32 %v2257_v3, %v9596_v49 }
 0x4c0   :  { %v2278_v10 = vadd.f32 %v2277_v23, %v2258_v46  ;;  %v2297_v7 = vpop.f32.mrf.mxu0 }
 0x4c1   :  { %v2465_v53 = vpop.f32.mrf.mxu1  ;;  %v2298_v13 = vadd.f32 %v2297_v7, %v9598_v8 }
 0x4c2   :  { %v2513_v43 = vrot.slane %v2465_v53, 6  ;;  %v3724_v20 = vmul.f32 -1.442695, %v2278_v10 }
 0x4c3   :  { %v2318_v53 = vadd.f32 %v2317_v56, %v2298_v13 }
 0x4c4   :  { %v2521_v61 = vadd.f32 %v2513_v43, %v2425_v33  ;;  %v3902_v27 = vpop.eup %3901  ;;  %3903 = vpow2.f32 %v3724_v20 }
 0x4c5   :  { %v2363_v31 = vadd.f32 1.0, %v3902_v27 }
 0x4c6   :  { %v2337_v32 = vpop.f32.mrf.mxu2  ;;  %v3727_v54 = vmul.f32 -1.442695, %v2521_v61 }
 0x4c7   :  { %v2338_v57 = vadd.f32 %v2337_v32, %v9597_v28  ;;  %3905 = vrcp.f32 %v2363_v31  ;;  %v2375_v33 = vand.u32 2147483648, %v2363_v31  ;;  %vm2369_vm15 = vweird.f32 %v2363_v31 }
 0x4c8   :  { %v2505_v15 = vpop.f32.mrf.mxu3  ;;  %3907 = vpow2.f32 %v3727_v54  ;;  %v2373_v32 = vand.u32 2147483647, %v2363_v31 }
 0x4c9   :  { %v2358_v24 = vadd.f32 %v2357_v6, %v2338_v57  ;;  %v2515_v44 = vrot.slane %v2505_v15, 6  ;;  %v2376_v7 = vor.u32 1.1754944e-38, %v2375_v33 }
 0x4ca   :  { %v3904_v55 = vpop.eup %3903  ;;  %vm2374_vm3 = vcmp.eq.f32.partialorder %v2373_v32, 8.507059e+37 }
 0x4cb   :  { %v3725_v26 = vmul.f32 -1.442695, %v2358_v24  ;;  %v2382_v39 = vadd.f32 1.0, %v3904_v55  ;;  %v2523_v45 = vadd.f32 %v2515_v44, %v2427_v21 }
 0x4cd   :  { %3909 = vpow2.f32 %v3725_v26  ;;  %v3906_v17 = vpop.eup %3905  ;;  %v3728_v61 = vmul.f32 -1.442695, %v2523_v45  ;;  %v2394_v54 = vand.u32 2147483648, %v2382_v39  ;;  %v2392_v15 = vand.u32 2147483647, %v2382_v39 }
 0x4ce   :  { %3911 = vrcp.f32 %v2382_v39  ;;  %v2365_v36 = vmul.f32 %v3906_v17, %v2363_v31  ;;  %v3908_v58 = vpop.eup %3907  ;;  %vm2370_vm14 = vweird.f32 %v3906_v17  ;;  %vm2388_vm2 = vweird.f32 %v2382_v39 }
 0x4cf   :  { %v7520_v57 = vadd.f32 1.0, %v3908_v58  ;;  %vm7522_vm0 = vmor %vm2369_vm15, %vm2370_vm14  ;;  %vm2393_vm5 = vcmp.eq.f32.partialorder %v2392_v15, 8.507059e+37 }
 0x4d0   :  { %v2366_v23 = vsub.f32 1.0, %v2365_v36  ;;  %v2424_v36 = vld [vmem:[#allocation2 + $0x8] sm:$0xc] }
 0x4d1   :  { %vm2552_vm11 = vweird.f32 %v7520_v57 }
 0x4d2   :  { %v2367_v46 = vmul.f32 %v3906_v17, %v2366_v23  ;;  %v2395_v23 = vor.u32 1.1754944e-38, %v2394_v54 }
 0x4d3   :  { %v3910_v3 = vpop.eup %3909 }
 0x4d4   :  { %v3912_v10 = vpop.eup %3911  ;;  %v2402_v43 = vadd.f32 1.0, %v3910_v3  ;;  %v2368_v20 = vadd.f32 %v3906_v17, %v2367_v46 }
 0x4d5   :  { %v2384_v6 = vmul.f32 %v3912_v10, %v2382_v39  ;;  %vm2389_vm1 = vweird.f32 %v3912_v10 }
 0x4d6   :  { %3913 = vrcp.f32 %v2402_v43  ;;  %v2372_v26 = vsel %vm7522_vm0, %v3906_v17, %v2368_v20  ;;  %vm2390_vm4 = vmor %vm2388_vm2, %vm2389_vm1  ;;  %v2414_v54 = vand.u32 2147483648, %v2402_v43  ;;  %vm2408_vm7 = vweird.f32 %v2402_v43 }
 0x4d7   :  { %v2385_v27 = vsub.f32 1.0, %v2384_v6  ;;  %3915 = vtanh.f32 %v2318_v53  ;;  %v2377_v21 = vsel %vm2374_vm3, %v2376_v7, %v2372_v26 }
 0x4d8   :  { %v2445_v55 = vpop.f32.mrf.mxu0  ;;  %3917 = vpow2.f32 %v3728_v61  ;;  %v2415_v7 = vor.u32 1.1754944e-38, %v2414_v54 }
 0x4d9   :  { %v2386_v56 = vmul.f32 %v3912_v10, %v2385_v27  ;;  %v2512_v44 = vrot.slane %v2445_v55, 6  ;;  %3919 = vrcp.f32 %v7520_v57 }
 0x4db   :  { %v2387_v31 = vadd.f32 %v3912_v10, %v2386_v56  ;;  %v2520_v58 = vadd.f32 %v2512_v44, %v2424_v36 }
 0x4dc   :  { %v3914_v13 = vpop.eup %3913 }
 0x4dd   :  { %v2391_v45 = vsel %vm2390_vm4, %v3912_v10, %v2387_v31  ;;  %v2404_v3 = vmul.f32 %v3914_v13, %v2402_v43  ;;  %v3916_v46 = vpop.eup %3915  ;;  %v3726_v53 = vmul.f32 -1.442695, %v2520_v58  ;;  %vm2409_vm6 = vweird.f32 %v3914_v13 }
 0x4de   :  { %v2396_v17 = vsel %vm2393_vm5, %v2395_v23, %v2391_v45  ;;  %v2419_v20 = vmul.f32 %v3916_v46, %v2377_v21  ;;  %v3918_v33 = vpop.eup %3917  ;;  %vm2410_vm8 = vmor %vm2408_vm7, %vm2409_vm6 }
 0x4df   :  { %v2418_v6 = vmul.f32 %v2396_v17, %v7220_v19  ;;  %v2405_v39 = vsub.f32 1.0, %v2404_v3  ;;  %3921 = vpow2.f32 %v3726_v53  ;;  %v7530_v61 = vpop.eup %3919  ;;  %v7537_v55 = vadd.f32 1.0, %v3918_v33  ;;  %v2485_v31 = vpop.f32.mrf.mxu2 }
 0x4e0   :  { %v2548_v24 = vmul.f32 %v7530_v61, %v7520_v57  ;;  %v2412_v19 = vand.u32 2147483647, %v2402_v43  ;;  %v2514_v58 = vrot.slane %v2485_v31, 6  ;;  %vm2553_vm10 = vweird.f32 %v7530_v61 }
 0x4e1   :  { %v7532_v27 = vadd.f32 %v2419_v20, %v2418_v6  ;;  %v2406_v32 = vmul.f32 %v3914_v13, %v2405_v39  ;;  %v2558_v39 = vand.u32 2147483648, %v7520_v57  ;;  %vm7560_vm12 = vmor %vm2552_vm11, %vm2553_vm10  ;;  %vm2572_vm3 = vweird.f32 %v7537_v55 }
 0x4e2   :  { %v2549_v44 = vsub.f32 1.0, %v2548_v24  ;;  %vm2413_vm9 = vcmp.eq.f32.partialorder %v2412_v19, 8.507059e+37  ;;  %v2556_v24 = vand.u32 2147483647, %v7520_v57 }
 0x4e3   :  { %3923 = vtanh.f32 %v7532_v27  ;;  %v2407_v10 = vadd.f32 %v3914_v13, %v2406_v32  ;;  %v7552_v32 = vld [vmem:[#allocation9 + $0x1e8] sm:$0xff] }
 0x4e4   :  { %3925 = vrcp.f32 %v7537_v55  ;;  %v2550_v45 = vmul.f32 %v7530_v61, %v2549_v44  ;;  %vm2557_vm15 = vcmp.eq.f32.partialorder %v2556_v24, 8.507059e+37  ;;  %v7593_v24 = vld [vmem:[#allocation9 + $0x178] sm:$0xff] }
 0x4e5   :  { %v3922_v56 = vpop.eup %3921  ;;  %v2411_v26 = vsel %vm2410_vm8, %v3914_v13, %v2407_v10  ;;  %v2426_v13 = vld [vmem:[#allocation2 + $0x28] sm:$0xc]  ;;  %v7555_v10 = vld [vmem:[#allocation9 + $0x1f8] sm:$0xff] }
 0x4e6   :  { %v7539_v15 = vadd.f32 1.0, %v3922_v56  ;;  %v2416_v23 = vsel %vm2413_vm9, %v2415_v7, %v2411_v26  ;;  %v2522_v53 = vadd.f32 %v2514_v58, %v2426_v13  ;;  %v2551_v20 = vadd.f32 %v7530_v61, %v2550_v45  ;;  %v7565_v26 = vld [vmem:[#allocation9 + $0x1c8] sm:$0xff]  ;;  %v7568_v7 = vld [vmem:[#allocation9 + $0x1d8] sm:$0xff] }
 0x4e7   :  { %v7578_v58 = vld [vmem:[#allocation9 + $0x1b8] sm:$0xff] }
 0x4e8   :  { %3927 = vrcp.f32 %v7539_v15  ;;  %v2539_v56 = vand.u32 2147483648, %v7539_v15  ;;  %v2537_v31 = vand.u32 2147483647, %v7539_v15  ;;  %v2555_v57 = vsel %vm7560_vm12, %v7530_v61, %v2551_v20  ;;  %v7585_v61 = vld [vmem:[#allocation9 + $0x198] sm:$0xff] }
 0x4e9   :  { %v3924_v36 = vpop.eup %3923  ;;  %3929 = vtanh.f32 %v2522_v53  ;;  %vm2533_vm14 = vweird.f32 %v7539_v15  ;;  %v7582_v53 = vld [vmem:[#allocation9 + $0x188] sm:$0xff] }
 0x4ea   :  { %v2422_v21 = vmul.f32 %v3924_v36, %v2416_v23  ;;  %v7544_v3 = vpop.eup %3925  ;;  %v2559_v36 = vor.u32 1.1754944e-38, %v2558_v39  ;;  %vm2538_vm1 = vcmp.eq.f32.partialorder %v2537_v31, 8.507059e+37  ;;  %v7606_v31 = vld [vmem:[#allocation9 + $0x128] sm:$0xff] }
 0x4eb   :  { %v2568_v33 = vmul.f32 %v7544_v3, %v7537_v55  ;;  %vm2573_vm2 = vweird.f32 %v7544_v3 }
 0x4ec   :  { %2423 = vst [vmem:[#allocation3 + $0x8] sm:$0x3] %v2422_v21  ;;  %v2591_v43 = vrot.slane %v2422_v21, 6  ;;  %v7575_v21 = vld [vmem:[#allocation9 + $0x1a8] sm:$0xff]  ;;  %v2560_v13 = vsel %vm2557_vm15, %v2559_v36, %v2555_v57  ;;  %v7609_v57 = vld [vmem:[#allocation9 + $0x138] sm:$0xff]  ;;  %v2578_v36 = vand.u32 2147483648, %v7537_v55  ;;  %vm2574_vm4 = vmor %vm2572_vm3, %vm2573_vm2 }
 0x4ed   :  { %v2569_v23 = vsub.f32 1.0, %v2568_v33 }
 0x4ee   :  { %v2594_v46 = vrot.slane %v2591_v43, 2  ;;  %v3928_v17 = vpop.eup %3927  ;;  %v2540_v43 = vor.u32 1.1754944e-38, %v2539_v56 }
 0x4ef   :  { %v2529_v6 = vmul.f32 %v3928_v17, %v7539_v15  ;;  %vm2534_vm13 = vweird.f32 %v3928_v17  ;;  %v3930_v39 = vpop.eup %3929  ;;  %v2570_v15 = vmul.f32 %v7544_v3, %v2569_v23  ;;  %v2576_v23 = vand.u32 2147483647, %v7537_v55 }
 0x4f0   :  { %2633 = vmatmul.f32.vlgmr.msra.gmra.mxu1 %v2594_v46  ;;  %2673 = vmatmul.f32.vlgmr.msrb.gmra.mxu3 %v2594_v46  ;;  %vm2535_vm0 = vmor %vm2533_vm14, %vm2534_vm13  ;;  %v2579_v55 = vor.u32 1.1754944e-38, %v2578_v36 }
 0x4f1   :  { %2845 = vmatpush.msra.mxu1 %v7552_v32  ;;  %2885 = vmatpush.msrb.mxu3 %v7555_v10  ;;  %v2530_v54 = vsub.f32 1.0, %v2529_v6  ;;  %v2583_v6 = vrot.slane %v7261_v50, 6  ;;  %v7599_v50 = vld [vmem:[#allocation9 + $0x158] sm:$0xff]  ;;  %vm2577_vm5 = vcmp.eq.f32.partialorder %v2576_v23, 8.507059e+37  ;;  %v7643_v23 = vld [vmem:[#allocation9 + $0x88] sm:$0xff] }
 0x4f3   :  { %2846 = vmatpush.msra.mxu1 %v7565_v26  ;;  %2886 = vmatpush.msrb.mxu3 %v7568_v7  ;;  %v2531_v44 = vmul.f32 %v3928_v17, %v2530_v54  ;;  %v7590_v54 = vld [vmem:[#allocation9 + $0x168] sm:$0xff]  ;;  %v2585_v19 = vmul.f32 %v2583_v6, %v2560_v13 }
 0x4f4   :  { %v7623_v6 = vld [vmem:[#allocation9 + $0xe8] sm:$0xff] }
 0x4f5   :  { %2847 = vmatpush.msra.mxu1 %v7575_v21  ;;  %2887 = vmatpush.msrb.mxu3 %v7578_v58  ;;  %v2532_v45 = vadd.f32 %v3928_v17, %v2531_v44  ;;  %v7596_v44 = vld [vmem:[#allocation9 + $0x148] sm:$0xff] }
 0x4f7   :  { %2848 = vmatpush.msra.mxu1 %v7582_v53  ;;  %2888 = vmatpush.msrb.mxu3 %v7585_v61  ;;  %v2536_v20 = vsel %vm2535_vm0, %v3928_v17, %v2532_v45  ;;  %v2571_v17 = vadd.f32 %v7544_v3, %v2570_v15  ;;  %v7616_v45 = vld [vmem:[#allocation9 + $0x108] sm:$0xff]  ;;  %v7632_v15 = vld [vmem:[#allocation9 + $0xd8] sm:$0xff] }
 0x4f8   :  { %2713 = vmatmul.f32.vlgmr.msrb.gmra.mxu1 %v2594_v46  ;;  %2753 = vmatmul.f32.vlgmr.msra.gmra.mxu3 %v2594_v46  ;;  %v2541_v33 = vsel %vm2538_vm1, %v2540_v43, %v2536_v20  ;;  %v7619_v43 = vld [vmem:[#allocation9 + $0x118] sm:$0xff] }
 0x4f9   :  { %2849 = vmatpush.msra.mxu1 %v7590_v54  ;;  %2889 = vmatpush.msrb.mxu3 %v7593_v24  ;;  %v2586_v56 = vmul.f32 %v3930_v39, %v2541_v33  ;;  %v2575_v13 = vsel %vm2574_vm4, %v7544_v3, %v2571_v17  ;;  %v7626_v20 = vld [vmem:[#allocation9 + $0xf8] sm:$0xff]  ;;  %v7629_v39 = vld [vmem:[#allocation9 + $0xc8] sm:$0xff] }
 0x4fa   :  { %9603 = vst [vmem:[#allocation36_spill] sm:$0xff] %v7629_v39  ;;  %v2580_v3 = vsel %vm2577_vm5, %v2579_v55, %v2575_v13  ;;  %v7638_v17 = vld [vmem:[#allocation9 + $0xb8] sm:$0xff]  ;;  %v7653_v13 = vld [vmem:[#allocation9 + $0x68] sm:$0xff] }
 0x4fb   :  { %2850 = vmatpush.msra.mxu1 %v7596_v44  ;;  %2890 = vmatpush.msrb.mxu3 %v7599_v50  ;;  %v7602_v46 = vadd.f32 %v2586_v56, %v2585_v19  ;;  %v7635_v56 = vld [vmem:[#allocation9 + $0xa8] sm:$0xff]  ;;  %v7656_v55 = vld [vmem:[#allocation9 + $0x78] sm:$0xff] }
 0x4fd   :  { %2851 = vmatpush.msra.mxu1 %v7606_v31  ;;  %2891 = vmatpush.msrb.mxu3 %v7609_v57  ;;  %3931 = vtanh.f32 %v7602_v46 }
 0x4ff   :  { %2852 = vmatpush.msra.mxu1 %v7616_v45  ;;  %2892 = vmatpush.msrb.mxu3 %v7619_v43 }
 0x501   :  { %2853 = vmatpush.msra.mxu1 %v7623_v6  ;;  %2893 = vmatpush.msrb.mxu3 %v7626_v20 }
 0x503   :  { %2854 = vmatpush.msra.mxu1 %v7629_v39  ;;  %2894 = vmatpush.msrb.mxu3 %v7632_v15  ;;  %v3932_v33 = vpop.eup %3931  ;;  %v7646_v39 = vld [vmem:[#allocation9 + $0x98] sm:$0xff] }
 0x504   :  { %v2589_v19 = vmul.f32 %v3932_v33, %v2580_v3  ;;  %v7661_v33 = vld [vmem:[#allocation9 + $0x48] sm:$0xff]  ;;  %v7664_v3 = vld [vmem:[#allocation9 + $0x58] sm:$0xff] }
 0x505   :  { %2855 = vmatpush.msra.mxu1 %v7635_v56  ;;  %2895 = vmatpush.msrb.mxu3 %v7638_v17 }
 0x506   :  { %v7641_v36 = vrot.slane %v2589_v19, 2  ;;  %v7777_v19 = vld [vmem:[#allocation9 + $0x10] sm:$0xff] }
 0x507   :  { %2856 = vmatpush.msra.mxu1 %v7643_v23  ;;  %2896 = vmatpush.msrb.mxu3 %v7646_v39  ;;  %9622 = vst [vmem:[#allocation71_spill] sm:$0xff] %v7777_v19 }
 0x508   :  { %2613 = vmatmul.f32.vlgmr.msra.gmra.mxu0 %v7641_v36  ;;  %2653 = vmatmul.f32.vlgmr.msrb.gmra.mxu2 %v7641_v36 }
 0x509   :  { %2825 = vmatpush.msra.mxu0 %v7286_v60  ;;  %2865 = vmatpush.msrb.mxu2 %v7289_v2  ;;  %v7669_v60 = vld [vmem:[#allocation9 + $0x28] sm:$0xff]  ;;  %v7672_v2 = vld [vmem:[#allocation9 + $0x38] sm:$0xff] }
 0x50a   :  { %2857 = vmatpush.msra.mxu1 %v7653_v13  ;;  %2897 = vmatpush.msrb.mxu3 %v7656_v55 }
 0x50b   :  { %2826 = vmatpush.msra.mxu0 %v7294_v22  ;;  %2866 = vmatpush.msrb.mxu2 %v7297_v37  ;;  %v7677_v22 = vld [vmem:[#allocation9 + $0x8] sm:$0xff]  ;;  %v7680_v37 = vld [vmem:[#allocation9 + $0x18] sm:$0xff] }
 0x50c   :  { %2858 = vmatpush.msra.mxu1 %v7661_v33  ;;  %2898 = vmatpush.msrb.mxu3 %v7664_v3 }
 0x50d   :  { %2827 = vmatpush.msra.mxu0 %v7302_v29  ;;  %2867 = vmatpush.msrb.mxu2 %v7305_v9  ;;  %v7690_v29 = vld [vmem:[#allocation12 + $0x3e0] sm:$0xff]  ;;  %v7694_v9 = vld [vmem:[#allocation12 + $0x3e8] sm:$0xff] }
 0x50e   :  { %2859 = vmatpush.msra.mxu1 %v7669_v60  ;;  %2899 = vmatpush.msrb.mxu3 %v7672_v2 }
 0x50f   :  { %2828 = vmatpush.msra.mxu0 %v7310_v34  ;;  %2868 = vmatpush.msrb.mxu2 %v7313_v62  ;;  %v7698_v34 = vld [vmem:[#allocation12 + $0x3c0] sm:$0xff]  ;;  %v7702_v62 = vld [vmem:[#allocation12 + $0x3c8] sm:$0xff] }
 0x510   :  { %2860 = vmatpush.msra.mxu1 %v7677_v22  ;;  %2900 = vmatpush.msrb.mxu3 %v7680_v37 }
 0x511   :  { %2693 = vmatmul.f32.vlgmr.msrb.gmra.mxu0 %v7641_v36  ;;  %2733 = vmatmul.f32.vlgmr.msra.gmra.mxu2 %v7641_v36 }
 0x512   :  { %2829 = vmatpush.msra.mxu0 %v7318_v51  ;;  %2861 = vmatmul.f32.vlgmr.msra.gmra.mxu1 %v7641_v36  ;;  %v7706_v51 = vld [vmem:[#allocation12 + $0x3a0] sm:$0xff] }
 0x513   :  { %2869 = vmatpush.msrb.mxu2 %v7322_v18  ;;  %2901 = vmatmul.f32.vlgmr.msrb.gmra.mxu3 %v7641_v36  ;;  %v7710_v18 = vld [vmem:[#allocation12 + $0x3a8] sm:$0xff] }
 0x514   :  { %2830 = vmatpush.msra.mxu0 %v7326_v11  ;;  %3014 = vmatpush.msrb.mxu1 %v7690_v29  ;;  %9604 = vst [vmem:[#allocation37_spill] sm:$0xff] %v7710_v18  ;;  %v7714_v11 = vld [vmem:[#allocation12 + $0x380] sm:$0xff] }
 0x515   :  { %2870 = vmatpush.msrb.mxu2 %v7330_v14  ;;  %3054 = vmatpush.msra.mxu3 %v7694_v9  ;;  %9605 = vst [vmem:[#allocation38_spill] sm:$0xff] %v7714_v11  ;;  %v7718_v14 = vld [vmem:[#allocation12 + $0x388] sm:$0xff] }
 0x516   :  { %2831 = vmatpush.msra.mxu0 %v7334_v47  ;;  %3015 = vmatpush.msrb.mxu1 %v7698_v34  ;;  %9606 = vst [vmem:[#allocation39_spill] sm:$0xff] %v7718_v14  ;;  %v7722_v47 = vld [vmem:[#allocation12 + $0x360] sm:$0xff] }
 0x517   :  { %2871 = vmatpush.msrb.mxu2 %v7338_v5  ;;  %3055 = vmatpush.msra.mxu3 %v7702_v62  ;;  %9607 = vst [vmem:[#allocation42_spill] sm:$0xff] %v7722_v47  ;;  %v7726_v5 = vld [vmem:[#allocation12 + $0x368] sm:$0xff] }
 0x518   :  { %2832 = vmatpush.msra.mxu0 %v7342_v40  ;;  %3016 = vmatpush.msrb.mxu1 %v7706_v51  ;;  %9608 = vst [vmem:[#allocation43_spill] sm:$0xff] %v7726_v5  ;;  %v7730_v40 = vld [vmem:[#allocation12 + $0x340] sm:$0xff] }
 0x519   :  { %2872 = vmatpush.msrb.mxu2 %v7346_v4  ;;  %3056 = vmatpush.msra.mxu3 %v7710_v18  ;;  %9609 = vst [vmem:[#allocation46_spill] sm:$0xff] %v7730_v40  ;;  %v7734_v4 = vld [vmem:[#allocation12 + $0x348] sm:$0xff] }
 0x51a   :  { %2833 = vmatpush.msra.mxu0 %v7350_v52  ;;  %3017 = vmatpush.msrb.mxu1 %v7714_v11  ;;  %9610 = vst [vmem:[#allocation47_spill] sm:$0xff] %v7734_v4  ;;  %v7738_v52 = vld [vmem:[#allocation12 + $0x320] sm:$0xff] }
 0x51b   :  { %2873 = vmatpush.msrb.mxu2 %v7354_v48  ;;  %3057 = vmatpush.msra.mxu3 %v7718_v14  ;;  %9611 = vst [vmem:[#allocation50_spill] sm:$0xff] %v7738_v52  ;;  %v7742_v48 = vld [vmem:[#allocation12 + $0x328] sm:$0xff] }
 0x51c   :  { %2834 = vmatpush.msra.mxu0 %v7358_v1  ;;  %3018 = vmatpush.msrb.mxu1 %v7722_v47  ;;  %9612 = vst [vmem:[#allocation51_spill] sm:$0xff] %v7742_v48  ;;  %v7746_v1 = vld [vmem:[#allocation12 + $0x300] sm:$0xff] }
 0x51d   :  { %2874 = vmatpush.msrb.mxu2 %v7362_v30  ;;  %3058 = vmatpush.msra.mxu3 %v7726_v5  ;;  %9613 = vst [vmem:[#allocation54_spill] sm:$0xff] %v7746_v1  ;;  %v7750_v30 = vld [vmem:[#allocation12 + $0x308] sm:$0xff] }
 0x51e   :  { %2835 = vmatpush.msra.mxu0 %v7366_v0  ;;  %3019 = vmatpush.msrb.mxu1 %v7730_v40  ;;  %9614 = vst [vmem:[#allocation55_spill] sm:$0xff] %v7750_v30  ;;  %v7754_v0 = vld [vmem:[#allocation12 + $0x2e0] sm:$0xff] }
 0x51f   :  { %2875 = vmatpush.msrb.mxu2 %v7370_v25  ;;  %3059 = vmatpush.msra.mxu3 %v7734_v4  ;;  %9615 = vst [vmem:[#allocation58_spill] sm:$0xff] %v7754_v0  ;;  %v7757_v25 = vld [vmem:[#allocation9 + $0x50] sm:$0xff]  ;;  %v2822_v40 = vld [vmem:[#allocation2 + $0x20] sm:$0x30] }
 0x520   :  { %2836 = vmatpush.msra.mxu0 %v7374_v12  ;;  %3020 = vmatpush.msrb.mxu1 %v7738_v52  ;;  %9616 = vst [vmem:[#allocation59_spill] sm:$0xff] %v7757_v25  ;;  %v7760_v12 = vld [vmem:[#allocation12 + $0x2e8] sm:$0xff] }
 0x521   :  { %2876 = vmatpush.msrb.mxu2 %v7378_v38  ;;  %3060 = vmatpush.msra.mxu3 %v7742_v48  ;;  %9617 = vst [vmem:[#allocation62_spill] sm:$0xff] %v7760_v12  ;;  %v7764_v38 = vld [vmem:[#allocation12 + $0x2c0] sm:$0xff] }
 0x522   :  { %2837 = vmatpush.msra.mxu0 %v7382_v63  ;;  %3021 = vmatpush.msrb.mxu1 %v7746_v1  ;;  %9618 = vst [vmem:[#allocation63_spill] sm:$0xff] %v7764_v38  ;;  %v7767_v63 = vld [vmem:[#allocation9 + $0x30] sm:$0xff] }
 0x523   :  { %2877 = vmatpush.msrb.mxu2 %v7386_v41  ;;  %3061 = vmatpush.msra.mxu3 %v7750_v30  ;;  %9619 = vst [vmem:[#allocation66_spill] sm:$0xff] %v7767_v63  ;;  %v7770_v41 = vld [vmem:[#allocation12 + $0x2c8] sm:$0xff] }
 0x524   :  { %2838 = vmatpush.msra.mxu0 %v7390_v16  ;;  %3022 = vmatpush.msrb.mxu1 %v7754_v0  ;;  %9620 = vst [vmem:[#allocation67_spill] sm:$0xff] %v7770_v41  ;;  %v7774_v16 = vld [vmem:[#allocation12 + $0x2a0] sm:$0xff] }
 0x525   :  { %2878 = vmatpush.msrb.mxu2 %v7757_v25  ;;  %3062 = vmatpush.msra.mxu3 %v7760_v12  ;;  %9621 = vst [vmem:[#allocation70_spill] sm:$0xff] %v7774_v16 }
 0x526   :  { %2839 = vmatpush.msra.mxu0 %v7396_v35  ;;  %3023 = vmatpush.msrb.mxu1 %v7764_v38  ;;  %v7782_v35 = vld [vmem:[#allocation12 + $0x2a8] sm:$0xff] }
 0x527   :  { %2879 = vmatpush.msrb.mxu2 %v7767_v63  ;;  %3063 = vmatpush.msra.mxu3 %v7770_v41  ;;  %9623 = vst [vmem:[#allocation74_spill] sm:$0xff] %v7782_v35  ;;  %v7785_v63 = vld [vmem:[#allocation12 + $0x280] sm:$0xff] }
 0x528   :  { %2840 = vmatpush.msra.mxu0 %v7402_v59  ;;  %3024 = vmatpush.msrb.mxu1 %v7774_v16  ;;  %9624 = vst [vmem:[#allocation75_spill] sm:$0xff] %v7785_v63  ;;  %v7788_v59 = vld [vmem:[#allocation12 + $0x1e0] sm:$0xff]  ;;  %v7791_v16 = vld [vmem:[#allocation12 + $0x288] sm:$0xff] }
 0x529   :  { %2880 = vmatpush.msrb.mxu2 %v7777_v19  ;;  %2841 = vmatmul.f32.vlgmr.msra.gmra.mxu0 %v7641_v36  ;;  %9625 = vst [vmem:[#allocation78_spill] sm:$0xff] %v7788_v59  ;;  %v7794_v19 = vld [vmem:[#allocation12 + $0x1e8] sm:$0xff] }
 0x52a   :  { %2881 = vmatmul.f32.vlgmr.msrb.gmra.mxu2 %v7641_v36  ;;  %3064 = vmatpush.msra.mxu3 %v7782_v35  ;;  %9626 = vst [vmem:[#allocation21_spill] sm:$0xff] %v7791_v16  ;;  %v7797_v36 = vld [vmem:[#allocation12 + $0x260] sm:$0xff] }
 0x52b   :  { %3025 = vmatpush.msrb.mxu1 %v7785_v63  ;;  %2994 = vmatpush.msrb.mxu0 %v7788_v59  ;;  %9627 = vst [vmem:[#allocation79_spill] sm:$0xff] %v7794_v19  ;;  %v7800_v35 = vld [vmem:[#allocation12 + $0x1c0] sm:$0xff]  ;;  %v7803_v63 = vld [vmem:[#allocation12 + $0x268] sm:$0xff] }
 0x52c   :  { %3065 = vmatpush.msra.mxu3 %v7791_v16  ;;  %3034 = vmatpush.msra.mxu2 %v7794_v19  ;;  %9628 = vst [vmem:[#allocation82_spill] sm:$0xff] %v7797_v36  ;;  %v7806_v59 = vld [vmem:[#allocation12 + $0x1c8] sm:$0xff]  ;;  %v7809_v16 = vld [vmem:[#allocation12 + $0x240] sm:$0xff] }
 0x52d   :  { %3026 = vmatpush.msrb.mxu1 %v7797_v36  ;;  %9629 = vst [vmem:[#allocation22_spill] sm:$0xff] %v7800_v35  ;;  %2995 = vmatpush.msrb.mxu0 %v7800_v35  ;;  %v7812_v19 = vld [vmem:[#allocation12 + $0x1a0] sm:$0xff]  ;;  %v7815_v36 = vld [vmem:[#allocation12 + $0x248] sm:$0xff] }
 0x52e   :  { %9630 = vst [vmem:[#allocation83_spill] sm:$0xff] %v7803_v63  ;;  %3066 = vmatpush.msra.mxu3 %v7803_v63  ;;  %3035 = vmatpush.msra.mxu2 %v7806_v59  ;;  %v7818_v35 = vld [vmem:[#allocation12 + $0x1a8] sm:$0xff]  ;;  %v7821_v63 = vld [vmem:[#allocation12 + $0x220] sm:$0xff] }
 0x52f   :  { %9631 = vst [vmem:[#allocation86_spill] sm:$0xff] %v7806_v59  ;;  %3027 = vmatpush.msrb.mxu1 %v7809_v16  ;;  %2996 = vmatpush.msrb.mxu0 %v7812_v19  ;;  %v7824_v59 = vld [vmem:[#allocation12 + $0x180] sm:$0xff] }
 0x530   :  { %9632 = vst [vmem:[#allocation23_spill] sm:$0xff] %v7809_v16  ;;  %3067 = vmatpush.msra.mxu3 %v7815_v36  ;;  %3036 = vmatpush.msra.mxu2 %v7818_v35  ;;  %v7827_v16 = vld [vmem:[#allocation12 + $0x228] sm:$0xff] }
 0x531   :  { %9633 = vst [vmem:[#allocation40_spill] sm:$0xff] %v7812_v19  ;;  %3028 = vmatpush.msrb.mxu1 %v7821_v63  ;;  %2997 = vmatpush.msrb.mxu0 %v7824_v59  ;;  %v7830_v19 = vld [vmem:[#allocation12 + $0x188] sm:$0xff] }
 0x532   :  { %9634 = vst [vmem:[#allocation41_spill] sm:$0xff] %v7815_v36  ;;  %3068 = vmatpush.msra.mxu3 %v7827_v16  ;;  %3037 = vmatpush.msra.mxu2 %v7830_v19  ;;  %v7833_v36 = vld [vmem:[#allocation12 + $0x200] sm:$0xff] }
 0x533   :  { %9635 = vst [vmem:[#allocation87_spill] sm:$0xff] %v7818_v35  ;;  %3029 = vmatpush.msrb.mxu1 %v7833_v36  ;;  %v7836_v35 = vld [vmem:[#allocation12 + $0x160] sm:$0xff] }
 0x534   :  { %9636 = vst [vmem:[#allocation44_spill] sm:$0xff] %v7821_v63  ;;  %2998 = vmatpush.msrb.mxu0 %v7836_v35  ;;  %v7839_v63 = vld [vmem:[#allocation12 + $0x208] sm:$0xff] }
 0x535   :  { %9637 = vst [vmem:[#allocation90_spill] sm:$0xff] %v7824_v59  ;;  %3069 = vmatpush.msra.mxu3 %v7839_v63  ;;  %v7842_v59 = vld [vmem:[#allocation12 + $0x168] sm:$0xff] }
 0x536   :  { %9638 = vst [vmem:[#allocation45_spill] sm:$0xff] %v7827_v16  ;;  %3038 = vmatpush.msra.mxu2 %v7842_v59  ;;  %v7845_v16 = vld [vmem:[#allocation12 + $0x3f0] sm:$0xff] }
 0x537   :  { %9639 = vst [vmem:[#allocation91_spill] sm:$0xff] %v7830_v19  ;;  %3094 = vmatpush.msra.mxu1 %v7845_v16  ;;  %v7848_v19 = vld [vmem:[#allocation12 + $0x3f8] sm:$0xff] }
 0x538   :  { %9640 = vst [vmem:[#allocation48_spill] sm:$0xff] %v7833_v36  ;;  %3134 = vmatpush.msrb.mxu3 %v7848_v19  ;;  %v7851_v36 = vld [vmem:[#allocation12 + $0x140] sm:$0xff] }
 0x539   :  { %9641 = vst [vmem:[#allocation94_spill] sm:$0xff] %v7836_v35  ;;  %2999 = vmatpush.msrb.mxu0 %v7851_v36  ;;  %v7854_v35 = vld [vmem:[#allocation12 + $0x148] sm:$0xff] }
 0x53a   :  { %9642 = vst [vmem:[#allocation49_spill] sm:$0xff] %v7839_v63  ;;  %3039 = vmatpush.msra.mxu2 %v7854_v35  ;;  %v7857_v63 = vld [vmem:[#allocation12 + $0x3d0] sm:$0xff] }
 0x53b   :  { %9643 = vst [vmem:[#allocation95_spill] sm:$0xff] %v7842_v59  ;;  %3095 = vmatpush.msra.mxu1 %v7857_v63  ;;  %v7860_v59 = vld [vmem:[#allocation12 + $0x3d8] sm:$0xff] }
 0x53c   :  { %9644 = vst [vmem:[#allocation52_spill] sm:$0xff] %v7845_v16  ;;  %3135 = vmatpush.msrb.mxu3 %v7860_v59  ;;  %v7863_v16 = vld [vmem:[#allocation12 + $0x120] sm:$0xff] }
 0x53d   :  { %9645 = vst [vmem:[#allocation98_spill] sm:$0xff] %v7848_v19  ;;  %3000 = vmatpush.msrb.mxu0 %v7863_v16  ;;  %v7866_v19 = vld [vmem:[#allocation12 + $0x128] sm:$0xff] }
 0x53e   :  { %9646 = vst [vmem:[#allocation53_spill] sm:$0xff] %v7851_v36  ;;  %3040 = vmatpush.msra.mxu2 %v7866_v19  ;;  %v7869_v36 = vld [vmem:[#allocation12 + $0x3b0] sm:$0xff] }
 0x53f   :  { %9647 = vst [vmem:[#allocation99_spill] sm:$0xff] %v7854_v35  ;;  %3096 = vmatpush.msra.mxu1 %v7869_v36  ;;  %v7872_v35 = vld [vmem:[#allocation12 + $0x3b8] sm:$0xff] }
 0x540   :  { %9648 = vst [vmem:[#allocation56_spill] sm:$0xff] %v7857_v63  ;;  %3136 = vmatpush.msrb.mxu3 %v7872_v35  ;;  %v7875_v63 = vld [vmem:[#allocation12 + $0x100] sm:$0xff] }
 0x541   :  { %9649 = vst [vmem:[#allocation57_spill] sm:$0xff] %v7860_v59  ;;  %3001 = vmatpush.msrb.mxu0 %v7875_v63  ;;  %v7878_v59 = vld [vmem:[#allocation12 + $0x108] sm:$0xff] }
 0x542   :  { %9650 = vst [vmem:[#allocation102_spill] sm:$0xff] %v7863_v16  ;;  %3041 = vmatpush.msra.mxu2 %v7878_v59  ;;  %v7881_v16 = vld [vmem:[#allocation12 + $0x390] sm:$0xff] }
 0x543   :  { %9651 = vst [vmem:[#allocation60_spill] sm:$0xff] %v7866_v19  ;;  %3097 = vmatpush.msra.mxu1 %v7881_v16  ;;  %v7884_v19 = vld [vmem:[#allocation12 + $0x398] sm:$0xff] }
 0x544   :  { %9652 = vst [vmem:[#allocation61_spill] sm:$0xff] %v7869_v36  ;;  %3137 = vmatpush.msrb.mxu3 %v7884_v19  ;;  %v7887_v36 = vld [vmem:[#allocation12 + $0xe0] sm:$0xff] }
 0x545   :  { %9653 = vst [vmem:[#allocation64_spill] sm:$0xff] %v7872_v35  ;;  %3002 = vmatpush.msrb.mxu0 %v7887_v36  ;;  %v7890_v35 = vld [vmem:[#allocation12 + $0xe8] sm:$0xff] }
 0x546   :  { %9654 = vst [vmem:[#allocation65_spill] sm:$0xff] %v7875_v63  ;;  %3042 = vmatpush.msra.mxu2 %v7890_v35  ;;  %v7893_v63 = vld [vmem:[#allocation12 + $0x370] sm:$0xff] }
 0x547   :  { %9655 = vst [vmem:[#allocation68_spill] sm:$0xff] %v7878_v59  ;;  %3098 = vmatpush.msra.mxu1 %v7893_v63  ;;  %v7896_v59 = vld [vmem:[#allocation12 + $0x378] sm:$0xff] }
 0x548   :  { %9656 = vst [vmem:[#allocation69_spill] sm:$0xff] %v7881_v16  ;;  %3138 = vmatpush.msrb.mxu3 %v7896_v59  ;;  %v7899_v16 = vld [vmem:[#allocation12 + $0xc0] sm:$0xff] }
 0x549   :  { %9657 = vst [vmem:[#allocation72_spill] sm:$0xff] %v7884_v19  ;;  %3003 = vmatpush.msrb.mxu0 %v7899_v16  ;;  %v7902_v19 = vld [vmem:[#allocation12 + $0xc8] sm:$0xff] }
 0x54a   :  { %9658 = vst [vmem:[#allocation73_spill] sm:$0xff] %v7887_v36  ;;  %3043 = vmatpush.msra.mxu2 %v7902_v19  ;;  %v7905_v36 = vld [vmem:[#allocation12 + $0x350] sm:$0xff] }
 0x54b   :  { %9659 = vst [vmem:[#allocation76_spill] sm:$0xff] %v7890_v35  ;;  %3099 = vmatpush.msra.mxu1 %v7905_v36  ;;  %v7908_v35 = vld [vmem:[#allocation12 + $0x358] sm:$0xff] }
 0x54c   :  { %9660 = vst [vmem:[#allocation77_spill] sm:$0xff] %v7893_v63  ;;  %3139 = vmatpush.msrb.mxu3 %v7908_v35  ;;  %v7911_v63 = vld [vmem:[#allocation12 + $0xa0] sm:$0xff] }
 0x54d   :  { %9661 = vst [vmem:[#allocation80_spill] sm:$0xff] %v7896_v59  ;;  %3004 = vmatpush.msrb.mxu0 %v7911_v63  ;;  %v7914_v59 = vld [vmem:[#allocation12 + $0xa8] sm:$0xff] }
 0x54e   :  { %9662 = vst [vmem:[#allocation81_spill] sm:$0xff] %v7899_v16  ;;  %3044 = vmatpush.msra.mxu2 %v7914_v59  ;;  %v7917_v16 = vld [vmem:[#allocation12 + $0x330] sm:$0xff] }
 0x54f   :  { %9663 = vst [vmem:[#allocation84_spill] sm:$0xff] %v7902_v19  ;;  %3100 = vmatpush.msra.mxu1 %v7917_v16  ;;  %v7920_v19 = vld [vmem:[#allocation12 + $0x338] sm:$0xff] }
 0x550   :  { %9664 = vst [vmem:[#allocation85_spill] sm:$0xff] %v7905_v36  ;;  %3140 = vmatpush.msrb.mxu3 %v7920_v19  ;;  %v7923_v36 = vld [vmem:[#allocation12 + $0x80] sm:$0xff] }
 0x551   :  { %9665 = vst [vmem:[#allocation88_spill] sm:$0xff] %v7908_v35  ;;  %3005 = vmatpush.msrb.mxu0 %v7923_v36  ;;  %v7926_v35 = vld [vmem:[#allocation12 + $0x88] sm:$0xff] }
 0x552   :  { %9666 = vst [vmem:[#allocation89_spill] sm:$0xff] %v7911_v63  ;;  %3045 = vmatpush.msra.mxu2 %v7926_v35  ;;  %v7929_v63 = vld [vmem:[#allocation12 + $0x310] sm:$0xff] }
 0x553   :  { %9667 = vst [vmem:[#allocation92_spill] sm:$0xff] %v7914_v59  ;;  %3101 = vmatpush.msra.mxu1 %v7929_v63  ;;  %v7932_v59 = vld [vmem:[#allocation12 + $0x318] sm:$0xff] }
 0x554   :  { %9668 = vst [vmem:[#allocation93_spill] sm:$0xff] %v7917_v16  ;;  %3141 = vmatpush.msrb.mxu3 %v7932_v59  ;;  %v7935_v16 = vld [vmem:[#allocation12 + $0x60] sm:$0xff] }
 0x555   :  { %9669 = vst [vmem:[#allocation96_spill] sm:$0xff] %v7920_v19  ;;  %3006 = vmatpush.msrb.mxu0 %v7935_v16  ;;  %v7938_v19 = vld [vmem:[#allocation12 + $0x68] sm:$0xff] }
 0x556   :  { %9670 = vst [vmem:[#allocation97_spill] sm:$0xff] %v7923_v36  ;;  %3046 = vmatpush.msra.mxu2 %v7938_v19  ;;  %v7941_v36 = vld [vmem:[#allocation12 + $0x2f0] sm:$0xff] }
 0x557   :  { %9671 = vst [vmem:[#allocation100_spill] sm:$0xff] %v7926_v35  ;;  %3102 = vmatpush.msra.mxu1 %v7941_v36  ;;  %v7944_v35 = vld [vmem:[#allocation12 + $0x2f8] sm:$0xff] }
 0x558   :  { %9672 = vst [vmem:[#allocation101_spill] sm:$0xff] %v7929_v63  ;;  %3142 = vmatpush.msrb.mxu3 %v7944_v35  ;;  %v7947_v63 = vld [vmem:[#allocation12 + $0x40] sm:$0xff] }
 0x559   :  { %9673 = vst [vmem:[#allocation103_spill] sm:$0xff] %v7932_v59  ;;  %3007 = vmatpush.msrb.mxu0 %v7947_v63  ;;  %v7950_v59 = vld [vmem:[#allocation12 + $0x48] sm:$0xff] }
 0x55a   :  { %9674 = vst [vmem:[#allocation104_spill] sm:$0xff] %v7935_v16  ;;  %3047 = vmatpush.msra.mxu2 %v7950_v59  ;;  %v7953_v16 = vld [vmem:[#allocation12 + $0x2d0] sm:$0xff] }
 0x55b   :  { %9675 = vst [vmem:[#allocation25_spill] sm:$0xff] %v7938_v19  ;;  %3103 = vmatpush.msra.mxu1 %v7953_v16  ;;  %v7956_v19 = vld [vmem:[#allocation12 + $0x2d8] sm:$0xff] }
 0x55c   :  { %9676 = vst [vmem:[#allocation24_spill] sm:$0xff] %v7941_v36  ;;  %3143 = vmatpush.msrb.mxu3 %v7956_v19  ;;  %v7959_v36 = vld [vmem:[#allocation12 + $0x20] sm:$0xff] }
 0x55d   :  { %9677 = vst [vmem:[#allocation26_spill] sm:$0xff] %v7944_v35  ;;  %3008 = vmatpush.msrb.mxu0 %v7959_v36  ;;  %v7962_v35 = vld [vmem:[#allocation12 + $0x28] sm:$0xff] }
 0x55e   :  { %9678 = vst [vmem:[#allocation27_spill] sm:$0xff] %v7947_v63  ;;  %3048 = vmatpush.msra.mxu2 %v7962_v35  ;;  %v7965_v63 = vld [vmem:[#allocation12 + $0x2b0] sm:$0xff] }
 0x55f   :  { %9679 = vst [vmem:[#allocation28_spill] sm:$0xff] %v7950_v59  ;;  %3104 = vmatpush.msra.mxu1 %v7965_v63  ;;  %v7968_v59 = vld [vmem:[#allocation12 + $0x2b8] sm:$0xff] }
 0x560   :  { %9680 = vst [vmem:[#allocation29_spill] sm:$0xff] %v7953_v16  ;;  %3144 = vmatpush.msrb.mxu3 %v7968_v59  ;;  %v7971_v16 = vld [vmem:[#allocation12] sm:$0xff] }
 0x561   :  { %9681 = vst [vmem:[#allocation30_spill] sm:$0xff] %v7956_v19  ;;  %3009 = vmatpush.msrb.mxu0 %v7971_v16  ;;  %v7974_v19 = vld [vmem:[#allocation12 + $0x8] sm:$0xff] }
 0x562   :  { %9682 = vst [vmem:[#allocation31_spill] sm:$0xff] %v7959_v36  ;;  %3049 = vmatpush.msra.mxu2 %v7974_v19  ;;  %v7977_v36 = vld [vmem:[#allocation12 + $0x290] sm:$0xff] }
 0x563   :  { %9683 = vst [vmem:[#allocation105_spill] sm:$0xff] %v7962_v35  ;;  %3105 = vmatpush.msra.mxu1 %v7977_v36  ;;  %v7980_v35 = vld [vmem:[#allocation12 + $0x298] sm:$0xff] }
 0x564   :  { %9684 = vst [vmem:[#allocation106_spill] sm:$0xff] %v7965_v63  ;;  %3145 = vmatpush.msrb.mxu3 %v7980_v35  ;;  %v7983_v63 = vld [vmem:[#allocation12 + $0x1f0] sm:$0xff] }
 0x565   :  { %9685 = vst [vmem:[#allocation107_spill] sm:$0xff] %v7968_v59  ;;  %3074 = vmatpush.msra.mxu0 %v7983_v63  ;;  %v7986_v59 = vld [vmem:[#allocation12 + $0x1f8] sm:$0xff] }
 0x566   :  { %9686 = vst [vmem:[#allocation108_spill] sm:$0xff] %v7971_v16  ;;  %3114 = vmatpush.msrb.mxu2 %v7986_v59  ;;  %v7989_v16 = vld [vmem:[#allocation12 + $0x270] sm:$0xff] }
 0x567   :  { %9687 = vst [vmem:[#allocation109_spill] sm:$0xff] %v7974_v19  ;;  %3106 = vmatpush.msra.mxu1 %v7989_v16  ;;  %v7992_v19 = vld [vmem:[#allocation12 + $0x278] sm:$0xff] }
 0x568   :  { %9688 = vst [vmem:[#allocation110_spill] sm:$0xff] %v7977_v36  ;;  %3146 = vmatpush.msrb.mxu3 %v7992_v19  ;;  %v7995_v36 = vld [vmem:[#allocation12 + $0x1d0] sm:$0xff] }
 0x569   :  { %9689 = vst [vmem:[#allocation111_spill] sm:$0xff] %v7980_v35  ;;  %3075 = vmatpush.msra.mxu0 %v7995_v36  ;;  %v7998_v35 = vld [vmem:[#allocation12 + $0x1d8] sm:$0xff] }
 0x56a   :  { %9690 = vst [vmem:[#allocation112_spill] sm:$0xff] %v7983_v63  ;;  %3115 = vmatpush.msrb.mxu2 %v7998_v35  ;;  %v8001_v63 = vld [vmem:[#allocation12 + $0x250] sm:$0xff] }
 0x56b   :  { %9691 = vst [vmem:[#allocation113_spill] sm:$0xff] %v7986_v59  ;;  %3107 = vmatpush.msra.mxu1 %v8001_v63  ;;  %v8004_v59 = vld [vmem:[#allocation12 + $0x258] sm:$0xff] }
 0x56c   :  { %9692 = vst [vmem:[#allocation114_spill] sm:$0xff] %v7989_v16  ;;  %3147 = vmatpush.msrb.mxu3 %v8004_v59  ;;  %v8007_v16 = vld [vmem:[#allocation12 + $0x1b0] sm:$0xff] }
 0x56d   :  { %9693 = vst [vmem:[#allocation115_spill] sm:$0xff] %v7992_v19  ;;  %3076 = vmatpush.msra.mxu0 %v8007_v16  ;;  %v8010_v19 = vld [vmem:[#allocation12 + $0x1b8] sm:$0xff] }
 0x56e   :  { %9694 = vst [vmem:[#allocation116_spill] sm:$0xff] %v7995_v36  ;;  %3116 = vmatpush.msrb.mxu2 %v8010_v19  ;;  %v8013_v36 = vld [vmem:[#allocation12 + $0x230] sm:$0xff] }
 0x56f   :  { %9695 = vst [vmem:[#allocation117_spill] sm:$0xff] %v7998_v35  ;;  %3108 = vmatpush.msra.mxu1 %v8013_v36  ;;  %v8016_v35 = vld [vmem:[#allocation12 + $0x238] sm:$0xff] }
 0x570   :  { %9696 = vst [vmem:[#allocation118_spill] sm:$0xff] %v8001_v63  ;;  %3148 = vmatpush.msrb.mxu3 %v8016_v35  ;;  %v8019_v63 = vld [vmem:[#allocation12 + $0x190] sm:$0xff] }
 0x571   :  { %9697 = vst [vmem:[#allocation119_spill] sm:$0xff] %v8004_v59  ;;  %3077 = vmatpush.msra.mxu0 %v8019_v63  ;;  %v8022_v59 = vld [vmem:[#allocation12 + $0x198] sm:$0xff] }
 0x572   :  { %9698 = vst [vmem:[#allocation120_spill] sm:$0xff] %v8007_v16  ;;  %3117 = vmatpush.msrb.mxu2 %v8022_v59  ;;  %v8025_v16 = vld [vmem:[#allocation12 + $0x210] sm:$0xff] }
 0x573   :  { %9699 = vst [vmem:[#allocation121_spill] sm:$0xff] %v8010_v19  ;;  %3109 = vmatpush.msra.mxu1 %v8025_v16  ;;  %v8028_v19 = vld [vmem:[#allocation12 + $0x218] sm:$0xff]  ;;  %v2674_v12 = vpop.f32.mrf.mxu3 }
 0x574   :  { %9700 = vst [vmem:[#allocation122_spill] sm:$0xff] %v8013_v36  ;;  %3149 = vmatpush.msrb.mxu3 %v8028_v19  ;;  %v8031_v36 = vld [vmem:[#allocation12 + $0x170] sm:$0xff] }
 0x575   :  { %9701 = vst [vmem:[#allocation123_spill] sm:$0xff] %v8016_v35  ;;  %3078 = vmatpush.msra.mxu0 %v8031_v36  ;;  %v8034_v35 = vld [vmem:[#allocation12 + $0x178] sm:$0xff] }
 0x576   :  { %9702 = vst [vmem:[#allocation124_spill] sm:$0xff] %v8019_v63  ;;  %3118 = vmatpush.msrb.mxu2 %v8034_v35  ;;  %v8037_v63 = vld [vmem:[#allocation12 + $0x150] sm:$0xff] }
 0x577   :  { %9703 = vst [vmem:[#allocation125_spill] sm:$0xff] %v8022_v59  ;;  %3079 = vmatpush.msra.mxu0 %v8037_v63  ;;  %v8040_v59 = vld [vmem:[#allocation12 + $0x158] sm:$0xff] }
 0x578   :  { %9704 = vst [vmem:[#allocation126_spill] sm:$0xff] %v8025_v16  ;;  %3119 = vmatpush.msrb.mxu2 %v8040_v59  ;;  %v8043_v16 = vld [vmem:[#allocation12 + $0x130] sm:$0xff] }
 0x579   :  { %9705 = vst [vmem:[#allocation127_spill] sm:$0xff] %v8028_v19  ;;  %3080 = vmatpush.msra.mxu0 %v8043_v16  ;;  %v8046_v19 = vld [vmem:[#allocation12 + $0x138] sm:$0xff] }
 0x57a   :  { %9706 = vst [vmem:[#allocation128_spill] sm:$0xff] %v8031_v36  ;;  %3120 = vmatpush.msrb.mxu2 %v8046_v19  ;;  %v8049_v36 = vld [vmem:[#allocation12 + $0x110] sm:$0xff] }
 0x57b   :  { %9707 = vst [vmem:[#allocation129_spill] sm:$0xff] %v8034_v35  ;;  %3081 = vmatpush.msra.mxu0 %v8049_v36  ;;  %v8052_v35 = vld [vmem:[#allocation12 + $0x118] sm:$0xff]  ;;  %v2754_v4 = vpop.f32.mrf.mxu3 }
 0x57c   :  { %9708 = vst [vmem:[#allocation130_spill] sm:$0xff] %v8037_v63  ;;  %3121 = vmatpush.msrb.mxu2 %v8052_v35  ;;  %v8055_v63 = vld [vmem:[#allocation12 + $0xf0] sm:$0xff] }
 0x57d   :  { %9709 = vst [vmem:[#allocation131_spill] sm:$0xff] %v8040_v59  ;;  %3082 = vmatpush.msra.mxu0 %v8055_v63  ;;  %v8058_v59 = vld [vmem:[#allocation12 + $0xf8] sm:$0xff] }
 0x57e   :  { %9710 = vst [vmem:[#allocation132_spill] sm:$0xff] %v8043_v16  ;;  %3122 = vmatpush.msrb.mxu2 %v8058_v59  ;;  %v8061_v16 = vld [vmem:[#allocation12 + $0xd0] sm:$0xff] }
 0x57f   :  { %9711 = vst [vmem:[#allocation133_spill] sm:$0xff] %v8046_v19  ;;  %3083 = vmatpush.msra.mxu0 %v8061_v16  ;;  %v8064_v19 = vld [vmem:[#allocation12 + $0xd8] sm:$0xff] }
 0x580   :  { %9712 = vst [vmem:[#allocation134_spill] sm:$0xff] %v8049_v36  ;;  %3123 = vmatpush.msrb.mxu2 %v8064_v19  ;;  %v8067_v36 = vld [vmem:[#allocation12 + $0xb0] sm:$0xff] }
 0x581   :  { %9713 = vst [vmem:[#allocation135_spill] sm:$0xff] %v8052_v35  ;;  %3084 = vmatpush.msra.mxu0 %v8067_v36  ;;  %v8070_v35 = vld [vmem:[#allocation12 + $0xb8] sm:$0xff] }
 0x582   :  { %9714 = vst [vmem:[#allocation136_spill] sm:$0xff] %v8055_v63  ;;  %3124 = vmatpush.msrb.mxu2 %v8070_v35  ;;  %v8073_v63 = vld [vmem:[#allocation12 + $0x90] sm:$0xff] }
 0x583   :  { %9715 = vst [vmem:[#allocation137_spill] sm:$0xff] %v8058_v59  ;;  %3085 = vmatpush.msra.mxu0 %v8073_v63  ;;  %v8076_v59 = vld [vmem:[#allocation12 + $0x98] sm:$0xff] }
 0x584   :  { %9716 = vst [vmem:[#allocation138_spill] sm:$0xff] %v8061_v16  ;;  %3125 = vmatpush.msrb.mxu2 %v8076_v59  ;;  %v8079_v16 = vld [vmem:[#allocation12 + $0x70] sm:$0xff] }
 0x585   :  { %9717 = vst [vmem:[#allocation139_spill] sm:$0xff] %v8064_v19  ;;  %3086 = vmatpush.msra.mxu0 %v8079_v16  ;;  %v8082_v19 = vld [vmem:[#allocation12 + $0x78] sm:$0xff]  ;;  %v2614_v41 = vpop.f32.mrf.mxu0 }
 0x586   :  { %9718 = vst [vmem:[#allocation140_spill] sm:$0xff] %v8067_v36  ;;  %3126 = vmatpush.msrb.mxu2 %v8082_v19  ;;  %v8085_v36 = vld [vmem:[#allocation12 + $0x50] sm:$0xff] }
 0x587   :  { %9719 = vst [vmem:[#allocation141_spill] sm:$0xff] %v8070_v35  ;;  %3087 = vmatpush.msra.mxu0 %v8085_v36  ;;  %v8088_v35 = vld [vmem:[#allocation12 + $0x58] sm:$0xff] }
 0x588   :  { %9720 = vst [vmem:[#allocation142_spill] sm:$0xff] %v8073_v63  ;;  %3127 = vmatpush.msrb.mxu2 %v8088_v35  ;;  %v8091_v63 = vld [vmem:[#allocation12 + $0x30] sm:$0xff] }
 0x589   :  { %9721 = vst [vmem:[#allocation143_spill] sm:$0xff] %v8076_v59  ;;  %3088 = vmatpush.msra.mxu0 %v8091_v63  ;;  %v8094_v59 = vld [vmem:[#allocation12 + $0x38] sm:$0xff] }
 0x58a   :  { %9722 = vst [vmem:[#allocation144_spill] sm:$0xff] %v8079_v16  ;;  %3128 = vmatpush.msrb.mxu2 %v8094_v59  ;;  %v8097_v16 = vld [vmem:[#allocation12 + $0x10] sm:$0xff] }
 0x58b   :  { %9723 = vst [vmem:[#allocation145_spill] sm:$0xff] %v8082_v19  ;;  %3089 = vmatpush.msra.mxu0 %v8097_v16  ;;  %v8100_v19 = vld [vmem:[#allocation12 + $0x18] sm:$0xff]  ;;  %v2654_v0 = vpop.f32.mrf.mxu2 }
 0x58c   :  { %9724 = vst [vmem:[#allocation146_spill] sm:$0xff] %v8085_v36  ;;  %3129 = vmatpush.msrb.mxu2 %v8100_v19  ;;  %v2634_v36 = vpop.f32.mrf.mxu1 }
 0x58d   :  { %9725 = vst [vmem:[#allocation147_spill] sm:$0xff] %v8088_v35  ;;  %v2615_v35 = vadd.f32 %v2614_v41, %v9595_v42 }
 0x58e   :  { %9726 = vst [vmem:[#allocation148_spill] sm:$0xff] %v8091_v63 }
 0x58f   :  { %9727 = vst [vmem:[#allocation149_spill] sm:$0xff] %v8094_v59  ;;  %v2635_v25 = vadd.f32 %v2634_v36, %v2615_v35  ;;  %v2655_v59 = vadd.f32 %v2654_v0, %v9596_v49 }
 0x590   :  { %9728 = vst [vmem:[#allocation150_spill] sm:$0xff] %v8097_v16 }
 0x591   :  { %9729 = vst [vmem:[#allocation151_spill] sm:$0xff] %v8100_v19  ;;  %v3729_v63 = vmul.f32 -1.442695, %v2635_v25  ;;  %v2675_v30 = vadd.f32 %v2674_v12, %v2655_v59 }
 0x593   :  { %3933 = vpow2.f32 %v3729_v63  ;;  %v3730_v48 = vmul.f32 -1.442695, %v2675_v30  ;;  %v2694_v63 = vpop.f32.mrf.mxu0 }
 0x594   :  { %v2714_v38 = vpop.f32.mrf.mxu1  ;;  %v2734_v5 = vpop.f32.mrf.mxu2  ;;  %v2695_v30 = vadd.f32 %v2694_v63, %v9598_v8 }
 0x595   :  { %3935 = vpow2.f32 %v3730_v48  ;;  %v2735_v42 = vadd.f32 %v2734_v5, %v9597_v28 }
 0x596   :  { %v2902_v12 = vpop.f32.mrf.mxu3  ;;  %v2715_v49 = vadd.f32 %v2714_v38, %v2695_v30 }
 0x597   :  { %v2755_v25 = vadd.f32 %v2754_v4, %v2735_v42 }
 0x599   :  { %v3934_v52 = vpop.eup %3933  ;;  %v3731_v0 = vmul.f32 -1.442695, %v2755_v25 }
 0x59a   :  { %v2760_v19 = vadd.f32 1.0, %v3934_v52  ;;  %v2912_v52 = vrot.slane %v2902_v12, 4 }
 0x59b   :  { %v3936_v35 = vpop.eup %3935 }
 0x59c   :  { %v2862_v1 = vpop.f32.mrf.mxu1  ;;  %3937 = vrcp.f32 %v2760_v19  ;;  %v2779_v36 = vadd.f32 1.0, %v3936_v35  ;;  %v2772_v25 = vand.u32 2147483648, %v2760_v19  ;;  %vm2766_vm7 = vweird.f32 %v2760_v19 }
 0x59d   :  { %v2910_v16 = vrot.slane %v2862_v1, 4  ;;  %v2770_v18 = vand.u32 2147483647, %v2760_v19 }
 0x59e   :  { %3939 = vrcp.f32 %v2779_v36  ;;  %v2791_v63 = vand.u32 2147483648, %v2779_v36  ;;  %v2789_v38 = vand.u32 2147483647, %v2779_v36  ;;  %vm2785_vm10 = vweird.f32 %v2779_v36 }
 0x59f   :  { %v2918_v41 = vadd.f32 %v2910_v16, %v2822_v40  ;;  %3941 = vpow2.f32 %v3731_v0  ;;  %v2824_v16 = vld [vmem:[#allocation2 + $0x38] sm:$0x30]  ;;  %vm2771_vm11 = vcmp.eq.f32.partialorder %v2770_v18, 8.507059e+37 }
 0x5a0   :  { %v2920_v28 = vadd.f32 %v2912_v52, %v2824_v16  ;;  %vm2790_vm13 = vcmp.eq.f32.partialorder %v2789_v38, 8.507059e+37 }
 0x5a1   :  { %v3733_v47 = vmul.f32 -1.442695, %v2918_v41 }
 0x5a2   :  { %v3938_v59 = vpop.eup %3937  ;;  %v3734_v0 = vmul.f32 -1.442695, %v2920_v28 }
 0x5a3   :  { %v2762_v1 = vmul.f32 %v3938_v59, %v2760_v19  ;;  %3943 = vpow2.f32 %v3733_v47  ;;  %vm2767_vm6 = vweird.f32 %v3938_v59 }
 0x5a4   :  { %v3940_v5 = vpop.eup %3939  ;;  %3945 = vtanh.f32 %v2715_v49  ;;  %vm8107_vm8 = vmor %vm2766_vm7, %vm2767_vm6 }
 0x5a5   :  { %v2763_v48 = vsub.f32 1.0, %v2762_v1  ;;  %v3942_v42 = vpop.eup %3941  ;;  %v2781_v4 = vmul.f32 %v3940_v5, %v2779_v36  ;;  %vm2786_vm9 = vweird.f32 %v3940_v5 }
 0x5a6   :  { %v2799_v14 = vadd.f32 1.0, %v3942_v42  ;;  %v2842_v52 = vpop.f32.mrf.mxu0  ;;  %vm2787_vm12 = vmor %vm2785_vm10, %vm2786_vm9  ;;  %v2821_v42 = vld [vmem:[#allocation2 + $0x8] sm:$0x30] }
 0x5a7   :  { %v2764_v40 = vmul.f32 %v3938_v59, %v2763_v48  ;;  %v2782_v11 = vsub.f32 1.0, %v2781_v4  ;;  %v2773_v48 = vor.u32 1.1754944e-38, %v2772_v25  ;;  %v2909_v19 = vrot.slane %v2842_v52, 4 }
 0x5a8   :  { %3947 = vrcp.f32 %v2799_v14  ;;  %v2811_v38 = vand.u32 2147483648, %v2799_v14  ;;  %vm2805_vm15 = vweird.f32 %v2799_v14 }
 0x5a9   :  { %v2765_v35 = vadd.f32 %v3938_v59, %v2764_v40  ;;  %v3944_v41 = vpop.eup %3943  ;;  %v2783_v12 = vmul.f32 %v3940_v5, %v2782_v11  ;;  %v2792_v40 = vor.u32 1.1754944e-38, %v2791_v63  ;;  %3949 = vpow2.f32 %v3734_v0 }
 0x5aa   :  { %v8113_v30 = vadd.f32 1.0, %v3944_v41  ;;  %v3946_v4 = vpop.eup %3945  ;;  %v2917_v11 = vadd.f32 %v2909_v19, %v2821_v42  ;;  %v2812_v19 = vor.u32 1.1754944e-38, %v2811_v38 }
 0x5ab   :  { %v2769_v1 = vsel %vm8107_vm8, %v3938_v59, %v2765_v35  ;;  %v2784_v49 = vadd.f32 %v3940_v5, %v2783_v12 }
 0x5ac   :  { %v2774_v16 = vsel %vm2771_vm11, %v2773_v48, %v2769_v1  ;;  %3951 = vrcp.f32 %v8113_v30  ;;  %v3732_v18 = vmul.f32 -1.442695, %v2917_v11  ;;  %v2809_v1 = vand.u32 2147483647, %v2799_v14 }
 0x5ad   :  { %v2788_v28 = vsel %vm2787_vm12, %v3940_v5, %v2784_v49  ;;  %v2816_v25 = vmul.f32 %v3946_v4, %v2774_v16  ;;  %v2882_v11 = vpop.f32.mrf.mxu2  ;;  %vm2949_vm3 = vweird.f32 %v8113_v30 }
 0x5ae   :  { %v3948_v59 = vpop.eup %3947  ;;  %v2793_v35 = vsel %vm2790_vm13, %v2792_v40, %v2788_v28  ;;  %3953 = vpow2.f32 %v3732_v18  ;;  %vm2810_vm1 = vcmp.eq.f32.partialorder %v2809_v1, 8.507059e+37  ;;  %v2955_v1 = vand.u32 2147483648, %v8113_v30 }
 0x5af   :  { %v2815_v41 = vmul.f32 %v2793_v35, %v7532_v27  ;;  %v2801_v36 = vmul.f32 %v3948_v59, %v2799_v14  ;;  %v3950_v63 = vpop.eup %3949  ;;  %vm2806_vm14 = vweird.f32 %v3948_v59 }
 0x5b0   :  { %v8124_v48 = vadd.f32 1.0, %v3950_v63  ;;  %vm2807_vm0 = vmor %vm2805_vm15, %vm2806_vm14 }
 0x5b1   :  { %v8117_v47 = vadd.f32 %v2816_v25, %v2815_v41  ;;  %v2802_v12 = vsub.f32 1.0, %v2801_v36  ;;  %v2911_v41 = vrot.slane %v2882_v11, 4 }
 0x5b2   :  { %v8119_v0 = vpop.eup %3951  ;;  %vm2969_vm11 = vweird.f32 %v8124_v48 }
 0x5b3   :  { %3955 = vtanh.f32 %v8117_v47  ;;  %v2803_v5 = vmul.f32 %v3948_v59, %v2802_v12  ;;  %v2945_v27 = vmul.f32 %v8119_v0, %v8113_v30  ;;  %vm2950_vm2 = vweird.f32 %v8119_v0 }
 0x5b4   :  { %v3954_v40 = vpop.eup %3953  ;;  %3957 = vrcp.f32 %v8124_v48  ;;  %vm8141_vm4 = vmor %vm2949_vm3, %vm2950_vm2 }
 0x5b5   :  { %v2804_v52 = vadd.f32 %v3948_v59, %v2803_v5  ;;  %v2924_v42 = vadd.f32 1.0, %v3954_v40  ;;  %v2946_v28 = vsub.f32 1.0, %v2945_v27  ;;  %v2956_v40 = vor.u32 1.1754944e-38, %v2955_v1  ;;  %v9742_v1 = vld [vmem:[#allocation50_spill] sm:$0xff] }
 0x5b7   :  { %v2808_v49 = vsel %vm2807_vm0, %v3948_v59, %v2804_v52  ;;  %3959 = vrcp.f32 %v2924_v42  ;;  %v2947_v25 = vmul.f32 %v8119_v0, %v2946_v28  ;;  %v2823_v59 = vld [vmem:[#allocation2 + $0x28] sm:$0x30]  ;;  %vm2930_vm6 = vweird.f32 %v2924_v42 }
 0x5b8   :  { %v2813_v4 = vsel %vm2810_vm1, %v2812_v19, %v2808_v49  ;;  %v2919_v63 = vadd.f32 %v2911_v41, %v2823_v59  ;;  %v2936_v49 = vand.u32 2147483648, %v2924_v42  ;;  %v9735_v41 = vld [vmem:[#allocation37_spill] sm:$0xff]  ;;  %v9739_v59 = vld [vmem:[#allocation43_spill] sm:$0xff] }
 0x5b9   :  { %v3956_v16 = vpop.eup %3955  ;;  %v2948_v38 = vadd.f32 %v8119_v0, %v2947_v25  ;;  %v9736_v25 = vld [vmem:[#allocation38_spill] sm:$0xff] }
 0x5ba   :  { %v2819_v35 = vmul.f32 %v3956_v16, %v2813_v4  ;;  %v8128_v18 = vpop.eup %3957  ;;  %3961 = vtanh.f32 %v2919_v63  ;;  %v4610_v63 = vld [vmem:[#allocation9 + $0xb0] sm:$0xff] }
 0x5bb   :  { %v2965_v52 = vmul.f32 %v8128_v18, %v8124_v48  ;;  %vm2970_vm10 = vweird.f32 %v8128_v18 }
 0x5bc   :  { %2820 = vst [vmem:[#allocation3 + $0xa] sm:$0x3] %v2819_v35  ;;  %v2988_v14 = vrot.slane %v2819_v35, 4  ;;  %vm2971_vm12 = vmor %vm2969_vm11, %vm2970_vm10  ;;  %v4603_v35 = vld [vmem:[#allocation9 + $0x100] sm:$0xff] }
 0x5bd   :  { %v3960_v12 = vpop.eup %3959  ;;  %v2966_v16 = vsub.f32 1.0, %v2965_v52  ;;  %v4612_v52 = vld [vmem:[#allocation9 + $0x90] sm:$0xff] }
 0x5be   :  { %v2991_v36 = vrot.slane %v2988_v14, 4  ;;  %v2926_v5 = vmul.f32 %v3960_v12, %v2924_v42  ;;  %vm2931_vm5 = vweird.f32 %v3960_v12  ;;  %v4604_v14 = vld [vmem:[#allocation9 + $0x110] sm:$0xff] }
 0x5bf   :  { %vm2932_vm8 = vmor %vm2930_vm6, %vm2931_vm5 }
 0x5c0   :  { %3030 = vmatmul.f32.vlgmr.msrb.gmra.mxu1 %v2991_v36  ;;  %3070 = vmatmul.f32.vlgmr.msra.gmra.mxu3 %v2991_v36  ;;  %v2927_v27 = vsub.f32 1.0, %v2926_v5  ;;  %v3962_v28 = vpop.eup %3961  ;;  %v9741_v5 = vld [vmem:[#allocation47_spill] sm:$0xff] }
 0x5c1   :  { %3242 = vmatpush.msrb.mxu1 %v7552_v32  ;;  %3282 = vmatpush.msra.mxu3 %v7555_v10  ;;  %v2953_v32 = vand.u32 2147483647, %v8113_v30  ;;  %v9744_v10 = vld [vmem:[#allocation54_spill] sm:$0xff] }
 0x5c2   :  { %v2928_v19 = vmul.f32 %v3960_v12, %v2927_v27  ;;  %v9743_v27 = vld [vmem:[#allocation51_spill] sm:$0xff] }
 0x5c3   :  { %3243 = vmatpush.msrb.mxu1 %v7565_v26  ;;  %3283 = vmatpush.msra.mxu3 %v7568_v7  ;;  %v2934_v26 = vand.u32 2147483647, %v2924_v42  ;;  %v2952_v7 = vsel %vm8141_vm4, %v8119_v0, %v2948_v38  ;;  %vm2954_vm7 = vcmp.eq.f32.partialorder %v2953_v32, 8.507059e+37  ;;  %v2980_v0 = vrot.slane %v7602_v46, 6  ;;  %v4611_v38 = vld [vmem:[#allocation9 + $0x80] sm:$0xff] }
 0x5c4   :  { %v2929_v30 = vadd.f32 %v3960_v12, %v2928_v19  ;;  %v4613_v32 = vld [vmem:[#allocation9 + $0x60] sm:$0xff] }
 0x5c5   :  { %3244 = vmatpush.msrb.mxu1 %v7575_v21  ;;  %3284 = vmatpush.msra.mxu3 %v7578_v58  ;;  %v2937_v21 = vor.u32 1.1754944e-38, %v2936_v49  ;;  %v2957_v58 = vsel %vm2954_vm7, %v2956_v40, %v2952_v7  ;;  %vm2935_vm9 = vcmp.eq.f32.partialorder %v2934_v26, 8.507059e+37  ;;  %v4614_v49 = vld [vmem:[#allocation9 + $0x70] sm:$0xff]  ;;  %v9745_v19 = vld [vmem:[#allocation55_spill] sm:$0xff]  ;;  %v9746_v7 = vld [vmem:[#allocation58_spill] sm:$0xff] }
 0x5c6   :  { %v2933_v4 = vsel %vm2932_vm8, %v3960_v12, %v2929_v30  ;;  %v2982_v42 = vmul.f32 %v2980_v0, %v2957_v58  ;;  %v9740_v12 = vld [vmem:[#allocation46_spill] sm:$0xff]  ;;  %v9747_v40 = vld [vmem:[#allocation59_spill] sm:$0xff] }
 0x5c7   :  { %3245 = vmatpush.msrb.mxu1 %v7582_v53  ;;  %3285 = vmatpush.msra.mxu3 %v7585_v61  ;;  %v2967_v53 = vmul.f32 %v8128_v18, %v2966_v16  ;;  %v2938_v61 = vsel %vm2935_vm9, %v2937_v21, %v2933_v4  ;;  %v4615_v26 = vld [vmem:[#allocation9 + $0x40] sm:$0xff] }
 0x5c8   :  { %3110 = vmatmul.f32.vlgmr.msra.gmra.mxu1 %v2991_v36  ;;  %3150 = vmatmul.f32.vlgmr.msrb.gmra.mxu3 %v2991_v36  ;;  %v2983_v11 = vmul.f32 %v3962_v28, %v2938_v61  ;;  %v9737_v36 = vld [vmem:[#allocation39_spill] sm:$0xff]  ;;  %v9748_v16 = vld [vmem:[#allocation62_spill] sm:$0xff] }
 0x5c9   :  { %3246 = vmatpush.msrb.mxu1 %v7590_v54  ;;  %3286 = vmatpush.msra.mxu3 %v7593_v24  ;;  %v2968_v24 = vadd.f32 %v8128_v18, %v2967_v53  ;;  %v4616_v30 = vld [vmem:[#allocation9 + $0x20] sm:$0xff] }
 0x5ca   :  { %v8160_v54 = vadd.f32 %v2983_v11, %v2982_v42  ;;  %v9749_v21 = vld [vmem:[#allocation63_spill] sm:$0xff]  ;;  %v9750_v58 = vld [vmem:[#allocation66_spill] sm:$0xff] }
 0x5cb   :  { %3247 = vmatpush.msrb.mxu1 %v7596_v44  ;;  %3287 = vmatpush.msra.mxu3 %v7599_v50  ;;  %v2975_v44 = vand.u32 2147483648, %v8124_v48  ;;  %v2973_v50 = vand.u32 2147483647, %v8124_v48  ;;  %v2972_v46 = vsel %vm2971_vm12, %v8128_v18, %v2968_v24  ;;  %v9738_v18 = vld [vmem:[#allocation42_spill] sm:$0xff]  ;;  %v9751_v0 = vld [vmem:[#allocation67_spill] sm:$0xff] }
 0x5cc   :  { %3963 = vtanh.f32 %v8160_v54  ;;  %v4617_v4 = vld [vmem:[#allocation9] sm:$0xff] }
 0x5cd   :  { %3248 = vmatpush.msrb.mxu1 %v7606_v31  ;;  %3288 = vmatpush.msra.mxu3 %v7609_v57  ;;  %v9734_v31 = vld [vmem:[#allocation36_spill] sm:$0xff]  ;;  %v2976_v57 = vor.u32 1.1754944e-38, %v2975_v44  ;;  %vm2974_vm13 = vcmp.eq.f32.partialorder %v2973_v50, 8.507059e+37  ;;  %v9752_v28 = vld [vmem:[#allocation70_spill] sm:$0xff]  ;;  %v9753_v53 = vld [vmem:[#allocation71_spill] sm:$0xff] }
 0x5ce   :  { %v9754_v61 = vld [vmem:[#allocation78_spill] sm:$0xff]  ;;  %v9756_v11 = vld [vmem:[#allocation75_spill] sm:$0xff]  ;;  %v9759_v50 = vld [vmem:[#allocation21_spill] sm:$0xff] }
 0x5cf   :  { %3249 = vmatpush.msrb.mxu1 %v7616_v45  ;;  %3289 = vmatpush.msra.mxu3 %v7619_v43  ;;  %v2977_v43 = vsel %vm2974_vm13, %v2976_v57, %v2972_v46  ;;  %v9755_v42 = vld [vmem:[#allocation74_spill] sm:$0xff]  ;;  %v9758_v44 = vld [vmem:[#allocation79_spill] sm:$0xff] }
 0x5d0   :  { %v9757_v24 = vld [vmem:[#allocation22_spill] sm:$0xff] }
 0x5d1   :  { %3250 = vmatpush.msrb.mxu1 %v7623_v6  ;;  %3290 = vmatpush.msra.mxu3 %v7626_v20  ;;  %v4589_v20 = vld [vmem:[#allocation9 + $0x1e0] sm:$0xff] }
 0x5d2   :  { %v3964_v45 = vpop.eup %3963  ;;  %v9760_v46 = vld [vmem:[#allocation82_spill] sm:$0xff] }
 0x5d3   :  { %3251 = vmatpush.msrb.mxu1 %v9734_v31  ;;  %3291 = vmatpush.msra.mxu3 %v7632_v15  ;;  %v2986_v48 = vmul.f32 %v3964_v45, %v2977_v43  ;;  %v4590_v15 = vld [vmem:[#allocation9 + $0x1f0] sm:$0xff]  ;;  %v9762_v57 = vld [vmem:[#allocation86_spill] sm:$0xff]  ;;  %v9763_v45 = vld [vmem:[#allocation83_spill] sm:$0xff] }
 0x5d4   :  { %v9761_v31 = vld [vmem:[#allocation40_spill] sm:$0xff]  ;;  %v9764_v43 = vld [vmem:[#allocation23_spill] sm:$0xff] }
 0x5d5   :  { %3252 = vmatpush.msrb.mxu1 %v7635_v56  ;;  %3292 = vmatpush.msra.mxu3 %v7638_v17  ;;  %v8179_v6 = vrot.slane %v2986_v48, 4  ;;  %v4591_v56 = vld [vmem:[#allocation9 + $0x1c0] sm:$0xff] }
 0x5d6   :  { %v4593_v17 = vld [vmem:[#allocation9 + $0x1a0] sm:$0xff] }
 0x5d7   :  { %3253 = vmatpush.msrb.mxu1 %v7643_v23  ;;  %3293 = vmatpush.msra.mxu3 %v7646_v39  ;;  %v4592_v39 = vld [vmem:[#allocation9 + $0x1d0] sm:$0xff]  ;;  %v9765_v48 = vld [vmem:[#allocation90_spill] sm:$0xff] }
 0x5d8   :  { %3010 = vmatmul.f32.vlgmr.msrb.gmra.mxu0 %v8179_v6  ;;  %3050 = vmatmul.f32.vlgmr.msra.gmra.mxu2 %v8179_v6  ;;  %v4594_v23 = vld [vmem:[#allocation9 + $0x1b0] sm:$0xff] }
 0x5d9   :  { %3254 = vmatpush.msrb.mxu1 %v7653_v13  ;;  %3294 = vmatpush.msra.mxu3 %v7656_v55  ;;  %v4595_v13 = vld [vmem:[#allocation9 + $0x180] sm:$0xff]  ;;  %v4596_v55 = vld [vmem:[#allocation9 + $0x190] sm:$0xff] }
 0x5da   :  { %3222 = vmatpush.msrb.mxu0 %v4589_v20  ;;  %3262 = vmatpush.msra.mxu2 %v4590_v15  ;;  %v9767_v20 = vld [vmem:[#allocation41_spill] sm:$0xff]  ;;  %v9768_v15 = vld [vmem:[#allocation44_spill] sm:$0xff] }
 0x5db   :  { %3255 = vmatpush.msrb.mxu1 %v7661_v33  ;;  %3295 = vmatpush.msra.mxu3 %v7664_v3  ;;  %v4597_v33 = vld [vmem:[#allocation9 + $0x160] sm:$0xff]  ;;  %v4598_v3 = vld [vmem:[#allocation9 + $0x170] sm:$0xff] }
 0x5dc   :  { %3223 = vmatpush.msrb.mxu0 %v4591_v56  ;;  %3263 = vmatpush.msra.mxu2 %v4592_v39  ;;  %v9769_v56 = vld [vmem:[#allocation94_spill] sm:$0xff]  ;;  %v9770_v39 = vld [vmem:[#allocation91_spill] sm:$0xff] }
 0x5dd   :  { %3256 = vmatpush.msrb.mxu1 %v7669_v60  ;;  %3296 = vmatpush.msra.mxu3 %v7672_v2  ;;  %v4599_v60 = vld [vmem:[#allocation9 + $0x140] sm:$0xff]  ;;  %v4600_v2 = vld [vmem:[#allocation9 + $0x150] sm:$0xff] }
 0x5de   :  { %3224 = vmatpush.msrb.mxu0 %v4593_v17  ;;  %3264 = vmatpush.msra.mxu2 %v4594_v23  ;;  %v9771_v17 = vld [vmem:[#allocation45_spill] sm:$0xff]  ;;  %v9772_v23 = vld [vmem:[#allocation48_spill] sm:$0xff] }
 0x5df   :  { %3257 = vmatpush.msrb.mxu1 %v7677_v22  ;;  %3297 = vmatpush.msra.mxu3 %v7680_v37  ;;  %v4601_v22 = vld [vmem:[#allocation9 + $0x120] sm:$0xff]  ;;  %v4602_v37 = vld [vmem:[#allocation9 + $0x130] sm:$0xff] }
 0x5e0   :  { %3225 = vmatpush.msrb.mxu0 %v4595_v13  ;;  %3265 = vmatpush.msra.mxu2 %v4596_v55  ;;  %v9773_v13 = vld [vmem:[#allocation53_spill] sm:$0xff]  ;;  %v9774_v55 = vld [vmem:[#allocation95_spill] sm:$0xff] }
 0x5e1   :  { %3090 = vmatmul.f32.vlgmr.msra.gmra.mxu0 %v8179_v6  ;;  %3130 = vmatmul.f32.vlgmr.msrb.gmra.mxu2 %v8179_v6 }
 0x5e2   :  { %3226 = vmatpush.msrb.mxu0 %v4597_v33  ;;  %3258 = vmatmul.f32.vlgmr.msrb.gmra.mxu1 %v8179_v6  ;;  %v9775_v33 = vld [vmem:[#allocation49_spill] sm:$0xff] }
 0x5e3   :  { %3266 = vmatpush.msra.mxu2 %v4598_v3  ;;  %3298 = vmatmul.f32.vlgmr.msra.gmra.mxu3 %v8179_v6  ;;  %v9776_v3 = vld [vmem:[#allocation52_spill] sm:$0xff] }
 0x5e4   :  { %3227 = vmatpush.msrb.mxu0 %v4599_v60  ;;  %3411 = vmatpush.msra.mxu1 %v7690_v29  ;;  %v4605_v29 = vld [vmem:[#allocation9 + $0xe0] sm:$0xff] }
 0x5e5   :  { %3267 = vmatpush.msra.mxu2 %v4600_v2  ;;  %3451 = vmatpush.msrb.mxu3 %v7694_v9  ;;  %v4606_v9 = vld [vmem:[#allocation9 + $0xf0] sm:$0xff]  ;;  %v9777_v60 = vld [vmem:[#allocation102_spill] sm:$0xff] }
 0x5e6   :  { %3228 = vmatpush.msrb.mxu0 %v4601_v22  ;;  %3412 = vmatpush.msra.mxu1 %v7698_v34  ;;  %v4607_v34 = vld [vmem:[#allocation9 + $0xc0] sm:$0xff] }
 0x5e7   :  { %3268 = vmatpush.msra.mxu2 %v4602_v37  ;;  %3452 = vmatpush.msrb.mxu3 %v7702_v62  ;;  %v4608_v62 = vld [vmem:[#allocation9 + $0xd0] sm:$0xff]  ;;  %v9778_v2 = vld [vmem:[#allocation98_spill] sm:$0xff]  ;;  %v9779_v22 = vld [vmem:[#allocation99_spill] sm:$0xff] }
 0x5e8   :  { %3229 = vmatpush.msrb.mxu0 %v4603_v35  ;;  %3413 = vmatpush.msra.mxu1 %v7706_v51  ;;  %v4609_v51 = vld [vmem:[#allocation9 + $0xa0] sm:$0xff]  ;;  %v9780_v37 = vld [vmem:[#allocation56_spill] sm:$0xff]  ;;  %v9781_v35 = vld [vmem:[#allocation65_spill] sm:$0xff] }
 0x5e9   :  { %3269 = vmatpush.msra.mxu2 %v4604_v14  ;;  %3453 = vmatpush.msrb.mxu3 %v9735_v41  ;;  %v9782_v14 = vld [vmem:[#allocation57_spill] sm:$0xff]  ;;  %v9783_v41 = vld [vmem:[#allocation60_spill] sm:$0xff] }
 0x5ea   :  { %3230 = vmatpush.msrb.mxu0 %v4605_v29  ;;  %3414 = vmatpush.msra.mxu1 %v9736_v25  ;;  %v9784_v29 = vld [vmem:[#allocation61_spill] sm:$0xff] }
 0x5eb   :  { %3270 = vmatpush.msra.mxu2 %v4606_v9  ;;  %3454 = vmatpush.msrb.mxu3 %v9737_v36  ;;  %v9785_v25 = vld [vmem:[#allocation73_spill] sm:$0xff]  ;;  %v9786_v9 = vld [vmem:[#allocation64_spill] sm:$0xff] }
 0x5ec   :  { %3231 = vmatpush.msrb.mxu0 %v4607_v34  ;;  %3415 = vmatpush.msra.mxu1 %v9738_v18  ;;  %v9787_v36 = vld [vmem:[#allocation68_spill] sm:$0xff]  ;;  %v9788_v34 = vld [vmem:[#allocation69_spill] sm:$0xff] }
 0x5ed   :  { %3271 = vmatpush.msra.mxu2 %v4608_v62  ;;  %3455 = vmatpush.msrb.mxu3 %v9739_v59  ;;  %v9789_v18 = vld [vmem:[#allocation81_spill] sm:$0xff]  ;;  %v9790_v62 = vld [vmem:[#allocation72_spill] sm:$0xff] }
 0x5ee   :  { %3232 = vmatpush.msrb.mxu0 %v4609_v51  ;;  %3416 = vmatpush.msra.mxu1 %v9740_v12  ;;  %v9791_v59 = vld [vmem:[#allocation76_spill] sm:$0xff]  ;;  %v9792_v51 = vld [vmem:[#allocation77_spill] sm:$0xff] }
 0x5ef   :  { %3272 = vmatpush.msra.mxu2 %v4610_v63  ;;  %3456 = vmatpush.msrb.mxu3 %v9741_v5  ;;  %v9793_v12 = vld [vmem:[#allocation89_spill] sm:$0xff]  ;;  %v9794_v63 = vld [vmem:[#allocation80_spill] sm:$0xff] }
 0x5f0   :  { %3233 = vmatpush.msrb.mxu0 %v4611_v38  ;;  %3417 = vmatpush.msra.mxu1 %v9742_v1  ;;  %v9795_v5 = vld [vmem:[#allocation84_spill] sm:$0xff]  ;;  %v9796_v38 = vld [vmem:[#allocation85_spill] sm:$0xff] }
 0x5f1   :  { %3273 = vmatpush.msra.mxu2 %v4612_v52  ;;  %3457 = vmatpush.msrb.mxu3 %v9743_v27  ;;  %v9797_v1 = vld [vmem:[#allocation97_spill] sm:$0xff]  ;;  %v9798_v52 = vld [vmem:[#allocation88_spill] sm:$0xff] }
 0x5f2   :  { %3234 = vmatpush.msrb.mxu0 %v4613_v32  ;;  %3418 = vmatpush.msra.mxu1 %v9744_v10  ;;  %v9799_v27 = vld [vmem:[#allocation92_spill] sm:$0xff]  ;;  %v9800_v32 = vld [vmem:[#allocation93_spill] sm:$0xff] }
 0x5f3   :  { %3274 = vmatpush.msra.mxu2 %v4614_v49  ;;  %3458 = vmatpush.msrb.mxu3 %v9745_v19  ;;  %v9801_v10 = vld [vmem:[#allocation104_spill] sm:$0xff] }
 0x5f4   :  { %3235 = vmatpush.msrb.mxu0 %v4615_v26  ;;  %3419 = vmatpush.msra.mxu1 %v9746_v7  ;;  %v9802_v49 = vld [vmem:[#allocation96_spill] sm:$0xff]  ;;  %v9804_v26 = vld [vmem:[#allocation101_spill] sm:$0xff]  ;;  %v9805_v7 = vld [vmem:[#allocation27_spill] sm:$0xff] }
 0x5f5   :  { %3275 = vmatpush.msra.mxu2 %v9747_v40  ;;  %3459 = vmatpush.msrb.mxu3 %v9748_v16  ;;  %v9803_v19 = vld [vmem:[#allocation100_spill] sm:$0xff]  ;;  %v9806_v40 = vld [vmem:[#allocation103_spill] sm:$0xff]  ;;  %v9807_v16 = vld [vmem:[#allocation25_spill] sm:$0xff] }
 0x5f6   :  { %3236 = vmatpush.msrb.mxu0 %v4616_v30  ;;  %3420 = vmatpush.msra.mxu1 %v9749_v21  ;;  %v9808_v30 = vld [vmem:[#allocation24_spill] sm:$0xff]  ;;  %v9809_v21 = vld [vmem:[#allocation31_spill] sm:$0xff] }
 0x5f7   :  { %3276 = vmatpush.msra.mxu2 %v9750_v58  ;;  %3460 = vmatpush.msrb.mxu3 %v9751_v0  ;;  %v9810_v58 = vld [vmem:[#allocation26_spill] sm:$0xff]  ;;  %v9811_v0 = vld [vmem:[#allocation28_spill] sm:$0xff] }
 0x5f8   :  { %3237 = vmatpush.msrb.mxu0 %v4617_v4  ;;  %3421 = vmatpush.msra.mxu1 %v9752_v28  ;;  %v9812_v4 = vld [vmem:[#allocation29_spill] sm:$0xff]  ;;  %v9813_v28 = vld [vmem:[#allocation108_spill] sm:$0xff] }
 0x5f9   :  { %3277 = vmatpush.msra.mxu2 %v9753_v53  ;;  %3238 = vmatmul.f32.vlgmr.msrb.gmra.mxu0 %v8179_v6  ;;  %v9814_v53 = vld [vmem:[#allocation30_spill] sm:$0xff] }
 0x5fa   :  { %3278 = vmatmul.f32.vlgmr.msra.gmra.mxu2 %v8179_v6  ;;  %3391 = vmatpush.msra.mxu0 %v9754_v61  ;;  %v9766_v6 = vld [vmem:[#allocation87_spill] sm:$0xff]  ;;  %v9815_v61 = vld [vmem:[#allocation112_spill] sm:$0xff] }
 0x5fb   :  { %3461 = vmatpush.msrb.mxu3 %v9755_v42  ;;  %3422 = vmatpush.msra.mxu1 %v9756_v11  ;;  %v9816_v42 = vld [vmem:[#allocation105_spill] sm:$0xff]  ;;  %v9817_v11 = vld [vmem:[#allocation106_spill] sm:$0xff] }
 0x5fc   :  { %3392 = vmatpush.msra.mxu0 %v9757_v24  ;;  %3431 = vmatpush.msrb.mxu2 %v9758_v44  ;;  %v9818_v24 = vld [vmem:[#allocation107_spill] sm:$0xff]  ;;  %v9819_v44 = vld [vmem:[#allocation116_spill] sm:$0xff] }
 0x5fd   :  { %3462 = vmatpush.msrb.mxu3 %v9759_v50  ;;  %3423 = vmatpush.msra.mxu1 %v9760_v46  ;;  %v9820_v50 = vld [vmem:[#allocation109_spill] sm:$0xff]  ;;  %v9821_v46 = vld [vmem:[#allocation110_spill] sm:$0xff] }
 0x5fe   :  { %3393 = vmatpush.msra.mxu0 %v9761_v31  ;;  %3432 = vmatpush.msrb.mxu2 %v9762_v57  ;;  %v9822_v31 = vld [vmem:[#allocation111_spill] sm:$0xff]  ;;  %v9823_v57 = vld [vmem:[#allocation120_spill] sm:$0xff] }
 0x5ff   :  { %3463 = vmatpush.msrb.mxu3 %v9763_v45  ;;  %3424 = vmatpush.msra.mxu1 %v9764_v43  ;;  %v9824_v45 = vld [vmem:[#allocation113_spill] sm:$0xff]  ;;  %v9825_v43 = vld [vmem:[#allocation114_spill] sm:$0xff] }
 0x600   :  { %3394 = vmatpush.msra.mxu0 %v9765_v48  ;;  %3433 = vmatpush.msrb.mxu2 %v9766_v6  ;;  %v9826_v48 = vld [vmem:[#allocation115_spill] sm:$0xff]  ;;  %v9827_v6 = vld [vmem:[#allocation124_spill] sm:$0xff] }
 0x601   :  { %3464 = vmatpush.msrb.mxu3 %v9767_v20  ;;  %3425 = vmatpush.msra.mxu1 %v9768_v15  ;;  %v9828_v20 = vld [vmem:[#allocation117_spill] sm:$0xff]  ;;  %v9829_v15 = vld [vmem:[#allocation118_spill] sm:$0xff] }
 0x602   :  { %3395 = vmatpush.msra.mxu0 %v9769_v56  ;;  %3434 = vmatpush.msrb.mxu2 %v9770_v39  ;;  %v9830_v56 = vld [vmem:[#allocation119_spill] sm:$0xff]  ;;  %v9831_v39 = vld [vmem:[#allocation128_spill] sm:$0xff] }
 0x603   :  { %3465 = vmatpush.msrb.mxu3 %v9771_v17  ;;  %3426 = vmatpush.msra.mxu1 %v9772_v23  ;;  %v9832_v17 = vld [vmem:[#allocation121_spill] sm:$0xff]  ;;  %v9833_v23 = vld [vmem:[#allocation122_spill] sm:$0xff] }
 0x604   :  { %3396 = vmatpush.msra.mxu0 %v9773_v13  ;;  %3435 = vmatpush.msrb.mxu2 %v9774_v55  ;;  %v9834_v13 = vld [vmem:[#allocation123_spill] sm:$0xff]  ;;  %v9835_v55 = vld [vmem:[#allocation130_spill] sm:$0xff] }
 0x605   :  { %3466 = vmatpush.msrb.mxu3 %v9775_v33  ;;  %3491 = vmatpush.msrb.mxu1 %v9776_v3  ;;  %v9836_v33 = vld [vmem:[#allocation125_spill] sm:$0xff]  ;;  %v9837_v3 = vld [vmem:[#allocation126_spill] sm:$0xff] }
 0x606   :  { %3397 = vmatpush.msra.mxu0 %v9777_v60  ;;  %3436 = vmatpush.msrb.mxu2 %v9779_v22  ;;  %v9838_v60 = vld [vmem:[#allocation127_spill] sm:$0xff]  ;;  %v9840_v22 = vld [vmem:[#allocation129_spill] sm:$0xff] }
 0x607   :  { %3531 = vmatpush.msra.mxu3 %v9778_v2  ;;  %3492 = vmatpush.msrb.mxu1 %v9780_v37  ;;  %v9839_v2 = vld [vmem:[#allocation132_spill] sm:$0xff]  ;;  %v9841_v37 = vld [vmem:[#allocation134_spill] sm:$0xff] }
 0x608   :  { %3398 = vmatpush.msra.mxu0 %v9781_v35  ;;  %3437 = vmatpush.msrb.mxu2 %v9783_v41  ;;  %v9842_v35 = vld [vmem:[#allocation131_spill] sm:$0xff]  ;;  %v9844_v41 = vld [vmem:[#allocation133_spill] sm:$0xff] }
 0x609   :  { %3532 = vmatpush.msra.mxu3 %v9782_v14  ;;  %3493 = vmatpush.msrb.mxu1 %v9784_v29  ;;  %v9843_v14 = vld [vmem:[#allocation136_spill] sm:$0xff]  ;;  %v9845_v29 = vld [vmem:[#allocation138_spill] sm:$0xff] }
 0x60a   :  { %3399 = vmatpush.msra.mxu0 %v9785_v25  ;;  %3438 = vmatpush.msrb.mxu2 %v9787_v36  ;;  %v9846_v25 = vld [vmem:[#allocation135_spill] sm:$0xff]  ;;  %v9848_v36 = vld [vmem:[#allocation137_spill] sm:$0xff] }
 0x60b   :  { %3533 = vmatpush.msra.mxu3 %v9786_v9  ;;  %3494 = vmatpush.msrb.mxu1 %v9788_v34  ;;  %v9847_v9 = vld [vmem:[#allocation140_spill] sm:$0xff]  ;;  %v9849_v34 = vld [vmem:[#allocation142_spill] sm:$0xff] }
 0x60c   :  { %3400 = vmatpush.msra.mxu0 %v9789_v18  ;;  %3439 = vmatpush.msrb.mxu2 %v9791_v59  ;;  %v9850_v18 = vld [vmem:[#allocation139_spill] sm:$0xff]  ;;  %v9852_v59 = vld [vmem:[#allocation141_spill] sm:$0xff] }
 0x60d   :  { %3534 = vmatpush.msra.mxu3 %v9790_v62  ;;  %3495 = vmatpush.msrb.mxu1 %v9792_v51  ;;  %v9851_v62 = vld [vmem:[#allocation144_spill] sm:$0xff]  ;;  %v9853_v51 = vld [vmem:[#allocation146_spill] sm:$0xff] }
 0x60e   :  { %3401 = vmatpush.msra.mxu0 %v9793_v12  ;;  %3440 = vmatpush.msrb.mxu2 %v9795_v5  ;;  %v9854_v12 = vld [vmem:[#allocation143_spill] sm:$0xff]  ;;  %v9856_v5 = vld [vmem:[#allocation145_spill] sm:$0xff] }
 0x60f   :  { %3535 = vmatpush.msra.mxu3 %v9794_v63  ;;  %3496 = vmatpush.msrb.mxu1 %v9796_v38  ;;  %v9855_v63 = vld [vmem:[#allocation148_spill] sm:$0xff]  ;;  %v9857_v38 = vld [vmem:[#allocation150_spill] sm:$0xff] }
 0x610   :  { %3402 = vmatpush.msra.mxu0 %v9797_v1  ;;  %3441 = vmatpush.msrb.mxu2 %v9799_v27  ;;  %v9858_v1 = vld [vmem:[#allocation147_spill] sm:$0xff] }
 0x611   :  { %3536 = vmatpush.msra.mxu3 %v9798_v52  ;;  %3497 = vmatpush.msrb.mxu1 %v9800_v32  ;;  %v9859_v52 = vld [vmem:[#allocation149_spill] sm:$0xff]  ;;  %v9860_v27 = vld [vmem:[#allocation151_spill] sm:$0xff] }
 0x612   :  { %3403 = vmatpush.msra.mxu0 %v9801_v10  ;;  %3442 = vmatpush.msrb.mxu2 %v9803_v19 }
 0x613   :  { %3537 = vmatpush.msra.mxu3 %v9802_v49  ;;  %3498 = vmatpush.msrb.mxu1 %v9804_v26  ;;  %v9861_v26 = vld [vmem:[#allocation32_spill] sm:$0xff] }
 0x614   :  { %3404 = vmatpush.msra.mxu0 %v9805_v7  ;;  %3443 = vmatpush.msrb.mxu2 %v9807_v16 }
 0x615   :  { %3538 = vmatpush.msra.mxu3 %v9806_v40  ;;  %3499 = vmatpush.msrb.mxu1 %v9808_v30 }
 0x616   :  { %3405 = vmatpush.msra.mxu0 %v9809_v21  ;;  %3444 = vmatpush.msrb.mxu2 %v9811_v0  ;;  %v9862_v21 = vld [vmem:[#allocation33_spill] sm:$0xff] }
 0x617   :  { %3539 = vmatpush.msra.mxu3 %v9810_v58  ;;  %3500 = vmatpush.msrb.mxu1 %v9812_v4 }
 0x618   :  { %3406 = vmatpush.msra.mxu0 %v9813_v28  ;;  %3445 = vmatpush.msrb.mxu2 %v9816_v42  ;;  %v3219_v42 = vld [vmem:[#allocation2 + $0x20] sm:$0xc0] }
 0x619   :  { %3540 = vmatpush.msra.mxu3 %v9814_v53  ;;  %3501 = vmatpush.msrb.mxu1 %v9817_v11 }
 0x61a   :  { %3471 = vmatpush.msrb.mxu0 %v9815_v61  ;;  %3446 = vmatpush.msrb.mxu2 %v9820_v50 }
 0x61b   :  { %3541 = vmatpush.msra.mxu3 %v9818_v24  ;;  %3502 = vmatpush.msrb.mxu1 %v9821_v46  ;;  %v9863_v46 = vld [vmem:[#allocation34_spill] sm:$0xff] }
 0x61c   :  { %3472 = vmatpush.msrb.mxu0 %v9819_v44  ;;  %3511 = vmatpush.msra.mxu2 %v9824_v45 }
 0x61d   :  { %3542 = vmatpush.msra.mxu3 %v9822_v31  ;;  %3503 = vmatpush.msrb.mxu1 %v9825_v43 }
 0x61e   :  { %3473 = vmatpush.msrb.mxu0 %v9823_v57  ;;  %3512 = vmatpush.msra.mxu2 %v9828_v20 }
 0x61f   :  { %3543 = vmatpush.msra.mxu3 %v9826_v48  ;;  %3504 = vmatpush.msrb.mxu1 %v9829_v15 }
 0x620   :  { %3474 = vmatpush.msrb.mxu0 %v9827_v6  ;;  %3513 = vmatpush.msra.mxu2 %v9832_v17 }
 0x621   :  { %3544 = vmatpush.msra.mxu3 %v9830_v56  ;;  %3505 = vmatpush.msrb.mxu1 %v9833_v23 }
 0x622   :  { %3475 = vmatpush.msrb.mxu0 %v9831_v39  ;;  %3514 = vmatpush.msra.mxu2 %v9836_v33 }
 0x623   :  { %3545 = vmatpush.msra.mxu3 %v9834_v13  ;;  %3506 = vmatpush.msrb.mxu1 %v9837_v3 }
 0x624   :  { %3476 = vmatpush.msrb.mxu0 %v9835_v55  ;;  %3515 = vmatpush.msra.mxu2 %v9840_v22  ;;  %v3221_v55 = vld [vmem:[#allocation2 + $0x38] sm:$0xc0] }
 0x625   :  { %3546 = vmatpush.msra.mxu3 %v9838_v60 }
 0x626   :  { %3477 = vmatpush.msrb.mxu0 %v9839_v2  ;;  %3516 = vmatpush.msra.mxu2 %v9842_v35 }
 0x628   :  { %3478 = vmatpush.msrb.mxu0 %v9841_v37  ;;  %3517 = vmatpush.msra.mxu2 %v9844_v41 }
 0x62a   :  { %3479 = vmatpush.msrb.mxu0 %v9843_v14  ;;  %3518 = vmatpush.msra.mxu2 %v9846_v25 }
 0x62c   :  { %3480 = vmatpush.msrb.mxu0 %v9845_v29  ;;  %3519 = vmatpush.msra.mxu2 %v9848_v36 }
 0x62e   :  { %3481 = vmatpush.msrb.mxu0 %v9847_v9  ;;  %3520 = vmatpush.msra.mxu2 %v9850_v18 }
 0x630   :  { %3482 = vmatpush.msrb.mxu0 %v9849_v34  ;;  %3521 = vmatpush.msra.mxu2 %v9852_v59 }
 0x632   :  { %3483 = vmatpush.msrb.mxu0 %v9851_v62  ;;  %3522 = vmatpush.msra.mxu2 %v9854_v12 }
 0x634   :  { %3484 = vmatpush.msrb.mxu0 %v9853_v51  ;;  %3523 = vmatpush.msra.mxu2 %v9856_v5 }
 0x636   :  { %3485 = vmatpush.msrb.mxu0 %v9855_v63  ;;  %3524 = vmatpush.msra.mxu2 %v9858_v1 }
 0x638   :  { %3486 = vmatpush.msrb.mxu0 %v9857_v38  ;;  %3525 = vmatpush.msra.mxu2 %v9859_v52  ;;  %v3218_v52 = vld [vmem:[#allocation2 + $0x8] sm:$0xc0] }
 0x63a   :  { %3526 = vmatpush.msra.mxu2 %v9860_v27 }
 0x63d   :  { %v3031_v32 = vpop.f32.mrf.mxu1 }
 0x643   :  { %v3071_v49 = vpop.f32.mrf.mxu3 }
 0x645   :  { %v3111_v19 = vpop.f32.mrf.mxu1 }
 0x64b   :  { %v3151_v53 = vpop.f32.mrf.mxu3 }
 0x655   :  { %v3011_v10 = vpop.f32.mrf.mxu0 }
 0x656   :  { %v3012_v7 = vadd.f32 %v3011_v10, %v9861_v26 }
 0x658   :  { %v3032_v40 = vadd.f32 %v3031_v32, %v3012_v7 }
 0x65a   :  { %v3735_v16 = vmul.f32 -1.442695, %v3032_v40 }
 0x65b   :  { %v3051_v30 = vpop.f32.mrf.mxu2 }
 0x65c   :  { %3965 = vpow2.f32 %v3735_v16  ;;  %v3052_v58 = vadd.f32 %v3051_v30, %v9862_v21 }
 0x65e   :  { %v3072_v0 = vadd.f32 %v3071_v49, %v3052_v58  ;;  %v3091_v15 = vpop.f32.mrf.mxu0 }
 0x65f   :  { %v3259_v4 = vpop.f32.mrf.mxu1  ;;  %v3092_v23 = vadd.f32 %v3091_v15, %v9598_v8 }
 0x660   :  { %v3307_v28 = vrot.slane %v3259_v4, 2  ;;  %v3736_v61 = vmul.f32 -1.442695, %v3072_v0 }
 0x661   :  { %v3112_v37 = vadd.f32 %v3111_v19, %v3092_v23 }
 0x662   :  { %v3315_v11 = vadd.f32 %v3307_v28, %v3219_v42  ;;  %v3966_v24 = vpop.eup %3965  ;;  %3967 = vpow2.f32 %v3736_v61 }
 0x663   :  { %v3157_v44 = vadd.f32 1.0, %v3966_v24 }
 0x664   :  { %v3131_v50 = vpop.f32.mrf.mxu2  ;;  %v3739_v57 = vmul.f32 -1.442695, %v3315_v11 }
 0x665   :  { %v3132_v31 = vadd.f32 %v3131_v50, %v9863_v46  ;;  %3969 = vrcp.f32 %v3157_v44  ;;  %v3169_v29 = vand.u32 2147483648, %v3157_v44  ;;  %vm3163_vm15 = vweird.f32 %v3157_v44 }
 0x666   :  { %v3299_v6 = vpop.f32.mrf.mxu3  ;;  %3971 = vpow2.f32 %v3739_v57  ;;  %v3167_v36 = vand.u32 2147483647, %v3157_v44 }
 0x667   :  { %v3152_v45 = vadd.f32 %v3151_v53, %v3132_v31  ;;  %v3309_v39 = vrot.slane %v3299_v6, 2  ;;  %v3170_v5 = vor.u32 1.1754944e-38, %v3169_v29 }
 0x668   :  { %v3968_v43 = vpop.eup %3967  ;;  %vm3168_vm3 = vcmp.eq.f32.partialorder %v3167_v36, 8.507059e+37 }
 0x669   :  { %v3737_v48 = vmul.f32 -1.442695, %v3152_v45  ;;  %v3176_v20 = vadd.f32 1.0, %v3968_v43  ;;  %v3317_v3 = vadd.f32 %v3309_v39, %v3221_v55  ;;  %v3220_v55 = vld [vmem:[#allocation2 + $0x28] sm:$0xc0] }
 0x66b   :  { %3973 = vpow2.f32 %v3737_v48  ;;  %v3970_v56 = vpop.eup %3969  ;;  %v3740_v25 = vmul.f32 -1.442695, %v3317_v3  ;;  %v3188_v18 = vand.u32 2147483648, %v3176_v20  ;;  %v3186_v63 = vand.u32 2147483647, %v3176_v20 }
 0x66c   :  { %3975 = vrcp.f32 %v3176_v20  ;;  %v3159_v17 = vmul.f32 %v3970_v56, %v3157_v44  ;;  %v3972_v33 = vpop.eup %3971  ;;  %vm3164_vm14 = vweird.f32 %v3970_v56  ;;  %vm3182_vm2 = vweird.f32 %v3176_v20 }
 0x66d   :  { %v8332_v34 = vadd.f32 1.0, %v3972_v33  ;;  %vm8334_vm0 = vmor %vm3163_vm15, %vm3164_vm14  ;;  %v3189_v32 = vor.u32 1.1754944e-38, %v3188_v18  ;;  %vm3187_vm5 = vcmp.eq.f32.partialorder %v3186_v63, 8.507059e+37  ;;  %v3377_v63 = vrot.slane %v8160_v54, 6 }
 0x66e   :  { %v3160_v13 = vsub.f32 1.0, %v3159_v17 }
 0x66f   :  { %vm3346_vm11 = vweird.f32 %v8332_v34 }
 0x670   :  { %v3161_v2 = vmul.f32 %v3970_v56, %v3160_v13 }
 0x671   :  { %v3974_v60 = vpop.eup %3973 }
 0x672   :  { %v3976_v22 = vpop.eup %3975  ;;  %v3196_v35 = vadd.f32 1.0, %v3974_v60  ;;  %v3162_v41 = vadd.f32 %v3970_v56, %v3161_v2 }
 0x673   :  { %v3178_v14 = vmul.f32 %v3976_v22, %v3176_v20  ;;  %vm3183_vm1 = vweird.f32 %v3976_v22 }
 0x674   :  { %3977 = vrcp.f32 %v3196_v35  ;;  %v3166_v12 = vsel %vm8334_vm0, %v3970_v56, %v3162_v41  ;;  %vm3184_vm4 = vmor %vm3182_vm2, %vm3183_vm1  ;;  %v3208_v11 = vand.u32 2147483648, %v3196_v35  ;;  %vm3202_vm7 = vweird.f32 %v3196_v35 }
 0x675   :  { %v3179_v9 = vsub.f32 1.0, %v3178_v14  ;;  %3979 = vtanh.f32 %v3112_v37  ;;  %v3171_v10 = vsel %vm3168_vm3, %v3170_v5, %v3166_v12  ;;  %v3206_v50 = vand.u32 2147483647, %v3196_v35 }
 0x676   :  { %v3239_v59 = vpop.f32.mrf.mxu0  ;;  %3981 = vpow2.f32 %v3740_v25  ;;  %v3209_v45 = vor.u32 1.1754944e-38, %v3208_v11  ;;  %v3352_v37 = vand.u32 2147483648, %v8332_v34  ;;  %v3350_v41 = vand.u32 2147483647, %v8332_v34  ;;  %v3627_v11 = vld [vmem:[#allocation13 + $0x50] sm:$0xff] }
 0x677   :  { %v3180_v51 = vmul.f32 %v3976_v22, %v3179_v9  ;;  %v3306_v38 = vrot.slane %v3239_v59, 2  ;;  %3983 = vrcp.f32 %v8332_v34  ;;  %vm3207_vm9 = vcmp.eq.f32.partialorder %v3206_v50, 8.507059e+37  ;;  %v3624_v50 = vld [vmem:[#allocation13 + $0x38] sm:$0xff] }
 0x678   :  { %v3353_v18 = vor.u32 1.1754944e-38, %v3352_v37  ;;  %vm3351_vm15 = vcmp.eq.f32.partialorder %v3350_v41, 8.507059e+37 }
 0x679   :  { %v3181_v1 = vadd.f32 %v3976_v22, %v3180_v51  ;;  %v3314_v49 = vadd.f32 %v3306_v38, %v3218_v52 }
 0x67a   :  { %v3978_v27 = vpop.eup %3977 }
 0x67b   :  { %v3185_v19 = vsel %vm3184_vm4, %v3976_v22, %v3181_v1  ;;  %v3198_v7 = vmul.f32 %v3978_v27, %v3196_v35  ;;  %v3980_v40 = vpop.eup %3979  ;;  %v3738_v30 = vmul.f32 -1.442695, %v3314_v49  ;;  %vm3203_vm6 = vweird.f32 %v3978_v27 }
 0x67c   :  { %v3190_v16 = vsel %vm3187_vm5, %v3189_v32, %v3185_v19  ;;  %v3213_v0 = vmul.f32 %v3980_v40, %v3171_v10  ;;  %v3982_v28 = vpop.eup %3981  ;;  %vm3204_vm8 = vmor %vm3202_vm7, %vm3203_vm6 }
 0x67d   :  { %v3212_v58 = vmul.f32 %v3190_v16, %v8117_v47  ;;  %v3199_v4 = vsub.f32 1.0, %v3198_v7  ;;  %3985 = vpow2.f32 %v3738_v30  ;;  %v3984_v53 = vpop.eup %3983  ;;  %v8346_v31 = vadd.f32 1.0, %v3982_v28  ;;  %v3279_v6 = vpop.f32.mrf.mxu2  ;;  %v3630_v28 = vld [vmem:[#allocation13 + $0x68] sm:$0xff] }
 0x67e   :  { %v3342_v44 = vmul.f32 %v3984_v53, %v8332_v34  ;;  %v3308_v39 = vrot.slane %v3279_v6, 2  ;;  %vm3347_vm10 = vweird.f32 %v3984_v53  ;;  %v3617_v6 = vld [vmem:[#allocation13] sm:$0xff] }
 0x67f   :  { %v8342_v61 = vadd.f32 %v3213_v0, %v3212_v58  ;;  %v3200_v42 = vmul.f32 %v3978_v27, %v3199_v4  ;;  %vm3348_vm12 = vmor %vm3346_vm11, %vm3347_vm10  ;;  %v3372_v49 = vand.u32 2147483648, %v8346_v31  ;;  %vm3366_vm3 = vweird.f32 %v8346_v31  ;;  %v3632_v0 = vld [vmem:[#allocation13 + $0x78] sm:$0xff]  ;;  %v3631_v4 = vld [vmem:[#allocation13 + $0x70] sm:$0xff] }
 0x680   :  { %v3343_v48 = vsub.f32 1.0, %v3342_v44  ;;  %v3316_v60 = vadd.f32 %v3308_v39, %v3220_v55  ;;  %v3370_v19 = vand.u32 2147483647, %v8346_v31  ;;  %v3625_v44 = vld [vmem:[#allocation13 + $0x40] sm:$0xff] }
 0x681   :  { %3987 = vtanh.f32 %v8342_v61  ;;  %v3201_v24 = vadd.f32 %v3978_v27, %v3200_v42  ;;  %v3373_v7 = vor.u32 1.1754944e-38, %v3372_v49  ;;  %v3628_v42 = vld [vmem:[#allocation13 + $0x58] sm:$0xff] }
 0x682   :  { %3989 = vrcp.f32 %v8346_v31  ;;  %v3344_v17 = vmul.f32 %v3984_v53, %v3343_v48  ;;  %vm3371_vm5 = vcmp.eq.f32.partialorder %v3370_v19, 8.507059e+37  ;;  %v3618_v48 = vld [vmem:[#allocation13 + $0x8] sm:$0xff] }
 0x683   :  { %v3986_v47 = vpop.eup %3985  ;;  %v3205_v57 = vsel %vm3204_vm8, %v3978_v27, %v3201_v24  ;;  %v3626_v24 = vld [vmem:[#allocation13 + $0x48] sm:$0xff] }
 0x684   :  { %v3321_v43 = vadd.f32 1.0, %v3986_v47  ;;  %v3210_v15 = vsel %vm3207_vm9, %v3209_v45, %v3205_v57  ;;  %v3345_v22 = vadd.f32 %v3984_v53, %v3344_v17  ;;  %v3622_v47 = vld [vmem:[#allocation13 + $0x28] sm:$0xff]  ;;  %v3621_v57 = vld [vmem:[#allocation13 + $0x20] sm:$0xff]  ;;  %v3620_v45 = vld [vmem:[#allocation13 + $0x18] sm:$0xff] }
 0x686   :  { %3991 = vrcp.f32 %v3321_v43  ;;  %v3333_v29 = vand.u32 2147483648, %v3321_v43  ;;  %v3331_v9 = vand.u32 2147483647, %v3321_v43  ;;  %v3349_v36 = vsel %vm3348_vm12, %v3984_v53, %v3345_v22  ;;  %v3629_v53 = vld [vmem:[#allocation13 + $0x60] sm:$0xff] }
 0x687   :  { %v3988_v20 = vpop.eup %3987  ;;  %3993 = vtanh.f32 %v3316_v60  ;;  %vm3327_vm14 = vweird.f32 %v3321_v43  ;;  %v3354_v12 = vsel %vm3351_vm15, %v3353_v18, %v3349_v36 }
 0x688   :  { %v3216_v56 = vmul.f32 %v3988_v20, %v3210_v15  ;;  %v3990_v13 = vpop.eup %3989  ;;  %v3334_v51 = vor.u32 1.1754944e-38, %v3333_v29  ;;  %vm3332_vm1 = vcmp.eq.f32.partialorder %v3331_v9, 8.507059e+37  ;;  %v3379_v52 = vmul.f32 %v3377_v63, %v3354_v12  ;;  %v3615_v20 = vld [vmem:[#allocation3] sm:$0xff] }
 0x689   :  { %v3362_v35 = vmul.f32 %v3990_v13, %v8346_v31  ;;  %vm3367_vm2 = vweird.f32 %v3990_v13  ;;  %v3623_v31 = vld [vmem:[#allocation13 + $0x30] sm:$0xff] }
 0x68a   :  { %3217 = vst [vmem:[#allocation3 + $0xc] sm:$0x3] %v3216_v56  ;;  %v3385_v23 = vrot.slane %v3216_v56, 2  ;;  %vm3368_vm4 = vmor %vm3366_vm3, %vm3367_vm2 }
 0x68b   :  { %v3363_v62 = vsub.f32 1.0, %v3362_v35 }
 0x68c   :  { %v3388_v33 = vrot.slane %v3385_v23, 6  ;;  %v3992_v3 = vpop.eup %3991 }
 0x68d   :  { %v3323_v2 = vmul.f32 %v3992_v3, %v3321_v43  ;;  %vm3328_vm13 = vweird.f32 %v3992_v3  ;;  %v3994_v34 = vpop.eup %3993  ;;  %v3364_v1 = vmul.f32 %v3990_v13, %v3363_v62  ;;  %v3619_v43 = vld [vmem:[#allocation13 + $0x10] sm:$0xff] }
 0x68e   :  { %3427 = vmatmul.f32.vlgmr.msra.gmra.mxu1 %v3388_v33  ;;  %3467 = vmatmul.f32.vlgmr.msrb.gmra.mxu3 %v3388_v33  ;;  %vm3329_vm0 = vmor %vm3327_vm14, %vm3328_vm13 }
 0x68f   :  { %v3324_v14 = vsub.f32 1.0, %v3323_v2  ;;  %v3365_v10 = vadd.f32 %v3990_v13, %v3364_v1  ;;  %v3756_v1 = vld [vmem:[%s8384_s7] ss:$0 sm:$0xff]  ;;  %s4807_s7 = smov [#allocation15]  }
 0x690   :  { %s3666_s14 = sshll.u32 %s4807_s7, 4  ;;  %s3667_s14 = int_to_ptr.vmem [resolvable:$true] %s3666_s14 }
 0x691   :  { %v3325_v25 = vmul.f32 %v3992_v3, %v3324_v14  ;;  %v3369_v54 = vsel %vm3368_vm4, %v3990_v13, %v3365_v10 }
 0x692   :  { %v3374_v16 = vsel %vm3371_vm5, %v3373_v7, %v3369_v54 }
 0x693   :  { %v3326_v59 = vadd.f32 %v3992_v3, %v3325_v25 }
 0x695   :  { %v3330_v5 = vsel %vm3329_vm0, %v3992_v3, %v3326_v59 }
 0x696   :  { %3507 = vmatmul.f32.vlgmr.msrb.gmra.mxu1 %v3388_v33  ;;  %3547 = vmatmul.f32.vlgmr.msra.gmra.mxu3 %v3388_v33  ;;  %v3335_v38 = vsel %vm3332_vm1, %v3334_v51, %v3330_v5 }
 0x697   :  { %v3380_v27 = vmul.f32 %v3994_v34, %v3335_v38 }
 0x699   :  { %v3381_v32 = vadd.f32 %v3380_v27, %v3379_v52 }
 0x69b   :  { %3995 = vtanh.f32 %v3381_v32 }
 0x6a1   :  { %v3996_v40 = vpop.eup %3995 }
 0x6a2   :  { %v3383_v30 = vmul.f32 %v3996_v40, %v3374_v16 }
 0x6a4   :  { %v3387_v58 = vrot.slane %v3383_v30, 6 }
 0x6a6   :  { %3407 = vmatmul.f32.vlgmr.msra.gmra.mxu0 %v3387_v58  ;;  %3447 = vmatmul.f32.vlgmr.msrb.gmra.mxu2 %v3387_v58 }
 0x6a7   :  { %3637 = vmatpush.msra.mxu0 %v3632_v0 }
 0x6a9   :  { %3638 = vmatpush.msra.mxu0 %v3631_v4 }
 0x6ab   :  { %3639 = vmatpush.msra.mxu0 %v3630_v28 }
 0x6ad   :  { %3640 = vmatpush.msra.mxu0 %v3629_v53 }
 0x6ae   :  { %3487 = vmatmul.f32.vlgmr.msrb.gmra.mxu0 %v3387_v58  ;;  %3527 = vmatmul.f32.vlgmr.msra.gmra.mxu2 %v3387_v58 }
 0x6af   :  { %3641 = vmatpush.msra.mxu0 %v3628_v42 }
 0x6b1   :  { %3642 = vmatpush.msra.mxu0 %v3627_v11 }
 0x6b3   :  { %3643 = vmatpush.msra.mxu0 %v3626_v24 }
 0x6b5   :  { %3644 = vmatpush.msra.mxu0 %v3625_v44 }
 0x6b7   :  { %3645 = vmatpush.msra.mxu0 %v3624_v50 }
 0x6b9   :  { %3646 = vmatpush.msra.mxu0 %v3623_v31 }
 0x6bb   :  { %3647 = vmatpush.msra.mxu0 %v3622_v47 }
 0x6bd   :  { %3648 = vmatpush.msra.mxu0 %v3621_v57 }
 0x6bf   :  { %3649 = vmatpush.msra.mxu0 %v3620_v45 }
 0x6c1   :  { %3650 = vmatpush.msra.mxu0 %v3619_v43 }
 0x6c3   :  { %3651 = vmatpush.msra.mxu0 %v3618_v48 }
 0x6c5   :  { %3652 = vmatpush.msra.mxu0 %v3617_v6 }
 0x6c6   :  { %3653 = vmatmul.f32.vlgmr.msra.gmra.mxu0 %v3615_v20 }
 0x70b   :  { %v3428_v39 = vpop.f32.mrf.mxu1 }
 0x711   :  { %v3468_v13 = vpop.f32.mrf.mxu3 }
 0x713   :  { %v3508_v51 = vpop.f32.mrf.mxu1 }
 0x719   :  { %v3548_v14 = vpop.f32.mrf.mxu3 }
 0x723   :  { %v3408_v15 = vpop.f32.mrf.mxu0 }
 0x724   :  { %v3409_v56 = vadd.f32 %v3408_v15, %v9861_v26 }
 0x726   :  { %v3429_v17 = vadd.f32 %v3428_v39, %v3409_v56 }
 0x728   :  { %v3741_v23 = vmul.f32 -1.442695, %v3429_v17 }
 0x729   :  { %v3448_v55 = vpop.f32.mrf.mxu2 }
 0x72a   :  { %3997 = vpow2.f32 %v3741_v23  ;;  %v3449_v33 = vadd.f32 %v3448_v55, %v9862_v21 }
 0x72b   :  { %v3488_v9 = vpop.f32.mrf.mxu0 }
 0x72c   :  { %v3469_v3 = vadd.f32 %v3468_v13, %v3449_v33  ;;  %v3489_v21 = vadd.f32 %v3488_v9, %v9598_v8 }
 0x72e   :  { %v3742_v60 = vmul.f32 -1.442695, %v3469_v3  ;;  %v3509_v5 = vadd.f32 %v3508_v51, %v3489_v21 }
 0x730   :  { %v3998_v2 = vpop.eup %3997  ;;  %3999 = vpow2.f32 %v3742_v60 }
 0x731   :  { %v3554_v22 = vadd.f32 1.0, %v3998_v2  ;;  %v3528_v37 = vpop.f32.mrf.mxu2 }
 0x732   :  { %v3529_v35 = vadd.f32 %v3528_v37, %v9863_v46 }
 0x733   :  { %4001 = vrcp.f32 %v3554_v22  ;;  %v3566_v52 = vand.u32 2147483648, %v3554_v22  ;;  %vm3560_vm7 = vweird.f32 %v3554_v22  ;;  %v3564_v32 = vand.u32 2147483647, %v3554_v22 }
 0x734   :  { %v3549_v41 = vadd.f32 %v3548_v14, %v3529_v35 }
 0x735   :  { %v3567_v16 = vor.u32 1.1754944e-38, %v3566_v52  ;;  %vm3565_vm11 = vcmp.eq.f32.partialorder %v3564_v32, 8.507059e+37 }
 0x736   :  { %v4000_v26 = vpop.eup %3999  ;;  %v3743_v29 = vmul.f32 -1.442695, %v3549_v41 }
 0x737   :  { %v3573_v25 = vadd.f32 1.0, %v4000_v26 }
 0x738   :  { %4003 = vpow2.f32 %v3743_v29 }
 0x739   :  { %v4002_v36 = vpop.eup %4001  ;;  %4005 = vrcp.f32 %v3573_v25  ;;  %v3585_v8 = vand.u32 2147483648, %v3573_v25  ;;  %v3583_v49 = vand.u32 2147483647, %v3573_v25  ;;  %vm3579_vm10 = vweird.f32 %v3573_v25 }
 0x73a   :  { %v3556_v18 = vmul.f32 %v4002_v36, %v3554_v22  ;;  %vm3561_vm6 = vweird.f32 %v4002_v36 }
 0x73b   :  { %vm8364_vm8 = vmor %vm3560_vm7, %vm3561_vm6  ;;  %v3586_v0 = vor.u32 1.1754944e-38, %v3585_v8  ;;  %vm3584_vm13 = vcmp.eq.f32.partialorder %v3583_v49, 8.507059e+37 }
 0x73c   :  { %v3557_v62 = vsub.f32 1.0, %v3556_v18 }
 0x73e   :  { %v4004_v59 = vpop.eup %4003  ;;  %v3558_v12 = vmul.f32 %v4002_v36, %v3557_v62 }
 0x73f   :  { %v4006_v63 = vpop.eup %4005  ;;  %v3593_v46 = vadd.f32 1.0, %v4004_v59 }
 0x740   :  { %v3575_v34 = vmul.f32 %v4006_v63, %v3573_v25  ;;  %v3559_v38 = vadd.f32 %v4002_v36, %v3558_v12  ;;  %vm3580_vm9 = vweird.f32 %v4006_v63 }
 0x741   :  { %4007 = vrcp.f32 %v3593_v46  ;;  %vm3581_vm12 = vmor %vm3579_vm10, %vm3580_vm9  ;;  %v3605_v45 = vand.u32 2147483648, %v3593_v46  ;;  %vm3599_vm15 = vweird.f32 %v3593_v46  ;;  %v3603_v43 = vand.u32 2147483647, %v3593_v46 }
 0x742   :  { %v3576_v27 = vsub.f32 1.0, %v3575_v34  ;;  %4009 = vtanh.f32 %v3509_v5  ;;  %v3563_v7 = vsel %vm8364_vm8, %v4002_v36, %v3559_v38 }
 0x743   :  { %v3654_v19 = vpop.f32.mrf.mxu0  ;;  %v3568_v4 = vsel %vm3565_vm11, %v3567_v16, %v3563_v7  ;;  %v3606_v6 = vor.u32 1.1754944e-38, %v3605_v45  ;;  %vm3604_vm1 = vcmp.eq.f32.partialorder %v3603_v43, 8.507059e+37 }
 0x744   :  { %v3577_v54 = vmul.f32 %v4006_v63, %v3576_v27  ;;  %v3655_v40 = vadd.f32 %v3756_v1, %v3654_v19 }
 0x746   :  { %v3578_v30 = vadd.f32 %v4006_v63, %v3577_v54  ;;  %3660 = vst [vmem:[#allocation15] sm:$0xff] %v3655_v40 }
 0x747   :  { %v4008_v58 = vpop.eup %4007 }
 0x748   :  { %v3582_v28 = vsel %vm3581_vm12, %v4006_v63, %v3578_v30  ;;  %v3595_v53 = vmul.f32 %v4008_v58, %v3593_v46  ;;  %v4010_v42 = vpop.eup %4009  ;;  %vm3600_vm14 = vweird.f32 %v4008_v58 }
 0x749   :  { %v3587_v11 = vsel %vm3584_vm13, %v3586_v0, %v3582_v28  ;;  %v3610_v44 = vmul.f32 %v4010_v42, %v3568_v4  ;;  %vm3601_vm0 = vmor %vm3599_vm15, %vm3600_vm14 }
 0x74a   :  { %v3609_v24 = vmul.f32 %v3587_v11, %v8342_v61  ;;  %v3596_v50 = vsub.f32 1.0, %v3595_v53 }
 0x74c   :  { %v3611_v31 = vadd.f32 %v3610_v44, %v3609_v24  ;;  %v3597_v47 = vmul.f32 %v4008_v58, %v3596_v50 }
 0x74e   :  { %4011 = vtanh.f32 %v3611_v31  ;;  %v3598_v57 = vadd.f32 %v4008_v58, %v3597_v47 }
 0x750   :  { %v3602_v48 = vsel %vm3601_vm0, %v4008_v58, %v3598_v57 }
 0x751   :  { %v3607_v15 = vsel %vm3604_vm1, %v3606_v6, %v3602_v48 }
 0x754   :  { %v4012_v20 = vpop.eup %4011 }
 0x755   :  { %v3613_v56 = vmul.f32 %v4012_v20, %v3607_v15 }
 0x757   :  { %3614 = vst [vmem:[#allocation3 + $0xe] sm:$0x3] %v3613_v56 }
 0x75e   :  { %v3616_v39 = vld [vmem:[#allocation3 + $0x8] sm:$0xff] }
 0x75f   :  { %3656 = vmatmul.f32.gmra.mxu0 %v3616_v39 }
 0x7dc   :  { %v3657_v61 = vpop.f32.mrf.mxu0 }
 0x7dd   :  { %v3658_v17 = vadd.f32 %v3756_v1, %v3657_v61 }
 0x7df   :  { %3661 = vst [vmem:[#allocation15 + $0x8] sm:$0xff] %v3658_v17 }
 0x7e0   :  { %3674 = dma.vmem_to_hbm [thread:$0]  %s3667_s14, 256, %s3669_s17, [#allocation6], %s4801_s23, %s4801_s23, %s4802_s24  }
 0x7e1   :  { %4794 = dma.done.wait [#allocation6], 256  }
 0x7e2   :  { %4795 = vsyncadd [#allocation6], 4294967040 }
 0x7e3   :  { %3679 = vsyncpa [#allocation5], 1 }
 0x7e4   :  { %3680 = vsyncpa [#allocation8], 1 }
 0x7e5   :  { %3681 = vsyncpa [#allocation11], 1 }
 0x7e6   :  { %3682 = vsyncpa [#allocation14], 1 }
 0x7e7   :  { %3683 = vsyncpa [#allocation6], 1 }

</bundles_post_ra>
